<compile_context>
chip_gen: v7x
topology: tpu7x:2x2x1
jax: 0.10.0
libtpu: 0.0.40
codegen_flags: <defaults>
</compile_context>

<pallas_src>
import jax
import jax.numpy as jnp
import numpy as np
from jax import lax
from jax.experimental import pallas as pl
from jax.experimental.pallas import tpu as pltpu

jax.config.update("jax_default_matmul_precision", "highest")


def _self_attn_lstm_kernel(x_ref, h0_ref, c0_ref,
                           wih_ref, whh_ref, ball_ref,
                           wq_ref, bq_ref, wkf_ref, bkf_ref, wvf_ref, bvf_ref,
                           mask_ref, rsum_ref, expand_ref, mskh_ref,
                           gamma_ref, wfcf_ref, wfce_ref, bfc_ref,
                           out_ref, s_scr):
    B, H = h0_ref.shape
    LB, _ = x_ref.shape
    L = LB // B
    LH = L * H
    O = wfcf_ref.shape[0]
    f32 = jnp.float32

    # ---- hoisted input projection: one matmul for all timesteps & all 4 gates ----
    xp = jnp.dot(x_ref[...], wih_ref[...], preferred_element_type=f32) + ball_ref[...]  # (B*L, 4H)
    whh = whh_ref[...]                                                                   # (H, 4H)

    # ---- LSTM recurrence: fully unrolled (static L), batch folded into rows --------
    h = h0_ref[...]                                   # (B, H)
    c = c0_ref[...]
    for t in range(L):
        gates = xp[t * B:(t + 1) * B, :] + jnp.dot(h, whh, preferred_element_type=f32)  # (B, 4H)
        i_g = jax.nn.sigmoid(gates[:, 0:H])
        f_g = jax.nn.sigmoid(gates[:, H:2 * H])
        g_g = jnp.tanh(gates[:, 2 * H:3 * H])
        o_g = jax.nn.sigmoid(gates[:, 3 * H:4 * H])
        c = f_g * c + i_g * g_g
        h = o_g * jnp.tanh(c)
        s_scr[t * B:(t + 1) * B, :] = h               # time-major rows (r = t*B + b), contiguous

    s_all = s_scr[...]                                # (B*L, H)

    # ---- 1x1-conv projections (one full-row matmul each) ---------------------------
    q_all = jnp.dot(s_all, wq_ref[...], preferred_element_type=f32) + bq_ref[...]       # (B*L, H)
    kt = jnp.dot(s_all, wkf_ref[...], preferred_element_type=f32) + bkf_ref[...]        # (B*L, L*H)
    vt = jnp.dot(s_all, wvf_ref[...], preferred_element_type=f32) + bvf_ref[...]        # (B*L, L*H)

    # ---- lane-dense flattened k / v per batch via precomputed selectors ------------
    # kf[b, t*H + h] = k(value at time t, batch b, channel h); same flatten order for v.
    msk = mask_ref[...]                                                                  # (B*L, L*H)
    kf = jnp.dot(rsum_ref[...], kt * msk, preferred_element_type=f32)                    # (B, L*H)
    vf = jnp.dot(rsum_ref[...], vt * msk, preferred_element_type=f32)                    # (B, L*H)

    # ---- q as stacked per-batch flat columns (B*L*H, 1) ----------------------------
    rep = jnp.dot(expand_ref[...], q_all, preferred_element_type=f32)                    # (B*L*H, H)
    mskh_all = mskh_ref[...]                                                             # (B*L*H, H)
    qcol = jnp.sum(rep * mskh_all, axis=1, keepdims=True)                                # (B*L*H, 1)

    # ---- fc applied to the LSTM branch for all batches at once ---------------------
    y_lstm = jnp.dot(wfce_ref[...], s_all, preferred_element_type=f32)                   # (B*O, H)

    mskh = mskh_all[0:LH, :]                          # (L*H, H): one-hot channel mask
    gamma = gamma_ref[...]                            # (1, 1)
    wfcf = wfcf_ref[...]                              # (O, L*H): fc cols replicated per channel
    bfc = bfc_ref[...]                                # (O, 1)

    # ---- self-attention per batch: one lane-dense (L*H, L*H) softmax tile ----------
    for b in range(B):
        qc = qcol[b * LH:(b + 1) * LH, :]             # (L*H, 1)
        kfb = kf[b:b + 1, :]                          # (1, L*H)
        vfb = vf[b:b + 1, :]                          # (1, L*H)
        # row max of logits q*k_n is max(q*kmax, q*kmin) since logits are linear in k
        kmax = jnp.max(kfb, axis=1, keepdims=True)    # (1, 1)
        kmin = jnp.min(kfb, axis=1, keepdims=True)    # (1, 1)
        mcol = jnp.maximum(qc * kmax, qc * kmin)      # (L*H, 1)
        p = jnp.exp(qc * kfb - mcol)                  # (L*H, L*H) full-lane exp
        z = jnp.sum(p, axis=1, keepdims=True)         # (L*H, 1) softmax denominator
        num = jnp.sum(p * vfb, axis=1, keepdims=True)  # (L*H, 1) softmax(q k) @ v
        attn = num / z                                # (L*H, 1), flat order n = t*H + h
        # W_fc @ unflatten(attn) without any relayout:
        y_attn = jnp.dot(wfcf, attn * mskh, preferred_element_type=f32)                  # (O, H)
        y = gamma * y_attn + y_lstm[b * O:(b + 1) * O, :] + bfc                          # (O, H)
        out_ref[b * O:(b + 1) * O, :] = y


def init_params(key, input_dim, hidden_dim, output_dim):
    H = hidden_dim
    ks = jax.random.split(key, 12)
    bound_lstm = 1.0 / np.sqrt(H)
    bound_conv = 1.0 / np.sqrt(H)      # Conv1d(H, H, kernel_size=1): fan_in = H
    bound_fc = 1.0 / np.sqrt(H)

    def u(k, shape, bound):
        return jax.random.uniform(k, shape, jnp.float32, -bound, bound)

    return dict(
        W_ih=u(ks[0], (4 * H, input_dim), bound_lstm),
        W_hh=u(ks[1], (4 * H, H), bound_lstm),
        b_ih=u(ks[2], (4 * H,), bound_lstm),
        b_hh=u(ks[3], (4 * H,), bound_lstm),
        W_q=u(ks[4], (H, H), bound_conv), b_q=u(ks[5], (H,), bound_conv),
        W_k=u(ks[6], (H, H), bound_conv), b_k=u(ks[7], (H,), bound_conv),
        W_v=u(ks[8], (H, H), bound_conv), b_v=u(ks[9], (H,), bound_conv),
        gamma=jnp.array(0.5, dtype=jnp.float32),   # PyTorch init is 0; nonzero for a real test
        W_fc=u(ks[10], (output_dim, H), bound_fc),
        b_fc=u(ks[11], (output_dim,), bound_fc),
    )


def self_attention_lstm_forward(x_ncl, hidden, params):
    """x_ncl: (B, input_dim, L) float32; hidden = (h0, c0), each (1, B, H)."""
    h0, c0 = hidden
    B, d_in, L = x_ncl.shape
    H = params["W_hh"].shape[1]
    O = params["W_fc"].shape[0]
    assert L == H, "reference module's fc requires seq_len == hidden_dim"
    LH = L * H
    f32 = jnp.float32

    # ---------------- glue: layouts & packed parameters (no compute) ----------------
    x_tm = jnp.transpose(x_ncl, (2, 0, 1)).reshape(B * L, d_in).astype(f32)  # row = t*B + b
    h0_b = h0[0].astype(f32)                                                 # (B, H)
    c0_b = c0[0].astype(f32)

    wih_all = params["W_ih"].T.astype(f32)                                   # (d_in, 4H), gates i|f|g|o
    whh_all = params["W_hh"].T.astype(f32)                                   # (H, 4H)
    b_all = (params["b_ih"] + params["b_hh"])[None, :].astype(f32)           # (1, 4H)

    wq_t = params["W_q"].T.astype(f32)                                       # (H, H)
    bq = params["b_q"][None, :].astype(f32)                                  # (1, H)
    # "flattened" conv weights: column n = t*H + h maps to channel h (tiled per timestep)
    wk_flat = jnp.tile(params["W_k"].T, (1, L)).astype(f32)                  # (H, L*H)
    bk_flat = jnp.tile(params["b_k"], L)[None, :].astype(f32)                # (1, L*H)
    wv_flat = jnp.tile(params["W_v"].T, (1, L)).astype(f32)
    bv_flat = jnp.tile(params["b_v"], L)[None, :].astype(f32)

    # selector / mask constants (rows r = t*B + b; flat cols n = t*H + h)
    idx_r = jnp.arange(B * L)
    r_t, r_b = idx_r // B, idx_r % B
    n_t = jnp.arange(LH) // H
    idx_m = jnp.arange(B * LH)
    m_b = idx_m // LH
    m_t = (idx_m % LH) // H
    m_h = idx_m % H
    mask_tf = (r_t[:, None] == n_t[None, :]).astype(f32)                     # (B*L, L*H)
    rsum = (jnp.arange(B)[:, None] == r_b[None, :]).astype(f32)              # (B, B*L)
    expand_all = ((m_t[:, None] == r_t[None, :]) &
                  (m_b[:, None] == r_b[None, :])).astype(f32)                # (B*L*H, B*L)
    mskh_all = (m_h[:, None] == jnp.arange(H)[None, :]).astype(f32)          # (B*L*H, H)

    gamma = params["gamma"].reshape(1, 1).astype(f32)
    wfc = params["W_fc"].astype(f32)                                         # (O, L)   [L == H]
    wfc_flat = jnp.repeat(wfc, H, axis=1)                                    # (O, L*H): col n -> wfc[:, n//H]
    wfc_exp = jnp.einsum("bc,ot->botc", jnp.eye(B, dtype=f32), wfc).reshape(B * O, B * L)
    bfc = params["b_fc"][:, None].astype(f32)                                # (O, 1)

    inputs = (x_tm, h0_b, c0_b, wih_all, whh_all, b_all,
              wq_t, bq, wk_flat, bk_flat, wv_flat, bv_flat,
              mask_tf, rsum, expand_all, mskh_all,
              gamma, wfc_flat, wfc_exp, bfc)

    def full_spec(a):
        nd = a.ndim
        return pl.BlockSpec(a.shape, lambda i, _nd=nd: (0,) * _nd)

    out = pl.pallas_call(
        _self_attn_lstm_kernel,
        out_shape=jax.ShapeDtypeStruct((B * O, H), f32),
        grid=(1,),
        in_specs=[full_spec(a) for a in inputs],
        out_specs=pl.BlockSpec((B * O, H), lambda i: (0, 0)),
        scratch_shapes=[pltpu.VMEM((B * L, H), f32)],       # LSTM hidden-state sequence
        compiler_params=pltpu.CompilerParams(
            dimension_semantics=("arbitrary",)),            # batch folded: no batch grid axis
    )(*inputs)

    return jnp.transpose(out.reshape(B, O, H), (0, 2, 1))   # (B, H, O) — matches PyTorch output


def reference_forward(x_ncl, hidden, p):
    """Pure-JAX replica of the PyTorch forward, used to validate the kernel."""
    h0, c0 = hidden
    B, _, L = x_ncl.shape
    H = p["W_hh"].shape[1]
    x = jnp.transpose(x_ncl, (0, 2, 1))                         # (B, L, d_in)
    bias = p["b_ih"] + p["b_hh"]

    def cell(carry, xt):
        h, c = carry
        gates = xt @ p["W_ih"].T + h @ p["W_hh"].T + bias
        i, f, g, o = jnp.split(gates, 4, axis=-1)
        i, f, o = jax.nn.sigmoid(i), jax.nn.sigmoid(f), jax.nn.sigmoid(o)
        g = jnp.tanh(g)
        c = f * c + i * g
        h = o * jnp.tanh(c)
        return (h, c), h

    _, hs = lax.scan(cell, (h0[0], c0[0]), jnp.transpose(x, (1, 0, 2)))
    lstm_perm = jnp.transpose(hs, (1, 2, 0))                    # (B, H, L)

    def conv1x1(w, b):
        return jnp.einsum("oi,bil->bol", w, lstm_perm) + b[None, :, None]

    q = conv1x1(p["W_q"], p["b_q"]).reshape(B, H * L)
    k = conv1x1(p["W_k"], p["b_k"]).reshape(B, H * L)
    v = conv1x1(p["W_v"], p["b_v"]).reshape(B, H * L)
    attn = jax.nn.softmax(q[:, :, None] * k[:, None, :], axis=-1)
    out = jnp.einsum("bmn,bn->bm", attn, v).reshape(B, H, L)
    out = p["gamma"] * out + lstm_perm                          # (B, H, L)
    # .squeeze() is a no-op here (B, H, L all > 1)
    return jnp.einsum("bhl,ol->bho", out, p["W_fc"]) + p["b_fc"]


if __name__ == "__main__":
    B, INPUT_DIM, HIDDEN_DIM, OUTPUT_DIM = 2, 8, 16, 4
    SEQ_LEN = HIDDEN_DIM   # module's fc (after the (b, H, L) view) requires L == hidden_dim

    key = jax.random.PRNGKey(0)
    k_param, k_x = jax.random.split(key)
    params = init_params(k_param, INPUT_DIM, HIDDEN_DIM, OUTPUT_DIM)

    x = jax.random.normal(k_x, (B, INPUT_DIM, SEQ_LEN), jnp.float32)   # PyTorch NCL input
    hidden = (jnp.zeros((1, B, HIDDEN_DIM), jnp.float32),              # init_hidden()
              jnp.zeros((1, B, HIDDEN_DIM), jnp.float32))

    y = jax.block_until_ready(self_attention_lstm_forward(x, hidden, params))
    y_ref = jax.block_until_ready(reference_forward(x, hidden, params))

    assert y.shape == (B, HIDDEN_DIM, OUTPUT_DIM), y.shape
    if not np.allclose(np.asarray(y), np.asarray(y_ref), rtol=2e-3, atol=2e-3):
        max_err = float(np.max(np.abs(np.asarray(y) - np.asarray(y_ref))))
        raise AssertionError(f"kernel mismatch vs pure-JAX reference, max abs err = {max_err}")
    print("KERNEL_OK")
</pallas_src>

<mosaic_0001>
module attributes {stable_mosaic.version = 11 : i64} {
  func.func @_self_attn_lstm_kernel(%arg0: i32, %arg1: memref<32x8xf32, #tpu.memory_space<vmem>>, %arg2: memref<2x16xf32, #tpu.memory_space<vmem>>, %arg3: memref<2x16xf32, #tpu.memory_space<vmem>>, %arg4: memref<8x64xf32, #tpu.memory_space<vmem>>, %arg5: memref<16x64xf32, #tpu.memory_space<vmem>>, %arg6: memref<1x64xf32, #tpu.memory_space<vmem>>, %arg7: memref<16x16xf32, #tpu.memory_space<vmem>>, %arg8: memref<1x16xf32, #tpu.memory_space<vmem>>, %arg9: memref<16x256xf32, #tpu.memory_space<vmem>>, %arg10: memref<1x256xf32, #tpu.memory_space<vmem>>, %arg11: memref<16x256xf32, #tpu.memory_space<vmem>>, %arg12: memref<1x256xf32, #tpu.memory_space<vmem>>, %arg13: memref<32x256xf32, #tpu.memory_space<vmem>>, %arg14: memref<2x32xf32, #tpu.memory_space<vmem>>, %arg15: memref<512x32xf32, #tpu.memory_space<vmem>>, %arg16: memref<512x16xf32, #tpu.memory_space<vmem>>, %arg17: memref<1x1xf32, #tpu.memory_space<vmem>>, %arg18: memref<4x256xf32, #tpu.memory_space<vmem>>, %arg19: memref<8x32xf32, #tpu.memory_space<vmem>>, %arg20: memref<4x1xf32, #tpu.memory_space<vmem>>, %arg21: memref<8x16xf32, #tpu.memory_space<vmem>>, %arg22: memref<32x16xf32, #tpu.memory_space<vmem>>) attributes {dimension_semantics = [#tpu.dimension_semantics<arbitrary>], iteration_bounds = array<i64: 1>, scalar_prefetch = 0 : i64, scratch_operands = 1 : i64, tpu.core_type = #tpu.core_type<tc>, window_params = [{pipeline_mode = #tpu.pipeline_mode<synchronous>, transform_indices = @transform_0, window_bounds = array<i64: 32, 8>}, {pipeline_mode = #tpu.pipeline_mode<synchronous>, transform_indices = @transform_1, window_bounds = array<i64: 2, 16>}, {pipeline_mode = #tpu.pipeline_mode<synchronous>, transform_indices = @transform_2, window_bounds = array<i64: 2, 16>}, {pipeline_mode = #tpu.pipeline_mode<synchronous>, transform_indices = @transform_3, window_bounds = array<i64: 8, 64>}, {pipeline_mode = #tpu.pipeline_mode<synchronous>, transform_indices = @transform_4, window_bounds = array<i64: 16, 64>}, {pipeline_mode = #tpu.pipeline_mode<synchronous>, transform_indices = @transform_5, window_bounds = array<i64: 1, 64>}, {pipeline_mode = #tpu.pipeline_mode<synchronous>, transform_indices = @transform_6, window_bounds = array<i64: 16, 16>}, {pipeline_mode = #tpu.pipeline_mode<synchronous>, transform_indices = @transform_7, window_bounds = array<i64: 1, 16>}, {pipeline_mode = #tpu.pipeline_mode<synchronous>, transform_indices = @transform_8, window_bounds = array<i64: 16, 256>}, {pipeline_mode = #tpu.pipeline_mode<synchronous>, transform_indices = @transform_9, window_bounds = array<i64: 1, 256>}, {pipeline_mode = #tpu.pipeline_mode<synchronous>, transform_indices = @transform_10, window_bounds = array<i64: 16, 256>}, {pipeline_mode = #tpu.pipeline_mode<synchronous>, transform_indices = @transform_11, window_bounds = array<i64: 1, 256>}, {pipeline_mode = #tpu.pipeline_mode<synchronous>, transform_indices = @transform_12, window_bounds = array<i64: 32, 256>}, {pipeline_mode = #tpu.pipeline_mode<synchronous>, transform_indices = @transform_13, window_bounds = array<i64: 2, 32>}, {pipeline_mode = #tpu.pipeline_mode<synchronous>, transform_indices = @transform_14, window_bounds = array<i64: 512, 32>}, {pipeline_mode = #tpu.pipeline_mode<synchronous>, transform_indices = @transform_15, window_bounds = array<i64: 512, 16>}, {pipeline_mode = #tpu.pipeline_mode<synchronous>, transform_indices = @transform_16, window_bounds = array<i64: 1, 1>}, {pipeline_mode = #tpu.pipeline_mode<synchronous>, transform_indices = @transform_17, window_bounds = array<i64: 4, 256>}, {pipeline_mode = #tpu.pipeline_mode<synchronous>, transform_indices = @transform_18, window_bounds = array<i64: 8, 32>}, {pipeline_mode = #tpu.pipeline_mode<synchronous>, transform_indices = @transform_19, window_bounds = array<i64: 4, 1>}, {pipeline_mode = #tpu.pipeline_mode<synchronous>, transform_indices = @transform_20, window_bounds = array<i64: 8, 16>}]} {
    %c0 = arith.constant 0 : index
    %c0_0 = arith.constant 0 : index
    %0 = vector.load %arg1[%c0, %c0_0] : memref<32x8xf32, #tpu.memory_space<vmem>>, vector<32x8xf32>
    %c0_1 = arith.constant 0 : index
    %c0_2 = arith.constant 0 : index
    %1 = vector.load %arg4[%c0_1, %c0_2] : memref<8x64xf32, #tpu.memory_space<vmem>>, vector<8x64xf32>
    %cst = arith.constant dense<0.000000e+00> : vector<32x64xf32>
    %2 = tpu.matmul %0, %1, %cst {dimension_numbers = #tpu.dot_dimension_numbers<[1], [0], [0], [1], [0, 0, 1, 1], [], []>, precision = #tpu.contract_precision<fp32>} : vector<32x8xf32>, vector<8x64xf32>, vector<32x64xf32> -> vector<32x64xf32>
    %c0_3 = arith.constant 0 : index
    %c0_4 = arith.constant 0 : index
    %3 = vector.load %arg6[%c0_3, %c0_4] : memref<1x64xf32, #tpu.memory_space<vmem>>, vector<1x64xf32>
    %4 = vector.broadcast %3 : vector<1x64xf32> to vector<32x64xf32>
    %5 = arith.addf %2, %4 : vector<32x64xf32>
    %c0_5 = arith.constant 0 : index
    %c0_6 = arith.constant 0 : index
    %6 = vector.load %arg5[%c0_5, %c0_6] : memref<16x64xf32, #tpu.memory_space<vmem>>, vector<16x64xf32>
    %c0_7 = arith.constant 0 : index
    %c0_8 = arith.constant 0 : index
    %7 = vector.load %arg2[%c0_7, %c0_8] : memref<2x16xf32, #tpu.memory_space<vmem>>, vector<2x16xf32>
    %c0_9 = arith.constant 0 : index
    %c0_10 = arith.constant 0 : index
    %8 = vector.load %arg3[%c0_9, %c0_10] : memref<2x16xf32, #tpu.memory_space<vmem>>, vector<2x16xf32>
    %9 = vector.extract_strided_slice %5 {offsets = [0, 0], sizes = [2, 64], strides = [1, 1]} : vector<32x64xf32> to vector<2x64xf32>
    %cst_11 = arith.constant dense<0.000000e+00> : vector<2x64xf32>
    %10 = tpu.matmul %7, %6, %cst_11 {dimension_numbers = #tpu.dot_dimension_numbers<[1], [0], [0], [1], [0, 0, 1, 1], [], []>, precision = #tpu.contract_precision<fp32>} : vector<2x16xf32>, vector<16x64xf32>, vector<2x64xf32> -> vector<2x64xf32>
    %11 = arith.addf %9, %10 : vector<2x64xf32>
    %12 = vector.extract_strided_slice %11 {offsets = [0, 0], sizes = [2, 16], strides = [1, 1]} : vector<2x64xf32> to vector<2x16xf32>
    %13 = arith.negf %12 : vector<2x16xf32>
    %14 = math.exp %13 : vector<2x16xf32>
    %cst_12 = arith.constant 1.000000e+00 : f32
    %15 = vector.broadcast %cst_12 : f32 to vector<2x16xf32>
    %16 = arith.addf %15, %14 : vector<2x16xf32>
    %17 = arith.divf %15, %16 : vector<2x16xf32>
    %18 = vector.extract_strided_slice %11 {offsets = [0, 16], sizes = [2, 16], strides = [1, 1]} : vector<2x64xf32> to vector<2x16xf32>
    %19 = arith.negf %18 : vector<2x16xf32>
    %20 = math.exp %19 : vector<2x16xf32>
    %cst_13 = arith.constant 1.000000e+00 : f32
    %21 = vector.broadcast %cst_13 : f32 to vector<2x16xf32>
    %22 = arith.addf %21, %20 : vector<2x16xf32>
    %23 = arith.divf %21, %22 : vector<2x16xf32>
    %24 = vector.extract_strided_slice %11 {offsets = [0, 32], sizes = [2, 16], strides = [1, 1]} : vector<2x64xf32> to vector<2x16xf32>
    %25 = math.tanh %24 : vector<2x16xf32>
    %26 = vector.extract_strided_slice %11 {offsets = [0, 48], sizes = [2, 16], strides = [1, 1]} : vector<2x64xf32> to vector<2x16xf32>
    %27 = arith.negf %26 : vector<2x16xf32>
    %28 = math.exp %27 : vector<2x16xf32>
    %cst_14 = arith.constant 1.000000e+00 : f32
    %29 = vector.broadcast %cst_14 : f32 to vector<2x16xf32>
    %30 = arith.addf %29, %28 : vector<2x16xf32>
    %31 = arith.divf %29, %30 : vector<2x16xf32>
    %32 = arith.mulf %23, %8 : vector<2x16xf32>
    %33 = arith.mulf %17, %25 : vector<2x16xf32>
    %34 = arith.addf %32, %33 : vector<2x16xf32>
    %35 = math.tanh %34 : vector<2x16xf32>
    %36 = arith.mulf %31, %35 : vector<2x16xf32>
    %c0_15 = arith.constant 0 : index
    %c0_16 = arith.constant 0 : index
    %37 = vector.load %arg22[%c0_15, %c0_16] : memref<32x16xf32, #tpu.memory_space<vmem>>, vector<2x16xf32>
    tpu.vector_store %arg22[%c0_15, %c0_16], %36 {strides = array<i32>} : memref<32x16xf32, #tpu.memory_space<vmem>>, vector<2x16xf32>,
    %38 = vector.extract_strided_slice %5 {offsets = [2, 0], sizes = [2, 64], strides = [1, 1]} : vector<32x64xf32> to vector<2x64xf32>
    %cst_17 = arith.constant dense<0.000000e+00> : vector<2x64xf32>
    %39 = tpu.matmul %36, %6, %cst_17 {dimension_numbers = #tpu.dot_dimension_numbers<[1], [0], [0], [1], [0, 0, 1, 1], [], []>, precision = #tpu.contract_precision<fp32>} : vector<2x16xf32>, vector<16x64xf32>, vector<2x64xf32> -> vector<2x64xf32>
    %40 = arith.addf %38, %39 : vector<2x64xf32>
    %41 = vector.extract_strided_slice %40 {offsets = [0, 0], sizes = [2, 16], strides = [1, 1]} : vector<2x64xf32> to vector<2x16xf32>
    %42 = arith.negf %41 : vector<2x16xf32>
    %43 = math.exp %42 : vector<2x16xf32>
    %cst_18 = arith.constant 1.000000e+00 : f32
    %44 = vector.broadcast %cst_18 : f32 to vector<2x16xf32>
    %45 = arith.addf %44, %43 : vector<2x16xf32>
    %46 = arith.divf %44, %45 : vector<2x16xf32>
    %47 = vector.extract_strided_slice %40 {offsets = [0, 16], sizes = [2, 16], strides = [1, 1]} : vector<2x64xf32> to vector<2x16xf32>
    %48 = arith.negf %47 : vector<2x16xf32>
    %49 = math.exp %48 : vector<2x16xf32>
    %cst_19 = arith.constant 1.000000e+00 : f32
    %50 = vector.broadcast %cst_19 : f32 to vector<2x16xf32>
    %51 = arith.addf %50, %49 : vector<2x16xf32>
    %52 = arith.divf %50, %51 : vector<2x16xf32>
    %53 = vector.extract_strided_slice %40 {offsets = [0, 32], sizes = [2, 16], strides = [1, 1]} : vector<2x64xf32> to vector<2x16xf32>
    %54 = math.tanh %53 : vector<2x16xf32>
    %55 = vector.extract_strided_slice %40 {offsets = [0, 48], sizes = [2, 16], strides = [1, 1]} : vector<2x64xf32> to vector<2x16xf32>
    %56 = arith.negf %55 : vector<2x16xf32>
    %57 = math.exp %56 : vector<2x16xf32>
    %cst_20 = arith.constant 1.000000e+00 : f32
    %58 = vector.broadcast %cst_20 : f32 to vector<2x16xf32>
    %59 = arith.addf %58, %57 : vector<2x16xf32>
    %60 = arith.divf %58, %59 : vector<2x16xf32>
    %61 = arith.mulf %52, %34 : vector<2x16xf32>
    %62 = arith.mulf %46, %54 : vector<2x16xf32>
    %63 = arith.addf %61, %62 : vector<2x16xf32>
    %64 = math.tanh %63 : vector<2x16xf32>
    %65 = arith.mulf %60, %64 : vector<2x16xf32>
    %c2 = arith.constant 2 : index
    %c0_21 = arith.constant 0 : index
    %66 = vector.load %arg22[%c2, %c0_21] : memref<32x16xf32, #tpu.memory_space<vmem>>, vector<2x16xf32>
    tpu.vector_store %arg22[%c2, %c0_21], %65 {strides = array<i32>} : memref<32x16xf32, #tpu.memory_space<vmem>>, vector<2x16xf32>,
    %67 = vector.extract_strided_slice %5 {offsets = [4, 0], sizes = [2, 64], strides = [1, 1]} : vector<32x64xf32> to vector<2x64xf32>
    %cst_22 = arith.constant dense<0.000000e+00> : vector<2x64xf32>
    %68 = tpu.matmul %65, %6, %cst_22 {dimension_numbers = #tpu.dot_dimension_numbers<[1], [0], [0], [1], [0, 0, 1, 1], [], []>, precision = #tpu.contract_precision<fp32>} : vector<2x16xf32>, vector<16x64xf32>, vector<2x64xf32> -> vector<2x64xf32>
    %69 = arith.addf %67, %68 : vector<2x64xf32>
    %70 = vector.extract_strided_slice %69 {offsets = [0, 0], sizes = [2, 16], strides = [1, 1]} : vector<2x64xf32> to vector<2x16xf32>
    %71 = arith.negf %70 : vector<2x16xf32>
    %72 = math.exp %71 : vector<2x16xf32>
    %cst_23 = arith.constant 1.000000e+00 : f32
    %73 = vector.broadcast %cst_23 : f32 to vector<2x16xf32>
    %74 = arith.addf %73, %72 : vector<2x16xf32>
    %75 = arith.divf %73, %74 : vector<2x16xf32>
    %76 = vector.extract_strided_slice %69 {offsets = [0, 16], sizes = [2, 16], strides = [1, 1]} : vector<2x64xf32> to vector<2x16xf32>
    %77 = arith.negf %76 : vector<2x16xf32>
    %78 = math.exp %77 : vector<2x16xf32>
    %cst_24 = arith.constant 1.000000e+00 : f32
    %79 = vector.broadcast %cst_24 : f32 to vector<2x16xf32>
    %80 = arith.addf %79, %78 : vector<2x16xf32>
    %81 = arith.divf %79, %80 : vector<2x16xf32>
    %82 = vector.extract_strided_slice %69 {offsets = [0, 32], sizes = [2, 16], strides = [1, 1]} : vector<2x64xf32> to vector<2x16xf32>
    %83 = math.tanh %82 : vector<2x16xf32>
    %84 = vector.extract_strided_slice %69 {offsets = [0, 48], sizes = [2, 16], strides = [1, 1]} : vector<2x64xf32> to vector<2x16xf32>
    %85 = arith.negf %84 : vector<2x16xf32>
    %86 = math.exp %85 : vector<2x16xf32>
    %cst_25 = arith.constant 1.000000e+00 : f32
    %87 = vector.broadcast %cst_25 : f32 to vector<2x16xf32>
    %88 = arith.addf %87, %86 : vector<2x16xf32>
    %89 = arith.divf %87, %88 : vector<2x16xf32>
    %90 = arith.mulf %81, %63 : vector<2x16xf32>
    %91 = arith.mulf %75, %83 : vector<2x16xf32>
    %92 = arith.addf %90, %91 : vector<2x16xf32>
    %93 = math.tanh %92 : vector<2x16xf32>
    %94 = arith.mulf %89, %93 : vector<2x16xf32>
    %c4 = arith.constant 4 : index
    %c0_26 = arith.constant 0 : index
    %95 = vector.load %arg22[%c4, %c0_26] : memref<32x16xf32, #tpu.memory_space<vmem>>, vector<2x16xf32>
    tpu.vector_store %arg22[%c4, %c0_26], %94 {strides = array<i32>} : memref<32x16xf32, #tpu.memory_space<vmem>>, vector<2x16xf32>,
    %96 = vector.extract_strided_slice %5 {offsets = [6, 0], sizes = [2, 64], strides = [1, 1]} : vector<32x64xf32> to vector<2x64xf32>
    %cst_27 = arith.constant dense<0.000000e+00> : vector<2x64xf32>
    %97 = tpu.matmul %94, %6, %cst_27 {dimension_numbers = #tpu.dot_dimension_numbers<[1], [0], [0], [1], [0, 0, 1, 1], [], []>, precision = #tpu.contract_precision<fp32>} : vector<2x16xf32>, vector<16x64xf32>, vector<2x64xf32> -> vector<2x64xf32>
    %98 = arith.addf %96, %97 : vector<2x64xf32>
    %99 = vector.extract_strided_slice %98 {offsets = [0, 0], sizes = [2, 16], strides = [1, 1]} : vector<2x64xf32> to vector<2x16xf32>
    %100 = arith.negf %99 : vector<2x16xf32>
    %101 = math.exp %100 : vector<2x16xf32>
    %cst_28 = arith.constant 1.000000e+00 : f32
    %102 = vector.broadcast %cst_28 : f32 to vector<2x16xf32>
    %103 = arith.addf %102, %101 : vector<2x16xf32>
    %104 = arith.divf %102, %103 : vector<2x16xf32>
    %105 = vector.extract_strided_slice %98 {offsets = [0, 16], sizes = [2, 16], strides = [1, 1]} : vector<2x64xf32> to vector<2x16xf32>
    %106 = arith.negf %105 : vector<2x16xf32>
    %107 = math.exp %106 : vector<2x16xf32>
    %cst_29 = arith.constant 1.000000e+00 : f32
    %108 = vector.broadcast %cst_29 : f32 to vector<2x16xf32>
    %109 = arith.addf %108, %107 : vector<2x16xf32>
    %110 = arith.divf %108, %109 : vector<2x16xf32>
    %111 = vector.extract_strided_slice %98 {offsets = [0, 32], sizes = [2, 16], strides = [1, 1]} : vector<2x64xf32> to vector<2x16xf32>
    %112 = math.tanh %111 : vector<2x16xf32>
    %113 = vector.extract_strided_slice %98 {offsets = [0, 48], sizes = [2, 16], strides = [1, 1]} : vector<2x64xf32> to vector<2x16xf32>
    %114 = arith.negf %113 : vector<2x16xf32>
    %115 = math.exp %114 : vector<2x16xf32>
    %cst_30 = arith.constant 1.000000e+00 : f32
    %116 = vector.broadcast %cst_30 : f32 to vector<2x16xf32>
    %117 = arith.addf %116, %115 : vector<2x16xf32>
    %118 = arith.divf %116, %117 : vector<2x16xf32>
    %119 = arith.mulf %110, %92 : vector<2x16xf32>
    %120 = arith.mulf %104, %112 : vector<2x16xf32>
    %121 = arith.addf %119, %120 : vector<2x16xf32>
    %122 = math.tanh %121 : vector<2x16xf32>
    %123 = arith.mulf %118, %122 : vector<2x16xf32>
    %c6 = arith.constant 6 : index
    %c0_31 = arith.constant 0 : index
    %124 = vector.load %arg22[%c6, %c0_31] : memref<32x16xf32, #tpu.memory_space<vmem>>, vector<2x16xf32>
    tpu.vector_store %arg22[%c6, %c0_31], %123 {strides = array<i32>} : memref<32x16xf32, #tpu.memory_space<vmem>>, vector<2x16xf32>,
    %125 = vector.extract_strided_slice %5 {offsets = [8, 0], sizes = [2, 64], strides = [1, 1]} : vector<32x64xf32> to vector<2x64xf32>
    %cst_32 = arith.constant dense<0.000000e+00> : vector<2x64xf32>
    %126 = tpu.matmul %123, %6, %cst_32 {dimension_numbers = #tpu.dot_dimension_numbers<[1], [0], [0], [1], [0, 0, 1, 1], [], []>, precision = #tpu.contract_precision<fp32>} : vector<2x16xf32>, vector<16x64xf32>, vector<2x64xf32> -> vector<2x64xf32>
    %127 = arith.addf %125, %126 : vector<2x64xf32>
    %128 = vector.extract_strided_slice %127 {offsets = [0, 0], sizes = [2, 16], strides = [1, 1]} : vector<2x64xf32> to vector<2x16xf32>
    %129 = arith.negf %128 : vector<2x16xf32>
    %130 = math.exp %129 : vector<2x16xf32>
    %cst_33 = arith.constant 1.000000e+00 : f32
    %131 = vector.broadcast %cst_33 : f32 to vector<2x16xf32>
    %132 = arith.addf %131, %130 : vector<2x16xf32>
    %133 = arith.divf %131, %132 : vector<2x16xf32>
    %134 = vector.extract_strided_slice %127 {offsets = [0, 16], sizes = [2, 16], strides = [1, 1]} : vector<2x64xf32> to vector<2x16xf32>
    %135 = arith.negf %134 : vector<2x16xf32>
    %136 = math.exp %135 : vector<2x16xf32>
    %cst_34 = arith.constant 1.000000e+00 : f32
    %137 = vector.broadcast %cst_34 : f32 to vector<2x16xf32>
    %138 = arith.addf %137, %136 : vector<2x16xf32>
    %139 = arith.divf %137, %138 : vector<2x16xf32>
    %140 = vector.extract_strided_slice %127 {offsets = [0, 32], sizes = [2, 16], strides = [1, 1]} : vector<2x64xf32> to vector<2x16xf32>
    %141 = math.tanh %140 : vector<2x16xf32>
    %142 = vector.extract_strided_slice %127 {offsets = [0, 48], sizes = [2, 16], strides = [1, 1]} : vector<2x64xf32> to vector<2x16xf32>
    %143 = arith.negf %142 : vector<2x16xf32>
    %144 = math.exp %143 : vector<2x16xf32>
    %cst_35 = arith.constant 1.000000e+00 : f32
    %145 = vector.broadcast %cst_35 : f32 to vector<2x16xf32>
    %146 = arith.addf %145, %144 : vector<2x16xf32>
    %147 = arith.divf %145, %146 : vector<2x16xf32>
    %148 = arith.mulf %139, %121 : vector<2x16xf32>
    %149 = arith.mulf %133, %141 : vector<2x16xf32>
    %150 = arith.addf %148, %149 : vector<2x16xf32>
    %151 = math.tanh %150 : vector<2x16xf32>
    %152 = arith.mulf %147, %151 : vector<2x16xf32>
    %c8 = arith.constant 8 : index
    %c0_36 = arith.constant 0 : index
    %153 = vector.load %arg22[%c8, %c0_36] : memref<32x16xf32, #tpu.memory_space<vmem>>, vector<2x16xf32>
    tpu.vector_store %arg22[%c8, %c0_36], %152 {strides = array<i32>} : memref<32x16xf32, #tpu.memory_space<vmem>>, vector<2x16xf32>,
    %154 = vector.extract_strided_slice %5 {offsets = [10, 0], sizes = [2, 64], strides = [1, 1]} : vector<32x64xf32> to vector<2x64xf32>
    %cst_37 = arith.constant dense<0.000000e+00> : vector<2x64xf32>
    %155 = tpu.matmul %152, %6, %cst_37 {dimension_numbers = #tpu.dot_dimension_numbers<[1], [0], [0], [1], [0, 0, 1, 1], [], []>, precision = #tpu.contract_precision<fp32>} : vector<2x16xf32>, vector<16x64xf32>, vector<2x64xf32> -> vector<2x64xf32>
    %156 = arith.addf %154, %155 : vector<2x64xf32>
    %157 = vector.extract_strided_slice %156 {offsets = [0, 0], sizes = [2, 16], strides = [1, 1]} : vector<2x64xf32> to vector<2x16xf32>
    %158 = arith.negf %157 : vector<2x16xf32>
    %159 = math.exp %158 : vector<2x16xf32>
    %cst_38 = arith.constant 1.000000e+00 : f32
    %160 = vector.broadcast %cst_38 : f32 to vector<2x16xf32>
    %161 = arith.addf %160, %159 : vector<2x16xf32>
    %162 = arith.divf %160, %161 : vector<2x16xf32>
    %163 = vector.extract_strided_slice %156 {offsets = [0, 16], sizes = [2, 16], strides = [1, 1]} : vector<2x64xf32> to vector<2x16xf32>
    %164 = arith.negf %163 : vector<2x16xf32>
    %165 = math.exp %164 : vector<2x16xf32>
    %cst_39 = arith.constant 1.000000e+00 : f32
    %166 = vector.broadcast %cst_39 : f32 to vector<2x16xf32>
    %167 = arith.addf %166, %165 : vector<2x16xf32>
    %168 = arith.divf %166, %167 : vector<2x16xf32>
    %169 = vector.extract_strided_slice %156 {offsets = [0, 32], sizes = [2, 16], strides = [1, 1]} : vector<2x64xf32> to vector<2x16xf32>
    %170 = math.tanh %169 : vector<2x16xf32>
    %171 = vector.extract_strided_slice %156 {offsets = [0, 48], sizes = [2, 16], strides = [1, 1]} : vector<2x64xf32> to vector<2x16xf32>
    %172 = arith.negf %171 : vector<2x16xf32>
    %173 = math.exp %172 : vector<2x16xf32>
    %cst_40 = arith.constant 1.000000e+00 : f32
    %174 = vector.broadcast %cst_40 : f32 to vector<2x16xf32>
    %175 = arith.addf %174, %173 : vector<2x16xf32>
    %176 = arith.divf %174, %175 : vector<2x16xf32>
    %177 = arith.mulf %168, %150 : vector<2x16xf32>
    %178 = arith.mulf %162, %170 : vector<2x16xf32>
    %179 = arith.addf %177, %178 : vector<2x16xf32>
    %180 = math.tanh %179 : vector<2x16xf32>
    %181 = arith.mulf %176, %180 : vector<2x16xf32>
    %c10 = arith.constant 10 : index
    %c0_41 = arith.constant 0 : index
    %182 = vector.load %arg22[%c10, %c0_41] : memref<32x16xf32, #tpu.memory_space<vmem>>, vector<2x16xf32>
    tpu.vector_store %arg22[%c10, %c0_41], %181 {strides = array<i32>} : memref<32x16xf32, #tpu.memory_space<vmem>>, vector<2x16xf32>,
    %183 = vector.extract_strided_slice %5 {offsets = [12, 0], sizes = [2, 64], strides = [1, 1]} : vector<32x64xf32> to vector<2x64xf32>
    %cst_42 = arith.constant dense<0.000000e+00> : vector<2x64xf32>
    %184 = tpu.matmul %181, %6, %cst_42 {dimension_numbers = #tpu.dot_dimension_numbers<[1], [0], [0], [1], [0, 0, 1, 1], [], []>, precision = #tpu.contract_precision<fp32>} : vector<2x16xf32>, vector<16x64xf32>, vector<2x64xf32> -> vector<2x64xf32>
    %185 = arith.addf %183, %184 : vector<2x64xf32>
    %186 = vector.extract_strided_slice %185 {offsets = [0, 0], sizes = [2, 16], strides = [1, 1]} : vector<2x64xf32> to vector<2x16xf32>
    %187 = arith.negf %186 : vector<2x16xf32>
    %188 = math.exp %187 : vector<2x16xf32>
    %cst_43 = arith.constant 1.000000e+00 : f32
    %189 = vector.broadcast %cst_43 : f32 to vector<2x16xf32>
    %190 = arith.addf %189, %188 : vector<2x16xf32>
    %191 = arith.divf %189, %190 : vector<2x16xf32>
    %192 = vector.extract_strided_slice %185 {offsets = [0, 16], sizes = [2, 16], strides = [1, 1]} : vector<2x64xf32> to vector<2x16xf32>
    %193 = arith.negf %192 : vector<2x16xf32>
    %194 = math.exp %193 : vector<2x16xf32>
    %cst_44 = arith.constant 1.000000e+00 : f32
    %195 = vector.broadcast %cst_44 : f32 to vector<2x16xf32>
    %196 = arith.addf %195, %194 : vector<2x16xf32>
    %197 = arith.divf %195, %196 : vector<2x16xf32>
    %198 = vector.extract_strided_slice %185 {offsets = [0, 32], sizes = [2, 16], strides = [1, 1]} : vector<2x64xf32> to vector<2x16xf32>
    %199 = math.tanh %198 : vector<2x16xf32>
    %200 = vector.extract_strided_slice %185 {offsets = [0, 48], sizes = [2, 16], strides = [1, 1]} : vector<2x64xf32> to vector<2x16xf32>
    %201 = arith.negf %200 : vector<2x16xf32>
    %202 = math.exp %201 : vector<2x16xf32>
    %cst_45 = arith.constant 1.000000e+00 : f32
    %203 = vector.broadcast %cst_45 : f32 to vector<2x16xf32>
    %204 = arith.addf %203, %202 : vector<2x16xf32>
    %205 = arith.divf %203, %204 : vector<2x16xf32>
    %206 = arith.mulf %197, %179 : vector<2x16xf32>
    %207 = arith.mulf %191, %199 : vector<2x16xf32>
    %208 = arith.addf %206, %207 : vector<2x16xf32>
    %209 = math.tanh %208 : vector<2x16xf32>
    %210 = arith.mulf %205, %209 : vector<2x16xf32>
    %c12 = arith.constant 12 : index
    %c0_46 = arith.constant 0 : index
    %211 = vector.load %arg22[%c12, %c0_46] : memref<32x16xf32, #tpu.memory_space<vmem>>, vector<2x16xf32>
    tpu.vector_store %arg22[%c12, %c0_46], %210 {strides = array<i32>} : memref<32x16xf32, #tpu.memory_space<vmem>>, vector<2x16xf32>,
    %212 = vector.extract_strided_slice %5 {offsets = [14, 0], sizes = [2, 64], strides = [1, 1]} : vector<32x64xf32> to vector<2x64xf32>
    %cst_47 = arith.constant dense<0.000000e+00> : vector<2x64xf32>
    %213 = tpu.matmul %210, %6, %cst_47 {dimension_numbers = #tpu.dot_dimension_numbers<[1], [0], [0], [1], [0, 0, 1, 1], [], []>, precision = #tpu.contract_precision<fp32>} : vector<2x16xf32>, vector<16x64xf32>, vector<2x64xf32> -> vector<2x64xf32>
    %214 = arith.addf %212, %213 : vector<2x64xf32>
    %215 = vector.extract_strided_slice %214 {offsets = [0, 0], sizes = [2, 16], strides = [1, 1]} : vector<2x64xf32> to vector<2x16xf32>
    %216 = arith.negf %215 : vector<2x16xf32>
    %217 = math.exp %216 : vector<2x16xf32>
    %cst_48 = arith.constant 1.000000e+00 : f32
    %218 = vector.broadcast %cst_48 : f32 to vector<2x16xf32>
    %219 = arith.addf %218, %217 : vector<2x16xf32>
    %220 = arith.divf %218, %219 : vector<2x16xf32>
    %221 = vector.extract_strided_slice %214 {offsets = [0, 16], sizes = [2, 16], strides = [1, 1]} : vector<2x64xf32> to vector<2x16xf32>
    %222 = arith.negf %221 : vector<2x16xf32>
    %223 = math.exp %222 : vector<2x16xf32>
    %cst_49 = arith.constant 1.000000e+00 : f32
    %224 = vector.broadcast %cst_49 : f32 to vector<2x16xf32>
    %225 = arith.addf %224, %223 : vector<2x16xf32>
    %226 = arith.divf %224, %225 : vector<2x16xf32>
    %227 = vector.extract_strided_slice %214 {offsets = [0, 32], sizes = [2, 16], strides = [1, 1]} : vector<2x64xf32> to vector<2x16xf32>
    %228 = math.tanh %227 : vector<2x16xf32>
    %229 = vector.extract_strided_slice %214 {offsets = [0, 48], sizes = [2, 16], strides = [1, 1]} : vector<2x64xf32> to vector<2x16xf32>
    %230 = arith.negf %229 : vector<2x16xf32>
    %231 = math.exp %230 : vector<2x16xf32>
    %cst_50 = arith.constant 1.000000e+00 : f32
    %232 = vector.broadcast %cst_50 : f32 to vector<2x16xf32>
    %233 = arith.addf %232, %231 : vector<2x16xf32>
    %234 = arith.divf %232, %233 : vector<2x16xf32>
    %235 = arith.mulf %226, %208 : vector<2x16xf32>
    %236 = arith.mulf %220, %228 : vector<2x16xf32>
    %237 = arith.addf %235, %236 : vector<2x16xf32>
    %238 = math.tanh %237 : vector<2x16xf32>
    %239 = arith.mulf %234, %238 : vector<2x16xf32>
    %c14 = arith.constant 14 : index
    %c0_51 = arith.constant 0 : index
    %240 = vector.load %arg22[%c14, %c0_51] : memref<32x16xf32, #tpu.memory_space<vmem>>, vector<2x16xf32>
    tpu.vector_store %arg22[%c14, %c0_51], %239 {strides = array<i32>} : memref<32x16xf32, #tpu.memory_space<vmem>>, vector<2x16xf32>,
    %241 = vector.extract_strided_slice %5 {offsets = [16, 0], sizes = [2, 64], strides = [1, 1]} : vector<32x64xf32> to vector<2x64xf32>
    %cst_52 = arith.constant dense<0.000000e+00> : vector<2x64xf32>
    %242 = tpu.matmul %239, %6, %cst_52 {dimension_numbers = #tpu.dot_dimension_numbers<[1], [0], [0], [1], [0, 0, 1, 1], [], []>, precision = #tpu.contract_precision<fp32>} : vector<2x16xf32>, vector<16x64xf32>, vector<2x64xf32> -> vector<2x64xf32>
    %243 = arith.addf %241, %242 : vector<2x64xf32>
    %244 = vector.extract_strided_slice %243 {offsets = [0, 0], sizes = [2, 16], strides = [1, 1]} : vector<2x64xf32> to vector<2x16xf32>
    %245 = arith.negf %244 : vector<2x16xf32>
    %246 = math.exp %245 : vector<2x16xf32>
    %cst_53 = arith.constant 1.000000e+00 : f32
    %247 = vector.broadcast %cst_53 : f32 to vector<2x16xf32>
    %248 = arith.addf %247, %246 : vector<2x16xf32>
    %249 = arith.divf %247, %248 : vector<2x16xf32>
    %250 = vector.extract_strided_slice %243 {offsets = [0, 16], sizes = [2, 16], strides = [1, 1]} : vector<2x64xf32> to vector<2x16xf32>
    %251 = arith.negf %250 : vector<2x16xf32>
    %252 = math.exp %251 : vector<2x16xf32>
    %cst_54 = arith.constant 1.000000e+00 : f32
    %253 = vector.broadcast %cst_54 : f32 to vector<2x16xf32>
    %254 = arith.addf %253, %252 : vector<2x16xf32>
    %255 = arith.divf %253, %254 : vector<2x16xf32>
    %256 = vector.extract_strided_slice %243 {offsets = [0, 32], sizes = [2, 16], strides = [1, 1]} : vector<2x64xf32> to vector<2x16xf32>
    %257 = math.tanh %256 : vector<2x16xf32>
    %258 = vector.extract_strided_slice %243 {offsets = [0, 48], sizes = [2, 16], strides = [1, 1]} : vector<2x64xf32> to vector<2x16xf32>
    %259 = arith.negf %258 : vector<2x16xf32>
    %260 = math.exp %259 : vector<2x16xf32>
    %cst_55 = arith.constant 1.000000e+00 : f32
    %261 = vector.broadcast %cst_55 : f32 to vector<2x16xf32>
    %262 = arith.addf %261, %260 : vector<2x16xf32>
    %263 = arith.divf %261, %262 : vector<2x16xf32>
    %264 = arith.mulf %255, %237 : vector<2x16xf32>
    %265 = arith.mulf %249, %257 : vector<2x16xf32>
    %266 = arith.addf %264, %265 : vector<2x16xf32>
    %267 = math.tanh %266 : vector<2x16xf32>
    %268 = arith.mulf %263, %267 : vector<2x16xf32>
    %c16 = arith.constant 16 : index
    %c0_56 = arith.constant 0 : index
    %269 = vector.load %arg22[%c16, %c0_56] : memref<32x16xf32, #tpu.memory_space<vmem>>, vector<2x16xf32>
    tpu.vector_store %arg22[%c16, %c0_56], %268 {strides = array<i32>} : memref<32x16xf32, #tpu.memory_space<vmem>>, vector<2x16xf32>,
    %270 = vector.extract_strided_slice %5 {offsets = [18, 0], sizes = [2, 64], strides = [1, 1]} : vector<32x64xf32> to vector<2x64xf32>
    %cst_57 = arith.constant dense<0.000000e+00> : vector<2x64xf32>
    %271 = tpu.matmul %268, %6, %cst_57 {dimension_numbers = #tpu.dot_dimension_numbers<[1], [0], [0], [1], [0, 0, 1, 1], [], []>, precision = #tpu.contract_precision<fp32>} : vector<2x16xf32>, vector<16x64xf32>, vector<2x64xf32> -> vector<2x64xf32>
    %272 = arith.addf %270, %271 : vector<2x64xf32>
    %273 = vector.extract_strided_slice %272 {offsets = [0, 0], sizes = [2, 16], strides = [1, 1]} : vector<2x64xf32> to vector<2x16xf32>
    %274 = arith.negf %273 : vector<2x16xf32>
    %275 = math.exp %274 : vector<2x16xf32>
    %cst_58 = arith.constant 1.000000e+00 : f32
    %276 = vector.broadcast %cst_58 : f32 to vector<2x16xf32>
    %277 = arith.addf %276, %275 : vector<2x16xf32>
    %278 = arith.divf %276, %277 : vector<2x16xf32>
    %279 = vector.extract_strided_slice %272 {offsets = [0, 16], sizes = [2, 16], strides = [1, 1]} : vector<2x64xf32> to vector<2x16xf32>
    %280 = arith.negf %279 : vector<2x16xf32>
    %281 = math.exp %280 : vector<2x16xf32>
    %cst_59 = arith.constant 1.000000e+00 : f32
    %282 = vector.broadcast %cst_59 : f32 to vector<2x16xf32>
    %283 = arith.addf %282, %281 : vector<2x16xf32>
    %284 = arith.divf %282, %283 : vector<2x16xf32>
    %285 = vector.extract_strided_slice %272 {offsets = [0, 32], sizes = [2, 16], strides = [1, 1]} : vector<2x64xf32> to vector<2x16xf32>
    %286 = math.tanh %285 : vector<2x16xf32>
    %287 = vector.extract_strided_slice %272 {offsets = [0, 48], sizes = [2, 16], strides = [1, 1]} : vector<2x64xf32> to vector<2x16xf32>
    %288 = arith.negf %287 : vector<2x16xf32>
    %289 = math.exp %288 : vector<2x16xf32>
    %cst_60 = arith.constant 1.000000e+00 : f32
    %290 = vector.broadcast %cst_60 : f32 to vector<2x16xf32>
    %291 = arith.addf %290, %289 : vector<2x16xf32>
    %292 = arith.divf %290, %291 : vector<2x16xf32>
    %293 = arith.mulf %284, %266 : vector<2x16xf32>
    %294 = arith.mulf %278, %286 : vector<2x16xf32>
    %295 = arith.addf %293, %294 : vector<2x16xf32>
    %296 = math.tanh %295 : vector<2x16xf32>
    %297 = arith.mulf %292, %296 : vector<2x16xf32>
    %c18 = arith.constant 18 : index
    %c0_61 = arith.constant 0 : index
    %298 = vector.load %arg22[%c18, %c0_61] : memref<32x16xf32, #tpu.memory_space<vmem>>, vector<2x16xf32>
    tpu.vector_store %arg22[%c18, %c0_61], %297 {strides = array<i32>} : memref<32x16xf32, #tpu.memory_space<vmem>>, vector<2x16xf32>,
    %299 = vector.extract_strided_slice %5 {offsets = [20, 0], sizes = [2, 64], strides = [1, 1]} : vector<32x64xf32> to vector<2x64xf32>
    %cst_62 = arith.constant dense<0.000000e+00> : vector<2x64xf32>
    %300 = tpu.matmul %297, %6, %cst_62 {dimension_numbers = #tpu.dot_dimension_numbers<[1], [0], [0], [1], [0, 0, 1, 1], [], []>, precision = #tpu.contract_precision<fp32>} : vector<2x16xf32>, vector<16x64xf32>, vector<2x64xf32> -> vector<2x64xf32>
    %301 = arith.addf %299, %300 : vector<2x64xf32>
    %302 = vector.extract_strided_slice %301 {offsets = [0, 0], sizes = [2, 16], strides = [1, 1]} : vector<2x64xf32> to vector<2x16xf32>
    %303 = arith.negf %302 : vector<2x16xf32>
    %304 = math.exp %303 : vector<2x16xf32>
    %cst_63 = arith.constant 1.000000e+00 : f32
    %305 = vector.broadcast %cst_63 : f32 to vector<2x16xf32>
    %306 = arith.addf %305, %304 : vector<2x16xf32>
    %307 = arith.divf %305, %306 : vector<2x16xf32>
    %308 = vector.extract_strided_slice %301 {offsets = [0, 16], sizes = [2, 16], strides = [1, 1]} : vector<2x64xf32> to vector<2x16xf32>
    %309 = arith.negf %308 : vector<2x16xf32>
    %310 = math.exp %309 : vector<2x16xf32>
    %cst_64 = arith.constant 1.000000e+00 : f32
    %311 = vector.broadcast %cst_64 : f32 to vector<2x16xf32>
    %312 = arith.addf %311, %310 : vector<2x16xf32>
    %313 = arith.divf %311, %312 : vector<2x16xf32>
    %314 = vector.extract_strided_slice %301 {offsets = [0, 32], sizes = [2, 16], strides = [1, 1]} : vector<2x64xf32> to vector<2x16xf32>
    %315 = math.tanh %314 : vector<2x16xf32>
    %316 = vector.extract_strided_slice %301 {offsets = [0, 48], sizes = [2, 16], strides = [1, 1]} : vector<2x64xf32> to vector<2x16xf32>
    %317 = arith.negf %316 : vector<2x16xf32>
    %318 = math.exp %317 : vector<2x16xf32>
    %cst_65 = arith.constant 1.000000e+00 : f32
    %319 = vector.broadcast %cst_65 : f32 to vector<2x16xf32>
    %320 = arith.addf %319, %318 : vector<2x16xf32>
    %321 = arith.divf %319, %320 : vector<2x16xf32>
    %322 = arith.mulf %313, %295 : vector<2x16xf32>
    %323 = arith.mulf %307, %315 : vector<2x16xf32>
    %324 = arith.addf %322, %323 : vector<2x16xf32>
    %325 = math.tanh %324 : vector<2x16xf32>
    %326 = arith.mulf %321, %325 : vector<2x16xf32>
    %c20 = arith.constant 20 : index
    %c0_66 = arith.constant 0 : index
    %327 = vector.load %arg22[%c20, %c0_66] : memref<32x16xf32, #tpu.memory_space<vmem>>, vector<2x16xf32>
    tpu.vector_store %arg22[%c20, %c0_66], %326 {strides = array<i32>} : memref<32x16xf32, #tpu.memory_space<vmem>>, vector<2x16xf32>,
    %328 = vector.extract_strided_slice %5 {offsets = [22, 0], sizes = [2, 64], strides = [1, 1]} : vector<32x64xf32> to vector<2x64xf32>
    %cst_67 = arith.constant dense<0.000000e+00> : vector<2x64xf32>
    %329 = tpu.matmul %326, %6, %cst_67 {dimension_numbers = #tpu.dot_dimension_numbers<[1], [0], [0], [1], [0, 0, 1, 1], [], []>, precision = #tpu.contract_precision<fp32>} : vector<2x16xf32>, vector<16x64xf32>, vector<2x64xf32> -> vector<2x64xf32>
    %330 = arith.addf %328, %329 : vector<2x64xf32>
    %331 = vector.extract_strided_slice %330 {offsets = [0, 0], sizes = [2, 16], strides = [1, 1]} : vector<2x64xf32> to vector<2x16xf32>
    %332 = arith.negf %331 : vector<2x16xf32>
    %333 = math.exp %332 : vector<2x16xf32>
    %cst_68 = arith.constant 1.000000e+00 : f32
    %334 = vector.broadcast %cst_68 : f32 to vector<2x16xf32>
    %335 = arith.addf %334, %333 : vector<2x16xf32>
    %336 = arith.divf %334, %335 : vector<2x16xf32>
    %337 = vector.extract_strided_slice %330 {offsets = [0, 16], sizes = [2, 16], strides = [1, 1]} : vector<2x64xf32> to vector<2x16xf32>
    %338 = arith.negf %337 : vector<2x16xf32>
    %339 = math.exp %338 : vector<2x16xf32>
    %cst_69 = arith.constant 1.000000e+00 : f32
    %340 = vector.broadcast %cst_69 : f32 to vector<2x16xf32>
    %341 = arith.addf %340, %339 : vector<2x16xf32>
    %342 = arith.divf %340, %341 : vector<2x16xf32>
    %343 = vector.extract_strided_slice %330 {offsets = [0, 32], sizes = [2, 16], strides = [1, 1]} : vector<2x64xf32> to vector<2x16xf32>
    %344 = math.tanh %343 : vector<2x16xf32>
    %345 = vector.extract_strided_slice %330 {offsets = [0, 48], sizes = [2, 16], strides = [1, 1]} : vector<2x64xf32> to vector<2x16xf32>
    %346 = arith.negf %345 : vector<2x16xf32>
    %347 = math.exp %346 : vector<2x16xf32>
    %cst_70 = arith.constant 1.000000e+00 : f32
    %348 = vector.broadcast %cst_70 : f32 to vector<2x16xf32>
    %349 = arith.addf %348, %347 : vector<2x16xf32>
    %350 = arith.divf %348, %349 : vector<2x16xf32>
    %351 = arith.mulf %342, %324 : vector<2x16xf32>
    %352 = arith.mulf %336, %344 : vector<2x16xf32>
    %353 = arith.addf %351, %352 : vector<2x16xf32>
    %354 = math.tanh %353 : vector<2x16xf32>
    %355 = arith.mulf %350, %354 : vector<2x16xf32>
    %c22 = arith.constant 22 : index
    %c0_71 = arith.constant 0 : index
    %356 = vector.load %arg22[%c22, %c0_71] : memref<32x16xf32, #tpu.memory_space<vmem>>, vector<2x16xf32>
    tpu.vector_store %arg22[%c22, %c0_71], %355 {strides = array<i32>} : memref<32x16xf32, #tpu.memory_space<vmem>>, vector<2x16xf32>,
    %357 = vector.extract_strided_slice %5 {offsets = [24, 0], sizes = [2, 64], strides = [1, 1]} : vector<32x64xf32> to vector<2x64xf32>
    %cst_72 = arith.constant dense<0.000000e+00> : vector<2x64xf32>
    %358 = tpu.matmul %355, %6, %cst_72 {dimension_numbers = #tpu.dot_dimension_numbers<[1], [0], [0], [1], [0, 0, 1, 1], [], []>, precision = #tpu.contract_precision<fp32>} : vector<2x16xf32>, vector<16x64xf32>, vector<2x64xf32> -> vector<2x64xf32>
    %359 = arith.addf %357, %358 : vector<2x64xf32>
    %360 = vector.extract_strided_slice %359 {offsets = [0, 0], sizes = [2, 16], strides = [1, 1]} : vector<2x64xf32> to vector<2x16xf32>
    %361 = arith.negf %360 : vector<2x16xf32>
    %362 = math.exp %361 : vector<2x16xf32>
    %cst_73 = arith.constant 1.000000e+00 : f32
    %363 = vector.broadcast %cst_73 : f32 to vector<2x16xf32>
    %364 = arith.addf %363, %362 : vector<2x16xf32>
    %365 = arith.divf %363, %364 : vector<2x16xf32>
    %366 = vector.extract_strided_slice %359 {offsets = [0, 16], sizes = [2, 16], strides = [1, 1]} : vector<2x64xf32> to vector<2x16xf32>
    %367 = arith.negf %366 : vector<2x16xf32>
    %368 = math.exp %367 : vector<2x16xf32>
    %cst_74 = arith.constant 1.000000e+00 : f32
    %369 = vector.broadcast %cst_74 : f32 to vector<2x16xf32>
    %370 = arith.addf %369, %368 : vector<2x16xf32>
    %371 = arith.divf %369, %370 : vector<2x16xf32>
    %372 = vector.extract_strided_slice %359 {offsets = [0, 32], sizes = [2, 16], strides = [1, 1]} : vector<2x64xf32> to vector<2x16xf32>
    %373 = math.tanh %372 : vector<2x16xf32>
    %374 = vector.extract_strided_slice %359 {offsets = [0, 48], sizes = [2, 16], strides = [1, 1]} : vector<2x64xf32> to vector<2x16xf32>
    %375 = arith.negf %374 : vector<2x16xf32>
    %376 = math.exp %375 : vector<2x16xf32>
    %cst_75 = arith.constant 1.000000e+00 : f32
    %377 = vector.broadcast %cst_75 : f32 to vector<2x16xf32>
    %378 = arith.addf %377, %376 : vector<2x16xf32>
    %379 = arith.divf %377, %378 : vector<2x16xf32>
    %380 = arith.mulf %371, %353 : vector<2x16xf32>
    %381 = arith.mulf %365, %373 : vector<2x16xf32>
    %382 = arith.addf %380, %381 : vector<2x16xf32>
    %383 = math.tanh %382 : vector<2x16xf32>
    %384 = arith.mulf %379, %383 : vector<2x16xf32>
    %c24 = arith.constant 24 : index
    %c0_76 = arith.constant 0 : index
    %385 = vector.load %arg22[%c24, %c0_76] : memref<32x16xf32, #tpu.memory_space<vmem>>, vector<2x16xf32>
    tpu.vector_store %arg22[%c24, %c0_76], %384 {strides = array<i32>} : memref<32x16xf32, #tpu.memory_space<vmem>>, vector<2x16xf32>,
    %386 = vector.extract_strided_slice %5 {offsets = [26, 0], sizes = [2, 64], strides = [1, 1]} : vector<32x64xf32> to vector<2x64xf32>
    %cst_77 = arith.constant dense<0.000000e+00> : vector<2x64xf32>
    %387 = tpu.matmul %384, %6, %cst_77 {dimension_numbers = #tpu.dot_dimension_numbers<[1], [0], [0], [1], [0, 0, 1, 1], [], []>, precision = #tpu.contract_precision<fp32>} : vector<2x16xf32>, vector<16x64xf32>, vector<2x64xf32> -> vector<2x64xf32>
    %388 = arith.addf %386, %387 : vector<2x64xf32>
    %389 = vector.extract_strided_slice %388 {offsets = [0, 0], sizes = [2, 16], strides = [1, 1]} : vector<2x64xf32> to vector<2x16xf32>
    %390 = arith.negf %389 : vector<2x16xf32>
    %391 = math.exp %390 : vector<2x16xf32>
    %cst_78 = arith.constant 1.000000e+00 : f32
    %392 = vector.broadcast %cst_78 : f32 to vector<2x16xf32>
    %393 = arith.addf %392, %391 : vector<2x16xf32>
    %394 = arith.divf %392, %393 : vector<2x16xf32>
    %395 = vector.extract_strided_slice %388 {offsets = [0, 16], sizes = [2, 16], strides = [1, 1]} : vector<2x64xf32> to vector<2x16xf32>
    %396 = arith.negf %395 : vector<2x16xf32>
    %397 = math.exp %396 : vector<2x16xf32>
    %cst_79 = arith.constant 1.000000e+00 : f32
    %398 = vector.broadcast %cst_79 : f32 to vector<2x16xf32>
    %399 = arith.addf %398, %397 : vector<2x16xf32>
    %400 = arith.divf %398, %399 : vector<2x16xf32>
    %401 = vector.extract_strided_slice %388 {offsets = [0, 32], sizes = [2, 16], strides = [1, 1]} : vector<2x64xf32> to vector<2x16xf32>
    %402 = math.tanh %401 : vector<2x16xf32>
    %403 = vector.extract_strided_slice %388 {offsets = [0, 48], sizes = [2, 16], strides = [1, 1]} : vector<2x64xf32> to vector<2x16xf32>
    %404 = arith.negf %403 : vector<2x16xf32>
    %405 = math.exp %404 : vector<2x16xf32>
    %cst_80 = arith.constant 1.000000e+00 : f32
    %406 = vector.broadcast %cst_80 : f32 to vector<2x16xf32>
    %407 = arith.addf %406, %405 : vector<2x16xf32>
    %408 = arith.divf %406, %407 : vector<2x16xf32>
    %409 = arith.mulf %400, %382 : vector<2x16xf32>
    %410 = arith.mulf %394, %402 : vector<2x16xf32>
    %411 = arith.addf %409, %410 : vector<2x16xf32>
    %412 = math.tanh %411 : vector<2x16xf32>
    %413 = arith.mulf %408, %412 : vector<2x16xf32>
    %c26 = arith.constant 26 : index
    %c0_81 = arith.constant 0 : index
    %414 = vector.load %arg22[%c26, %c0_81] : memref<32x16xf32, #tpu.memory_space<vmem>>, vector<2x16xf32>
    tpu.vector_store %arg22[%c26, %c0_81], %413 {strides = array<i32>} : memref<32x16xf32, #tpu.memory_space<vmem>>, vector<2x16xf32>,
    %415 = vector.extract_strided_slice %5 {offsets = [28, 0], sizes = [2, 64], strides = [1, 1]} : vector<32x64xf32> to vector<2x64xf32>
    %cst_82 = arith.constant dense<0.000000e+00> : vector<2x64xf32>
    %416 = tpu.matmul %413, %6, %cst_82 {dimension_numbers = #tpu.dot_dimension_numbers<[1], [0], [0], [1], [0, 0, 1, 1], [], []>, precision = #tpu.contract_precision<fp32>} : vector<2x16xf32>, vector<16x64xf32>, vector<2x64xf32> -> vector<2x64xf32>
    %417 = arith.addf %415, %416 : vector<2x64xf32>
    %418 = vector.extract_strided_slice %417 {offsets = [0, 0], sizes = [2, 16], strides = [1, 1]} : vector<2x64xf32> to vector<2x16xf32>
    %419 = arith.negf %418 : vector<2x16xf32>
    %420 = math.exp %419 : vector<2x16xf32>
    %cst_83 = arith.constant 1.000000e+00 : f32
    %421 = vector.broadcast %cst_83 : f32 to vector<2x16xf32>
    %422 = arith.addf %421, %420 : vector<2x16xf32>
    %423 = arith.divf %421, %422 : vector<2x16xf32>
    %424 = vector.extract_strided_slice %417 {offsets = [0, 16], sizes = [2, 16], strides = [1, 1]} : vector<2x64xf32> to vector<2x16xf32>
    %425 = arith.negf %424 : vector<2x16xf32>
    %426 = math.exp %425 : vector<2x16xf32>
    %cst_84 = arith.constant 1.000000e+00 : f32
    %427 = vector.broadcast %cst_84 : f32 to vector<2x16xf32>
    %428 = arith.addf %427, %426 : vector<2x16xf32>
    %429 = arith.divf %427, %428 : vector<2x16xf32>
    %430 = vector.extract_strided_slice %417 {offsets = [0, 32], sizes = [2, 16], strides = [1, 1]} : vector<2x64xf32> to vector<2x16xf32>
    %431 = math.tanh %430 : vector<2x16xf32>
    %432 = vector.extract_strided_slice %417 {offsets = [0, 48], sizes = [2, 16], strides = [1, 1]} : vector<2x64xf32> to vector<2x16xf32>
    %433 = arith.negf %432 : vector<2x16xf32>
    %434 = math.exp %433 : vector<2x16xf32>
    %cst_85 = arith.constant 1.000000e+00 : f32
    %435 = vector.broadcast %cst_85 : f32 to vector<2x16xf32>
    %436 = arith.addf %435, %434 : vector<2x16xf32>
    %437 = arith.divf %435, %436 : vector<2x16xf32>
    %438 = arith.mulf %429, %411 : vector<2x16xf32>
    %439 = arith.mulf %423, %431 : vector<2x16xf32>
    %440 = arith.addf %438, %439 : vector<2x16xf32>
    %441 = math.tanh %440 : vector<2x16xf32>
    %442 = arith.mulf %437, %441 : vector<2x16xf32>
    %c28 = arith.constant 28 : index
    %c0_86 = arith.constant 0 : index
    %443 = vector.load %arg22[%c28, %c0_86] : memref<32x16xf32, #tpu.memory_space<vmem>>, vector<2x16xf32>
    tpu.vector_store %arg22[%c28, %c0_86], %442 {strides = array<i32>} : memref<32x16xf32, #tpu.memory_space<vmem>>, vector<2x16xf32>,
    %444 = vector.extract_strided_slice %5 {offsets = [30, 0], sizes = [2, 64], strides = [1, 1]} : vector<32x64xf32> to vector<2x64xf32>
    %cst_87 = arith.constant dense<0.000000e+00> : vector<2x64xf32>
    %445 = tpu.matmul %442, %6, %cst_87 {dimension_numbers = #tpu.dot_dimension_numbers<[1], [0], [0], [1], [0, 0, 1, 1], [], []>, precision = #tpu.contract_precision<fp32>} : vector<2x16xf32>, vector<16x64xf32>, vector<2x64xf32> -> vector<2x64xf32>
    %446 = arith.addf %444, %445 : vector<2x64xf32>
    %447 = vector.extract_strided_slice %446 {offsets = [0, 0], sizes = [2, 16], strides = [1, 1]} : vector<2x64xf32> to vector<2x16xf32>
    %448 = arith.negf %447 : vector<2x16xf32>
    %449 = math.exp %448 : vector<2x16xf32>
    %cst_88 = arith.constant 1.000000e+00 : f32
    %450 = vector.broadcast %cst_88 : f32 to vector<2x16xf32>
    %451 = arith.addf %450, %449 : vector<2x16xf32>
    %452 = arith.divf %450, %451 : vector<2x16xf32>
    %453 = vector.extract_strided_slice %446 {offsets = [0, 16], sizes = [2, 16], strides = [1, 1]} : vector<2x64xf32> to vector<2x16xf32>
    %454 = arith.negf %453 : vector<2x16xf32>
    %455 = math.exp %454 : vector<2x16xf32>
    %cst_89 = arith.constant 1.000000e+00 : f32
    %456 = vector.broadcast %cst_89 : f32 to vector<2x16xf32>
    %457 = arith.addf %456, %455 : vector<2x16xf32>
    %458 = arith.divf %456, %457 : vector<2x16xf32>
    %459 = vector.extract_strided_slice %446 {offsets = [0, 32], sizes = [2, 16], strides = [1, 1]} : vector<2x64xf32> to vector<2x16xf32>
    %460 = math.tanh %459 : vector<2x16xf32>
    %461 = vector.extract_strided_slice %446 {offsets = [0, 48], sizes = [2, 16], strides = [1, 1]} : vector<2x64xf32> to vector<2x16xf32>
    %462 = arith.negf %461 : vector<2x16xf32>
    %463 = math.exp %462 : vector<2x16xf32>
    %cst_90 = arith.constant 1.000000e+00 : f32
    %464 = vector.broadcast %cst_90 : f32 to vector<2x16xf32>
    %465 = arith.addf %464, %463 : vector<2x16xf32>
    %466 = arith.divf %464, %465 : vector<2x16xf32>
    %467 = arith.mulf %458, %440 : vector<2x16xf32>
    %468 = arith.mulf %452, %460 : vector<2x16xf32>
    %469 = arith.addf %467, %468 : vector<2x16xf32>
    %470 = math.tanh %469 : vector<2x16xf32>
    %471 = arith.mulf %466, %470 : vector<2x16xf32>
    %c30 = arith.constant 30 : index
    %c0_91 = arith.constant 0 : index
    %472 = vector.load %arg22[%c30, %c0_91] : memref<32x16xf32, #tpu.memory_space<vmem>>, vector<2x16xf32>
    tpu.vector_store %arg22[%c30, %c0_91], %471 {strides = array<i32>} : memref<32x16xf32, #tpu.memory_space<vmem>>, vector<2x16xf32>,
    %c0_92 = arith.constant 0 : index
    %c0_93 = arith.constant 0 : index
    %473 = vector.load %arg22[%c0_92, %c0_93] : memref<32x16xf32, #tpu.memory_space<vmem>>, vector<32x16xf32>
    %c0_94 = arith.constant 0 : index
    %c0_95 = arith.constant 0 : index
    %474 = vector.load %arg7[%c0_94, %c0_95] : memref<16x16xf32, #tpu.memory_space<vmem>>, vector<16x16xf32>
    %cst_96 = arith.constant dense<0.000000e+00> : vector<32x16xf32>
    %475 = tpu.matmul %473, %474, %cst_96 {dimension_numbers = #tpu.dot_dimension_numbers<[1], [0], [0], [1], [0, 0, 1, 1], [], []>, precision = #tpu.contract_precision<fp32>} : vector<32x16xf32>, vector<16x16xf32>, vector<32x16xf32> -> vector<32x16xf32>
    %c0_97 = arith.constant 0 : index
    %c0_98 = arith.constant 0 : index
    %476 = vector.load %arg8[%c0_97, %c0_98] : memref<1x16xf32, #tpu.memory_space<vmem>>, vector<1x16xf32>
    %477 = vector.broadcast %476 : vector<1x16xf32> to vector<32x16xf32>
    %478 = arith.addf %475, %477 : vector<32x16xf32>
    %c0_99 = arith.constant 0 : index
    %c0_100 = arith.constant 0 : index
    %479 = vector.load %arg9[%c0_99, %c0_100] : memref<16x256xf32, #tpu.memory_space<vmem>>, vector<16x256xf32>
    %cst_101 = arith.constant dense<0.000000e+00> : vector<32x256xf32>
    %480 = tpu.matmul %473, %479, %cst_101 {dimension_numbers = #tpu.dot_dimension_numbers<[1], [0], [0], [1], [0, 0, 1, 1], [], []>, precision = #tpu.contract_precision<fp32>} : vector<32x16xf32>, vector<16x256xf32>, vector<32x256xf32> -> vector<32x256xf32>
    %c0_102 = arith.constant 0 : index
    %c0_103 = arith.constant 0 : index
    %481 = vector.load %arg10[%c0_102, %c0_103] : memref<1x256xf32, #tpu.memory_space<vmem>>, vector<1x256xf32>
    %482 = vector.broadcast %481 : vector<1x256xf32> to vector<32x256xf32>
    %483 = arith.addf %480, %482 : vector<32x256xf32>
    %c0_104 = arith.constant 0 : index
    %c0_105 = arith.constant 0 : index
    %484 = vector.load %arg11[%c0_104, %c0_105] : memref<16x256xf32, #tpu.memory_space<vmem>>, vector<16x256xf32>
    %cst_106 = arith.constant dense<0.000000e+00> : vector<32x256xf32>
    %485 = tpu.matmul %473, %484, %cst_106 {dimension_numbers = #tpu.dot_dimension_numbers<[1], [0], [0], [1], [0, 0, 1, 1], [], []>, precision = #tpu.contract_precision<fp32>} : vector<32x16xf32>, vector<16x256xf32>, vector<32x256xf32> -> vector<32x256xf32>
    %c0_107 = arith.constant 0 : index
    %c0_108 = arith.constant 0 : index
    %486 = vector.load %arg12[%c0_107, %c0_108] : memref<1x256xf32, #tpu.memory_space<vmem>>, vector<1x256xf32>
    %487 = vector.broadcast %486 : vector<1x256xf32> to vector<32x256xf32>
    %488 = arith.addf %485, %487 : vector<32x256xf32>
    %c0_109 = arith.constant 0 : index
    %c0_110 = arith.constant 0 : index
    %489 = vector.load %arg13[%c0_109, %c0_110] : memref<32x256xf32, #tpu.memory_space<vmem>>, vector<32x256xf32>
    %c0_111 = arith.constant 0 : index
    %c0_112 = arith.constant 0 : index
    %490 = vector.load %arg14[%c0_111, %c0_112] : memref<2x32xf32, #tpu.memory_space<vmem>>, vector<2x32xf32>
    %491 = arith.mulf %483, %489 : vector<32x256xf32>
    %cst_113 = arith.constant dense<0.000000e+00> : vector<2x256xf32>
    %492 = tpu.matmul %490, %491, %cst_113 {dimension_numbers = #tpu.dot_dimension_numbers<[1], [0], [0], [1], [0, 0, 1, 1], [], []>, precision = #tpu.contract_precision<fp32>} : vector<2x32xf32>, vector<32x256xf32>, vector<2x256xf32> -> vector<2x256xf32>
    %c0_114 = arith.constant 0 : index
    %c0_115 = arith.constant 0 : index
    %493 = vector.load %arg14[%c0_114, %c0_115] : memref<2x32xf32, #tpu.memory_space<vmem>>, vector<2x32xf32>
    %494 = arith.mulf %488, %489 : vector<32x256xf32>
    %cst_116 = arith.constant dense<0.000000e+00> : vector<2x256xf32>
    %495 = tpu.matmul %493, %494, %cst_116 {dimension_numbers = #tpu.dot_dimension_numbers<[1], [0], [0], [1], [0, 0, 1, 1], [], []>, precision = #tpu.contract_precision<fp32>} : vector<2x32xf32>, vector<32x256xf32>, vector<2x256xf32> -> vector<2x256xf32>
    %c0_117 = arith.constant 0 : index
    %c0_118 = arith.constant 0 : index
    %496 = vector.load %arg15[%c0_117, %c0_118] : memref<512x32xf32, #tpu.memory_space<vmem>>, vector<512x32xf32>
    %cst_119 = arith.constant dense<0.000000e+00> : vector<512x16xf32>
    %497 = tpu.matmul %496, %478, %cst_119 {dimension_numbers = #tpu.dot_dimension_numbers<[1], [0], [0], [1], [0, 0, 1, 1], [], []>, precision = #tpu.contract_precision<fp32>} : vector<512x32xf32>, vector<32x16xf32>, vector<512x16xf32> -> vector<512x16xf32>
    %c0_120 = arith.constant 0 : index
    %c0_121 = arith.constant 0 : index
    %498 = vector.load %arg16[%c0_120, %c0_121] : memref<512x16xf32, #tpu.memory_space<vmem>>, vector<512x16xf32>
    %499 = arith.mulf %497, %498 : vector<512x16xf32>
    %cst_122 = arith.constant dense<0.000000e+00> : vector<512xf32>
    %500 = vector.multi_reduction <add>, %499, %cst_122 [1] : vector<512x16xf32> to vector<512xf32>
    %501 = vector.shape_cast %500 : vector<512xf32> to vector<512x1xf32>
    %c0_123 = arith.constant 0 : index
    %c0_124 = arith.constant 0 : index
    %502 = vector.load %arg19[%c0_123, %c0_124] : memref<8x32xf32, #tpu.memory_space<vmem>>, vector<8x32xf32>
    %cst_125 = arith.constant dense<0.000000e+00> : vector<8x16xf32>
    %503 = tpu.matmul %502, %473, %cst_125 {dimension_numbers = #tpu.dot_dimension_numbers<[1], [0], [0], [1], [0, 0, 1, 1], [], []>, precision = #tpu.contract_precision<fp32>} : vector<8x32xf32>, vector<32x16xf32>, vector<8x16xf32> -> vector<8x16xf32>
    %504 = vector.extract_strided_slice %498 {offsets = [0, 0], sizes = [256, 16], strides = [1, 1]} : vector<512x16xf32> to vector<256x16xf32>
    %c0_126 = arith.constant 0 : index
    %c0_127 = arith.constant 0 : index
    %505 = vector.load %arg17[%c0_126, %c0_127] : memref<1x1xf32, #tpu.memory_space<vmem>>, vector<1x1xf32>
    %c0_128 = arith.constant 0 : index
    %c0_129 = arith.constant 0 : index
    %506 = vector.load %arg18[%c0_128, %c0_129] : memref<4x256xf32, #tpu.memory_space<vmem>>, vector<4x256xf32>
    %c0_130 = arith.constant 0 : index
    %c0_131 = arith.constant 0 : index
    %507 = vector.load %arg20[%c0_130, %c0_131] : memref<4x1xf32, #tpu.memory_space<vmem>>, vector<4x1xf32>
    %508 = vector.extract_strided_slice %501 {offsets = [0, 0], sizes = [256, 1], strides = [1, 1]} : vector<512x1xf32> to vector<256x1xf32>
    %509 = vector.extract_strided_slice %492 {offsets = [0, 0], sizes = [1, 256], strides = [1, 1]} : vector<2x256xf32> to vector<1x256xf32>
    %510 = vector.extract_strided_slice %495 {offsets = [0, 0], sizes = [1, 256], strides = [1, 1]} : vector<2x256xf32> to vector<1x256xf32>
    %cst_132 = arith.constant dense<0xFF800000> : vector<1xf32>
    %511 = vector.multi_reduction <maximumf>, %509, %cst_132 [1] : vector<1x256xf32> to vector<1xf32>
    %512 = vector.shape_cast %511 : vector<1xf32> to vector<1x1xf32>
    %cst_133 = arith.constant dense<0x7F800000> : vector<1xf32>
    %513 = vector.multi_reduction <minimumf>, %509, %cst_133 [1] : vector<1x256xf32> to vector<1xf32>
    %514 = vector.shape_cast %513 : vector<1xf32> to vector<1x1xf32>
    %515 = vector.broadcast %512 : vector<1x1xf32> to vector<256x1xf32>
    %516 = arith.mulf %508, %515 : vector<256x1xf32>
    %517 = vector.broadcast %514 : vector<1x1xf32> to vector<256x1xf32>
    %518 = arith.mulf %508, %517 : vector<256x1xf32>
    %519 = arith.maximumf %516, %518 : vector<256x1xf32>
    %520 = vector.broadcast %508 : vector<256x1xf32> to vector<256x256xf32>
    %521 = vector.broadcast %509 : vector<1x256xf32> to vector<256x256xf32>
    %522 = arith.mulf %520, %521 : vector<256x256xf32>
    %523 = vector.broadcast %519 : vector<256x1xf32> to vector<256x256xf32>
    %524 = arith.subf %522, %523 : vector<256x256xf32>
    %525 = math.exp %524 : vector<256x256xf32>
    %cst_134 = arith.constant dense<0.000000e+00> : vector<256xf32>
    %526 = vector.multi_reduction <add>, %525, %cst_134 [1] : vector<256x256xf32> to vector<256xf32>
    %527 = vector.shape_cast %526 : vector<256xf32> to vector<256x1xf32>
    %528 = vector.broadcast %510 : vector<1x256xf32> to vector<256x256xf32>
    %529 = arith.mulf %525, %528 : vector<256x256xf32>
    %cst_135 = arith.constant dense<0.000000e+00> : vector<256xf32>
    %530 = vector.multi_reduction <add>, %529, %cst_135 [1] : vector<256x256xf32> to vector<256xf32>
    %531 = vector.shape_cast %530 : vector<256xf32> to vector<256x1xf32>
    %532 = arith.divf %531, %527 : vector<256x1xf32>
    %533 = vector.broadcast %532 : vector<256x1xf32> to vector<256x16xf32>
    %534 = arith.mulf %533, %504 : vector<256x16xf32>
    %cst_136 = arith.constant dense<0.000000e+00> : vector<4x16xf32>
    %535 = tpu.matmul %506, %534, %cst_136 {dimension_numbers = #tpu.dot_dimension_numbers<[1], [0], [0], [1], [0, 0, 1, 1], [], []>, precision = #tpu.contract_precision<fp32>} : vector<4x256xf32>, vector<256x16xf32>, vector<4x16xf32> -> vector<4x16xf32>
    %536 = vector.broadcast %505 : vector<1x1xf32> to vector<4x16xf32>
    %537 = arith.mulf %536, %535 : vector<4x16xf32>
    %538 = vector.extract_strided_slice %503 {offsets = [0, 0], sizes = [4, 16], strides = [1, 1]} : vector<8x16xf32> to vector<4x16xf32>
    %539 = arith.addf %537, %538 : vector<4x16xf32>
    %540 = vector.broadcast %507 : vector<4x1xf32> to vector<4x16xf32>
    %541 = arith.addf %539, %540 : vector<4x16xf32>
    %c0_137 = arith.constant 0 : index
    %c0_138 = arith.constant 0 : index
    %542 = vector.load %arg21[%c0_137, %c0_138] : memref<8x16xf32, #tpu.memory_space<vmem>>, vector<4x16xf32>
    tpu.vector_store %arg21[%c0_137, %c0_138], %541 {strides = array<i32>} : memref<8x16xf32, #tpu.memory_space<vmem>>, vector<4x16xf32>,
    %543 = vector.extract_strided_slice %501 {offsets = [256, 0], sizes = [256, 1], strides = [1, 1]} : vector<512x1xf32> to vector<256x1xf32>
    %544 = vector.extract_strided_slice %492 {offsets = [1, 0], sizes = [1, 256], strides = [1, 1]} : vector<2x256xf32> to vector<1x256xf32>
    %545 = vector.extract_strided_slice %495 {offsets = [1, 0], sizes = [1, 256], strides = [1, 1]} : vector<2x256xf32> to vector<1x256xf32>
    %cst_139 = arith.constant dense<0xFF800000> : vector<1xf32>
    %546 = vector.multi_reduction <maximumf>, %544, %cst_139 [1] : vector<1x256xf32> to vector<1xf32>
    %547 = vector.shape_cast %546 : vector<1xf32> to vector<1x1xf32>
    %cst_140 = arith.constant dense<0x7F800000> : vector<1xf32>
    %548 = vector.multi_reduction <minimumf>, %544, %cst_140 [1] : vector<1x256xf32> to vector<1xf32>
    %549 = vector.shape_cast %548 : vector<1xf32> to vector<1x1xf32>
    %550 = vector.broadcast %547 : vector<1x1xf32> to vector<256x1xf32>
    %551 = arith.mulf %543, %550 : vector<256x1xf32>
    %552 = vector.broadcast %549 : vector<1x1xf32> to vector<256x1xf32>
    %553 = arith.mulf %543, %552 : vector<256x1xf32>
    %554 = arith.maximumf %551, %553 : vector<256x1xf32>
    %555 = vector.broadcast %543 : vector<256x1xf32> to vector<256x256xf32>
    %556 = vector.broadcast %544 : vector<1x256xf32> to vector<256x256xf32>
    %557 = arith.mulf %555, %556 : vector<256x256xf32>
    %558 = vector.broadcast %554 : vector<256x1xf32> to vector<256x256xf32>
    %559 = arith.subf %557, %558 : vector<256x256xf32>
    %560 = math.exp %559 : vector<256x256xf32>
    %cst_141 = arith.constant dense<0.000000e+00> : vector<256xf32>
    %561 = vector.multi_reduction <add>, %560, %cst_141 [1] : vector<256x256xf32> to vector<256xf32>
    %562 = vector.shape_cast %561 : vector<256xf32> to vector<256x1xf32>
    %563 = vector.broadcast %545 : vector<1x256xf32> to vector<256x256xf32>
    %564 = arith.mulf %560, %563 : vector<256x256xf32>
    %cst_142 = arith.constant dense<0.000000e+00> : vector<256xf32>
    %565 = vector.multi_reduction <add>, %564, %cst_142 [1] : vector<256x256xf32> to vector<256xf32>
    %566 = vector.shape_cast %565 : vector<256xf32> to vector<256x1xf32>
    %567 = arith.divf %566, %562 : vector<256x1xf32>
    %568 = vector.broadcast %567 : vector<256x1xf32> to vector<256x16xf32>
    %569 = arith.mulf %568, %504 : vector<256x16xf32>
    %cst_143 = arith.constant dense<0.000000e+00> : vector<4x16xf32>
    %570 = tpu.matmul %506, %569, %cst_143 {dimension_numbers = #tpu.dot_dimension_numbers<[1], [0], [0], [1], [0, 0, 1, 1], [], []>, precision = #tpu.contract_precision<fp32>} : vector<4x256xf32>, vector<256x16xf32>, vector<4x16xf32> -> vector<4x16xf32>
    %571 = vector.broadcast %505 : vector<1x1xf32> to vector<4x16xf32>
    %572 = arith.mulf %571, %570 : vector<4x16xf32>
    %573 = vector.extract_strided_slice %503 {offsets = [4, 0], sizes = [4, 16], strides = [1, 1]} : vector<8x16xf32> to vector<4x16xf32>
    %574 = arith.addf %572, %573 : vector<4x16xf32>
    %575 = vector.broadcast %507 : vector<4x1xf32> to vector<4x16xf32>
    %576 = arith.addf %574, %575 : vector<4x16xf32>
    %c4_144 = arith.constant 4 : index
    %c0_145 = arith.constant 0 : index
    %577 = vector.load %arg21[%c4_144, %c0_145] : memref<8x16xf32, #tpu.memory_space<vmem>>, vector<4x16xf32>
    tpu.vector_store %arg21[%c4_144, %c0_145], %576 {strides = array<i32>} : memref<8x16xf32, #tpu.memory_space<vmem>>, vector<4x16xf32>,
    return
  }
  func.func @transform_0(%arg0: i32) -> (i32, i32) {
    %c0_i32 = arith.constant 0 : i32
    %c0_i32_0 = arith.constant 0 : i32
    %c0_i32_1 = arith.constant 0 : i32
    return %c0_i32, %c0_i32_0 : i32, i32
  }
  func.func @transform_1(%arg0: i32) -> (i32, i32) {
    %c0_i32 = arith.constant 0 : i32
    %c0_i32_0 = arith.constant 0 : i32
    %c0_i32_1 = arith.constant 0 : i32
    return %c0_i32, %c0_i32_0 : i32, i32
  }
  func.func @transform_2(%arg0: i32) -> (i32, i32) {
    %c0_i32 = arith.constant 0 : i32
    %c0_i32_0 = arith.constant 0 : i32
    %c0_i32_1 = arith.constant 0 : i32
    return %c0_i32, %c0_i32_0 : i32, i32
  }
  func.func @transform_3(%arg0: i32) -> (i32, i32) {
    %c0_i32 = arith.constant 0 : i32
    %c0_i32_0 = arith.constant 0 : i32
    %c0_i32_1 = arith.constant 0 : i32
    return %c0_i32, %c0_i32_0 : i32, i32
  }
  func.func @transform_4(%arg0: i32) -> (i32, i32) {
    %c0_i32 = arith.constant 0 : i32
    %c0_i32_0 = arith.constant 0 : i32
    %c0_i32_1 = arith.constant 0 : i32
    return %c0_i32, %c0_i32_0 : i32, i32
  }
  func.func @transform_5(%arg0: i32) -> (i32, i32) {
    %c0_i32 = arith.constant 0 : i32
    %c0_i32_0 = arith.constant 0 : i32
    %c0_i32_1 = arith.constant 0 : i32
    return %c0_i32, %c0_i32_0 : i32, i32
  }
  func.func @transform_6(%arg0: i32) -> (i32, i32) {
    %c0_i32 = arith.constant 0 : i32
    %c0_i32_0 = arith.constant 0 : i32
    %c0_i32_1 = arith.constant 0 : i32
    return %c0_i32, %c0_i32_0 : i32, i32
  }
  func.func @transform_7(%arg0: i32) -> (i32, i32) {
    %c0_i32 = arith.constant 0 : i32
    %c0_i32_0 = arith.constant 0 : i32
    %c0_i32_1 = arith.constant 0 : i32
    return %c0_i32, %c0_i32_0 : i32, i32
  }
  func.func @transform_8(%arg0: i32) -> (i32, i32) {
    %c0_i32 = arith.constant 0 : i32
    %c0_i32_0 = arith.constant 0 : i32
    %c0_i32_1 = arith.constant 0 : i32
    return %c0_i32, %c0_i32_0 : i32, i32
  }
  func.func @transform_9(%arg0: i32) -> (i32, i32) {
    %c0_i32 = arith.constant 0 : i32
    %c0_i32_0 = arith.constant 0 : i32
    %c0_i32_1 = arith.constant 0 : i32
    return %c0_i32, %c0_i32_0 : i32, i32
  }
  func.func @transform_10(%arg0: i32) -> (i32, i32) {
    %c0_i32 = arith.constant 0 : i32
    %c0_i32_0 = arith.constant 0 : i32
    %c0_i32_1 = arith.constant 0 : i32
    return %c0_i32, %c0_i32_0 : i32, i32
  }
  func.func @transform_11(%arg0: i32) -> (i32, i32) {
    %c0_i32 = arith.constant 0 : i32
    %c0_i32_0 = arith.constant 0 : i32
    %c0_i32_1 = arith.constant 0 : i32
    return %c0_i32, %c0_i32_0 : i32, i32
  }
  func.func @transform_12(%arg0: i32) -> (i32, i32) {
    %c0_i32 = arith.constant 0 : i32
    %c0_i32_0 = arith.constant 0 : i32
    %c0_i32_1 = arith.constant 0 : i32
    return %c0_i32, %c0_i32_0 : i32, i32
  }
  func.func @transform_13(%arg0: i32) -> (i32, i32) {
    %c0_i32 = arith.constant 0 : i32
    %c0_i32_0 = arith.constant 0 : i32
    %c0_i32_1 = arith.constant 0 : i32
    return %c0_i32, %c0_i32_0 : i32, i32
  }
  func.func @transform_14(%arg0: i32) -> (i32, i32) {
    %c0_i32 = arith.constant 0 : i32
    %c0_i32_0 = arith.constant 0 : i32
    %c0_i32_1 = arith.constant 0 : i32
    return %c0_i32, %c0_i32_0 : i32, i32
  }
  func.func @transform_15(%arg0: i32) -> (i32, i32) {
    %c0_i32 = arith.constant 0 : i32
    %c0_i32_0 = arith.constant 0 : i32
    %c0_i32_1 = arith.constant 0 : i32
    return %c0_i32, %c0_i32_0 : i32, i32
  }
  func.func @transform_16(%arg0: i32) -> (i32, i32) {
    %c0_i32 = arith.constant 0 : i32
    %c0_i32_0 = arith.constant 0 : i32
    %c0_i32_1 = arith.constant 0 : i32
    return %c0_i32, %c0_i32_0 : i32, i32
  }
  func.func @transform_17(%arg0: i32) -> (i32, i32) {
    %c0_i32 = arith.constant 0 : i32
    %c0_i32_0 = arith.constant 0 : i32
    %c0_i32_1 = arith.constant 0 : i32
    return %c0_i32, %c0_i32_0 : i32, i32
  }
  func.func @transform_18(%arg0: i32) -> (i32, i32) {
    %c0_i32 = arith.constant 0 : i32
    %c0_i32_0 = arith.constant 0 : i32
    %c0_i32_1 = arith.constant 0 : i32
    return %c0_i32, %c0_i32_0 : i32, i32
  }
  func.func @transform_19(%arg0: i32) -> (i32, i32) {
    %c0_i32 = arith.constant 0 : i32
    %c0_i32_0 = arith.constant 0 : i32
    %c0_i32_1 = arith.constant 0 : i32
    return %c0_i32, %c0_i32_0 : i32, i32
  }
  func.func @transform_20(%arg0: i32) -> (i32, i32) {
    %c0_i32 = arith.constant 0 : i32
    %c0_i32_0 = arith.constant 0 : i32
    %c0_i32_1 = arith.constant 0 : i32
    return %c0_i32, %c0_i32_0 : i32, i32
  }
}

</mosaic_0001>

<bundles_post_ra>
// kernel: tpu_custom_call.1
= control target key start
LH: loop header
LB: loop body
LE: loop exit
PB: predicated region body
PF: predicated region fallthrough
CT: control target
= control target key end

     0   :  { %s29535_s0 = inlined_call_operand.vmem [shape: f32[32,8], index: 0, kind: input, shape index: {}]   ;;  %s29536_s1 = inlined_call_operand.vmem [shape: f32[2,16], index: 1, kind: input, shape index: {}]   ;;  %s29537_s2 = inlined_call_operand.vmem [shape: f32[2,16], index: 2, kind: input, shape index: {}]   ;;  %s29538_s3 = inlined_call_operand.vmem [shape: f32[8,64], index: 3, kind: input, shape index: {}]   ;;  %s29539_s4 = inlined_call_operand.vmem [shape: f32[16,64], index: 4, kind: input, shape index: {}]   ;;  %s29540_s5 = inlined_call_operand.vmem [shape: f32[1,64], index: 5, kind: input, shape index: {}]   ;;  %s29541_s6 = inlined_call_operand.vmem [shape: f32[16,16], index: 6, kind: input, shape index: {}]   ;;  %s29542_s7 = inlined_call_operand.vmem [shape: f32[1,16], index: 7, kind: input, shape index: {}]   ;;  %s29543_s8 = inlined_call_operand.vmem [shape: f32[16,256], index: 8, kind: input, shape index: {}]   ;;  %s29544_s9 = inlined_call_operand.vmem [shape: f32[1,256], index: 9, kind: input, shape index: {}]   ;;  %s29545_s10 = inlined_call_operand.vmem [shape: f32[16,256], index: 10, kind: input, shape index: {}]   ;;  %s29546_s11 = inlined_call_operand.vmem [shape: f32[1,256], index: 11, kind: input, shape index: {}]   ;;  %s29547_s12 = inlined_call_operand.vmem [shape: f32[32,256], index: 12, kind: input, shape index: {}]   ;;  %s29548_s13 = inlined_call_operand.vmem [shape: f32[2,32], index: 13, kind: input, shape index: {}]   ;;  %s29549_s14 = inlined_call_operand.vmem [shape: f32[512,32], index: 14, kind: input, shape index: {}]   ;;  %s29550_s15 = inlined_call_operand.vmem [shape: f32[512,16], index: 15, kind: input, shape index: {}]   ;;  %s29551_s16 = inlined_call_operand.<no memory space> [shape: f32[1,1], index: 16, kind: input, shape index: {}]   ;;  %s29552_s17 = inlined_call_operand.vmem [shape: f32[4,256], index: 17, kind: input, shape index: {}]   ;;  %s29553_s18 = inlined_call_operand.vmem [shape: f32[8,32], index: 18, kind: input, shape index: {}]   ;;  %s29554_s19 = inlined_call_operand.vmem [shape: f32[4,1], index: 19, kind: input, shape index: {}]   ;;  %s29555_s20 = inlined_call_operand.hbm [shape: f32[8,16], index: 20, kind: output, shape index: {}]  }
   0x1   :  { %29921 = sst [smem:[#allocation112_spill]] %s29535_s0  ;;  %v25_v0 = vstv %s29551_s16 }
   0x2   :  { %29922 = sst [smem:[#allocation113_spill]] %s29536_s1  ;;  %26 = vst [vmem:[#allocation3] sm:$0x1] %v25_v0 }
   0x3   :  { %29923 = sst [smem:[#allocation114_spill]] %s29537_s2 }
   0x4   :  { %29924 = sst [smem:[#allocation115_spill]] %s29538_s3 }
   0x5   :  { %29925 = sst [smem:[#allocation116_spill]] %s29539_s4 }
   0x6   :  { %s29926_s2 = sld [smem:[#allocation115_spill]]  ;;  %s29927_s26 = sld [smem:[#allocation112_spill]]  ;;  %vm80_vm0 = vcmask 64512   ;;  %v29558_v9 = vmov 0.0|0.0  }
   0x7   :  { %21896 = vmatprep.subr.bf16.mxu1 %v29558_v9  ;;  %s29928_s1 = sld [smem:[#allocation116_spill]]  ;;  %s29929_s25 = sld [smem:[#allocation113_spill]] }
   0xc   :  { %v72_v1 = vld [vmem:[%s29926_s2] sm:$0xff]  ;;  %v69_v3 = vld [vmem:[%s29927_s26 + $0x8] sm:$0xff]  ;;  %v70_v7 = vld [vmem:[%s29927_s26 + $0x10] sm:$0xff] }
   0xd   :  { %v68_v2 = vld [vmem:[%s29927_s26] sm:$0xff]  ;;  %v24176_v4 = vand.u32 4294901760, %v72_v1  ;;  %v85_v6 = vsel %vm80_vm0, %v69_v3, 0  ;;  %v71_v8 = vld [vmem:[%s29927_s26 + $0x18] sm:$0xff]  ;;  %v88_v13 = vsel %vm80_vm0, %v70_v7, 0  ;;  %v669_v15 = vld [vmem:[%s29928_s1 + $0x8] sm:$0xff] }
   0xe   :  { %v82_v5 = vsel %vm80_vm0, %v68_v2, 0  ;;  %v668_v10 = vld [vmem:[%s29928_s1] sm:$0xff]  ;;  %v24190_v12 = vand.u32 4294901760, %v85_v6  ;;  %v91_v14 = vsel %vm80_vm0, %v71_v8, 0  ;;  %v24196_v16 = vand.u32 4294901760, %v88_v13 }
   0xf   :  { %v24188_v11 = vand.u32 4294901760, %v82_v5  ;;  %20426 = vmatprep.subr.mxu0 %v24176_v4  ;;  %v24199_v17 = vsub.f32 %v72_v1, %v24176_v4  ;;  %v24201_v18 = vand.u32 4294901760, %v91_v14  ;;  %v677_v19 = vand.u32 4294901760, %v668_v10  ;;  %v670_v20 = vld [vmem:[%s29929_s25] sm:$0x3] }
  0x10   :  { %20427 = vmatpush3.msra.mxu0 %v24176_v4  ;;  %v24211_v22 = vsub.f32 %v85_v6, %v24190_v12  ;;  %v680_v23 = vand.u32 4294901760, %v669_v15 }
  0x11   :  { %v24208_v21 = vsub.f32 %v82_v5, %v24188_v11 }
  0x12   :  { %27 = vsyncpa [#allocation5], 0  ;;  %v24214_v24 = vsub.f32 %v88_v13, %v24196_v16  ;;  %v24217_v25 = vand.u32 4294901760, %v24199_v17  ;;  %v24220_v26 = vsub.f32 %v91_v14, %v24201_v18  ;;  %vm24051_vm1 = vmmov 0   ;;  %v19195_v14 = vld [vmem:[%s29540_s5] ss:$0 sm:$0xff] }
  0x13   :  { %v29560_v27 = vmov 0.0   ;;  %vm672_vm2 = vcmask 130048   ;;  %v161_v28 = vand.u32 4294901760, %v24208_v21  ;;  %v171_v29 = vand.u32 4294901760, %v24211_v22  ;;  %s24053_s27 = smov 96   ;;  %s29930_s4 = sld [smem:[#allocation114_spill]] }
  0x14   :  { %20478 = vmatprep.mubr.msk.f32.mxu1 %vm24051_vm1, %v29560_v27  ;;  %v24226_v30 = vpack.c.bf16 %v680_v23, %v677_v19  ;;  %v674_v31 = vsel %vm672_vm2, %v670_v20, 0  ;;  %v181_v32 = vand.u32 4294901760, %v24214_v24  ;;  %v203_v33 = vsub.f32 %v24199_v17, %v24217_v25  ;;  %s24054_s16 = smov 16   ;;  %s24055_s29 = smov 32  }
  0x15   :  { %v191_v34 = vand.u32 4294901760, %v24220_v26  ;;  %v24233_v35 = vand.u32 4294901760, %v674_v31  ;;  %v162_v36 = vsub.f32 %v24208_v21, %v161_v28  ;;  %v172_v37 = vsub.f32 %v24211_v22, %v171_v29  ;;  %s24056_s30 = smov 80  }
  0x16   :  { %21898 = vmatpush3.bf16.msra.mxu1 %v24226_v30  ;;  %v755_v38 = vsub.f32 %v668_v10, %v677_v19  ;;  %v762_v39 = vsub.f32 %v669_v15, %v680_v23  ;;  %v182_v40 = vsub.f32 %v24214_v24, %v181_v32  ;;  %v204_v41 = vand.u32 4294901760, %v203_v33 }
  0x17   :  { %v192_v42 = vsub.f32 %v24220_v26, %v191_v34  ;;  %v744_v43 = vsub.f32 %v674_v31, %v24233_v35  ;;  %21899 = vmatprep.subr.bf16.mxu1 %v29558_v9  ;;  %v163_v44 = vand.u32 4294901760, %v162_v36  ;;  %v173_v45 = vand.u32 4294901760, %v172_v37 }
  0x18   :  { %v756_v46 = vand.u32 4294901760, %v755_v38  ;;  %v763_v47 = vand.u32 4294901760, %v762_v39  ;;  %v183_v48 = vand.u32 4294901760, %v182_v40  ;;  %20434 = vmatprep.subr.mxu0 %v204_v41  ;;  %v24258_v58 = vpack.c.bf16 %v762_v39, %v755_v38 }
  0x19   :  { %v745_v49 = vand.u32 4294901760, %v744_v43  ;;  %20428 = vmatprep.mubr.f32.mxu0 %v163_v44  ;;  %v193_v52 = vand.u32 4294901760, %v192_v42  ;;  %vm1168_vm3 = vcmask 123904   ;;  %vm1666_vm4 = vcmask 125954  }
  0x1a   :  { %v757_v50 = vsub.f32 %v755_v38, %v756_v46  ;;  %v764_v51 = vsub.f32 %v762_v39, %v763_v47  ;;  %20429 = vmatmul.mubr.f32.vlgmr.msra.gmra.mrb[0].mxu0 %v173_v45  ;;  %v24275_v59 = vpack.c.bf16 %v763_v47, %v756_v46  ;;  %vm2668_vm5 = vcmask 130054  }
  0x1b   :  { %v746_v53 = vsub.f32 %v744_v43, %v745_v49  ;;  %20431 = vmatprep.mubr.f32.mxu0 %v183_v48  ;;  %20435 = vmatpush3.msra.mxu0 %v204_v41  ;;  %vm2167_vm6 = vcmask 128004   ;;  %vm10590_vm7 = vcmask 261120   ;;  %vm15950_vm8 = vcmask 1040384  }
  0x1c   :  { %v758_v54 = vand.u32 4294901760, %v757_v50  ;;  %v765_v55 = vand.u32 4294901760, %v764_v51  ;;  %20442 = vmatprep.subr.mxu0 %v24199_v17  ;;  %vm17573_vm9 = vcmask 1041409   ;;  %vm17571_vm10 = vcmask 125952  }
  0x1d   :  { %v747_v56 = vand.u32 4294901760, %v746_v53 }
  0x1e   :  { %v24251_v57 = vpack.c.bf16 %v765_v55, %v758_v54  ;;  %20432 = vmatmul.mubr.f32.gmra.mrb[2].mxu0 %v193_v52 }
  0x1f   :  { %20479 = vmatmul.mubr.f32.vlgmr.msra.gmra.mrb[0].mxu1 %v747_v56  ;;  %20436 = vmatprep.mubr.f32.mxu0 %v24188_v11 }
  0x20   :  { %21901 = vmatpush3.bf16.msra.mxu1 %v24251_v57  ;;  %20485 = vmatprep.mubr.msk.f32.mxu1 %vm24051_vm1, %v29560_v27 }
  0x21   :  { %21902 = vmatprep.subr.bf16.mxu1 %v29558_v9 }
  0x22   :  { %20437 = vmatmul.mubr.f32.vlgmr.msra.gmra.mrb[0].mxu0 %v24190_v12 }
  0x23   :  { %20486 = vmatmul.mubr.f32.vlgmr.msra.gmra.mrb[2].mxu1 %v24233_v35  ;;  %20439 = vmatprep.mubr.f32.mxu0 %v24196_v16 }
  0x24   :  { %20443 = vmatpush3.msra.mxu0 %v24199_v17  ;;  %21904 = vmatpush3.bf16.msra.mxu1 %v24258_v58 }
  0x25   :  { %20492 = vmatprep.mubr.msk.f32.mxu1 %vm24051_vm1, %v29560_v27  ;;  %21905 = vmatprep.subr.bf16.mxu1 %v29558_v9 }
  0x26   :  { %20450 = vmatprep.subr.mxu0 %v24176_v4  ;;  %20440 = vmatmul.mubr.f32.gmra.mrb[2].mxu0 %v24201_v18 }
  0x27   :  { %20444 = vmatprep.mubr.f32.mxu0 %v24208_v21  ;;  %20493 = vmatmul.mubr.f32.vlgmr.msra.gmra.mrb[4].mxu1 %v744_v43 }
  0x28   :  { %21907 = vmatpush3.bf16.msra.mxu1 %v24226_v30  ;;  %20499 = vmatprep.mubr.msk.f32.mxu1 %vm24051_vm1, %v29560_v27 }
  0x29   :  { %21908 = vmatprep.subr.bf16.mxu1 %v29558_v9 }
  0x2a   :  { %20445 = vmatmul.mubr.f32.vlgmr.msra.gmra.mrb[0].mxu0 %v24211_v22 }
  0x2b   :  { %20447 = vmatprep.mubr.f32.mxu0 %v24214_v24  ;;  %20451 = vmatpush3.msra.mxu0 %v24176_v4 }
  0x2c   :  { %20500 = vmatmul.mubr.f32.vlgmr.msra.gmra.mrb[6].mxu1 %v745_v49  ;;  %20458 = vmatprep.subr.mxu0 %v24217_v25 }
  0x2d   :  { %21910 = vmatpush3.bf16.msra.mxu1 %v24275_v59  ;;  %20506 = vmatprep.mubr.msk.f32.mxu1 %vm24051_vm1, %v29560_v27 }
  0x2e   :  { %20448 = vmatmul.mubr.f32.gmra.mrb[2].mxu0 %v24220_v26  ;;  %21911 = vmatprep.subr.bf16.mxu1 %v29558_v9 }
  0x2f   :  { %20452 = vmatprep.mubr.f32.mxu0 %v161_v28 }
  0x30   :  { %20507 = vmatmul.mubr.f32.vlgmr.msra.gmra.mrb[8].mxu1 %v24233_v35 }
  0x31   :  { %21913 = vmatpush3.bf16.msra.mxu1 %v24226_v30  ;;  %20513 = vmatprep.mubr.msk.f32.mxu1 %vm24051_vm1, %v29560_v27 }
  0x32   :  { %20453 = vmatmul.mubr.f32.vlgmr.msra.gmra.mrb[0].mxu0 %v171_v29  ;;  %21914 = vmatprep.subr.bf16.mxu1 %v29558_v9 }
  0x33   :  { %20455 = vmatprep.mubr.f32.mxu0 %v181_v32  ;;  %20459 = vmatpush3.msra.mxu0 %v24217_v25  ;;  %v671_v25 = vld [vmem:[%s29930_s4] sm:$0x3] }
  0x34   :  { %20514 = vmatmul.mubr.f32.vlgmr.msra.gmra.mrb[10].mxu1 %v24233_v35  ;;  %20466 = vmatprep.subr.mxu0 %v24176_v4 }
  0x35   :  { %21916 = vmatpush3.bf16.msra.mxu1 %v24226_v30  ;;  %20520 = vmatprep.mubr.msk.f32.mxu1 %vm24051_vm1, %v29560_v27 }
  0x36   :  { %20456 = vmatmul.mubr.f32.gmra.mrb[2].mxu0 %v191_v34  ;;  %21917 = vmatprep.subr.bf16.mxu1 %v29558_v9 }
  0x37   :  { %20460 = vmatprep.mubr.f32.mxu0 %v24188_v11 }
  0x3a   :  { %20461 = vmatmul.mubr.f32.vlgmr.msra.gmra.mrb[0].mxu0 %v24190_v12 }
  0x3b   :  { %20463 = vmatprep.mubr.f32.mxu0 %v24196_v16  ;;  %20467 = vmatpush3.msra.mxu0 %v24176_v4 }
  0x3c   :  { %21932 = vmatprep.subr.bf16.mxu0 %v29558_v9 }
  0x3e   :  { %20464 = vmatmul.mubr.f32.gmra.mrb[2].mxu0 %v24201_v18 }
  0x3f   :  { %20468 = vmatprep.mubr.f32.mxu0 %v24188_v11 }
  0x42   :  { %20469 = vmatmul.mubr.f32.vlgmr.msra.gmra.mrb[0].mxu0 %v24190_v12 }
  0x43   :  { %20471 = vmatprep.mubr.f32.mxu0 %v24196_v16  ;;  %21934 = vmatpush3.bf16.msra.mxu0 %v24226_v30 }
  0x44   :  { %21935 = vmatprep.subr.bf16.mxu0 %v29558_v9 }
  0x46   :  { %20472 = vmatmul.mubr.f32.gmra.mrb[2].mxu0 %v24201_v18 }
  0x47   :  { %20562 = vmatprep.mubr.msk.f32.mxu0 %vm24051_vm1, %v29560_v27 }
  0xf2   :  { %v749_v60 = vpop.f32.mrb[0].mxu1 }
  0xf3   :  { %v20480_v61 = vpop.f32.mrb[1].mxu1 }
  0xf6   :  { %v830_v62 = vpop.f32.mrb[2].mxu1 }
  0xf7   :  { %v831_v63 = vadd.f32 %v830_v62, %v749_v60  ;;  %v20487_v0 = vpop.f32.mrb[3].mxu1 }
  0xfa   :  { %v906_v1 = vpop.f32.mrb[4].mxu1 }
  0xfb   :  { %v907_v2 = vadd.f32 %v906_v1, %v831_v63  ;;  %v20494_v3 = vpop.f32.mrb[5].mxu1 }
  0xff   :  { %v981_v4 = vpop.f32.mrb[6].mxu1 }
 0x100   :  { %v982_v5 = vadd.f32 %v981_v4, %v907_v2  ;;  %v20501_v6 = vpop.f32.mrb[7].mxu1 }
 0x103   :  { %v1058_v7 = vpop.f32.mrb[8].mxu1 }
 0x104   :  { %v1059_v8 = vadd.f32 %v1058_v7, %v982_v5  ;;  %v20508_v10 = vpop.f32.mrb[9].mxu1 }
 0x107   :  { %v1131_v11 = vpop.f32.mrb[10].mxu1 }
 0x108   :  { %v1132_v12 = vadd.f32 %v1131_v11, %v1059_v8  ;;  %v20515_v13 = vpop.f32.mrb[11].mxu1 }
 0x115   :  { %v20470_v15 = vpop.f32.mrb[0].mxu0 }
 0x116   :  { %v24323_v16 = vadd.f32 %v20470_v15, %v19195_v14  ;;  %v646_v17 = vpop.f32.mrb[1].mxu0 }
 0x117   :  { %v24325_v18 = vadd.f32 %v19195_v14, %v646_v17 }
 0x119   :  { %v1135_v19 = vadd.f32 %v24325_v18, %v1132_v12  ;;  %v20473_v20 = vpop.f32.mrb[2].mxu0 }
 0x11a   :  { %v24328_v21 = vadd.f32 %v20473_v20, %v19195_v14  ;;  %v658_v22 = vpop.f32.mrb[3].mxu0 }
 0x11b   :  { %v24330_v23 = vadd.f32 %v19195_v14, %v658_v22  ;;  %23450 = vtanh.f32 %v1135_v19  ;;  %v19196_v26 = vmul.f32 -1.442695, %v1135_v19 }
 0x11d   :  { %23452 = vpow2.f32 %v19196_v26 }
 0x125   :  { %v23451_v24 = vpop.eup %23450 }
 0x126   :  { %1149 = vrot.lane.b32.xlu0 %v23451_v24, %s24053_s27 }
 0x127   :  { %v23453_v28 = vpop.eup %23452 }
 0x128   :  { %v1139_v29 = vadd.f32 1.0, %v23453_v28 }
 0x12a   :  { %1144 = vrot.lane.b32.xlu0 %v671_v25, %s24054_s16  ;;  %23454 = vrcp.f32 %v1139_v29 }
 0x134   :  { %v23455_v31 = vpop.eup %23454 }
 0x198   :  { %v1150_v32 = vpop.permute.xlu0 %1149 }
 0x199   :  { %v1152_v33 = vmul.f32 %v23455_v31, %v1150_v32 }
 0x19b   :  { %1154 = vrot.lane.b32.xlu1 %v1152_v33, %s24054_s16 }
 0x19c   :  { %v1145_v34 = vpop.permute.xlu0 %1144 }
 0x19d   :  { %v1147_v35 = vmul.f32 %v23455_v31, %v1145_v34 }
 0x20d   :  { %v1155_v36 = vpop.permute.xlu1 %1154 }
 0x20e   :  { %v1157_v37 = vadd.f32 %v1155_v36, %v1147_v35 }
 0x210   :  { %23456 = vtanh.f32 %v1157_v37  ;;  %v1643_v62 = vrot.slane %v1157_v37, 6 }
 0x21a   :  { %v23457_v38 = vpop.eup %23456 }
 0x21b   :  { %1160 = vrot.lane.b32.xlu1 %v23457_v38, %s24055_s29 }
 0x28d   :  { %v1161_v39 = vpop.permute.xlu1 %1160 }
 0x28e   :  { %v1163_v40 = vmul.f32 %v23455_v31, %v1161_v39 }
 0x290   :  { %1165 = vrot.lane.b32.xlu0 %v1163_v40, %s24056_s30 }
 0x302   :  { %v1166_v41 = vpop.permute.xlu0 %1165 }
 0x303   :  { %1169 = vst.msk [vmem:[#allocation2] sm:$0x3] %vm1168_vm3, %v1166_v41  ;;  %v1170_v42 = vsel %vm672_vm2, %v1166_v41, 0 }
 0x304   :  { %v1239_v43 = vand.u32 4294901760, %v1170_v42 }
 0x306   :  { %v1240_v44 = vsub.f32 %v1170_v42, %v1239_v43 }
 0x308   :  { %v1241_v45 = vand.u32 4294901760, %v1240_v44 }
 0x30a   :  { %v1242_v46 = vsub.f32 %v1240_v44, %v1241_v45 }
 0x30c   :  { %v1243_v47 = vand.u32 4294901760, %v1242_v46 }
 0x30e   :  { %20521 = vmatmul.mubr.f32.vlgmr.msra.gmra.mrb[12].mxu1 %v1243_v47 }
 0x30f   :  { %21919 = vmatpush3.bf16.msra.mxu1 %v24251_v57  ;;  %20527 = vmatprep.mubr.msk.f32.mxu1 %vm24051_vm1, %v29560_v27 }
 0x310   :  { %21920 = vmatprep.subr.bf16.mxu1 %v29558_v9 }
 0x316   :  { %20528 = vmatmul.mubr.f32.vlgmr.msra.gmra.mrb[12].mxu1 %v1239_v43 }
 0x317   :  { %21922 = vmatpush3.bf16.msra.mxu1 %v24258_v58  ;;  %20534 = vmatprep.mubr.msk.f32.mxu1 %vm24051_vm1, %v29560_v27 }
 0x318   :  { %21923 = vmatprep.subr.bf16.mxu1 %v29558_v9 }
 0x31e   :  { %20535 = vmatmul.mubr.f32.vlgmr.msra.gmra.mrb[12].mxu1 %v1240_v44 }
 0x31f   :  { %21925 = vmatpush3.bf16.msra.mxu1 %v24226_v30  ;;  %20541 = vmatprep.mubr.msk.f32.mxu1 %vm24051_vm1, %v29560_v27 }
 0x320   :  { %21926 = vmatprep.subr.bf16.mxu1 %v29558_v9 }
 0x326   :  { %20542 = vmatmul.mubr.f32.vlgmr.msra.gmra.mrb[12].mxu1 %v1241_v45 }
 0x327   :  { %21928 = vmatpush3.bf16.msra.mxu1 %v24275_v59  ;;  %20548 = vmatprep.mubr.msk.f32.mxu1 %vm24051_vm1, %v29560_v27 }
 0x328   :  { %21929 = vmatprep.subr.bf16.mxu1 %v29558_v9 }
 0x32e   :  { %20549 = vmatmul.mubr.f32.vlgmr.msra.gmra.mrb[12].mxu1 %v1239_v43 }
 0x32f   :  { %21931 = vmatpush3.bf16.msra.mxu1 %v24226_v30  ;;  %20555 = vmatprep.mubr.msk.f32.mxu1 %vm24051_vm1, %v29560_v27 }
 0x330   :  { %21950 = vmatprep.subr.bf16.mxu1 %v29558_v9 }
 0x336   :  { %20556 = vmatmul.mubr.f32.vlgmr.msra.gmra.mrb[12].mxu1 %v1239_v43 }
 0x337   :  { %21952 = vmatpush3.bf16.msra.mxu1 %v24226_v30  ;;  %20604 = vmatprep.mubr.msk.f32.mxu1 %vm24051_vm1, %v29560_v27 }
 0x338   :  { %21953 = vmatprep.subr.bf16.mxu1 %v29558_v9 }
 0x409   :  { %v1627_v48 = vpop.f32.mrb[12].mxu1 }
 0x40a   :  { %v1632_v49 = vrot.slane %v1627_v48, 6  ;;  %v20557_v50 = vpop.f32.mrb[13].mxu1 }
 0x40c   :  { %v1634_v51 = vadd.f32 %v24325_v18, %v1632_v49 }
 0x40e   :  { %23458 = vtanh.f32 %v1634_v51  ;;  %v19197_v53 = vmul.f32 -1.442695, %v1634_v51 }
 0x410   :  { %23460 = vpow2.f32 %v19197_v53 }
 0x418   :  { %v23459_v52 = vpop.eup %23458 }
 0x419   :  { %1647 = vrot.lane.b32.xlu1 %v23459_v52, %s24053_s27 }
 0x41a   :  { %v23461_v54 = vpop.eup %23460 }
 0x41b   :  { %v1638_v55 = vadd.f32 1.0, %v23461_v54 }
 0x41d   :  { %23462 = vrcp.f32 %v1638_v55 }
 0x427   :  { %v23463_v56 = vpop.eup %23462 }
 0x428   :  { %v1645_v63 = vmul.f32 %v23463_v56, %v1643_v62 }
 0x48b   :  { %v1648_v60 = vpop.permute.xlu1 %1647 }
 0x48c   :  { %v1650_v61 = vmul.f32 %v23463_v56, %v1648_v60 }
 0x48e   :  { %1652 = vrot.lane.b32.xlu0 %v1650_v61, %s24054_s16 }
 0x500   :  { %v1653_v0 = vpop.permute.xlu0 %1652 }
 0x501   :  { %v1655_v1 = vadd.f32 %v1653_v0, %v1645_v63 }
 0x503   :  { %23464 = vtanh.f32 %v1655_v1  ;;  %v2144_v31 = vrot.slane %v1655_v1, 6 }
 0x50d   :  { %v23465_v2 = vpop.eup %23464 }
 0x50e   :  { %1658 = vrot.lane.b32.xlu1 %v23465_v2, %s24055_s29 }
 0x580   :  { %v1659_v3 = vpop.permute.xlu1 %1658 }
 0x581   :  { %v24370_v4 = vmul.f32 %v23463_v56, %v1659_v3 }
 0x583   :  { %v1668_v5 = vrot.slane %v24370_v4, 2 }
 0x585   :  { %1669 = vrot.lane.b32.xlu0 %v1668_v5, %s24056_s30 }
 0x5f7   :  { %v1670_v6 = vpop.permute.xlu0 %1669 }
 0x5f8   :  { %v1671_v7 = vsel %vm672_vm2, %v1670_v6, 0 }
 0x5f9   :  { %v1740_v8 = vand.u32 4294901760, %v1671_v7 }
 0x5fb   :  { %v1741_v10 = vsub.f32 %v1671_v7, %v1740_v8 }
 0x5fd   :  { %v1742_v11 = vand.u32 4294901760, %v1741_v10 }
 0x5ff   :  { %v1743_v12 = vsub.f32 %v1741_v10, %v1742_v11 }
 0x601   :  { %v1744_v13 = vand.u32 4294901760, %v1743_v12 }
 0x603   :  { %20563 = vmatmul.mubr.f32.vlgmr.msra.gmra.mrb[4].mxu0 %v1744_v13 }
 0x604   :  { %21937 = vmatpush3.bf16.msra.mxu0 %v24251_v57  ;;  %20569 = vmatprep.mubr.msk.f32.mxu0 %vm24051_vm1, %v29560_v27 }
 0x605   :  { %21938 = vmatprep.subr.bf16.mxu0 %v29558_v9 }
 0x60b   :  { %20570 = vmatmul.mubr.f32.vlgmr.msra.gmra.mrb[4].mxu0 %v1740_v8 }
 0x60c   :  { %21940 = vmatpush3.bf16.msra.mxu0 %v24258_v58  ;;  %20576 = vmatprep.mubr.msk.f32.mxu0 %vm24051_vm1, %v29560_v27 }
 0x60d   :  { %21941 = vmatprep.subr.bf16.mxu0 %v29558_v9 }
 0x613   :  { %20577 = vmatmul.mubr.f32.vlgmr.msra.gmra.mrb[4].mxu0 %v1741_v10 }
 0x614   :  { %21943 = vmatpush3.bf16.msra.mxu0 %v24226_v30  ;;  %20583 = vmatprep.mubr.msk.f32.mxu0 %vm24051_vm1, %v29560_v27 }
 0x615   :  { %21944 = vmatprep.subr.bf16.mxu0 %v29558_v9 }
 0x61b   :  { %20584 = vmatmul.mubr.f32.vlgmr.msra.gmra.mrb[4].mxu0 %v1742_v11 }
 0x61c   :  { %21946 = vmatpush3.bf16.msra.mxu0 %v24275_v59  ;;  %20590 = vmatprep.mubr.msk.f32.mxu0 %vm24051_vm1, %v29560_v27 }
 0x61d   :  { %21947 = vmatprep.subr.bf16.mxu0 %v29558_v9 }
 0x623   :  { %20591 = vmatmul.mubr.f32.vlgmr.msra.gmra.mrb[4].mxu0 %v1740_v8 }
 0x624   :  { %21949 = vmatpush3.bf16.msra.mxu0 %v24226_v30  ;;  %20597 = vmatprep.mubr.msk.f32.mxu0 %vm24051_vm1, %v29560_v27 }
 0x625   :  { %21968 = vmatprep.subr.bf16.mxu0 %v29558_v9 }
 0x62b   :  { %20598 = vmatmul.mubr.f32.vlgmr.msra.gmra.mrb[4].mxu0 %v1740_v8 }
 0x62c   :  { %21970 = vmatpush3.bf16.msra.mxu0 %v24226_v30  ;;  %20646 = vmatprep.mubr.msk.f32.mxu0 %vm24051_vm1, %v29560_v27 }
 0x62d   :  { %21974 = vmatprep.subr.bf16.mxu0 %v29558_v9 }
 0x6fe   :  { %v2128_v14 = vpop.f32.mrb[4].mxu0 }
 0x6ff   :  { %v2133_v15 = vrot.slane %v2128_v14, 4  ;;  %v20599_v17 = vpop.f32.mrb[5].mxu0 }
 0x701   :  { %v2135_v19 = vadd.f32 %v24325_v18, %v2133_v15 }
 0x703   :  { %23466 = vtanh.f32 %v2135_v19  ;;  %v19198_v22 = vmul.f32 -1.442695, %v2135_v19 }
 0x705   :  { %23468 = vpow2.f32 %v19198_v22 }
 0x70d   :  { %v23467_v20 = vpop.eup %23466 }
 0x70e   :  { %2148 = vrot.lane.b32.xlu1 %v23467_v20, %s24053_s27 }
 0x70f   :  { %v23469_v24 = vpop.eup %23468 }
 0x710   :  { %v2139_v25 = vadd.f32 1.0, %v23469_v24 }
 0x712   :  { %23470 = vrcp.f32 %v2139_v25 }
 0x71c   :  { %v23471_v26 = vpop.eup %23470 }
 0x71d   :  { %v2146_v32 = vmul.f32 %v23471_v26, %v2144_v31 }
 0x780   :  { %v2149_v28 = vpop.permute.xlu1 %2148 }
 0x781   :  { %v2151_v29 = vmul.f32 %v23471_v26, %v2149_v28 }
 0x783   :  { %2153 = vrot.lane.b32.xlu0 %v2151_v29, %s24054_s16 }
 0x7f5   :  { %v2154_v33 = vpop.permute.xlu0 %2153 }
 0x7f6   :  { %v2156_v34 = vadd.f32 %v2154_v33, %v2146_v32 }
 0x7f8   :  { %23472 = vtanh.f32 %v2156_v34  ;;  %v2645_v60 = vrot.slane %v2156_v34, 6 }
 0x802   :  { %v23473_v35 = vpop.eup %23472 }
 0x803   :  { %2159 = vrot.lane.b32.xlu1 %v23473_v35, %s24055_s29 }
 0x875   :  { %v2160_v36 = vpop.permute.xlu1 %2159 }
 0x876   :  { %v24403_v37 = vmul.f32 %v23471_v26, %v2160_v36 }
 0x878   :  { %v2169_v38 = vrot.slane %v24403_v37, 4 }
 0x87a   :  { %2170 = vrot.lane.b32.xlu0 %v2169_v38, %s24056_s30 }
 0x8ec   :  { %v2171_v39 = vpop.permute.xlu0 %2170 }
 0x8ed   :  { %v2172_v40 = vsel %vm672_vm2, %v2171_v39, 0 }
 0x8ee   :  { %v2241_v41 = vand.u32 4294901760, %v2172_v40 }
 0x8f0   :  { %v2242_v42 = vsub.f32 %v2172_v40, %v2241_v41 }
 0x8f2   :  { %v2243_v43 = vand.u32 4294901760, %v2242_v42 }
 0x8f4   :  { %v2244_v44 = vsub.f32 %v2242_v42, %v2243_v43 }
 0x8f6   :  { %v2245_v45 = vand.u32 4294901760, %v2244_v44 }
 0x8f8   :  { %20605 = vmatmul.mubr.f32.vlgmr.msra.gmra.mrb[14].mxu1 %v2245_v45 }
 0x8f9   :  { %21955 = vmatpush3.bf16.msra.mxu1 %v24251_v57  ;;  %20611 = vmatprep.mubr.msk.f32.mxu1 %vm24051_vm1, %v29560_v27 }
 0x8fa   :  { %21956 = vmatprep.subr.bf16.mxu1 %v29558_v9 }
 0x900   :  { %20612 = vmatmul.mubr.f32.vlgmr.msra.gmra.mrb[14].mxu1 %v2241_v41 }
 0x901   :  { %21958 = vmatpush3.bf16.msra.mxu1 %v24258_v58  ;;  %20618 = vmatprep.mubr.msk.f32.mxu1 %vm24051_vm1, %v29560_v27 }
 0x902   :  { %21959 = vmatprep.subr.bf16.mxu1 %v29558_v9 }
 0x908   :  { %20619 = vmatmul.mubr.f32.vlgmr.msra.gmra.mrb[14].mxu1 %v2242_v42 }
 0x909   :  { %21961 = vmatpush3.bf16.msra.mxu1 %v24226_v30  ;;  %20625 = vmatprep.mubr.msk.f32.mxu1 %vm24051_vm1, %v29560_v27 }
 0x90a   :  { %21962 = vmatprep.subr.bf16.mxu1 %v29558_v9 }
 0x910   :  { %20626 = vmatmul.mubr.f32.vlgmr.msra.gmra.mrb[14].mxu1 %v2243_v43 }
 0x911   :  { %21964 = vmatpush3.bf16.msra.mxu1 %v24275_v59  ;;  %20632 = vmatprep.mubr.msk.f32.mxu1 %vm24051_vm1, %v29560_v27 }
 0x912   :  { %21965 = vmatprep.subr.bf16.mxu1 %v29558_v9 }
 0x918   :  { %20633 = vmatmul.mubr.f32.vlgmr.msra.gmra.mrb[14].mxu1 %v2241_v41 }
 0x919   :  { %21967 = vmatpush3.bf16.msra.mxu1 %v24226_v30  ;;  %20639 = vmatprep.mubr.msk.f32.mxu1 %vm24051_vm1, %v29560_v27 }
 0x91a   :  { %21971 = vmatprep.subr.bf16.mxu1 %v29558_v9 }
 0x920   :  { %20640 = vmatmul.mubr.f32.vlgmr.msra.gmra.mrb[14].mxu1 %v2241_v41 }
 0x921   :  { %21973 = vmatpush3.bf16.msra.mxu1 %v24251_v57  ;;  %20653 = vmatprep.mubr.msk.f32.mxu1 %vm24051_vm1, %v29560_v27 }
 0x922   :  { %21977 = vmatprep.subr.bf16.mxu1 %v29558_v9 }
 0x9f3   :  { %v2629_v46 = vpop.f32.mrb[14].mxu1 }
 0x9f4   :  { %v2634_v47 = vrot.slane %v2629_v46, 2  ;;  %v20641_v48 = vpop.f32.mrb[15].mxu1 }
 0x9f6   :  { %v2636_v49 = vadd.f32 %v24325_v18, %v2634_v47 }
 0x9f8   :  { %23474 = vtanh.f32 %v2636_v49  ;;  %v19199_v51 = vmul.f32 -1.442695, %v2636_v49 }
 0x9fa   :  { %23476 = vpow2.f32 %v19199_v51 }
 0xa02   :  { %v23475_v50 = vpop.eup %23474 }
 0xa03   :  { %2649 = vrot.lane.b32.xlu1 %v23475_v50, %s24053_s27 }
 0xa04   :  { %v23477_v52 = vpop.eup %23476 }
 0xa05   :  { %v2640_v53 = vadd.f32 1.0, %v23477_v52 }
 0xa07   :  { %23478 = vrcp.f32 %v2640_v53 }
 0xa11   :  { %v23479_v54 = vpop.eup %23478 }
 0xa12   :  { %v2647_v61 = vmul.f32 %v23479_v54, %v2645_v60 }
 0xa75   :  { %v2650_v55 = vpop.permute.xlu1 %2649 }
 0xa76   :  { %v2652_v56 = vmul.f32 %v23479_v54, %v2650_v55 }
 0xa78   :  { %2654 = vrot.lane.b32.xlu0 %v2652_v56, %s24054_s16 }
 0xaea   :  { %v2655_v62 = vpop.permute.xlu0 %2654 }
 0xaeb   :  { %v24435_v63 = vadd.f32 %v2655_v62, %v2647_v61 }
 0xaed   :  { %23480 = vtanh.f32 %v24435_v63  ;;  %v3143_v44 = vrot.slane %v24435_v63, 6 }
 0xaf7   :  { %v23481_v18 = vpop.eup %23480 }
 0xaf8   :  { %2660 = vrot.lane.b32.xlu1 %v23481_v18, %s24055_s29 }
 0xb6a   :  { %v2661_v0 = vpop.permute.xlu1 %2660 }
 0xb6b   :  { %v24439_v1 = vmul.f32 %v23479_v54, %v2661_v0 }
 0xb6d   :  { %v2670_v2 = vrot.slane %v24439_v1, 6 }
 0xb6f   :  { %2671 = vrot.lane.b32.xlu0 %v2670_v2, %s24056_s30 }
 0xbe1   :  { %v2672_v3 = vpop.permute.xlu0 %2671 }
 0xbe2   :  { %v2673_v5 = vsel %vm672_vm2, %v2672_v3, 0 }
 0xbe3   :  { %v2742_v6 = vand.u32 4294901760, %v2673_v5 }
 0xbe5   :  { %v2743_v7 = vsub.f32 %v2673_v5, %v2742_v6  ;;  %20654 = vmatmul.mubr.f32.vlgmr.msra.gmra.mrb[16].mxu1 %v2742_v6 }
 0xbe6   :  { %21979 = vmatpush3.bf16.msra.mxu1 %v24226_v30  ;;  %20667 = vmatprep.mubr.msk.f32.mxu1 %vm24051_vm1, %v29560_v27 }
 0xbe7   :  { %v2744_v8 = vand.u32 4294901760, %v2743_v7  ;;  %21983 = vmatprep.subr.bf16.mxu1 %v29558_v9 }
 0xbe9   :  { %v2745_v10 = vsub.f32 %v2743_v7, %v2744_v8  ;;  %20668 = vmatmul.mubr.f32.vlgmr.msra.gmra.mrb[18].mxu1 %v2744_v8 }
 0xbea   :  { %21985 = vmatpush3.bf16.msra.mxu1 %v24226_v30  ;;  %20681 = vmatprep.mubr.msk.f32.mxu1 %vm24051_vm1, %v29560_v27 }
 0xbeb   :  { %v2746_v11 = vand.u32 4294901760, %v2745_v10  ;;  %22004 = vmatprep.subr.bf16.mxu1 %v29558_v9 }
 0xbed   :  { %20647 = vmatmul.mubr.f32.vlgmr.msra.gmra.mrb[6].mxu0 %v2746_v11  ;;  %20682 = vmatmul.mubr.f32.vlgmr.msra.gmra.mrb[20].mxu1 %v2742_v6 }
 0xbee   :  { %21976 = vmatpush3.bf16.msra.mxu0 %v24258_v58  ;;  %20660 = vmatprep.mubr.msk.f32.mxu0 %vm24051_vm1, %v29560_v27 }
 0xbef   :  { %21980 = vmatprep.subr.bf16.mxu0 %v29558_v9  ;;  %22006 = vmatpush3.bf16.msra.mxu1 %v24226_v30 }
 0xbf0   :  { %20730 = vmatprep.mubr.msk.f32.mxu1 %vm24051_vm1, %v29560_v27  ;;  %22007 = vmatprep.subr.bf16.mxu1 %v29558_v9 }
 0xbf1   :  { %20661 = vmatmul.mubr.f32.vlgmr.msra.gmra.mrb[8].mxu0 %v2743_v7 }
 0xbf2   :  { %21982 = vmatpush3.bf16.msra.mxu0 %v24275_v59  ;;  %20674 = vmatprep.mubr.msk.f32.mxu0 %vm24051_vm1, %v29560_v27 }
 0xbf3   :  { %21986 = vmatprep.subr.bf16.mxu0 %v29558_v9 }
 0xbf5   :  { %20675 = vmatmul.mubr.f32.vlgmr.msra.gmra.mrb[10].mxu0 %v2742_v6 }
 0xbf6   :  { %21988 = vmatpush3.bf16.msra.mxu0 %v24226_v30  ;;  %20688 = vmatprep.mubr.msk.f32.mxu0 %vm24051_vm1, %v29560_v27 }
 0xbf7   :  { %21989 = vmatprep.subr.bf16.mxu0 %v29558_v9 }
 0xcb8   :  { %v2829_v12 = vpop.f32.mrb[16].mxu1 }
 0xcb9   :  { %v20655_v13 = vpop.f32.mrb[17].mxu1 }
 0xcbc   :  { %v2980_v14 = vpop.f32.mrb[18].mxu1 }
 0xcbd   :  { %v20669_v15 = vpop.f32.mrb[19].mxu1 }
 0xcc0   :  { %v2748_v17 = vpop.f32.mrb[6].mxu0  ;;  %v3130_v19 = vpop.f32.mrb[20].mxu1 }
 0xcc1   :  { %v2830_v20 = vadd.f32 %v2829_v12, %v2748_v17  ;;  %v20648_v22 = vpop.f32.mrb[7].mxu0  ;;  %v20683_v24 = vpop.f32.mrb[21].mxu1 }
 0xcc4   :  { %v2905_v25 = vpop.f32.mrb[8].mxu0 }
 0xcc5   :  { %v2906_v26 = vadd.f32 %v2905_v25, %v2830_v20  ;;  %v20662_v28 = vpop.f32.mrb[9].mxu0 }
 0xcc7   :  { %v2981_v29 = vadd.f32 %v2980_v14, %v2906_v26 }
 0xcc8   :  { %v3057_v31 = vpop.f32.mrb[10].mxu0 }
 0xcc9   :  { %v3058_v32 = vadd.f32 %v3057_v31, %v2981_v29  ;;  %v20676_v33 = vpop.f32.mrb[11].mxu0 }
 0xccb   :  { %v3131_v34 = vadd.f32 %v3130_v19, %v3058_v32 }
 0xccd   :  { %v3134_v35 = vadd.f32 %v24323_v16, %v3131_v34 }
 0xccf   :  { %23482 = vtanh.f32 %v3134_v35  ;;  %v19200_v38 = vmul.f32 -1.442695, %v3134_v35 }
 0xcd1   :  { %23484 = vpow2.f32 %v19200_v38 }
 0xcd9   :  { %v23483_v36 = vpop.eup %23482 }
 0xcda   :  { %3147 = vrot.lane.b32.xlu1 %v23483_v36, %s24053_s27 }
 0xcdb   :  { %v23485_v39 = vpop.eup %23484 }
 0xcdc   :  { %v3138_v40 = vadd.f32 1.0, %v23485_v39 }
 0xcde   :  { %23486 = vrcp.f32 %v3138_v40 }
 0xce8   :  { %v23487_v41 = vpop.eup %23486 }
 0xce9   :  { %v3145_v45 = vmul.f32 %v23487_v41, %v3143_v44 }
 0xd4c   :  { %v3148_v42 = vpop.permute.xlu1 %3147 }
 0xd4d   :  { %v3150_v43 = vmul.f32 %v23487_v41, %v3148_v42 }
 0xd4f   :  { %3152 = vrot.lane.b32.xlu0 %v3150_v43, %s24054_s16 }
 0xdc1   :  { %v3153_v46 = vpop.permute.xlu0 %3152 }
 0xdc2   :  { %v3155_v47 = vadd.f32 %v3153_v46, %v3145_v45 }
 0xdc4   :  { %23488 = vtanh.f32 %v3155_v47  ;;  %v3640_v10 = vrot.slane %v3155_v47, 6 }
 0xdce   :  { %v23489_v48 = vpop.eup %23488 }
 0xdcf   :  { %3158 = vrot.lane.b32.xlu1 %v23489_v48, %s24055_s29 }
 0xe41   :  { %v3159_v49 = vpop.permute.xlu1 %3158 }
 0xe42   :  { %v3161_v50 = vmul.f32 %v23487_v41, %v3159_v49 }
 0xe44   :  { %3163 = vrot.lane.b32.xlu0 %v3161_v50, %s24056_s30 }
 0xeb6   :  { %v3164_v51 = vpop.permute.xlu0 %3163 }
 0xeb7   :  { %3166 = vst.msk [vmem:[#allocation2 + $0x8] sm:$0x3] %vm1168_vm3, %v3164_v51  ;;  %v3167_v52 = vsel %vm672_vm2, %v3164_v51, 0 }
 0xeb8   :  { %v3236_v53 = vand.u32 4294901760, %v3167_v52 }
 0xeba   :  { %v3237_v54 = vsub.f32 %v3167_v52, %v3236_v53 }
 0xebc   :  { %v3238_v55 = vand.u32 4294901760, %v3237_v54 }
 0xebe   :  { %v3239_v56 = vsub.f32 %v3237_v54, %v3238_v55 }
 0xec0   :  { %v3240_v60 = vand.u32 4294901760, %v3239_v56 }
 0xec2   :  { %20689 = vmatmul.mubr.f32.vlgmr.msra.gmra.mrb[12].mxu0 %v3240_v60 }
 0xec3   :  { %21991 = vmatpush3.bf16.msra.mxu0 %v24251_v57  ;;  %20695 = vmatprep.mubr.msk.f32.mxu0 %vm24051_vm1, %v29560_v27 }
 0xec4   :  { %21992 = vmatprep.subr.bf16.mxu0 %v29558_v9 }
 0xeca   :  { %20696 = vmatmul.mubr.f32.vlgmr.msra.gmra.mrb[12].mxu0 %v3236_v53 }
 0xecb   :  { %21994 = vmatpush3.bf16.msra.mxu0 %v24258_v58  ;;  %20702 = vmatprep.mubr.msk.f32.mxu0 %vm24051_vm1, %v29560_v27 }
 0xecc   :  { %21995 = vmatprep.subr.bf16.mxu0 %v29558_v9 }
 0xed2   :  { %20703 = vmatmul.mubr.f32.vlgmr.msra.gmra.mrb[12].mxu0 %v3237_v54 }
 0xed3   :  { %21997 = vmatpush3.bf16.msra.mxu0 %v24226_v30  ;;  %20709 = vmatprep.mubr.msk.f32.mxu0 %vm24051_vm1, %v29560_v27 }
 0xed4   :  { %21998 = vmatprep.subr.bf16.mxu0 %v29558_v9 }
 0xeda   :  { %20710 = vmatmul.mubr.f32.vlgmr.msra.gmra.mrb[12].mxu0 %v3238_v55 }
 0xedb   :  { %22000 = vmatpush3.bf16.msra.mxu0 %v24275_v59  ;;  %20716 = vmatprep.mubr.msk.f32.mxu0 %vm24051_vm1, %v29560_v27 }
 0xedc   :  { %22001 = vmatprep.subr.bf16.mxu0 %v29558_v9 }
 0xee2   :  { %20717 = vmatmul.mubr.f32.vlgmr.msra.gmra.mrb[12].mxu0 %v3236_v53 }
 0xee3   :  { %22003 = vmatpush3.bf16.msra.mxu0 %v24226_v30  ;;  %20723 = vmatprep.mubr.msk.f32.mxu0 %vm24051_vm1, %v29560_v27 }
 0xee4   :  { %22022 = vmatprep.subr.bf16.mxu0 %v29558_v9 }
 0xeea   :  { %20724 = vmatmul.mubr.f32.vlgmr.msra.gmra.mrb[12].mxu0 %v3236_v53 }
 0xeeb   :  { %22024 = vmatpush3.bf16.msra.mxu0 %v24226_v30  ;;  %20772 = vmatprep.mubr.msk.f32.mxu0 %vm24051_vm1, %v29560_v27 }
 0xeec   :  { %22025 = vmatprep.subr.bf16.mxu0 %v29558_v9 }
 0xfbd   :  { %v3624_v61 = vpop.f32.mrb[12].mxu0 }
 0xfbe   :  { %v3629_v62 = vrot.slane %v3624_v61, 6  ;;  %v20725_v63 = vpop.f32.mrb[13].mxu0 }
 0xfc0   :  { %v3631_v18 = vadd.f32 %v24323_v16, %v3629_v62 }
 0xfc2   :  { %23490 = vtanh.f32 %v3631_v18  ;;  %v19201_v2 = vmul.f32 -1.442695, %v3631_v18 }
 0xfc4   :  { %23492 = vpow2.f32 %v19201_v2 }
 0xfcc   :  { %v23491_v0 = vpop.eup %23490 }
 0xfcd   :  { %3644 = vrot.lane.b32.xlu1 %v23491_v0, %s24053_s27 }
 0xfce   :  { %v23493_v3 = vpop.eup %23492 }
 0xfcf   :  { %v3635_v5 = vadd.f32 1.0, %v23493_v3 }
 0xfd1   :  { %23494 = vrcp.f32 %v3635_v5 }
 0xfdb   :  { %v23495_v6 = vpop.eup %23494 }
 0xfdc   :  { %v3642_v11 = vmul.f32 %v23495_v6, %v3640_v10 }
0x103f   :  { %v3645_v7 = vpop.permute.xlu1 %3644 }
0x1040   :  { %v3647_v8 = vmul.f32 %v23495_v6, %v3645_v7 }
0x1042   :  { %3649 = vrot.lane.b32.xlu0 %v3647_v8, %s24054_s16 }
0x10b4   :  { %v3650_v12 = vpop.permute.xlu0 %3649 }
0x10b5   :  { %v3652_v13 = vadd.f32 %v3650_v12, %v3642_v11 }
0x10b7   :  { %23496 = vtanh.f32 %v3652_v13  ;;  %v4140_v43 = vrot.slane %v3652_v13, 6 }
0x10c1   :  { %v23497_v14 = vpop.eup %23496 }
0x10c2   :  { %3655 = vrot.lane.b32.xlu1 %v23497_v14, %s24055_s29 }
0x1134   :  { %v3656_v15 = vpop.permute.xlu1 %3655 }
0x1135   :  { %v24504_v17 = vmul.f32 %v23495_v6, %v3656_v15 }
0x1137   :  { %v3664_v19 = vrot.slane %v24504_v17, 2 }
0x1139   :  { %3665 = vrot.lane.b32.xlu0 %v3664_v19, %s24056_s30 }
0x11ab   :  { %v3666_v20 = vpop.permute.xlu0 %3665 }
0x11ac   :  { %v3667_v22 = vsel %vm672_vm2, %v3666_v20, 0 }
0x11ad   :  { %v3736_v24 = vand.u32 4294901760, %v3667_v22 }
0x11af   :  { %v3737_v25 = vsub.f32 %v3667_v22, %v3736_v24 }
0x11b1   :  { %v3738_v26 = vand.u32 4294901760, %v3737_v25 }
0x11b3   :  { %v3739_v28 = vsub.f32 %v3737_v25, %v3738_v26 }
0x11b5   :  { %v3740_v29 = vand.u32 4294901760, %v3739_v28 }
0x11b7   :  { %20731 = vmatmul.mubr.f32.vlgmr.msra.gmra.mrb[22].mxu1 %v3740_v29 }
0x11b8   :  { %22009 = vmatpush3.bf16.msra.mxu1 %v24251_v57  ;;  %20737 = vmatprep.mubr.msk.f32.mxu1 %vm24051_vm1, %v29560_v27 }
0x11b9   :  { %22010 = vmatprep.subr.bf16.mxu1 %v29558_v9 }
0x11bf   :  { %20738 = vmatmul.mubr.f32.vlgmr.msra.gmra.mrb[22].mxu1 %v3736_v24 }
0x11c0   :  { %22012 = vmatpush3.bf16.msra.mxu1 %v24258_v58  ;;  %20744 = vmatprep.mubr.msk.f32.mxu1 %vm24051_vm1, %v29560_v27 }
0x11c1   :  { %22013 = vmatprep.subr.bf16.mxu1 %v29558_v9 }
0x11c7   :  { %20745 = vmatmul.mubr.f32.vlgmr.msra.gmra.mrb[22].mxu1 %v3737_v25 }
0x11c8   :  { %22015 = vmatpush3.bf16.msra.mxu1 %v24226_v30  ;;  %20751 = vmatprep.mubr.msk.f32.mxu1 %vm24051_vm1, %v29560_v27 }
0x11c9   :  { %22016 = vmatprep.subr.bf16.mxu1 %v29558_v9 }
0x11cf   :  { %20752 = vmatmul.mubr.f32.vlgmr.msra.gmra.mrb[22].mxu1 %v3738_v26 }
0x11d0   :  { %22018 = vmatpush3.bf16.msra.mxu1 %v24275_v59  ;;  %20758 = vmatprep.mubr.msk.f32.mxu1 %vm24051_vm1, %v29560_v27 }
0x11d1   :  { %22019 = vmatprep.subr.bf16.mxu1 %v29558_v9 }
0x11d7   :  { %20759 = vmatmul.mubr.f32.vlgmr.msra.gmra.mrb[22].mxu1 %v3736_v24 }
0x11d8   :  { %22021 = vmatpush3.bf16.msra.mxu1 %v24226_v30  ;;  %20765 = vmatprep.mubr.msk.f32.mxu1 %vm24051_vm1, %v29560_v27 }
0x11d9   :  { %22040 = vmatprep.subr.bf16.mxu1 %v29558_v9 }
0x11df   :  { %20766 = vmatmul.mubr.f32.vlgmr.msra.gmra.mrb[22].mxu1 %v3736_v24 }
0x11e0   :  { %22042 = vmatpush3.bf16.msra.mxu1 %v24226_v30  ;;  %20814 = vmatprep.mubr.msk.f32.mxu1 %vm24051_vm1, %v29560_v27 }
0x11e1   :  { %22043 = vmatprep.subr.bf16.mxu1 %v29558_v9 }
0x12b2   :  { %v4124_v31 = vpop.f32.mrb[22].mxu1 }
0x12b3   :  { %v4129_v32 = vrot.slane %v4124_v31, 4  ;;  %v20767_v33 = vpop.f32.mrb[23].mxu1 }
0x12b5   :  { %v4131_v34 = vadd.f32 %v24323_v16, %v4129_v32 }
0x12b7   :  { %23498 = vtanh.f32 %v4131_v34  ;;  %v19202_v36 = vmul.f32 -1.442695, %v4131_v34 }
0x12b9   :  { %23500 = vpow2.f32 %v19202_v36 }
0x12c1   :  { %v23499_v35 = vpop.eup %23498 }
0x12c2   :  { %4144 = vrot.lane.b32.xlu1 %v23499_v35, %s24053_s27 }
0x12c3   :  { %v23501_v38 = vpop.eup %23500 }
0x12c4   :  { %v4135_v39 = vadd.f32 1.0, %v23501_v38 }
0x12c6   :  { %23502 = vrcp.f32 %v4135_v39 }
0x12d0   :  { %v23503_v40 = vpop.eup %23502 }
0x12d1   :  { %v4142_v44 = vmul.f32 %v23503_v40, %v4140_v43 }
0x1334   :  { %v4145_v41 = vpop.permute.xlu1 %4144 }
0x1335   :  { %v4147_v42 = vmul.f32 %v23503_v40, %v4145_v41 }
0x1337   :  { %4149 = vrot.lane.b32.xlu0 %v4147_v42, %s24054_s16 }
0x13a9   :  { %v4150_v45 = vpop.permute.xlu0 %4149 }
0x13aa   :  { %v4152_v46 = vadd.f32 %v4150_v45, %v4142_v44 }
0x13ac   :  { %23504 = vtanh.f32 %v4152_v46  ;;  %v4640_v10 = vrot.slane %v4152_v46, 6 }
0x13b6   :  { %v23505_v47 = vpop.eup %23504 }
0x13b7   :  { %4155 = vrot.lane.b32.xlu1 %v23505_v47, %s24055_s29 }
0x1429   :  { %v4156_v48 = vpop.permute.xlu1 %4155 }
0x142a   :  { %v24537_v49 = vmul.f32 %v23503_v40, %v4156_v48 }
0x142c   :  { %v4164_v50 = vrot.slane %v24537_v49, 4 }
0x142e   :  { %4165 = vrot.lane.b32.xlu0 %v4164_v50, %s24056_s30 }
0x14a0   :  { %v4166_v51 = vpop.permute.xlu0 %4165 }
0x14a1   :  { %v4167_v52 = vsel %vm672_vm2, %v4166_v51, 0 }
0x14a2   :  { %v4236_v53 = vand.u32 4294901760, %v4167_v52 }
0x14a4   :  { %v4237_v54 = vsub.f32 %v4167_v52, %v4236_v53 }
0x14a6   :  { %v4238_v55 = vand.u32 4294901760, %v4237_v54 }
0x14a8   :  { %v4239_v56 = vsub.f32 %v4237_v54, %v4238_v55 }
0x14aa   :  { %v4240_v60 = vand.u32 4294901760, %v4239_v56 }
0x14ac   :  { %20773 = vmatmul.mubr.f32.vlgmr.msra.gmra.mrb[14].mxu0 %v4240_v60 }
0x14ad   :  { %22027 = vmatpush3.bf16.msra.mxu0 %v24251_v57  ;;  %20779 = vmatprep.mubr.msk.f32.mxu0 %vm24051_vm1, %v29560_v27 }
0x14ae   :  { %22028 = vmatprep.subr.bf16.mxu0 %v29558_v9 }
0x14b4   :  { %20780 = vmatmul.mubr.f32.vlgmr.msra.gmra.mrb[14].mxu0 %v4236_v53 }
0x14b5   :  { %22030 = vmatpush3.bf16.msra.mxu0 %v24258_v58  ;;  %20786 = vmatprep.mubr.msk.f32.mxu0 %vm24051_vm1, %v29560_v27 }
0x14b6   :  { %22031 = vmatprep.subr.bf16.mxu0 %v29558_v9 }
0x14bc   :  { %20787 = vmatmul.mubr.f32.vlgmr.msra.gmra.mrb[14].mxu0 %v4237_v54 }
0x14bd   :  { %22033 = vmatpush3.bf16.msra.mxu0 %v24226_v30  ;;  %20793 = vmatprep.mubr.msk.f32.mxu0 %vm24051_vm1, %v29560_v27 }
0x14be   :  { %22034 = vmatprep.subr.bf16.mxu0 %v29558_v9 }
0x14c4   :  { %20794 = vmatmul.mubr.f32.vlgmr.msra.gmra.mrb[14].mxu0 %v4238_v55 }
0x14c5   :  { %22036 = vmatpush3.bf16.msra.mxu0 %v24275_v59  ;;  %20800 = vmatprep.mubr.msk.f32.mxu0 %vm24051_vm1, %v29560_v27 }
0x14c6   :  { %22037 = vmatprep.subr.bf16.mxu0 %v29558_v9 }
0x14cc   :  { %20801 = vmatmul.mubr.f32.vlgmr.msra.gmra.mrb[14].mxu0 %v4236_v53 }
0x14cd   :  { %22039 = vmatpush3.bf16.msra.mxu0 %v24226_v30  ;;  %20807 = vmatprep.mubr.msk.f32.mxu0 %vm24051_vm1, %v29560_v27 }
0x14ce   :  { %22058 = vmatprep.subr.bf16.mxu0 %v29558_v9 }
0x14d4   :  { %20808 = vmatmul.mubr.f32.vlgmr.msra.gmra.mrb[14].mxu0 %v4236_v53 }
0x14d5   :  { %22060 = vmatpush3.bf16.msra.mxu0 %v24226_v30  ;;  %20856 = vmatprep.mubr.msk.f32.mxu0 %vm24051_vm1, %v29560_v27 }
0x14d6   :  { %22061 = vmatprep.subr.bf16.mxu0 %v29558_v9 }
0x15a7   :  { %v4624_v61 = vpop.f32.mrb[14].mxu0 }
0x15a8   :  { %v4629_v62 = vrot.slane %v4624_v61, 2  ;;  %v20809_v63 = vpop.f32.mrb[15].mxu0 }
0x15aa   :  { %v4631_v18 = vadd.f32 %v24323_v16, %v4629_v62 }
0x15ac   :  { %23506 = vtanh.f32 %v4631_v18  ;;  %v19203_v2 = vmul.f32 -1.442695, %v4631_v18 }
0x15ae   :  { %23508 = vpow2.f32 %v19203_v2 }
0x15b6   :  { %v23507_v0 = vpop.eup %23506 }
0x15b7   :  { %4644 = vrot.lane.b32.xlu1 %v23507_v0, %s24053_s27 }
0x15b8   :  { %v23509_v3 = vpop.eup %23508 }
0x15b9   :  { %v4635_v5 = vadd.f32 1.0, %v23509_v3 }
0x15bb   :  { %23510 = vrcp.f32 %v4635_v5 }
0x15c5   :  { %v23511_v6 = vpop.eup %23510 }
0x15c6   :  { %v4642_v11 = vmul.f32 %v23511_v6, %v4640_v10 }
0x1629   :  { %v4645_v7 = vpop.permute.xlu1 %4644 }
0x162a   :  { %v4647_v8 = vmul.f32 %v23511_v6, %v4645_v7 }
0x162c   :  { %4649 = vrot.lane.b32.xlu0 %v4647_v8, %s24054_s16 }
0x169e   :  { %v4650_v12 = vpop.permute.xlu0 %4649 }
0x169f   :  { %v24569_v13 = vadd.f32 %v4650_v12, %v4642_v11 }
0x16a1   :  { %23512 = vtanh.f32 %v24569_v13  ;;  %v5137_v61 = vrot.slane %v24569_v13, 6 }
0x16ab   :  { %v23513_v16 = vpop.eup %23512 }
0x16ac   :  { %4655 = vrot.lane.b32.xlu1 %v23513_v16, %s24055_s29 }
0x171e   :  { %v4656_v14 = vpop.permute.xlu1 %4655 }
0x171f   :  { %v24573_v15 = vmul.f32 %v23511_v6, %v4656_v14 }
0x1721   :  { %v4664_v19 = vrot.slane %v24573_v15, 6 }
0x1723   :  { %4665 = vrot.lane.b32.xlu0 %v4664_v19, %s24056_s30 }
0x1795   :  { %v4666_v20 = vpop.permute.xlu0 %4665 }
0x1796   :  { %v4667_v22 = vsel %vm672_vm2, %v4666_v20, 0 }
0x1797   :  { %v4736_v24 = vand.u32 4294901760, %v4667_v22 }
0x1799   :  { %v4737_v25 = vsub.f32 %v4667_v22, %v4736_v24 }
0x179b   :  { %v4738_v26 = vand.u32 4294901760, %v4737_v25 }
0x179d   :  { %v4739_v28 = vsub.f32 %v4737_v25, %v4738_v26 }
0x179f   :  { %v4740_v29 = vand.u32 4294901760, %v4739_v28 }
0x17a1   :  { %20815 = vmatmul.mubr.f32.vlgmr.msra.gmra.mrb[24].mxu1 %v4740_v29 }
0x17a2   :  { %22045 = vmatpush3.bf16.msra.mxu1 %v24251_v57  ;;  %20821 = vmatprep.mubr.msk.f32.mxu1 %vm24051_vm1, %v29560_v27 }
0x17a3   :  { %22046 = vmatprep.subr.bf16.mxu1 %v29558_v9 }
0x17a5   :  { %20822 = vmatmul.mubr.f32.vlgmr.msra.gmra.mrb[26].mxu1 %v4736_v24 }
0x17a6   :  { %22048 = vmatpush3.bf16.msra.mxu1 %v24258_v58  ;;  %20828 = vmatprep.mubr.msk.f32.mxu1 %vm24051_vm1, %v29560_v27 }
0x17a7   :  { %22049 = vmatprep.subr.bf16.mxu1 %v29558_v9 }
0x17a9   :  { %20829 = vmatmul.mubr.f32.vlgmr.msra.gmra.mrb[28].mxu1 %v4737_v25 }
0x17aa   :  { %22051 = vmatpush3.bf16.msra.mxu1 %v24226_v30  ;;  %20835 = vmatprep.mubr.msk.f32.mxu1 %vm24051_vm1, %v29560_v27 }
0x17ab   :  { %22052 = vmatprep.subr.bf16.mxu1 %v29558_v9 }
0x17ad   :  { %20836 = vmatmul.mubr.f32.vlgmr.msra.gmra.mrb[30].mxu1 %v4738_v26 }
0x17ae   :  { %22054 = vmatpush3.bf16.msra.mxu1 %v24275_v59  ;;  %20842 = vmatprep.mubr.msk.f32.mxu1 %vm24051_vm1, %v29560_v27 }
0x17af   :  { %22055 = vmatprep.subr.bf16.mxu1 %v29558_v9 }
0x17b1   :  { %20843 = vmatmul.mubr.f32.vlgmr.msra.gmra.mrb[32].mxu1 %v4736_v24 }
0x17b2   :  { %22057 = vmatpush3.bf16.msra.mxu1 %v24226_v30  ;;  %20849 = vmatprep.mubr.msk.f32.mxu1 %vm24051_vm1, %v29560_v27 }
0x17b3   :  { %22076 = vmatprep.subr.bf16.mxu1 %v29558_v9 }
0x17b5   :  { %20850 = vmatmul.mubr.f32.vlgmr.msra.gmra.mrb[34].mxu1 %v4736_v24 }
0x17b6   :  { %22078 = vmatpush3.bf16.msra.mxu1 %v24226_v30  ;;  %20898 = vmatprep.mubr.msk.f32.mxu1 %vm24051_vm1, %v29560_v27 }
0x17b7   :  { %22079 = vmatprep.subr.bf16.mxu1 %v29558_v9 }
0x1874   :  { %v4742_v31 = vpop.f32.mrb[24].mxu1 }
0x1875   :  { %v20816_v32 = vpop.f32.mrb[25].mxu1 }
0x1878   :  { %v4823_v33 = vpop.f32.mrb[26].mxu1 }
0x1879   :  { %v4824_v34 = vadd.f32 %v4823_v33, %v4742_v31  ;;  %v20823_v35 = vpop.f32.mrb[27].mxu1 }
0x187c   :  { %v4899_v36 = vpop.f32.mrb[28].mxu1 }
0x187d   :  { %v4900_v38 = vadd.f32 %v4899_v36, %v4824_v34  ;;  %v20830_v39 = vpop.f32.mrb[29].mxu1 }
0x1880   :  { %v4974_v40 = vpop.f32.mrb[30].mxu1 }
0x1881   :  { %v4975_v41 = vadd.f32 %v4974_v40, %v4900_v38  ;;  %v20837_v42 = vpop.f32.mrb[31].mxu1 }
0x1884   :  { %v5051_v43 = vpop.f32.mrb[32].mxu1 }
0x1885   :  { %v5052_v44 = vadd.f32 %v5051_v43, %v4975_v41  ;;  %v20844_v45 = vpop.f32.mrb[33].mxu1 }
0x1888   :  { %v5124_v46 = vpop.f32.mrb[34].mxu1 }
0x1889   :  { %v5125_v47 = vadd.f32 %v5124_v46, %v5052_v44  ;;  %v20851_v48 = vpop.f32.mrb[35].mxu1 }
0x188b   :  { %v5128_v50 = vadd.f32 %v24330_v23, %v5125_v47 }
0x188d   :  { %23514 = vtanh.f32 %v5128_v50  ;;  %v19204_v52 = vmul.f32 -1.442695, %v5128_v50 }
0x188f   :  { %23516 = vpow2.f32 %v19204_v52 }
0x1897   :  { %v23515_v51 = vpop.eup %23514 }
0x1898   :  { %5141 = vrot.lane.b32.xlu1 %v23515_v51, %s24053_s27 }
0x1899   :  { %v23517_v53 = vpop.eup %23516 }
0x189a   :  { %v5132_v54 = vadd.f32 1.0, %v23517_v53 }
0x189c   :  { %23518 = vrcp.f32 %v5132_v54 }
0x18a6   :  { %v23519_v55 = vpop.eup %23518 }
0x18a7   :  { %v5139_v62 = vmul.f32 %v23519_v55, %v5137_v61 }
0x190a   :  { %v5142_v56 = vpop.permute.xlu1 %5141 }
0x190b   :  { %v5144_v60 = vmul.f32 %v23519_v55, %v5142_v56 }
0x190d   :  { %5146 = vrot.lane.b32.xlu0 %v5144_v60, %s24054_s16 }
0x197f   :  { %v5147_v63 = vpop.permute.xlu0 %5146 }
0x1980   :  { %v5149_v18 = vadd.f32 %v5147_v63, %v5139_v62 }
0x1982   :  { %23520 = vtanh.f32 %v5149_v18  ;;  %v5634_v31 = vrot.slane %v5149_v18, 6 }
0x198c   :  { %v23521_v0 = vpop.eup %23520 }
0x198d   :  { %5152 = vrot.lane.b32.xlu1 %v23521_v0, %s24055_s29 }
0x19ff   :  { %v5153_v2 = vpop.permute.xlu1 %5152 }
0x1a00   :  { %v5155_v3 = vmul.f32 %v23519_v55, %v5153_v2 }
0x1a02   :  { %5157 = vrot.lane.b32.xlu0 %v5155_v3, %s24056_s30 }
0x1a74   :  { %v5158_v5 = vpop.permute.xlu0 %5157 }
0x1a75   :  { %5160 = vst.msk [vmem:[#allocation2 + $0x10] sm:$0x3] %vm1168_vm3, %v5158_v5  ;;  %v5161_v6 = vsel %vm672_vm2, %v5158_v5, 0 }
0x1a76   :  { %v5230_v7 = vand.u32 4294901760, %v5161_v6 }
0x1a78   :  { %v5231_v8 = vsub.f32 %v5161_v6, %v5230_v7 }
0x1a7a   :  { %v5232_v10 = vand.u32 4294901760, %v5231_v8 }
0x1a7c   :  { %v5233_v11 = vsub.f32 %v5231_v8, %v5232_v10 }
0x1a7e   :  { %v5234_v12 = vand.u32 4294901760, %v5233_v11 }
0x1a80   :  { %20857 = vmatmul.mubr.f32.vlgmr.msra.gmra.mrb[16].mxu0 %v5234_v12 }
0x1a81   :  { %22063 = vmatpush3.bf16.msra.mxu0 %v24251_v57  ;;  %20863 = vmatprep.mubr.msk.f32.mxu0 %vm24051_vm1, %v29560_v27 }
0x1a82   :  { %22064 = vmatprep.subr.bf16.mxu0 %v29558_v9 }
0x1a88   :  { %20864 = vmatmul.mubr.f32.vlgmr.msra.gmra.mrb[16].mxu0 %v5230_v7 }
0x1a89   :  { %22066 = vmatpush3.bf16.msra.mxu0 %v24258_v58  ;;  %20870 = vmatprep.mubr.msk.f32.mxu0 %vm24051_vm1, %v29560_v27 }
0x1a8a   :  { %22067 = vmatprep.subr.bf16.mxu0 %v29558_v9 }
0x1a90   :  { %20871 = vmatmul.mubr.f32.vlgmr.msra.gmra.mrb[16].mxu0 %v5231_v8 }
0x1a91   :  { %22069 = vmatpush3.bf16.msra.mxu0 %v24226_v30  ;;  %20877 = vmatprep.mubr.msk.f32.mxu0 %vm24051_vm1, %v29560_v27 }
0x1a92   :  { %22070 = vmatprep.subr.bf16.mxu0 %v29558_v9 }
0x1a98   :  { %20878 = vmatmul.mubr.f32.vlgmr.msra.gmra.mrb[16].mxu0 %v5232_v10 }
0x1a99   :  { %22072 = vmatpush3.bf16.msra.mxu0 %v24275_v59  ;;  %20884 = vmatprep.mubr.msk.f32.mxu0 %vm24051_vm1, %v29560_v27 }
0x1a9a   :  { %22073 = vmatprep.subr.bf16.mxu0 %v29558_v9 }
0x1aa0   :  { %20885 = vmatmul.mubr.f32.vlgmr.msra.gmra.mrb[16].mxu0 %v5230_v7 }
0x1aa1   :  { %22075 = vmatpush3.bf16.msra.mxu0 %v24226_v30  ;;  %20891 = vmatprep.mubr.msk.f32.mxu0 %vm24051_vm1, %v29560_v27 }
0x1aa2   :  { %22094 = vmatprep.subr.bf16.mxu0 %v29558_v9 }
0x1aa8   :  { %20892 = vmatmul.mubr.f32.vlgmr.msra.gmra.mrb[16].mxu0 %v5230_v7 }
0x1aa9   :  { %22096 = vmatpush3.bf16.msra.mxu0 %v24226_v30  ;;  %20940 = vmatprep.mubr.msk.f32.mxu0 %vm24051_vm1, %v29560_v27 }
0x1aaa   :  { %22097 = vmatprep.subr.bf16.mxu0 %v29558_v9 }
0x1b7b   :  { %v5618_v13 = vpop.f32.mrb[16].mxu0 }
0x1b7c   :  { %v5623_v16 = vrot.slane %v5618_v13, 6  ;;  %v20893_v14 = vpop.f32.mrb[17].mxu0 }
0x1b7e   :  { %v5625_v19 = vadd.f32 %v24330_v23, %v5623_v16 }
0x1b80   :  { %23522 = vtanh.f32 %v5625_v19  ;;  %v19205_v22 = vmul.f32 -1.442695, %v5625_v19 }
0x1b82   :  { %23524 = vpow2.f32 %v19205_v22 }
0x1b8a   :  { %v23523_v20 = vpop.eup %23522 }
0x1b8b   :  { %5638 = vrot.lane.b32.xlu1 %v23523_v20, %s24053_s27 }
0x1b8c   :  { %v23525_v24 = vpop.eup %23524 }
0x1b8d   :  { %v5629_v25 = vadd.f32 1.0, %v23525_v24 }
0x1b8f   :  { %23526 = vrcp.f32 %v5629_v25 }
0x1b99   :  { %v23527_v26 = vpop.eup %23526 }
0x1b9a   :  { %v5636_v32 = vmul.f32 %v23527_v26, %v5634_v31 }
0x1bfd   :  { %v5639_v28 = vpop.permute.xlu1 %5638 }
0x1bfe   :  { %v5641_v29 = vmul.f32 %v23527_v26, %v5639_v28 }
0x1c00   :  { %5643 = vrot.lane.b32.xlu0 %v5641_v29, %s24054_s16 }
0x1c72   :  { %v5644_v33 = vpop.permute.xlu0 %5643 }
0x1c73   :  { %v5646_v34 = vadd.f32 %v5644_v33, %v5636_v32 }
0x1c75   :  { %23528 = vtanh.f32 %v5646_v34  ;;  %v6134_v62 = vrot.slane %v5646_v34, 6 }
0x1c7f   :  { %v23529_v35 = vpop.eup %23528 }
0x1c80   :  { %5649 = vrot.lane.b32.xlu1 %v23529_v35, %s24055_s29 }
0x1cf2   :  { %v5650_v36 = vpop.permute.xlu1 %5649 }
0x1cf3   :  { %v24638_v38 = vmul.f32 %v23527_v26, %v5650_v36 }
0x1cf5   :  { %v5658_v39 = vrot.slane %v24638_v38, 2 }
0x1cf7   :  { %5659 = vrot.lane.b32.xlu0 %v5658_v39, %s24056_s30 }
0x1d69   :  { %v5660_v40 = vpop.permute.xlu0 %5659 }
0x1d6a   :  { %v5661_v41 = vsel %vm672_vm2, %v5660_v40, 0 }
0x1d6b   :  { %v5730_v42 = vand.u32 4294901760, %v5661_v41 }
0x1d6d   :  { %v5731_v43 = vsub.f32 %v5661_v41, %v5730_v42 }
0x1d6f   :  { %v5732_v44 = vand.u32 4294901760, %v5731_v43 }
0x1d71   :  { %v5733_v45 = vsub.f32 %v5731_v43, %v5732_v44 }
0x1d73   :  { %v5734_v46 = vand.u32 4294901760, %v5733_v45 }
0x1d75   :  { %20899 = vmatmul.mubr.f32.vlgmr.msra.gmra.mrb[36].mxu1 %v5734_v46 }
0x1d76   :  { %22081 = vmatpush3.bf16.msra.mxu1 %v24251_v57  ;;  %20905 = vmatprep.mubr.msk.f32.mxu1 %vm24051_vm1, %v29560_v27 }
0x1d77   :  { %22082 = vmatprep.subr.bf16.mxu1 %v29558_v9 }
0x1d7d   :  { %20906 = vmatmul.mubr.f32.vlgmr.msra.gmra.mrb[36].mxu1 %v5730_v42 }
0x1d7e   :  { %22084 = vmatpush3.bf16.msra.mxu1 %v24258_v58  ;;  %20912 = vmatprep.mubr.msk.f32.mxu1 %vm24051_vm1, %v29560_v27 }
0x1d7f   :  { %22085 = vmatprep.subr.bf16.mxu1 %v29558_v9 }
0x1d85   :  { %20913 = vmatmul.mubr.f32.vlgmr.msra.gmra.mrb[36].mxu1 %v5731_v43 }
0x1d86   :  { %22087 = vmatpush3.bf16.msra.mxu1 %v24226_v30  ;;  %20919 = vmatprep.mubr.msk.f32.mxu1 %vm24051_vm1, %v29560_v27 }
0x1d87   :  { %22088 = vmatprep.subr.bf16.mxu1 %v29558_v9 }
0x1d8d   :  { %20920 = vmatmul.mubr.f32.vlgmr.msra.gmra.mrb[36].mxu1 %v5732_v44 }
0x1d8e   :  { %22090 = vmatpush3.bf16.msra.mxu1 %v24275_v59  ;;  %20926 = vmatprep.mubr.msk.f32.mxu1 %vm24051_vm1, %v29560_v27 }
0x1d8f   :  { %22091 = vmatprep.subr.bf16.mxu1 %v29558_v9 }
0x1d95   :  { %20927 = vmatmul.mubr.f32.vlgmr.msra.gmra.mrb[36].mxu1 %v5730_v42 }
0x1d96   :  { %22093 = vmatpush3.bf16.msra.mxu1 %v24226_v30  ;;  %20933 = vmatprep.mubr.msk.f32.mxu1 %vm24051_vm1, %v29560_v27 }
0x1d97   :  { %22112 = vmatprep.subr.bf16.mxu1 %v29558_v9 }
0x1d9d   :  { %20934 = vmatmul.mubr.f32.vlgmr.msra.gmra.mrb[36].mxu1 %v5730_v42 }
0x1d9e   :  { %22114 = vmatpush3.bf16.msra.mxu1 %v24226_v30  ;;  %20982 = vmatprep.mubr.msk.f32.mxu1 %vm24051_vm1, %v29560_v27 }
0x1d9f   :  { %22115 = vmatprep.subr.bf16.mxu1 %v29558_v9 }
0x1e70   :  { %v6118_v47 = vpop.f32.mrb[36].mxu1 }
0x1e71   :  { %v6123_v48 = vrot.slane %v6118_v47, 4  ;;  %v20935_v50 = vpop.f32.mrb[37].mxu1 }
0x1e73   :  { %v6125_v51 = vadd.f32 %v24330_v23, %v6123_v48 }
0x1e75   :  { %23530 = vtanh.f32 %v6125_v51  ;;  %v19206_v53 = vmul.f32 -1.442695, %v6125_v51 }
0x1e77   :  { %23532 = vpow2.f32 %v19206_v53 }
0x1e7f   :  { %v23531_v52 = vpop.eup %23530 }
0x1e80   :  { %6138 = vrot.lane.b32.xlu1 %v23531_v52, %s24053_s27 }
0x1e81   :  { %v23533_v54 = vpop.eup %23532 }
0x1e82   :  { %v6129_v55 = vadd.f32 1.0, %v23533_v54 }
0x1e84   :  { %23534 = vrcp.f32 %v6129_v55 }
0x1e8e   :  { %v23535_v56 = vpop.eup %23534 }
0x1e8f   :  { %v6136_v63 = vmul.f32 %v23535_v56, %v6134_v62 }
0x1ef2   :  { %v6139_v60 = vpop.permute.xlu1 %6138 }
0x1ef3   :  { %v6141_v61 = vmul.f32 %v23535_v56, %v6139_v60 }
0x1ef5   :  { %6143 = vrot.lane.b32.xlu0 %v6141_v61, %s24054_s16 }
0x1f67   :  { %v6144_v18 = vpop.permute.xlu0 %6143 }
0x1f68   :  { %v6146_v0 = vadd.f32 %v6144_v18, %v6136_v63 }
0x1f6a   :  { %23536 = vtanh.f32 %v6146_v0  ;;  %v6634_v33 = vrot.slane %v6146_v0, 6 }
0x1f74   :  { %v23537_v2 = vpop.eup %23536 }
0x1f75   :  { %6149 = vrot.lane.b32.xlu1 %v23537_v2, %s24055_s29 }
0x1fe7   :  { %v6150_v3 = vpop.permute.xlu1 %6149 }
0x1fe8   :  { %v24671_v5 = vmul.f32 %v23535_v56, %v6150_v3 }
0x1fea   :  { %v6158_v6 = vrot.slane %v24671_v5, 4 }
0x1fec   :  { %6159 = vrot.lane.b32.xlu0 %v6158_v6, %s24056_s30 }
0x205e   :  { %v6160_v7 = vpop.permute.xlu0 %6159 }
0x205f   :  { %v6161_v8 = vsel %vm672_vm2, %v6160_v7, 0 }
0x2060   :  { %v6230_v10 = vand.u32 4294901760, %v6161_v8 }
0x2062   :  { %v6231_v11 = vsub.f32 %v6161_v8, %v6230_v10 }
0x2064   :  { %v6232_v12 = vand.u32 4294901760, %v6231_v11 }
0x2066   :  { %v6233_v13 = vsub.f32 %v6231_v11, %v6232_v12 }
0x2068   :  { %v6234_v16 = vand.u32 4294901760, %v6233_v13 }
0x206a   :  { %20941 = vmatmul.mubr.f32.vlgmr.msra.gmra.mrb[18].mxu0 %v6234_v16 }
0x206b   :  { %22099 = vmatpush3.bf16.msra.mxu0 %v24251_v57  ;;  %20947 = vmatprep.mubr.msk.f32.mxu0 %vm24051_vm1, %v29560_v27 }
0x206c   :  { %22100 = vmatprep.subr.bf16.mxu0 %v29558_v9 }
0x2072   :  { %20948 = vmatmul.mubr.f32.vlgmr.msra.gmra.mrb[18].mxu0 %v6230_v10 }
0x2073   :  { %22102 = vmatpush3.bf16.msra.mxu0 %v24258_v58  ;;  %20954 = vmatprep.mubr.msk.f32.mxu0 %vm24051_vm1, %v29560_v27 }
0x2074   :  { %22103 = vmatprep.subr.bf16.mxu0 %v29558_v9 }
0x207a   :  { %20955 = vmatmul.mubr.f32.vlgmr.msra.gmra.mrb[18].mxu0 %v6231_v11 }
0x207b   :  { %22105 = vmatpush3.bf16.msra.mxu0 %v24226_v30  ;;  %20961 = vmatprep.mubr.msk.f32.mxu0 %vm24051_vm1, %v29560_v27 }
0x207c   :  { %22106 = vmatprep.subr.bf16.mxu0 %v29558_v9 }
0x2082   :  { %20962 = vmatmul.mubr.f32.vlgmr.msra.gmra.mrb[18].mxu0 %v6232_v12 }
0x2083   :  { %22108 = vmatpush3.bf16.msra.mxu0 %v24275_v59  ;;  %20968 = vmatprep.mubr.msk.f32.mxu0 %vm24051_vm1, %v29560_v27 }
0x2084   :  { %22109 = vmatprep.subr.bf16.mxu0 %v29558_v9 }
0x208a   :  { %20969 = vmatmul.mubr.f32.vlgmr.msra.gmra.mrb[18].mxu0 %v6230_v10 }
0x208b   :  { %22111 = vmatpush3.bf16.msra.mxu0 %v24226_v30  ;;  %20975 = vmatprep.mubr.msk.f32.mxu0 %vm24051_vm1, %v29560_v27 }
0x208c   :  { %22130 = vmatprep.subr.bf16.mxu0 %v29558_v9 }
0x2092   :  { %20976 = vmatmul.mubr.f32.vlgmr.msra.gmra.mrb[18].mxu0 %v6230_v10 }
0x2093   :  { %22132 = vmatpush3.bf16.msra.mxu0 %v24226_v30  ;;  %21024 = vmatprep.mubr.msk.f32.mxu0 %vm24051_vm1, %v29560_v27 }
0x2094   :  { %22133 = vmatprep.subr.bf16.mxu0 %v29558_v9 }
0x2165   :  { %v6618_v14 = vpop.f32.mrb[18].mxu0 }
0x2166   :  { %v6623_v19 = vrot.slane %v6618_v14, 2  ;;  %v20977_v20 = vpop.f32.mrb[19].mxu0 }
0x2168   :  { %v6625_v22 = vadd.f32 %v24330_v23, %v6623_v19 }
0x216a   :  { %23538 = vtanh.f32 %v6625_v22  ;;  %v19207_v25 = vmul.f32 -1.442695, %v6625_v22 }
0x216c   :  { %23540 = vpow2.f32 %v19207_v25 }
0x2174   :  { %v23539_v24 = vpop.eup %23538 }
0x2175   :  { %6638 = vrot.lane.b32.xlu1 %v23539_v24, %s24053_s27 }
0x2176   :  { %v23541_v26 = vpop.eup %23540 }
0x2177   :  { %v6629_v28 = vadd.f32 1.0, %v23541_v26 }
0x2179   :  { %23542 = vrcp.f32 %v6629_v28 }
0x2183   :  { %v23543_v29 = vpop.eup %23542 }
0x2184   :  { %v6636_v34 = vmul.f32 %v23543_v29, %v6634_v33 }
0x21e7   :  { %v6639_v31 = vpop.permute.xlu1 %6638 }
0x21e8   :  { %v6641_v32 = vmul.f32 %v23543_v29, %v6639_v31 }
0x21ea   :  { %6643 = vrot.lane.b32.xlu0 %v6641_v32, %s24054_s16 }
0x225c   :  { %v6644_v35 = vpop.permute.xlu0 %6643 }
0x225d   :  { %v24703_v36 = vadd.f32 %v6644_v35, %v6636_v34 }
0x225f   :  { %23544 = vtanh.f32 %v24703_v36  ;;  %v7131_v20 = vrot.slane %v24703_v36, 6 }
0x2269   :  { %v23545_v23 = vpop.eup %23544 }
0x226a   :  { %6649 = vrot.lane.b32.xlu1 %v23545_v23, %s24055_s29 }
0x22dc   :  { %v6650_v39 = vpop.permute.xlu1 %6649 }
0x22dd   :  { %v24707_v40 = vmul.f32 %v23543_v29, %v6650_v39 }
0x22df   :  { %v6658_v41 = vrot.slane %v24707_v40, 6 }
0x22e1   :  { %6659 = vrot.lane.b32.xlu0 %v6658_v41, %s24056_s30 }
0x2353   :  { %v6660_v42 = vpop.permute.xlu0 %6659 }
0x2354   :  { %v6661_v43 = vsel %vm672_vm2, %v6660_v42, 0 }
0x2355   :  { %v6730_v44 = vand.u32 4294901760, %v6661_v43 }
0x2357   :  { %v6731_v45 = vsub.f32 %v6661_v43, %v6730_v44 }
0x2359   :  { %v6732_v46 = vand.u32 4294901760, %v6731_v45 }
0x235b   :  { %v6733_v47 = vsub.f32 %v6731_v45, %v6732_v46 }
0x235d   :  { %v6734_v48 = vand.u32 4294901760, %v6733_v47 }
0x235f   :  { %20983 = vmatmul.mubr.f32.vlgmr.msra.gmra.mrb[38].mxu1 %v6734_v48 }
0x2360   :  { %22117 = vmatpush3.bf16.msra.mxu1 %v24251_v57  ;;  %20989 = vmatprep.mubr.msk.f32.mxu1 %vm24051_vm1, %v29560_v27 }
0x2361   :  { %22118 = vmatprep.subr.bf16.mxu1 %v29558_v9 }
0x2363   :  { %20990 = vmatmul.mubr.f32.vlgmr.msra.gmra.mrb[40].mxu1 %v6730_v44 }
0x2364   :  { %22120 = vmatpush3.bf16.msra.mxu1 %v24258_v58  ;;  %20996 = vmatprep.mubr.msk.f32.mxu1 %vm24051_vm1, %v29560_v27 }
0x2365   :  { %22121 = vmatprep.subr.bf16.mxu1 %v29558_v9 }
0x2367   :  { %20997 = vmatmul.mubr.f32.vlgmr.msra.gmra.mrb[42].mxu1 %v6731_v45 }
0x2368   :  { %22123 = vmatpush3.bf16.msra.mxu1 %v24226_v30  ;;  %21003 = vmatprep.mubr.msk.f32.mxu1 %vm24051_vm1, %v29560_v27 }
0x2369   :  { %22124 = vmatprep.subr.bf16.mxu1 %v29558_v9 }
0x236b   :  { %21004 = vmatmul.mubr.f32.vlgmr.msra.gmra.mrb[44].mxu1 %v6732_v46 }
0x236c   :  { %22126 = vmatpush3.bf16.msra.mxu1 %v24275_v59  ;;  %21010 = vmatprep.mubr.msk.f32.mxu1 %vm24051_vm1, %v29560_v27 }
0x236d   :  { %22127 = vmatprep.subr.bf16.mxu1 %v29558_v9 }
0x236f   :  { %21011 = vmatmul.mubr.f32.vlgmr.msra.gmra.mrb[46].mxu1 %v6730_v44 }
0x2370   :  { %22129 = vmatpush3.bf16.msra.mxu1 %v24226_v30  ;;  %21017 = vmatprep.mubr.msk.f32.mxu1 %vm24051_vm1, %v29560_v27 }
0x2371   :  { %22148 = vmatprep.subr.bf16.mxu1 %v29558_v9 }
0x2373   :  { %21018 = vmatmul.mubr.f32.vlgmr.msra.gmra.mrb[48].mxu1 %v6730_v44 }
0x2374   :  { %22150 = vmatpush3.bf16.msra.mxu1 %v24226_v30  ;;  %21066 = vmatprep.mubr.msk.f32.mxu1 %vm24051_vm1, %v29560_v27 }
0x2375   :  { %22151 = vmatprep.subr.bf16.mxu1 %v29558_v9 }
0x2432   :  { %v6736_v50 = vpop.f32.mrb[38].mxu1 }
0x2433   :  { %v20984_v51 = vpop.f32.mrb[39].mxu1 }
0x2436   :  { %v6817_v52 = vpop.f32.mrb[40].mxu1 }
0x2437   :  { %v6818_v53 = vadd.f32 %v6817_v52, %v6736_v50  ;;  %v20991_v54 = vpop.f32.mrb[41].mxu1 }
0x243a   :  { %v6893_v55 = vpop.f32.mrb[42].mxu1 }
0x243b   :  { %v6894_v56 = vadd.f32 %v6893_v55, %v6818_v53  ;;  %v20998_v60 = vpop.f32.mrb[43].mxu1 }
0x243e   :  { %v6968_v61 = vpop.f32.mrb[44].mxu1 }
0x243f   :  { %v6969_v62 = vadd.f32 %v6968_v61, %v6894_v56  ;;  %v21005_v63 = vpop.f32.mrb[45].mxu1 }
0x2442   :  { %v7045_v18 = vpop.f32.mrb[46].mxu1 }
0x2443   :  { %v7046_v0 = vadd.f32 %v7045_v18, %v6969_v62  ;;  %v21012_v2 = vpop.f32.mrb[47].mxu1 }
0x2446   :  { %v7118_v3 = vpop.f32.mrb[48].mxu1 }
0x2447   :  { %v7119_v6 = vadd.f32 %v7118_v3, %v7046_v0  ;;  %v21019_v7 = vpop.f32.mrb[49].mxu1 }
0x2449   :  { %v7122_v8 = vadd.f32 %v24328_v21, %v7119_v6 }
0x244b   :  { %23546 = vtanh.f32 %v7122_v8  ;;  %v19208_v11 = vmul.f32 -1.442695, %v7122_v8 }
0x244d   :  { %23548 = vpow2.f32 %v19208_v11 }
0x2455   :  { %v23547_v10 = vpop.eup %23546 }
0x2456   :  { %7135 = vrot.lane.b32.xlu1 %v23547_v10, %s24053_s27 }
0x2457   :  { %v23549_v12 = vpop.eup %23548 }
0x2458   :  { %v7126_v13 = vadd.f32 1.0, %v23549_v12 }
0x245a   :  { %23550 = vrcp.f32 %v7126_v13 }
0x2464   :  { %v23551_v16 = vpop.eup %23550 }
0x2465   :  { %v7133_v22 = vmul.f32 %v23551_v16, %v7131_v20 }
0x24c8   :  { %v7136_v14 = vpop.permute.xlu1 %7135 }
0x24c9   :  { %v7138_v19 = vmul.f32 %v23551_v16, %v7136_v14 }
0x24cb   :  { %7140 = vrot.lane.b32.xlu0 %v7138_v19, %s24054_s16 }
0x253d   :  { %v7141_v24 = vpop.permute.xlu0 %7140 }
0x253e   :  { %v7143_v25 = vadd.f32 %v7141_v24, %v7133_v22 }
0x2540   :  { %23552 = vtanh.f32 %v7143_v25  ;;  %v7628_v52 = vrot.slane %v7143_v25, 6 }
0x254a   :  { %v23553_v26 = vpop.eup %23552 }
0x254b   :  { %7146 = vrot.lane.b32.xlu1 %v23553_v26, %s24055_s29 }
0x25bd   :  { %v7147_v28 = vpop.permute.xlu1 %7146 }
0x25be   :  { %v7149_v29 = vmul.f32 %v23551_v16, %v7147_v28 }
0x25c0   :  { %7151 = vrot.lane.b32.xlu0 %v7149_v29, %s24056_s30 }
0x2632   :  { %v7152_v31 = vpop.permute.xlu0 %7151 }
0x2633   :  { %7154 = vst.msk [vmem:[#allocation2 + $0x18] sm:$0x3] %vm1168_vm3, %v7152_v31  ;;  %v7155_v32 = vsel %vm672_vm2, %v7152_v31, 0 }
0x2634   :  { %v7224_v33 = vand.u32 4294901760, %v7155_v32 }
0x2636   :  { %v7225_v34 = vsub.f32 %v7155_v32, %v7224_v33 }
0x2638   :  { %v7226_v35 = vand.u32 4294901760, %v7225_v34 }
0x263a   :  { %v7227_v36 = vsub.f32 %v7225_v34, %v7226_v35 }
0x263c   :  { %v7228_v23 = vand.u32 4294901760, %v7227_v36 }
0x263e   :  { %21025 = vmatmul.mubr.f32.vlgmr.msra.gmra.mrb[20].mxu0 %v7228_v23 }
0x263f   :  { %22135 = vmatpush3.bf16.msra.mxu0 %v24251_v57  ;;  %21031 = vmatprep.mubr.msk.f32.mxu0 %vm24051_vm1, %v29560_v27 }
0x2640   :  { %22136 = vmatprep.subr.bf16.mxu0 %v29558_v9 }
0x2646   :  { %21032 = vmatmul.mubr.f32.vlgmr.msra.gmra.mrb[20].mxu0 %v7224_v33 }
0x2647   :  { %22138 = vmatpush3.bf16.msra.mxu0 %v24258_v58  ;;  %21038 = vmatprep.mubr.msk.f32.mxu0 %vm24051_vm1, %v29560_v27 }
0x2648   :  { %22139 = vmatprep.subr.bf16.mxu0 %v29558_v9 }
0x264e   :  { %21039 = vmatmul.mubr.f32.vlgmr.msra.gmra.mrb[20].mxu0 %v7225_v34 }
0x264f   :  { %22141 = vmatpush3.bf16.msra.mxu0 %v24226_v30  ;;  %21045 = vmatprep.mubr.msk.f32.mxu0 %vm24051_vm1, %v29560_v27 }
0x2650   :  { %22142 = vmatprep.subr.bf16.mxu0 %v29558_v9 }
0x2656   :  { %21046 = vmatmul.mubr.f32.vlgmr.msra.gmra.mrb[20].mxu0 %v7226_v35 }
0x2657   :  { %22144 = vmatpush3.bf16.msra.mxu0 %v24275_v59  ;;  %21052 = vmatprep.mubr.msk.f32.mxu0 %vm24051_vm1, %v29560_v27 }
0x2658   :  { %22145 = vmatprep.subr.bf16.mxu0 %v29558_v9 }
0x265e   :  { %21053 = vmatmul.mubr.f32.vlgmr.msra.gmra.mrb[20].mxu0 %v7224_v33 }
0x265f   :  { %22147 = vmatpush3.bf16.msra.mxu0 %v24226_v30  ;;  %21059 = vmatprep.mubr.msk.f32.mxu0 %vm24051_vm1, %v29560_v27 }
0x2660   :  { %22166 = vmatprep.subr.bf16.mxu0 %v29558_v9 }
0x2666   :  { %21060 = vmatmul.mubr.f32.vlgmr.msra.gmra.mrb[20].mxu0 %v7224_v33 }
0x2667   :  { %22168 = vmatpush3.bf16.msra.mxu0 %v24226_v30  ;;  %21108 = vmatprep.mubr.msk.f32.mxu0 %vm24051_vm1, %v29560_v27 }
0x2668   :  { %22169 = vmatprep.subr.bf16.mxu0 %v29558_v9 }
0x2739   :  { %v7612_v39 = vpop.f32.mrb[20].mxu0 }
0x273a   :  { %v7617_v41 = vrot.slane %v7612_v39, 6  ;;  %v21061_v42 = vpop.f32.mrb[21].mxu0 }
0x273c   :  { %v7619_v43 = vadd.f32 %v24328_v21, %v7617_v41 }
0x273e   :  { %23554 = vtanh.f32 %v7619_v43  ;;  %v19209_v45 = vmul.f32 -1.442695, %v7619_v43 }
0x2740   :  { %23556 = vpow2.f32 %v19209_v45 }
0x2748   :  { %v23555_v44 = vpop.eup %23554 }
0x2749   :  { %7632 = vrot.lane.b32.xlu1 %v23555_v44, %s24053_s27 }
0x274a   :  { %v23557_v46 = vpop.eup %23556 }
0x274b   :  { %v7623_v47 = vadd.f32 1.0, %v23557_v46 }
0x274d   :  { %23558 = vrcp.f32 %v7623_v47 }
0x2757   :  { %v23559_v48 = vpop.eup %23558 }
0x2758   :  { %v7630_v53 = vmul.f32 %v23559_v48, %v7628_v52 }
0x27bb   :  { %v7633_v50 = vpop.permute.xlu1 %7632 }
0x27bc   :  { %v7635_v51 = vmul.f32 %v23559_v48, %v7633_v50 }
0x27be   :  { %7637 = vrot.lane.b32.xlu0 %v7635_v51, %s24054_s16 }
0x2830   :  { %v7638_v54 = vpop.permute.xlu0 %7637 }
0x2831   :  { %v7640_v55 = vadd.f32 %v7638_v54, %v7630_v53 }
0x2833   :  { %23560 = vtanh.f32 %v7640_v55  ;;  %v8128_v25 = vrot.slane %v7640_v55, 6  ;;  %v9268_v55 = vld [vmem:[%s29543_s8 + $0x18] sm:$0xff] }
0x283d   :  { %v23561_v56 = vpop.eup %23560 }
0x283e   :  { %7643 = vrot.lane.b32.xlu1 %v23561_v56, %s24055_s29 }
0x28b0   :  { %v7644_v60 = vpop.permute.xlu1 %7643 }
0x28b1   :  { %v24772_v61 = vmul.f32 %v23559_v48, %v7644_v60 }
0x28b3   :  { %v7652_v62 = vrot.slane %v24772_v61, 2 }
0x28b5   :  { %7653 = vrot.lane.b32.xlu0 %v7652_v62, %s24056_s30  ;;  %v9285_v62 = vand.u32 4294901760, %v9268_v55 }
0x2927   :  { %v7654_v63 = vpop.permute.xlu0 %7653 }
0x2928   :  { %v7655_v18 = vsel %vm672_vm2, %v7654_v63, 0  ;;  %v9265_v63 = vld [vmem:[%s29543_s8] sm:$0xff] }
0x2929   :  { %v7724_v0 = vand.u32 4294901760, %v7655_v18 }
0x292b   :  { %v7725_v2 = vsub.f32 %v7655_v18, %v7724_v0  ;;  %v9267_v18 = vld [vmem:[%s29543_s8 + $0x10] sm:$0xff] }
0x292d   :  { %v7726_v3 = vand.u32 4294901760, %v7725_v2 }
0x292f   :  { %v7727_v6 = vsub.f32 %v7725_v2, %v7726_v3 }
0x2931   :  { %v7728_v7 = vand.u32 4294901760, %v7727_v6 }
0x2933   :  { %21067 = vmatmul.mubr.f32.vlgmr.msra.gmra.mrb[50].mxu1 %v7728_v7  ;;  %v24863_v7 = vsub.f32 %v9268_v55, %v9285_v62 }
0x2934   :  { %22153 = vmatpush3.bf16.msra.mxu1 %v24251_v57  ;;  %21073 = vmatprep.mubr.msk.f32.mxu1 %vm24051_vm1, %v29560_v27 }
0x2935   :  { %22154 = vmatprep.subr.bf16.mxu1 %v29558_v9 }
0x293b   :  { %21074 = vmatmul.mubr.f32.vlgmr.msra.gmra.mrb[50].mxu1 %v7724_v0 }
0x293c   :  { %22156 = vmatpush3.bf16.msra.mxu1 %v24258_v58  ;;  %21080 = vmatprep.mubr.msk.f32.mxu1 %vm24051_vm1, %v29560_v27 }
0x293d   :  { %22157 = vmatprep.subr.bf16.mxu1 %v29558_v9 }
0x2943   :  { %21081 = vmatmul.mubr.f32.vlgmr.msra.gmra.mrb[50].mxu1 %v7725_v2  ;;  %v9287_v2 = vand.u32 4294901760, %v9267_v18 }
0x2944   :  { %22159 = vmatpush3.bf16.msra.mxu1 %v24226_v30  ;;  %21087 = vmatprep.mubr.msk.f32.mxu1 %vm24051_vm1, %v29560_v27 }
0x2945   :  { %22160 = vmatprep.subr.bf16.mxu1 %v29558_v9 }
0x294b   :  { %21088 = vmatmul.mubr.f32.vlgmr.msra.gmra.mrb[50].mxu1 %v7726_v3 }
0x294c   :  { %22162 = vmatpush3.bf16.msra.mxu1 %v24275_v59  ;;  %21094 = vmatprep.mubr.msk.f32.mxu1 %vm24051_vm1, %v29560_v27 }
0x294d   :  { %22163 = vmatprep.subr.bf16.mxu1 %v29558_v9 }
0x2953   :  { %21095 = vmatmul.mubr.f32.vlgmr.msra.gmra.mrb[50].mxu1 %v7724_v0 }
0x2954   :  { %22165 = vmatpush3.bf16.msra.mxu1 %v24226_v30  ;;  %21101 = vmatprep.mubr.msk.f32.mxu1 %vm24051_vm1, %v29560_v27 }
0x295b   :  { %21102 = vmatmul.mubr.f32.vlgmr.msra.gmra.mrb[50].mxu1 %v7724_v0  ;;  %v9283_v0 = vand.u32 4294901760, %v9265_v63 }
0x2a2e   :  { %v8112_v8 = vpop.f32.mrb[50].mxu1 }
0x2a2f   :  { %v8117_v10 = vrot.slane %v8112_v8, 4  ;;  %v21103_v11 = vpop.f32.mrb[51].mxu1  ;;  %v24865_v8 = vpack.c.bf16 %v9287_v2, %v9283_v0 }
0x2a30   :  { %v24870_v11 = vsub.f32 %v9265_v63, %v9283_v0 }
0x2a31   :  { %v8119_v12 = vadd.f32 %v24328_v21, %v8117_v10 }
0x2a33   :  { %23562 = vtanh.f32 %v8119_v12  ;;  %v19210_v16 = vmul.f32 -1.442695, %v8119_v12  ;;  %v24872_v12 = vsub.f32 %v9267_v18, %v9287_v2 }
0x2a35   :  { %23564 = vpow2.f32 %v19210_v16 }
0x2a3d   :  { %v23563_v13 = vpop.eup %23562 }
0x2a3e   :  { %8132 = vrot.lane.b32.xlu1 %v23563_v13, %s24053_s27  ;;  %v8657_v13 = vld [vmem:[%s29541_s6 + $0x8] sm:$0xff] }
0x2a3f   :  { %v23565_v14 = vpop.eup %23564 }
0x2a40   :  { %v8123_v19 = vadd.f32 1.0, %v23565_v14 }
0x2a42   :  { %23566 = vrcp.f32 %v8123_v19  ;;  %v8681_v19 = vand.u32 4294901760, %v8657_v13 }
0x2a4c   :  { %v23567_v20 = vpop.eup %23566 }
0x2a4d   :  { %v8130_v26 = vmul.f32 %v23567_v20, %v8128_v25 }
0x2ab0   :  { %v8133_v22 = vpop.permute.xlu1 %8132 }
0x2ab1   :  { %v8135_v24 = vmul.f32 %v23567_v20, %v8133_v22  ;;  %v9408_v22 = vand.u32 4294901760, %v24863_v7 }
0x2ab3   :  { %8137 = vrot.lane.b32.xlu0 %v8135_v24, %s24054_s16  ;;  %v9402_v24 = vand.u32 4294901760, %v24870_v11 }
0x2b25   :  { %v8138_v28 = vpop.permute.xlu0 %8137 }
0x2b26   :  { %v8140_v29 = vadd.f32 %v8138_v28, %v8130_v26  ;;  %v9409_v26 = vsub.f32 %v24863_v7, %v9408_v22 }
0x2b28   :  { %23568 = vtanh.f32 %v8140_v29 }
0x2b32   :  { %v23569_v31 = vpop.eup %23568 }
0x2b33   :  { %8143 = vrot.lane.b32.xlu1 %v23569_v31, %s24055_s29 }
0x2ba5   :  { %v8144_v32 = vpop.permute.xlu1 %8143 }
0x2ba6   :  { %v8146_v33 = vmul.f32 %v23567_v20, %v8144_v32 }
0x2ba8   :  { %v8152_v34 = vrot.slane %v8146_v33, 4 }
0x2baa   :  { %8153 = vrot.lane.b32.xlu0 %v8152_v34, %s24056_s30 }
0x2c1c   :  { %v8154_v35 = vpop.permute.xlu0 %8153 }
0x2c1d   :  { %v8155_v36 = vsel %vm672_vm2, %v8154_v35, 0 }
0x2c1e   :  { %v8224_v23 = vand.u32 4294901760, %v8155_v36 }
0x2c20   :  { %v8225_v39 = vsub.f32 %v8155_v36, %v8224_v23  ;;  %v24911_v36 = vsub.f32 %v8657_v13, %v8681_v19 }
0x2c22   :  { %v8226_v41 = vand.u32 4294901760, %v8225_v39 }
0x2c24   :  { %v8227_v42 = vsub.f32 %v8225_v39, %v8226_v41 }
0x2c26   :  { %v8228_v43 = vand.u32 4294901760, %v8227_v42  ;;  %v8794_v42 = vand.u32 4294901760, %v24911_v36 }
0x2c28   :  { %21109 = vmatmul.mubr.f32.vlgmr.msra.gmra.mrb[22].mxu0 %v8228_v43 }
0x2c29   :  { %22171 = vmatpush3.bf16.msra.mxu0 %v24251_v57  ;;  %21115 = vmatprep.mubr.msk.f32.mxu0 %vm24051_vm1, %v29560_v27 }
0x2c2a   :  { %22172 = vmatprep.subr.bf16.mxu0 %v29558_v9 }
0x2c30   :  { %21116 = vmatmul.mubr.f32.vlgmr.msra.gmra.mrb[22].mxu0 %v8224_v23 }
0x2c31   :  { %22174 = vmatpush3.bf16.msra.mxu0 %v24258_v58  ;;  %21122 = vmatprep.mubr.msk.f32.mxu0 %vm24051_vm1, %v29560_v27 }
0x2c32   :  { %22175 = vmatprep.subr.bf16.mxu0 %v29558_v9 }
0x2c38   :  { %21123 = vmatmul.mubr.f32.vlgmr.msra.gmra.mrb[22].mxu0 %v8225_v39 }
0x2c39   :  { %22177 = vmatpush3.bf16.msra.mxu0 %v24226_v30  ;;  %21129 = vmatprep.mubr.msk.f32.mxu0 %vm24051_vm1, %v29560_v27 }
0x2c3a   :  { %22178 = vmatprep.subr.bf16.mxu0 %v29558_v9 }
0x2c40   :  { %21130 = vmatmul.mubr.f32.vlgmr.msra.gmra.mrb[22].mxu0 %v8226_v41 }
0x2c41   :  { %22180 = vmatpush3.bf16.msra.mxu0 %v24275_v59  ;;  %21136 = vmatprep.mubr.msk.f32.mxu0 %vm24051_vm1, %v29560_v27 }
0x2c42   :  { %22181 = vmatprep.subr.bf16.mxu0 %v29558_v9 }
0x2c48   :  { %21137 = vmatmul.mubr.f32.vlgmr.msra.gmra.mrb[22].mxu0 %v8224_v23 }
0x2c49   :  { %22183 = vmatpush3.bf16.msra.mxu0 %v24226_v30  ;;  %21143 = vmatprep.mubr.msk.f32.mxu0 %vm24051_vm1, %v29560_v27 }
0x2c50   :  { %21144 = vmatmul.mubr.f32.vlgmr.msra.gmra.mrb[22].mxu0 %v8224_v23 }
0x2c51   :  { %9349 = vmatprep.mubr.f32.mxu0 %v29560_v27 }
0x2d23   :  { %v8612_v57 = vpop.f32.mrb[22].mxu0 }
0x2d24   :  { %v8617_v58 = vrot.slane %v8612_v57, 2  ;;  %v21145_v44 = vpop.f32.mrb[23].mxu0  ;;  %v8795_v57 = vsub.f32 %v24911_v36, %v8794_v42 }
0x2d26   :  { %v8619_v45 = vadd.f32 %v24328_v21, %v8617_v58  ;;  %v8628_v21 = vrot.slane %v8140_v29, 6  ;;  %v9410_v29 = vand.u32 4294901760, %v9409_v26 }
0x2d28   :  { %23570 = vtanh.f32 %v8619_v45  ;;  %v19211_v46 = vmul.f32 -1.442695, %v8619_v45  ;;  %v8796_v45 = vand.u32 4294901760, %v8795_v57 }
0x2d2a   :  { %23572 = vpow2.f32 %v19211_v46 }
0x2d32   :  { %v23571_v59 = vpop.eup %23570 }
0x2d33   :  { %8632 = vrot.lane.b32.xlu1 %v23571_v59, %s24053_s27 }
0x2d34   :  { %v23573_v47 = vpop.eup %23572 }
0x2d35   :  { %v8623_v48 = vadd.f32 1.0, %v23573_v47 }
0x2d37   :  { %23574 = vrcp.f32 %v8623_v48 }
0x2d41   :  { %v24824_v30 = vpop.eup %23574 }
0x2d42   :  { %v8630_v52 = vmul.f32 %v24824_v30, %v8628_v21 }
0x2da5   :  { %v8633_v50 = vpop.permute.xlu1 %8632 }
0x2da6   :  { %v8635_v51 = vmul.f32 %v24824_v30, %v8633_v50 }
0x2da8   :  { %8637 = vrot.lane.b32.xlu0 %v8635_v51, %s24054_s16 }
0x2dac   :  { %1663 = vrot.lane.b32.xlu0 %v24370_v4, %s24056_s30 }
0x2db0   :  { %2665 = vrot.lane.b32.xlu0 %v24439_v1, %s24056_s30 }
0x2db4   :  { %4160 = vrot.lane.b32.xlu0 %v24537_v49, %s24056_s30 }
0x2db8   :  { %5654 = vrot.lane.b32.xlu0 %v24638_v38, %s24056_s30 }
0x2dbc   :  { %6654 = vrot.lane.b32.xlu0 %v24707_v40, %s24056_s30  ;;  %v9266_v40 = vld [vmem:[%s29543_s8 + $0x8] sm:$0xff] }
0x2dbd   :  { %v9281_v60 = vand.u32 4294901760, %v9266_v40 }
0x2dbf   :  { %v24859_v3 = vpack.c.bf16 %v9285_v62, %v9281_v60  ;;  %v24861_v6 = vsub.f32 %v9266_v40, %v9281_v60 }
0x2dc0   :  { %8148 = vrot.lane.b32.xlu0 %v8146_v33, %s24056_s30 }
0x2dc1   :  { %22209 = vmatprep.subr.bf16.mxu0 %v24859_v3  ;;  %v22216_v21 = vpack.c.bf16 %v24863_v7, %v24861_v6 }
0x2dc2   :  { %22211 = vmatpush1.bf16.msra.mxu0 %v24865_v8 }
0x2e1a   :  { %v8638_v53 = vpop.permute.xlu0 %8637 }
0x2e1b   :  { %v8640_v54 = vadd.f32 %v8638_v53, %v8630_v52 }
0x2e1d   :  { %23576 = vtanh.f32 %v8640_v54  ;;  %v22218_v54 = vpack.c.bf16 %v24872_v12, %v24870_v11 }
0x2e1e   :  { %v1664_v4 = vpop.permute.xlu0 %1663 }
0x2e1f   :  { %1667 = vst.msk [vmem:[#allocation2] sm:$0xc] %vm1666_vm4, %v1664_v4 }
0x2e22   :  { %v2666_v1 = vpop.permute.xlu0 %2665 }
0x2e23   :  { %2669 = vst.msk [vmem:[#allocation2] sm:$0xc0] %vm2668_vm5, %v2666_v1 }
0x2e26   :  { %v4161_v49 = vpop.permute.xlu0 %4160 }
0x2e27   :  { %v23577_v38 = vpop.eup %23576  ;;  %4163 = vst.msk [vmem:[#allocation2 + $0x8] sm:$0x30] %vm2167_vm6, %v4161_v49 }
0x2e28   :  { %8643 = vrot.lane.b32.xlu1 %v23577_v38, %s24055_s29 }
0x2e2a   :  { %v5655_v56 = vpop.permute.xlu0 %5654 }
0x2e2b   :  { %5657 = vst.msk [vmem:[#allocation2 + $0x10] sm:$0xc] %vm1666_vm4, %v5655_v56 }
0x2e2c   :  { %2164 = vrot.lane.b32.xlu1 %v24403_v37, %s24056_s30  ;;  %v8656_v37 = vld [vmem:[%s29541_s6] sm:$0xff] }
0x2e2d   :  { %v8678_v14 = vand.u32 4294901760, %v8656_v37 }
0x2e2e   :  { %v6655_v10 = vpop.permute.xlu0 %6654 }
0x2e2f   :  { %6657 = vst.msk [vmem:[#allocation2 + $0x10] sm:$0xc0] %vm2668_vm5, %v6655_v10  ;;  %v24885_v20 = vpack.c.bf16 %v8681_v19, %v8678_v14  ;;  %v24909_v35 = vsub.f32 %v8656_v37, %v8678_v14 }
0x2e30   :  { %3660 = vrot.lane.b32.xlu1 %v24504_v17, %s24056_s30  ;;  %v9396_v17 = vand.u32 4294901760, %v24861_v6 }
0x2e31   :  { %22185 = vmatprep.subr.bf16.mxu1 %v24885_v20  ;;  %v8787_v41 = vand.u32 4294901760, %v24909_v35 }
0x2e32   :  { %v8149_v16 = vpop.permute.xlu0 %8148  ;;  %22187 = vmatpush3.bf16.msra.mxu1 %v24885_v20  ;;  %v9397_v25 = vsub.f32 %v24861_v6, %v9396_v17 }
0x2e33   :  { %8151 = vst.msk [vmem:[#allocation2 + $0x18] sm:$0x30] %vm2167_vm6, %v8149_v16  ;;  %v8788_v43 = vsub.f32 %v24909_v35, %v8787_v41 }
0x2e34   :  { %4660 = vrot.lane.b32.xlu1 %v24573_v15, %s24056_s30  ;;  %v9414_v15 = vand.u32 4294901760, %v24872_v12  ;;  %v9398_v28 = vand.u32 4294901760, %v9397_v25 }
0x2e35   :  { %v8789_v44 = vand.u32 4294901760, %v8788_v43 }
0x2e36   :  { %v22212_v33 = vpack.c.bf16 %v9410_v29, %v9398_v28 }
0x2e37   :  { %v22188_v59 = vpack.c.bf16 %v8796_v45, %v8789_v44 }
0x2e38   :  { %6154 = vrot.lane.b32.xlu1 %v24671_v5, %s24056_s30  ;;  %v9403_v5 = vsub.f32 %v24870_v11, %v9402_v24  ;;  %22213 = vmatprep.subr.bf16.mxu0 %v22212_v33  ;;  %v9920_v11 = vld [vmem:[%s29545_s10 + $0x8] sm:$0xff] }
0x2e39   :  { %22189 = vmatprep.subr.bf16.mxu1 %v22188_v59 }
0x2e3a   :  { %v9404_v31 = vand.u32 4294901760, %v9403_v5 }
0x2e3c   :  { %7648 = vrot.lane.b32.xlu1 %v24772_v61, %s24056_s30  ;;  %v9415_v61 = vsub.f32 %v24872_v12, %v9414_v15  ;;  %v9922_v12 = vld [vmem:[%s29545_s10 + $0x18] sm:$0xff] }
0x2e3e   :  { %v9416_v32 = vand.u32 4294901760, %v9415_v61 }
0x2e40   :  { %v22214_v34 = vpack.c.bf16 %v9416_v32, %v9404_v31 }
0x2e9a   :  { %v8644_v23 = vpop.permute.xlu1 %8643 }
0x2e9b   :  { %v8646_v39 = vmul.f32 %v24824_v30, %v8644_v23  ;;  %v24982_v23 = vpack.c.bf16 %v8794_v42, %v8787_v41 }
0x2e9d   :  { %8648 = vrot.lane.b32.xlu1 %v8646_v39, %s24056_s30 }
0x2e9e   :  { %v2165_v58 = vpop.permute.xlu1 %2164 }
0x2e9f   :  { %2168 = vst.msk [vmem:[#allocation2] sm:$0x30] %vm2167_vm6, %v2165_v58 }
0x2ea2   :  { %v3661_v46 = vpop.permute.xlu1 %3660 }
0x2ea3   :  { %3663 = vst.msk [vmem:[#allocation2 + $0x8] sm:$0xc] %vm1666_vm4, %v3661_v46 }
0x2ea6   :  { %v4661_v47 = vpop.permute.xlu1 %4660  ;;  %v8652_v48 = vld [vmem:[#allocation2] sm:$0xff] }
0x2ea7   :  { %4663 = vst.msk [vmem:[#allocation2 + $0x8] sm:$0xc0] %vm2668_vm5, %v4661_v47  ;;  %v8666_v30 = vsel %vm672_vm2, %v8652_v48, 0  ;;  %v15463_v50 = vand.u32 4294901760, %v8652_v48 }
0x2ea8   :  { %v24923_v51 = vand.u32 4294901760, %v8666_v30 }
0x2ea9   :  { %v24933_v4 = vsub.f32 %v8652_v48, %v15463_v50 }
0x2eaa   :  { %v6155_v52 = vpop.permute.xlu1 %6154  ;;  %v24928_v53 = vsub.f32 %v8666_v30, %v24923_v51 }
0x2eab   :  { %6157 = vst.msk [vmem:[#allocation2 + $0x10] sm:$0x30] %vm2167_vm6, %v6155_v52  ;;  %29931 = vst [vmem:[#allocation7_spill] sm:$0xff] %v24933_v4  ;;  %v15544_v60 = vand.u32 4294901760, %v24933_v4 }
0x2eac   :  { %v24936_v1 = vand.u32 4294901760, %v24928_v53 }
0x2ead   :  { %v15545_v13 = vsub.f32 %v24933_v4, %v15544_v60  ;;  %v11709_v4 = vld [vmem:[%s29549_s14 + $0xa8] sm:$0xff] }
0x2eae   :  { %v7649_v49 = vpop.permute.xlu1 %7648  ;;  %v8747_v38 = vsub.f32 %v24928_v53, %v24936_v1  ;;  %v8653_v40 = vld [vmem:[#allocation2 + $0x8] sm:$0xff] }
0x2eaf   :  { %7651 = vst.msk [vmem:[#allocation2 + $0x18] sm:$0xc] %vm1666_vm4, %v7649_v49  ;;  %v8669_v55 = vsel %vm672_vm2, %v8653_v40, 0  ;;  %v15466_v56 = vand.u32 4294901760, %v8653_v40  ;;  %v15546_v29 = vand.u32 4294901760, %v15545_v13 }
0x2eb0   :  { %v24943_v62 = vand.u32 4294901760, %v8747_v38  ;;  %v24945_v63 = vand.u32 4294901760, %v8669_v55 }
0x2eb1   :  { %v24947_v18 = vpack.c.bf16 %v15466_v56, %v15463_v50  ;;  %v24949_v0 = vsub.f32 %v8653_v40, %v15466_v56 }
0x2eb2   :  { %21150 = vmatprep.mubr.f32.mxu1 %v24943_v62  ;;  %9355 = vmatmul.mubr.f32.vlgmr.msra.gmra.mrb[24].mxu0 %v24943_v62  ;;  %v24954_v2 = vsub.f32 %v8669_v55, %v24945_v63  ;;  %v8654_v10 = vld [vmem:[#allocation2 + $0x10] sm:$0xff]  ;;  %v9939_v55 = vand.u32 4294901760, %v9922_v12 }
0x2eb3   :  { %29932 = vst [vmem:[#allocation8_spill] sm:$0xff] %v24947_v18  ;;  %29933 = vst [vmem:[#allocation9_spill] sm:$0xff] %v24949_v0  ;;  %9360 = vmatprep.mubr.f32.mxu0 %v29560_v27  ;;  %v8672_v37 = vsel %vm672_vm2, %v8654_v10, 0  ;;  %22215 = vmatpush1.bf16.msra.mxu0 %v22214_v34  ;;  %v15551_v16 = vand.u32 4294901760, %v24949_v0  ;;  %v22192_v34 = vpack.c.bf16 %v24911_v36, %v24909_v35  ;;  %v15469_v42 = vand.u32 4294901760, %v8654_v10 }
0x2eb4   :  { %v24963_v19 = vand.u32 4294901760, %v24954_v2  ;;  %v24965_v25 = vand.u32 4294901760, %v8672_v37  ;;  %22217 = vmatprep.subr.bf16.mxu0 %v22216_v21  ;;  %v25000_v35 = vpack.c.bf16 %v9408_v22, %v9396_v17  ;;  %v25006_v36 = vpack.c.bf16 %v9414_v15, %v9402_v24 }
0x2eb5   :  { %v15552_v26 = vsub.f32 %v24949_v0, %v15551_v16  ;;  %v24968_v5 = vpack.c.bf16 %v15551_v16, %v15544_v60  ;;  %v25009_v58 = vsub.f32 %v8654_v10, %v15469_v42  ;;  %v25073_v60 = vsub.f32 %v9922_v12, %v9939_v55  ;;  %v9919_v10 = vld [vmem:[%s29545_s10] sm:$0xff]  ;;  %v11710_v0 = vld [vmem:[%s29549_s14 + $0xb0] sm:$0xff] }
0x2eb6   :  { %v8757_v61 = vsub.f32 %v24954_v2, %v24963_v19  ;;  %v24973_v28 = vsub.f32 %v8672_v37, %v24965_v25  ;;  %v9921_v37 = vld [vmem:[%s29545_s10 + $0x10] sm:$0xff] }
0x2eb7   :  { %29934 = vst [vmem:[#allocation10_spill] sm:$0xff] %v24968_v5  ;;  %v15553_v31 = vand.u32 4294901760, %v15552_v26  ;;  %29936 = vst [vmem:[#allocation12_spill] sm:$0xff] %v25009_v58  ;;  %v15558_v7 = vand.u32 4294901760, %v25009_v58  ;;  %v10062_v16 = vand.u32 4294901760, %v25073_v60  ;;  %v9937_v26 = vand.u32 4294901760, %v9919_v10 }
0x2eb8   :  { %v24975_v32 = vand.u32 4294901760, %v8757_v61  ;;  %v24978_v33 = vand.u32 4294901760, %v24973_v28  ;;  %v9941_v61 = vand.u32 4294901760, %v9921_v37 }
0x2eb9   :  { %v24984_v39 = vpack.c.bf16 %v15553_v31, %v15546_v29  ;;  %v15559_v15 = vsub.f32 %v25009_v58, %v15558_v7  ;;  %v25095_v29 = vsub.f32 %v9919_v10, %v9937_v26 }
0x2eba   :  { %21151 = vmatmul.mubr.f32.vlgmr.msra.gmra.mrb[52].mxu1 %v24975_v32  ;;  %9366 = vmatmul.mubr.f32.gmra.mrb[26].mxu0 %v24975_v32  ;;  %v8767_v43 = vsub.f32 %v24973_v28, %v24978_v33  ;;  %v25097_v31 = vsub.f32 %v9921_v37, %v9941_v61 }
0x2ebb   :  { %29935 = vst [vmem:[#allocation11_spill] sm:$0xff] %v24984_v39  ;;  %9371 = vmatprep.mubr.f32.mxu0 %v29560_v27  ;;  %22191 = vmatpush3.bf16.msra.mxu1 %v22188_v59  ;;  %v15560_v52 = vand.u32 4294901760, %v15559_v15 }
0x2ebc   :  { %v24991_v57 = vand.u32 4294901760, %v8767_v43  ;;  %22193 = vmatprep.subr.bf16.mxu1 %v22192_v34  ;;  %v10063_v43 = vsub.f32 %v25073_v60, %v10062_v16 }
0x2ebe   :  { %21153 = vmatprep.mubr.f32.mxu1 %v24991_v57  ;;  %9377 = vmatmul.mubr.f32.gmra.mrb[28].mxu0 %v24991_v57 }
0x2ebf   :  { %9382 = vmatprep.mubr.f32.mxu0 %v29560_v27 }
0x2f0f   :  { %v8649_v41 = vpop.permute.xlu1 %8648 }
0x2f10   :  { %8651 = vst.msk [vmem:[#allocation2 + $0x18] sm:$0xc0] %vm2668_vm5, %v8649_v41  ;;  %v10068_v41 = vand.u32 4294901760, %v25097_v31 }
0x2f17   :  { %v8655_v44 = vld [vmem:[#allocation2 + $0x18] sm:$0xff] }
0x2f18   :  { %v8675_v45 = vsel %vm672_vm2, %v8655_v44, 0  ;;  %v15472_v6 = vand.u32 4294901760, %v8655_v44 }
0x2f19   :  { %v25013_v17 = vand.u32 4294901760, %v8675_v45 }
0x2f1a   :  { %v25015_v22 = vpack.c.bf16 %v15472_v6, %v15469_v42  ;;  %v25017_v59 = vsub.f32 %v8655_v44, %v15472_v6  ;;  %v10064_v44 = vand.u32 4294901760, %v10063_v43  ;;  %v10069_v6 = vsub.f32 %v25097_v31, %v10068_v41 }
0x2f1b   :  { %v25020_v24 = vsub.f32 %v8675_v45, %v25013_v17  ;;  %v25119_v45 = vpack.c.bf16 %v9941_v61, %v9937_v26 }
0x2f1c   :  { %29937 = vst [vmem:[#allocation13_spill] sm:$0xff] %v25015_v22  ;;  %29938 = vst [vmem:[#allocation14_spill] sm:$0xff] %v25017_v59  ;;  %v15565_v46 = vand.u32 4294901760, %v25017_v59  ;;  %v11715_v22 = vld [vmem:[%s29549_s14 + $0xd8] sm:$0xff] }
0x2f1d   :  { %v25027_v48 = vand.u32 4294901760, %v25020_v24 }
0x2f1e   :  { %v15566_v30 = vsub.f32 %v25017_v59, %v15565_v46  ;;  %v25030_v50 = vpack.c.bf16 %v15565_v46, %v15558_v7  ;;  %v10070_v46 = vand.u32 4294901760, %v10069_v6  ;;  %v9269_v6 = vld [vmem:[%s29544_s9] sm:$0x3] }
0x2f1f   :  { %v8777_v21 = vsub.f32 %v25020_v24, %v25027_v48 }
0x2f20   :  { %29939 = vst [vmem:[#allocation15_spill] sm:$0xff] %v25030_v50  ;;  %v15567_v49 = vand.u32 4294901760, %v15566_v30 }
0x2f21   :  { %v25034_v38 = vand.u32 4294901760, %v8777_v21 }
0x2f22   :  { %v25036_v40 = vpack.c.bf16 %v15567_v49, %v15560_v52 }
0x2f23   :  { %21154 = vmatmul.mubr.f32.gmra.mrb[54].mxu1 %v25034_v38  ;;  %9388 = vmatmul.mubr.f32.gmra.mrb[30].mxu0 %v25034_v38 }
0x2f24   :  { %29940 = vst [vmem:[#allocation16_spill] sm:$0xff] %v25036_v40  ;;  %21160 = vmatprep.mubr.f32.mxu1 %v24923_v51  ;;  %9478 = vmatprep.mubr.f32.mxu0 %v29560_v27  ;;  %v25698_v40 = vsel %vm10590_vm7, %v11710_v0, 0 }
0x2f25   :  { %v25717_v0 = vand.u32 4294901760, %v25698_v40 }
0x2f27   :  { %21161 = vmatmul.mubr.f32.vlgmr.msra.gmra.mrb[52].mxu1 %v24945_v63  ;;  %9480 = vmatmul.mubr.f32.vlgmr.msra.gmra.mrb[24].mxu0 %v24923_v51  ;;  %29972 = vst [vmem:[#allocation46_spill] sm:$0xff] %v25717_v0 }
0x2f28   :  { %21163 = vmatprep.mubr.f32.mxu1 %v24965_v25  ;;  %9485 = vmatprep.mubr.f32.mxu0 %v29560_v27 }
0x2f29   :  { %22219 = vmatpush1.bf16.msra.mxu0 %v22218_v54  ;;  %22195 = vmatpush3.bf16.msra.mxu1 %v22192_v34  ;;  %v9935_v54 = vand.u32 4294901760, %v9920_v11 }
0x2f2a   :  { %22197 = vmatprep.subr.bf16.mxu1 %v24885_v20  ;;  %22221 = vmatprep.subr.bf16.mxu0 %v24859_v3 }
0x2f2b   :  { %21164 = vmatmul.mubr.f32.gmra.mrb[54].mxu1 %v25013_v17  ;;  %9487 = vmatmul.mubr.f32.gmra.mrb[26].mxu0 %v24945_v63  ;;  %v25071_v56 = vsub.f32 %v9920_v11, %v9935_v54  ;;  %v25099_v34 = vpack.c.bf16 %v9939_v55, %v9935_v54 }
0x2f2c   :  { %21170 = vmatprep.mubr.f32.mxu1 %v24928_v53  ;;  %9492 = vmatprep.mubr.f32.mxu0 %v29560_v27 }
0x2f2d   :  { %v10050_v13 = vand.u32 4294901760, %v25071_v56  ;;  %v22240_v21 = vpack.c.bf16 %v25073_v60, %v25071_v56 }
0x2f2f   :  { %21171 = vmatmul.mubr.f32.vlgmr.msra.gmra.mrb[52].mxu1 %v24954_v2  ;;  %9494 = vmatmul.mubr.f32.gmra.mrb[28].mxu0 %v24965_v25 }
0x2f30   :  { %21173 = vmatprep.mubr.f32.mxu1 %v24973_v28  ;;  %9499 = vmatprep.mubr.f32.mxu0 %v29560_v27 }
0x2f31   :  { %22199 = vmatpush3.bf16.msra.mxu1 %v24885_v20 }
0x2f32   :  { %22201 = vmatprep.subr.bf16.mxu1 %v24982_v23 }
0x2f33   :  { %21174 = vmatmul.mubr.f32.gmra.mrb[54].mxu1 %v25020_v24  ;;  %9501 = vmatmul.mubr.f32.gmra.mrb[30].mxu0 %v25013_v17 }
0x2f34   :  { %21180 = vmatprep.mubr.f32.mxu1 %v24936_v1  ;;  %9579 = vmatprep.mubr.f32.mxu0 %v29560_v27 }
0x2f37   :  { %21181 = vmatmul.mubr.f32.vlgmr.msra.gmra.mrb[52].mxu1 %v24963_v19  ;;  %9582 = vmatmul.mubr.f32.vlgmr.msra.gmra.mrb[24].mxu0 %v24928_v53 }
0x2f38   :  { %21183 = vmatprep.mubr.f32.mxu1 %v24978_v33  ;;  %9587 = vmatprep.mubr.f32.mxu0 %v29560_v27 }
0x2f39   :  { %22223 = vmatpush1.bf16.msra.mxu0 %v24865_v8  ;;  %22203 = vmatpush3.bf16.msra.mxu1 %v24982_v23  ;;  %v10051_v23 = vsub.f32 %v25071_v56, %v10050_v13 }
0x2f3a   :  { %22205 = vmatprep.subr.bf16.mxu1 %v24885_v20  ;;  %22225 = vmatprep.subr.bf16.mxu0 %v25000_v35  ;;  %v10056_v35 = vand.u32 4294901760, %v25095_v29 }
0x2f3b   :  { %21184 = vmatmul.mubr.f32.gmra.mrb[54].mxu1 %v25027_v48  ;;  %9590 = vmatmul.mubr.f32.gmra.mrb[26].mxu0 %v24954_v2  ;;  %v10052_v42 = vand.u32 4294901760, %v10051_v23 }
0x2f3c   :  { %21190 = vmatprep.mubr.f32.mxu1 %v24923_v51  ;;  %9595 = vmatprep.mubr.f32.mxu0 %v29560_v27 }
0x2f3d   :  { %v22236_v7 = vpack.c.bf16 %v10064_v44, %v10052_v42 }
0x2f3f   :  { %21191 = vmatmul.mubr.f32.vlgmr.msra.gmra.mrb[52].mxu1 %v24945_v63  ;;  %9598 = vmatmul.mubr.f32.gmra.mrb[28].mxu0 %v24973_v28 }
0x2f40   :  { %21193 = vmatprep.mubr.f32.mxu1 %v24965_v25  ;;  %9603 = vmatprep.mubr.f32.mxu0 %v29560_v27 }
0x2f41   :  { %22207 = vmatpush3.bf16.msra.mxu1 %v24885_v20  ;;  %v10057_v20 = vsub.f32 %v25095_v29, %v10056_v35 }
0x2f42   :  { %22233 = vmatprep.subr.bf16.mxu1 %v25099_v34 }
0x2f43   :  { %21194 = vmatmul.mubr.f32.gmra.mrb[54].mxu1 %v25013_v17  ;;  %9606 = vmatmul.mubr.f32.gmra.mrb[30].mxu0 %v25020_v24  ;;  %v10058_v15 = vand.u32 4294901760, %v10057_v20 }
0x2f44   :  { %21200 = vmatprep.mubr.f32.mxu1 %v24923_v51  ;;  %9680 = vmatprep.mubr.f32.mxu0 %v29560_v27 }
0x2f45   :  { %v22238_v30 = vpack.c.bf16 %v10070_v46, %v10058_v15 }
0x2f47   :  { %21201 = vmatmul.mubr.f32.vlgmr.msra.gmra.mrb[52].mxu1 %v24945_v63  ;;  %9684 = vmatmul.mubr.f32.vlgmr.msra.gmra.mrb[24].mxu0 %v24936_v1 }
0x2f48   :  { %21203 = vmatprep.mubr.f32.mxu1 %v24965_v25  ;;  %9689 = vmatprep.mubr.f32.mxu0 %v29560_v27 }
0x2f49   :  { %22227 = vmatpush1.bf16.msra.mxu0 %v25006_v36  ;;  %22235 = vmatpush1.bf16.msra.mxu1 %v25119_v45 }
0x2f4a   :  { %22229 = vmatprep.subr.bf16.mxu0 %v24859_v3  ;;  %22237 = vmatprep.subr.bf16.mxu1 %v22236_v7  ;;  %v22242_v3 = vpack.c.bf16 %v25097_v31, %v25095_v29 }
0x2f4b   :  { %21204 = vmatmul.mubr.f32.gmra.mrb[54].mxu1 %v25013_v17  ;;  %9693 = vmatmul.mubr.f32.gmra.mrb[26].mxu0 %v24963_v19 }
0x2f4c   :  { %9698 = vmatprep.mubr.f32.mxu0 %v29560_v27  ;;  %10003 = vmatprep.mubr.f32.mxu1 %v29560_v27 }
0x2f4f   :  { %9702 = vmatmul.mubr.f32.gmra.mrb[28].mxu0 %v24978_v33  ;;  %10009 = vmatmul.mubr.f32.vlgmr.msra.gmra.mrb[56].mxu1 %v24943_v62 }
0x2f50   :  { %9707 = vmatprep.mubr.f32.mxu0 %v29560_v27  ;;  %10014 = vmatprep.mubr.f32.mxu1 %v29560_v27 }
0x2f51   :  { %22239 = vmatpush1.bf16.msra.mxu1 %v22238_v30 }
0x2f52   :  { %22241 = vmatprep.subr.bf16.mxu1 %v22240_v21 }
0x2f53   :  { %9711 = vmatmul.mubr.f32.gmra.mrb[30].mxu0 %v25027_v48  ;;  %10020 = vmatmul.mubr.f32.gmra.mrb[58].mxu1 %v24975_v32 }
0x2f54   :  { %9793 = vmatprep.mubr.f32.mxu0 %v29560_v27  ;;  %10025 = vmatprep.mubr.f32.mxu1 %v29560_v27 }
0x2f57   :  { %9795 = vmatmul.mubr.f32.vlgmr.msra.gmra.mrb[24].mxu0 %v24923_v51  ;;  %10031 = vmatmul.mubr.f32.gmra.mrb[60].mxu1 %v24991_v57 }
0x2f58   :  { %9800 = vmatprep.mubr.f32.mxu0 %v29560_v27  ;;  %10036 = vmatprep.mubr.f32.mxu1 %v29560_v27 }
0x2f59   :  { %22231 = vmatpush1.bf16.msra.mxu0 %v24865_v8  ;;  %v22248_v8 = vpack.c.bf16 %v10062_v16, %v10050_v13 }
0x2f5b   :  { %9802 = vmatmul.mubr.f32.gmra.mrb[26].mxu0 %v24945_v63  ;;  %10042 = vmatmul.mubr.f32.gmra.mrb[62].mxu1 %v25034_v38 }
0x2f5c   :  { %9807 = vmatprep.mubr.f32.mxu0 %v29560_v27  ;;  %10132 = vmatprep.mubr.f32.mxu1 %v29560_v27 }
0x2f5f   :  { %9809 = vmatmul.mubr.f32.gmra.mrb[28].mxu0 %v24965_v25  ;;  %10134 = vmatmul.mubr.f32.vlgmr.msra.gmra.mrb[56].mxu1 %v24923_v51 }
0x2f60   :  { %9814 = vmatprep.mubr.f32.mxu0 %v29560_v27  ;;  %10139 = vmatprep.mubr.f32.mxu1 %v29560_v27 }
0x2f61   :  { %22243 = vmatpush1.bf16.msra.mxu1 %v22242_v3 }
0x2f62   :  { %22245 = vmatprep.subr.bf16.mxu1 %v25099_v34 }
0x2f63   :  { %9816 = vmatmul.mubr.f32.gmra.mrb[30].mxu0 %v25013_v17  ;;  %10141 = vmatmul.mubr.f32.gmra.mrb[58].mxu1 %v24945_v63 }
0x2f64   :  { %9890 = vmatprep.mubr.f32.mxu0 %v29560_v27  ;;  %10146 = vmatprep.mubr.f32.mxu1 %v29560_v27 }
0x2f67   :  { %9892 = vmatmul.mubr.f32.vlgmr.msra.gmra.mrb[24].mxu0 %v24923_v51  ;;  %10148 = vmatmul.mubr.f32.gmra.mrb[60].mxu1 %v24965_v25 }
0x2f68   :  { %9897 = vmatprep.mubr.f32.mxu0 %v29560_v27  ;;  %10153 = vmatprep.mubr.f32.mxu1 %v29560_v27 }
0x2f6b   :  { %9899 = vmatmul.mubr.f32.gmra.mrb[26].mxu0 %v24945_v63  ;;  %10155 = vmatmul.mubr.f32.gmra.mrb[62].mxu1 %v25013_v17 }
0x2f6c   :  { %9904 = vmatprep.mubr.f32.mxu0 %v29560_v27  ;;  %10233 = vmatprep.mubr.f32.mxu1 %v29560_v27 }
0x2f6f   :  { %9906 = vmatmul.mubr.f32.gmra.mrb[28].mxu0 %v24965_v25  ;;  %10236 = vmatmul.mubr.f32.vlgmr.msra.gmra.mrb[56].mxu1 %v24928_v53  ;;  %v22250_v53 = vpack.c.bf16 %v10068_v41, %v10056_v35  ;;  %v9271_v41 = vlaneseq }
0x2f70   :  { %9911 = vmatprep.mubr.f32.mxu0 %v29560_v27  ;;  %10241 = vmatprep.mubr.f32.mxu1 %v29560_v27 }
0x2f71   :  { %22247 = vmatpush1.bf16.msra.mxu1 %v25119_v45  ;;  %v9272_v44 = vshrl.u32 %v9271_v41, 7 }
0x2f72   :  { %22249 = vmatprep.subr.bf16.mxu1 %v22248_v8  ;;  %v25260_v8 = vld [vmem:[%s29547_s12] sm:$0xff] }
0x2f73   :  { %9913 = vmatmul.mubr.f32.gmra.mrb[30].mxu0 %v25013_v17  ;;  %10244 = vmatmul.mubr.f32.gmra.mrb[58].mxu1 %v24954_v2  ;;  %v25245_v20 = vsub.s32 0, %v9272_v44  ;;  %v25250_v7 = vsub.s32 1, %v9272_v44 }
0x2f74   :  { %10249 = vmatprep.mubr.f32.mxu1 %v29560_v27  ;;  %10666 = vmatprep.mubr.f32.mxu0 %v29560_v27 }
0x2f75   :  { %29945 = vst [vmem:[#allocation21_spill] sm:$0xff] %v25245_v20  ;;  %29946 = vst [vmem:[#allocation22_spill] sm:$0xff] %v25250_v7  ;;  %v9274_v46 = vrot.slane %v9269_v6, %v25245_v20  ;;  %v9278_v30 = vrot.slane %v9269_v6, %v25250_v7 }
0x2f77   :  { %10252 = vmatmul.mubr.f32.gmra.mrb[60].mxu1 %v24973_v28 }
0x2f78   :  { %10257 = vmatprep.mubr.f32.mxu1 %v29560_v27 }
0x2f7b   :  { %10260 = vmatmul.mubr.f32.gmra.mrb[62].mxu1 %v25020_v24 }
0x2f7c   :  { %10334 = vmatprep.mubr.f32.mxu1 %v29560_v27 }
0x2f7f   :  { %10338 = vmatmul.mubr.f32.vlgmr.msra.gmra.mrb[56].mxu1 %v24936_v1  ;;  %v19212_v1 = vld [vmem:[%s29542_s7] ss:$0 sm:$0xff] }
0x2f80   :  { %10343 = vmatprep.mubr.f32.mxu1 %v29560_v27  ;;  %22251 = vmatpush1.bf16.msra.mxu1 %v22250_v53 }
0x2f81   :  { %22253 = vmatprep.subr.bf16.mxu1 %v25099_v34 }
0x2f83   :  { %10347 = vmatmul.mubr.f32.gmra.mrb[58].mxu1 %v24963_v19 }
0x2f84   :  { %10352 = vmatprep.mubr.f32.mxu1 %v29560_v27 }
0x2f87   :  { %10356 = vmatmul.mubr.f32.gmra.mrb[60].mxu1 %v24978_v33 }
0x2f88   :  { %10361 = vmatprep.mubr.f32.mxu1 %v29560_v27 }
0x2f8b   :  { %10365 = vmatmul.mubr.f32.gmra.mrb[62].mxu1 %v25027_v48 }
0x2f8c   :  { %10447 = vmatprep.mubr.f32.mxu1 %v29560_v27 }
0x2f8f   :  { %10449 = vmatmul.mubr.f32.vlgmr.msra.gmra.mrb[56].mxu1 %v24923_v51 }
0x2f90   :  { %10454 = vmatprep.mubr.f32.mxu1 %v29560_v27  ;;  %22255 = vmatpush1.bf16.msra.mxu1 %v25119_v45  ;;  %v10581_v45 = vld [vmem:[%s29548_s13] sm:$0x3] }
0x2f91   :  { %v10592_v15 = vsel %vm10590_vm7, %v10581_v45, 0 }
0x2f92   :  { %v25255_v21 = vand.u32 4294901760, %v10592_v15 }
0x2f93   :  { %10456 = vmatmul.mubr.f32.gmra.mrb[58].mxu1 %v24945_v63 }
0x2f94   :  { %10461 = vmatprep.mubr.f32.mxu1 %v29560_v27 }
0x2f97   :  { %10463 = vmatmul.mubr.f32.gmra.mrb[60].mxu1 %v24965_v25 }
0x2f98   :  { %10468 = vmatprep.mubr.f32.mxu1 %v29560_v27 }
0x2f9b   :  { %10470 = vmatmul.mubr.f32.gmra.mrb[62].mxu1 %v25013_v17 }
0x2f9c   :  { %10544 = vmatprep.mubr.f32.mxu1 %v29560_v27 }
0x2f9f   :  { %10546 = vmatmul.mubr.f32.vlgmr.msra.gmra.mrb[56].mxu1 %v24923_v51 }
0x2fa0   :  { %10551 = vmatprep.mubr.f32.mxu1 %v29560_v27 }
0x2fa3   :  { %10553 = vmatmul.mubr.f32.gmra.mrb[58].mxu1 %v24945_v63 }
0x2fa4   :  { %10558 = vmatprep.mubr.f32.mxu1 %v29560_v27 }
0x2fa7   :  { %10560 = vmatmul.mubr.f32.gmra.mrb[60].mxu1 %v24965_v25 }
0x2fa8   :  { %10565 = vmatprep.mubr.f32.mxu1 %v29560_v27 }
0x2fab   :  { %10567 = vmatmul.mubr.f32.gmra.mrb[62].mxu1 %v25013_v17 }
0x2fac   :  { %11217 = vmatprep.mubr.f32.mxu1 %v29560_v27 }
0x301a   :  { %v21202_v62 = vpop.f32.mrb[52].mxu1 }
0x301b   :  { %v22828_v51 = vadd.f32 %v21202_v62, %v19212_v1  ;;  %v9243_v2 = vpop.f32.mrb[53].mxu1  ;;  %v25265_v62 = vld [vmem:[%s29547_s12 + $0x8] sm:$0xff] }
0x301c   :  { %v22829_v19 = vadd.f32 %v19212_v1, %v9243_v2  ;;  %v25268_v2 = vsub.f32 %v10592_v15, %v25255_v21 }
0x301d   :  { %v11948_v28 = vand.u32 4294901760, %v22828_v51 }
0x301e   :  { %v11945_v63 = vand.u32 4294901760, %v22829_v19  ;;  %v21205_v32 = vpop.f32.mrb[54].mxu1 }
0x301f   :  { %v12662_v33 = vsub.f32 %v22828_v51, %v11948_v28  ;;  %v22830_v57 = vadd.f32 %v21205_v32, %v19212_v1  ;;  %v9255_v25 = vpop.f32.mrb[55].mxu1  ;;  %v25275_v32 = vld [vmem:[%s29547_s12 + $0x10] sm:$0xff] }
0x3020   :  { %v25226_v36 = vpack.c.bf16 %v11948_v28, %v11945_v63  ;;  %v12655_v24 = vsub.f32 %v22829_v19, %v11945_v63  ;;  %v22831_v17 = vadd.f32 %v19212_v1, %v9255_v25 }
0x3021   :  { %v12663_v48 = vand.u32 4294901760, %v12662_v33  ;;  %v11954_v52 = vand.u32 4294901760, %v22830_v57 }
0x3022   :  { %29941 = vst [vmem:[#allocation17_spill] sm:$0xff] %v25226_v36  ;;  %v12656_v49 = vand.u32 4294901760, %v12655_v24  ;;  %v11951_v38 = vand.u32 4294901760, %v22831_v17  ;;  %v25228_v11 = vpack.c.bf16 %v12662_v33, %v12655_v24 }
0x3023   :  { %v12664_v12 = vsub.f32 %v12662_v33, %v12663_v48  ;;  %v12676_v54 = vsub.f32 %v22830_v57, %v11954_v52 }
0x3024   :  { %v12657_v55 = vsub.f32 %v12655_v24, %v12656_v49  ;;  %v25230_v56 = vpack.c.bf16 %v11954_v52, %v11951_v38  ;;  %v12669_v60 = vsub.f32 %v22831_v17, %v11951_v38  ;;  %v25232_v13 = vpack.c.bf16 %v12663_v48, %v12656_v49  ;;  %v25280_v24 = vld [vmem:[%s29547_s12 + $0x18] sm:$0xff] }
0x3025   :  { %v12665_v10 = vand.u32 4294901760, %v12664_v12  ;;  %v12677_v37 = vand.u32 4294901760, %v12676_v54  ;;  %v25283_v52 = vand.u32 4294901760, %v25268_v2 }
0x3026   :  { %29942 = vst [vmem:[#allocation18_spill] sm:$0xff] %v25230_v56  ;;  %29943 = vst [vmem:[#allocation19_spill] sm:$0xff] %v25232_v13  ;;  %v12658_v16 = vand.u32 4294901760, %v12657_v55  ;;  %v12670_v26 = vand.u32 4294901760, %v12669_v60  ;;  %v25234_v61 = vpack.c.bf16 %v12676_v54, %v12669_v60  ;;  %v11716_v13 = vld [vmem:[%s29549_s14 + $0xe0] sm:$0xff] }
0x3027   :  { %v12678_v29 = vsub.f32 %v12676_v54, %v12677_v37  ;;  %v10670_v41 = vsub.f32 %v25268_v2, %v25283_v52 }
0x3028   :  { %v12671_v31 = vsub.f32 %v12669_v60, %v12670_v26  ;;  %v25236_v34 = vpack.c.bf16 %v12665_v10, %v12658_v16  ;;  %v25238_v43 = vpack.c.bf16 %v12677_v37, %v12670_v26  ;;  %v25294_v60 = vld [vmem:[%s29547_s12 + $0x20] sm:$0xff] }
0x3029   :  { %v12679_v23 = vand.u32 4294901760, %v12678_v29  ;;  %v25300_v29 = vld [vmem:[%s29547_s12 + $0x28] sm:$0xff] }
0x302a   :  { %29944 = vst [vmem:[#allocation20_spill] sm:$0xff] %v25238_v43  ;;  %v12672_v35 = vand.u32 4294901760, %v12671_v31 }
0x302c   :  { %v25240_v42 = vpack.c.bf16 %v12679_v23, %v12672_v35 }
0x303a   :  { %v9893_v3 = vpop.f32.mrb[24].mxu0 }
0x303b   :  { %v22832_v53 = vadd.f32 %v9893_v3, %v9274_v46  ;;  %v9895_v1 = vpop.f32.mrb[25].mxu0 }
0x303c   :  { %v22833_v51 = vadd.f32 %v9895_v1, %v9278_v30 }
0x303d   :  { %v10582_v19 = vmul.f32 %v22832_v53, %v25260_v8 }
0x303e   :  { %v10583_v28 = vmul.f32 %v22833_v51, %v25265_v62  ;;  %v9900_v63 = vpop.f32.mrb[26].mxu0  ;;  %v25317_v51 = vld [vmem:[%s29547_s12 + $0x30] sm:$0xff] }
0x303f   :  { %v10596_v33 = vand.u32 4294901760, %v10582_v19  ;;  %v22834_v57 = vadd.f32 %v9900_v63, %v9274_v46  ;;  %v9902_v25 = vpop.f32.mrb[27].mxu0 }
0x3040   :  { %v10594_v17 = vand.u32 4294901760, %v10583_v28  ;;  %v22835_v48 = vadd.f32 %v9902_v25, %v9278_v30 }
0x3041   :  { %v25285_v49 = vsub.f32 %v10582_v19, %v10596_v33  ;;  %v10584_v38 = vmul.f32 %v22834_v57, %v25275_v32 }
0x3042   :  { %v25288_v12 = vsub.f32 %v10583_v28, %v10594_v17  ;;  %v10585_v54 = vmul.f32 %v22835_v48, %v25280_v24  ;;  %v9907_v55 = vpop.f32.mrb[28].mxu0  ;;  %v25326_v48 = vld [vmem:[%s29547_s12 + $0x38] sm:$0xff] }
0x3043   :  { %v10686_v10 = vand.u32 4294901760, %v25285_v49  ;;  %v10600_v37 = vand.u32 4294901760, %v10584_v38  ;;  %v22836_v16 = vadd.f32 %v9907_v55, %v9274_v46  ;;  %v9909_v26 = vpop.f32.mrb[29].mxu0 }
0x3044   :  { %v10598_v31 = vand.u32 4294901760, %v10585_v54  ;;  %v22837_v23 = vadd.f32 %v9909_v26, %v9278_v30  ;;  %v10680_v35 = vand.u32 4294901760, %v25288_v12 }
0x3045   :  { %v10687_v44 = vsub.f32 %v25285_v49, %v10686_v10  ;;  %v25306_v45 = vpack.c.bf16 %v10600_v37, %v10596_v33  ;;  %v25308_v6 = vsub.f32 %v10584_v38, %v10600_v37  ;;  %v10586_v15 = vmul.f32 %v22836_v16, %v25294_v60 }
0x3046   :  { %v25311_v3 = vsub.f32 %v10585_v54, %v10598_v31  ;;  %v10587_v53 = vmul.f32 %v22837_v23, %v25300_v29  ;;  %v9914_v1 = vpop.f32.mrb[30].mxu0  ;;  %v25319_v19 = vpack.c.bf16 %v10598_v31, %v10594_v17  ;;  %v10681_v28 = vsub.f32 %v25288_v12, %v10680_v35 }
0x3047   :  { %v10698_v63 = vand.u32 4294901760, %v25308_v6  ;;  %v10604_v33 = vand.u32 4294901760, %v10586_v15  ;;  %v22838_v57 = vadd.f32 %v9914_v1, %v9274_v46  ;;  %v9916_v25 = vpop.f32.mrb[31].mxu0  ;;  %v10688_v38 = vand.u32 4294901760, %v10687_v44 }
0x3048   :  { %v10602_v54 = vand.u32 4294901760, %v10587_v53  ;;  %v22839_v55 = vadd.f32 %v9916_v25, %v9278_v30  ;;  %22257 = vmatprep.subr.bf16.mxu0 %v25319_v19  ;;  %v10682_v37 = vand.u32 4294901760, %v10681_v28  ;;  %v10692_v17 = vand.u32 4294901760, %v25311_v3 }
0x3049   :  { %v10699_v16 = vsub.f32 %v25308_v6, %v10698_v63  ;;  %v10709_v26 = vsub.f32 %v10586_v15, %v10604_v33  ;;  %v10588_v31 = vmul.f32 %v22838_v57, %v25317_v51  ;;  %22259 = vmatpush1.bf16.msra.mxu0 %v25306_v45  ;;  %v22272_v46 = vpack.c.bf16 %v25311_v3, %v25288_v12 }
0x304a   :  { %v10703_v23 = vsub.f32 %v10587_v53, %v10602_v54  ;;  %v10589_v44 = vmul.f32 %v22839_v55, %v25326_v48  ;;  %v10693_v30 = vsub.f32 %v25311_v3, %v10692_v17  ;;  %v22274_v1 = vpack.c.bf16 %v25308_v6, %v25285_v49 }
0x304b   :  { %v10710_v28 = vand.u32 4294901760, %v10709_v26  ;;  %v10608_v25 = vand.u32 4294901760, %v10588_v31  ;;  %v10700_v47 = vand.u32 4294901760, %v10699_v16  ;;  %v22288_v14 = vpack.c.bf16 %v10692_v17, %v10680_v35 }
0x304c   :  { %v10606_v15 = vand.u32 4294901760, %v10589_v44  ;;  %v10694_v9 = vand.u32 4294901760, %v10693_v30  ;;  %v10704_v57 = vand.u32 4294901760, %v10703_v23  ;;  %v22290_v27 = vpack.c.bf16 %v10698_v63, %v10686_v10  ;;  %v11690_v30 = vld [vmem:[%s29549_s14 + $0x10] sm:$0xff] }
0x304d   :  { %v25339_v50 = vpack.c.bf16 %v10608_v25, %v10604_v33  ;;  %v10721_v5 = vsub.f32 %v10588_v31, %v10608_v25  ;;  %v22266_v12 = vpack.c.bf16 %v10700_v47, %v10688_v38  ;;  %v10711_v58 = vsub.f32 %v10709_v26, %v10710_v28 }
0x304e   :  { %v10715_v53 = vsub.f32 %v10589_v44, %v10606_v15  ;;  %v22260_v43 = vpack.c.bf16 %v10606_v15, %v10602_v54  ;;  %v22264_v55 = vpack.c.bf16 %v10694_v9, %v10682_v37  ;;  %v25341_v49 = vand.u32 4294901760, %v10670_v41  ;;  %v11689_v44 = vld [vmem:[%s29549_s14 + $0x8] sm:$0xff] }
0x304f   :  { %v10722_v3 = vand.u32 4294901760, %v10721_v5  ;;  %v22278_v59 = vpack.c.bf16 %v10721_v5, %v10709_v26  ;;  %v10705_v6 = vsub.f32 %v10703_v23, %v10704_v57  ;;  %v10712_v47 = vand.u32 4294901760, %v10711_v58 }
0x3050   :  { %22261 = vmatprep.subr.bf16.mxu0 %v22260_v43  ;;  %v10716_v16 = vand.u32 4294901760, %v10715_v53  ;;  %v22276_v35 = vpack.c.bf16 %v10715_v53, %v10703_v23  ;;  %v29947_v41 = vmov 0.0  }
0x3051   :  { %v10723_v17 = vsub.f32 %v10721_v5, %v10722_v3  ;;  %22263 = vmatpush1.bf16.msra.mxu0 %v25339_v50  ;;  %v22294_v10 = vpack.c.bf16 %v10722_v3, %v10710_v28  ;;  %v10706_v9 = vand.u32 4294901760, %v10705_v6  ;;  %v9923_v5 = vld [vmem:[%s29546_s11] sm:$0x3] }
0x3052   :  { %22265 = vmatprep.subr.bf16.mxu0 %v22264_v55  ;;  %v10717_v63 = vsub.f32 %v10715_v53, %v10716_v16  ;;  %v22292_v33 = vpack.c.bf16 %v10716_v16, %v10704_v57  ;;  %v25359_v58 = vrot.slane %v9923_v5, %v25245_v20 }
0x3053   :  { %v10724_v38 = vand.u32 4294901760, %v10723_v17 }
0x3054   :  { %10672 = vmatmul.mubr.f32.vlgmr.msra.gmra.mrb[32].mxu0 %v25341_v49  ;;  %v10718_v54 = vand.u32 4294901760, %v10717_v63 }
0x3055   :  { %22267 = vmatpush1.bf16.msra.mxu0 %v22266_v12  ;;  %v22270_v37 = vpack.c.bf16 %v10724_v38, %v10712_v47  ;;  %10782 = vmatprep.mubr.f32.mxu0 %v29947_v41 }
0x3056   :  { %v22268_v26 = vpack.c.bf16 %v10718_v54, %v10706_v9 }
0x3058   :  { %22269 = vmatprep.subr.bf16.mxu0 %v22268_v26 }
0x3059   :  { %22271 = vmatpush1.bf16.msra.mxu0 %v22270_v37 }
0x305a   :  { %22273 = vmatprep.subr.bf16.mxu0 %v22272_v46 }
0x305c   :  { %10784 = vmatmul.mubr.f32.vlgmr.msra.gmra.mrb[32].mxu0 %v25255_v21 }
0x305d   :  { %22275 = vmatpush1.bf16.msra.mxu0 %v22274_v1  ;;  %10870 = vmatprep.mubr.f32.mxu0 %v29947_v41  ;;  %v11691_v1 = vld [vmem:[%s29549_s14 + $0x18] sm:$0xff] }
0x305e   :  { %22277 = vmatprep.subr.bf16.mxu0 %v22276_v35  ;;  %v11692_v35 = vld [vmem:[%s29549_s14 + $0x20] sm:$0xff] }
0x3061   :  { %22279 = vmatpush1.bf16.msra.mxu0 %v22278_v59  ;;  %v25362_v59 = vrot.slane %v9923_v5, %v25250_v7 }
0x3062   :  { %22281 = vmatprep.subr.bf16.mxu0 %v25319_v19 }
0x3064   :  { %10873 = vmatmul.mubr.f32.vlgmr.msra.gmra.mrb[32].mxu0 %v25268_v2 }
0x3065   :  { %22283 = vmatpush1.bf16.msra.mxu0 %v25306_v45  ;;  %10951 = vmatprep.mubr.f32.mxu0 %v29947_v41 }
0x3066   :  { %22285 = vmatprep.subr.bf16.mxu0 %v22260_v43 }
0x3069   :  { %22287 = vmatpush1.bf16.msra.mxu0 %v25339_v50 }
0x306a   :  { %22289 = vmatprep.subr.bf16.mxu0 %v22288_v14 }
0x306c   :  { %10955 = vmatmul.mubr.f32.vlgmr.msra.gmra.mrb[32].mxu0 %v25283_v52 }
0x306d   :  { %22291 = vmatpush1.bf16.msra.mxu0 %v22290_v27  ;;  %11049 = vmatprep.mubr.f32.mxu0 %v29947_v41  ;;  %v11688_v27 = vld [vmem:[%s29549_s14] sm:$0xff] }
0x306e   :  { %22293 = vmatprep.subr.bf16.mxu0 %v22292_v33  ;;  %v25385_v15 = vsel %vm10590_vm7, %v11688_v27, 0 }
0x306f   :  { %v25403_v16 = vand.u32 4294901760, %v25385_v15 }
0x3071   :  { %22295 = vmatpush1.bf16.msra.mxu0 %v22294_v10  ;;  %29948 = vst [vmem:[#allocation23_spill] sm:$0xff] %v25403_v16 }
0x3072   :  { %v10547_v31 = vpop.f32.mrb[56].mxu1  ;;  %22297 = vmatprep.subr.bf16.mxu0 %v25319_v19 }
0x3073   :  { %v22840_v14 = vadd.f32 %v10547_v31, %v25359_v58  ;;  %v10549_v46 = vpop.f32.mrb[57].mxu1  ;;  %v25430_v31 = vsel %vm10590_vm7, %v11692_v35, 0 }
0x3074   :  { %v22841_v23 = vadd.f32 %v10549_v46, %v25362_v59  ;;  %11051 = vmatmul.mubr.f32.vlgmr.msra.gmra.mrb[32].mxu0 %v25255_v21 }
0x3075   :  { %v11137_v19 = vmul.f32 %v22840_v14, %v25260_v8  ;;  %22299 = vmatpush1.bf16.msra.mxu0 %v25306_v45  ;;  %11129 = vmatprep.mubr.f32.mxu0 %v29947_v41  ;;  %v25389_v8 = vsel %vm10590_vm7, %v11689_v44, 0  ;;  %v25392_v45 = vsel %vm10590_vm7, %v11690_v30, 0 }
0x3076   :  { %v11138_v28 = vmul.f32 %v22841_v23, %v25265_v62  ;;  %v10554_v25 = vpop.f32.mrb[58].mxu1  ;;  %22301 = vmatprep.subr.bf16.mxu0 %v22260_v43  ;;  %v25396_v62 = vsel %vm10590_vm7, %v11691_v1, 0  ;;  %v25413_v33 = vand.u32 4294901760, %v25389_v8 }
0x3077   :  { %v11147_v57 = vand.u32 4294901760, %v11137_v19  ;;  %v22842_v12 = vadd.f32 %v10554_v25, %v25359_v58  ;;  %v10556_v53 = vpop.f32.mrb[59].mxu1  ;;  %v25421_v54 = vand.u32 4294901760, %v25396_v62 }
0x3078   :  { %v11145_v55 = vand.u32 4294901760, %v11138_v28  ;;  %v22843_v3 = vadd.f32 %v10556_v53, %v25362_v59  ;;  %29949 = vst [vmem:[#allocation24_spill] sm:$0xff] %v25413_v33 }
0x3079   :  { %v25398_v43 = vsub.f32 %v11137_v19, %v11147_v57  ;;  %v11139_v6 = vmul.f32 %v22842_v12, %v25275_v32  ;;  %22303 = vmatpush1.bf16.msra.mxu0 %v25339_v50  ;;  %v25416_v32 = vand.u32 4294901760, %v25392_v45  ;;  %29951 = vst [vmem:[#allocation26_spill] sm:$0xff] %v25421_v54 }
0x307a   :  { %v25408_v17 = vsub.f32 %v11138_v28, %v11145_v55  ;;  %v11140_v10 = vmul.f32 %v22843_v3, %v25280_v24  ;;  %v10561_v63 = vpop.f32.mrb[60].mxu1  ;;  %22361 = vmatprep.subr.bf16.mxu0 %v25236_v34  ;;  %v11693_v24 = vld [vmem:[%s29549_s14 + $0x28] sm:$0xff] }
0x307b   :  { %29950 = vst [vmem:[#allocation25_spill] sm:$0xff] %v25416_v32  ;;  %v11237_v50 = vand.u32 4294901760, %v25398_v43  ;;  %v11151_v47 = vand.u32 4294901760, %v11139_v6  ;;  %v22844_v38 = vadd.f32 %v10561_v63, %v25359_v58  ;;  %v10563_v9 = vpop.f32.mrb[61].mxu1  ;;  %v25449_v28 = vsel %vm10590_vm7, %v11693_v24, 0 }
0x307c   :  { %v11149_v37 = vand.u32 4294901760, %v11140_v10  ;;  %v22845_v26 = vadd.f32 %v10563_v9, %v25362_v59  ;;  %11131 = vmatmul.mubr.f32.vlgmr.msra.gmra.mrb[32].mxu0 %v25255_v21  ;;  %v11231_v5 = vand.u32 4294901760, %v25408_v17  ;;  %v11694_v9 = vld [vmem:[%s29549_s14 + $0x30] sm:$0xff] }
0x307d   :  { %v11238_v14 = vsub.f32 %v25398_v43, %v11237_v50  ;;  %v25435_v46 = vpack.c.bf16 %v11151_v47, %v11147_v57  ;;  %v25437_v27 = vsub.f32 %v11139_v6, %v11151_v47  ;;  %v11141_v23 = vmul.f32 %v22844_v38, %v25294_v60  ;;  %22363 = vmatpush3.bf16.msra.mxu0 %v25236_v34 }
0x307e   :  { %v25441_v44 = vsub.f32 %v11140_v10, %v11149_v37  ;;  %v11142_v30 = vmul.f32 %v22845_v26, %v25300_v29  ;;  %v10568_v19 = vpop.f32.mrb[62].mxu1  ;;  %22365 = vmatprep.subr.bf16.mxu0 %v25240_v42  ;;  %v25445_v1 = vpack.c.bf16 %v11149_v37, %v11145_v55  ;;  %21318 = vmatprep.mubr.f32.mxu0 %v25403_v16 }
0x307f   :  { %v11249_v25 = vand.u32 4294901760, %v25437_v27  ;;  %v11155_v57 = vand.u32 4294901760, %v11141_v23  ;;  %v22846_v60 = vadd.f32 %v10568_v19, %v25359_v58  ;;  %v10570_v12 = vpop.f32.mrb[63].mxu1  ;;  %v11232_v53 = vsub.f32 %v25408_v17, %v11231_v5 }
0x3080   :  { %v11153_v3 = vand.u32 4294901760, %v11142_v30  ;;  %v22847_v29 = vadd.f32 %v10570_v12, %v25362_v59  ;;  %22305 = vmatprep.subr.bf16.mxu1 %v25445_v1  ;;  %v11243_v55 = vand.u32 4294901760, %v25441_v44  ;;  %v11239_v6 = vand.u32 4294901760, %v11238_v14 }
0x3081   :  { %v11250_v35 = vsub.f32 %v25437_v27, %v11249_v25  ;;  %v25458_v10 = vsub.f32 %v11141_v23, %v11155_v57  ;;  %v11143_v63 = vmul.f32 %v22846_v60, %v25317_v51  ;;  %22307 = vmatpush1.bf16.msra.mxu1 %v25435_v46  ;;  %22367 = vmatpush3.bf16.msra.mxu0 %v25240_v42  ;;  %v11233_v58 = vand.u32 4294901760, %v11232_v53 }
0x3082   :  { %v25463_v47 = vsub.f32 %v11142_v30, %v11153_v3  ;;  %v11144_v59 = vmul.f32 %v22847_v29, %v25326_v48  ;;  %22369 = vmatprep.subr.bf16.mxu0 %v25228_v11  ;;  %v11244_v38 = vsub.f32 %v25441_v44, %v11243_v55  ;;  %v22320_v51 = vpack.c.bf16 %v25441_v44, %v25408_v17 }
0x3083   :  { %v11261_v24 = vand.u32 4294901760, %v25458_v10  ;;  %v11159_v37 = vand.u32 4294901760, %v11143_v63  ;;  %v11251_v26 = vand.u32 4294901760, %v11250_v35  ;;  %v25478_v19 = vpack.c.bf16 %v11243_v55, %v11231_v5 }
0x3084   :  { %v11157_v23 = vand.u32 4294901760, %v11144_v59  ;;  %21319 = vmatmul.mubr.f32.vlgmr.msra.gmra.mrb[34].mxu0 %v25413_v33  ;;  %v11245_v48 = vand.u32 4294901760, %v11244_v38  ;;  %v11255_v30 = vand.u32 4294901760, %v25463_v47  ;;  %v25487_v53 = vand.u32 4294901760, %v25430_v31 }
0x3085   :  { %v25480_v60 = vpack.c.bf16 %v11159_v37, %v11155_v57  ;;  %v25482_v12 = vsub.f32 %v11143_v63, %v11159_v37  ;;  %22371 = vmatpush3.bf16.msra.mxu0 %v25228_v11  ;;  %21321 = vmatprep.mubr.f32.mxu0 %v25416_v32  ;;  %v25490_v29 = vsel %vm10590_vm7, %v11694_v9, 0  ;;  %v22314_v55 = vpack.c.bf16 %v11251_v26, %v11239_v6  ;;  %v11695_v11 = vld [vmem:[%s29549_s14 + $0x38] sm:$0xff] }
0x3086   :  { %29952 = vst [vmem:[#allocation27_spill] sm:$0xff] %v25487_v53  ;;  %v25492_v35 = vsub.f32 %v11144_v59, %v11157_v23  ;;  %22373 = vmatprep.subr.bf16.mxu0 %v25234_v61  ;;  %v25495_v5 = vpack.c.bf16 %v11157_v23, %v11153_v3  ;;  %v22312_v57 = vpack.c.bf16 %v11245_v48, %v11233_v58  ;;  %v25503_v37 = vand.u32 4294901760, %v25449_v28  ;;  %v11696_v59 = vld [vmem:[%s29549_s14 + $0x40] sm:$0xff] }
0x3087   :  { %v11262_v63 = vsub.f32 %v25458_v10, %v11261_v24  ;;  %v11273_v38 = vand.u32 4294901760, %v25482_v12  ;;  %v22326_v3 = vpack.c.bf16 %v25482_v12, %v25458_v10  ;;  %v11256_v6 = vsub.f32 %v25463_v47, %v11255_v30 }
0x3088   :  { %29953 = vst [vmem:[#allocation28_spill] sm:$0xff] %v25503_v37  ;;  %22309 = vmatprep.subr.bf16.mxu1 %v25495_v5  ;;  %21322 = vmatmul.mubr.f32.gmra.mrb[36].mxu0 %v25421_v54  ;;  %v11267_v58 = vand.u32 4294901760, %v25492_v35  ;;  %v22324_v9 = vpack.c.bf16 %v25492_v35, %v25463_v47  ;;  %v25518_v26 = vpack.c.bf16 %v11249_v25, %v11237_v50  ;;  %v25524_v10 = vand.u32 4294901760, %v25490_v29 }
0x3089   :  { %v11274_v23 = vsub.f32 %v25482_v12, %v11273_v38  ;;  %22311 = vmatpush1.bf16.msra.mxu1 %v25480_v60  ;;  %22375 = vmatpush3.bf16.msra.mxu0 %v25234_v61  ;;  %v25527_v48 = vsel %vm10590_vm7, %v11695_v11, 0  ;;  %v25529_v14 = vpack.c.bf16 %v11273_v38, %v11261_v24  ;;  %v25534_v25 = vsel %vm10590_vm7, %v11696_v59, 0  ;;  %v11697_v61 = vld [vmem:[%s29549_s14 + $0x48] sm:$0xff]  ;;  %v11698_v24 = vld [vmem:[%s29549_s14 + $0x50] sm:$0xff] }
0x308a   :  { %29954 = vst [vmem:[#allocation29_spill] sm:$0xff] %v25524_v10  ;;  %22313 = vmatprep.subr.bf16.mxu1 %v22312_v57  ;;  %22377 = vmatprep.subr.bf16.mxu0 %v25226_v36  ;;  %v11268_v50 = vsub.f32 %v25492_v35, %v11267_v58  ;;  %v25539_v47 = vpack.c.bf16 %v11267_v58, %v11255_v30  ;;  %v11263_v12 = vand.u32 4294901760, %v11262_v63  ;;  %v11257_v35 = vand.u32 4294901760, %v11256_v6  ;;  %v11699_v6 = vld [vmem:[%s29549_s14 + $0x58] sm:$0xff] }
0x308b   :  { %21324 = vmatprep.mubr.f32.mxu0 %v25487_v53  ;;  %v11275_v11 = vand.u32 4294901760, %v11274_v23  ;;  %v25548_v38 = vand.u32 4294901760, %v25527_v48  ;;  %v25552_v63 = vand.u32 4294901760, %v25534_v25  ;;  %v25555_v59 = vsel %vm10590_vm7, %v11697_v61, 0 }
0x308c   :  { %21325 = vmatmul.mubr.f32.gmra.mrb[38].mxu0 %v25503_v37  ;;  %11223 = vmatmul.mubr.f32.vlgmr.msra.gmra.mrb[64].mxu1 %v25341_v49  ;;  %v11269_v57 = vand.u32 4294901760, %v11268_v50  ;;  %v25559_v49 = vsel %vm10590_vm7, %v11698_v24, 0  ;;  %v25569_v23 = vand.u32 4294901760, %v25555_v59  ;;  %v25576_v61 = vsel %vm10590_vm7, %v11699_v6, 0  ;;  %v11702_v24 = vld [vmem:[%s29549_s14 + $0x70] sm:$0xff] }
0x308d   :  { %29955 = vst [vmem:[#allocation30_spill] sm:$0xff] %v25548_v38  ;;  %22315 = vmatpush1.bf16.msra.mxu1 %v22314_v55  ;;  %21327 = vmatprep.mubr.f32.mxu0 %v25524_v10  ;;  %v22318_v30 = vpack.c.bf16 %v11275_v11, %v11263_v12  ;;  %29956 = vst [vmem:[#allocation31_spill] sm:$0xff] %v25552_v63  ;;  %v11700_v55 = vld [vmem:[%s29549_s14 + $0x60] sm:$0xff]  ;;  %v25573_v50 = vand.u32 4294901760, %v25559_v49  ;;  %v11701_v11 = vld [vmem:[%s29549_s14 + $0x68] sm:$0xff]  ;;  %v29960_v17 = vpack.c.bf16 %v25437_v27, %v25398_v43 }
0x308e   :  { %v22316_v58 = vpack.c.bf16 %v11269_v57, %v11257_v35  ;;  %11333 = vmatprep.mubr.f32.mxu1 %v29947_v41  ;;  %29957 = vst [vmem:[#allocation32_spill] sm:$0xff] %v25569_v23  ;;  %v25582_v12 = vsel %vm10590_vm7, %v11700_v55, 0  ;;  %v25593_v35 = vand.u32 4294901760, %v25576_v61  ;;  %v25607_v57 = vsel %vm10590_vm7, %v11702_v24, 0  ;;  %v11704_v43 = vld [vmem:[%s29549_s14 + $0x80] sm:$0xff]  ;;  %v11705_v55 = vld [vmem:[%s29549_s14 + $0x88] sm:$0xff] }
0x308f   :  { %29958 = vst [vmem:[#allocation33_spill] sm:$0xff] %v25573_v50  ;;  %v25600_v44 = vand.u32 4294901760, %v25582_v12  ;;  %v25628_v6 = vsel %vm10590_vm7, %v11704_v43, 0  ;;  %v11708_v43 = vld [vmem:[%s29549_s14 + $0xa0] sm:$0xff] }
0x3090   :  { %22317 = vmatprep.subr.bf16.mxu1 %v22316_v58  ;;  %21328 = vmatmul.mubr.f32.gmra.mrb[40].mxu0 %v25548_v38  ;;  %29959 = vst [vmem:[#allocation34_spill] sm:$0xff] %v25593_v35  ;;  %v25644_v24 = vand.u32 4294901760, %v25628_v6  ;;  %v25674_v20 = vsel %vm10590_vm7, %v11708_v43, 0  ;;  %v25693_v43 = vsel %vm10590_vm7, %v11709_v4, 0  ;;  %v11712_v4 = vld [vmem:[%s29549_s14 + $0xc0] sm:$0xff] }
0x3091   :  { %22319 = vmatpush1.bf16.msra.mxu1 %v22318_v30  ;;  %21330 = vmatprep.mubr.f32.mxu0 %v25552_v63  ;;  %29961 = vst [vmem:[#allocation35_spill] sm:$0xff] %v25600_v44  ;;  %v11703_v30 = vld [vmem:[%s29549_s14 + $0x78] sm:$0xff] }
0x3092   :  { %22321 = vmatprep.subr.bf16.mxu1 %v22320_v51  ;;  %v25603_v51 = vsel %vm10590_vm7, %v11701_v11, 0  ;;  %v25624_v58 = vsel %vm10590_vm7, %v11703_v30, 0  ;;  %29965 = vst [vmem:[#allocation39_spill] sm:$0xff] %v25644_v24 }
0x3093   :  { %v25617_v27 = vand.u32 4294901760, %v25603_v51  ;;  %v25639_v11 = vand.u32 4294901760, %v25624_v58 }
0x3094   :  { %21331 = vmatmul.mubr.f32.gmra.mrb[42].mxu0 %v25569_v23  ;;  %11335 = vmatmul.mubr.f32.vlgmr.msra.gmra.mrb[64].mxu1 %v25255_v21 }
0x3095   :  { %22323 = vmatpush1.bf16.msra.mxu1 %v29960_v17  ;;  %21333 = vmatprep.mubr.f32.mxu0 %v25573_v50  ;;  %29962 = vst [vmem:[#allocation36_spill] sm:$0xff] %v25617_v27  ;;  %29964 = vst [vmem:[#allocation38_spill] sm:$0xff] %v25639_v11  ;;  %v25647_v17 = vsel %vm10590_vm7, %v11705_v55, 0 }
0x3096   :  { %22325 = vmatprep.subr.bf16.mxu1 %v22324_v9  ;;  %11421 = vmatprep.mubr.f32.mxu1 %v29947_v41  ;;  %v25621_v9 = vand.u32 4294901760, %v25607_v57  ;;  %v25662_v55 = vand.u32 4294901760, %v25647_v17 }
0x3098   :  { %21334 = vmatmul.mubr.f32.gmra.mrb[44].mxu0 %v25593_v35  ;;  %29963 = vst [vmem:[#allocation37_spill] sm:$0xff] %v25621_v9  ;;  %29966 = vst [vmem:[#allocation40_spill] sm:$0xff] %v25662_v55 }
0x3099   :  { %22327 = vmatpush1.bf16.msra.mxu1 %v22326_v3  ;;  %21336 = vmatprep.mubr.f32.mxu0 %v25600_v44  ;;  %v11706_v3 = vld [vmem:[%s29549_s14 + $0x90] sm:$0xff] }
0x309a   :  { %22329 = vmatprep.subr.bf16.mxu1 %v25445_v1  ;;  %v25652_v30 = vsel %vm10590_vm7, %v11706_v3, 0 }
0x309b   :  { %v25667_v3 = vand.u32 4294901760, %v25652_v30 }
0x309c   :  { %21337 = vmatmul.mubr.f32.gmra.mrb[46].mxu0 %v25617_v27  ;;  %11424 = vmatmul.mubr.f32.vlgmr.msra.gmra.mrb[64].mxu1 %v25268_v2  ;;  %v11707_v2 = vld [vmem:[%s29549_s14 + $0x98] sm:$0xff] }
0x309d   :  { %22331 = vmatpush1.bf16.msra.mxu1 %v25435_v46  ;;  %21339 = vmatprep.mubr.f32.mxu0 %v25621_v9  ;;  %29967 = vst [vmem:[#allocation41_spill] sm:$0xff] %v25667_v3  ;;  %v25670_v7 = vsel %vm10590_vm7, %v11707_v2, 0 }
0x309e   :  { %22333 = vmatprep.subr.bf16.mxu1 %v25495_v5  ;;  %11502 = vmatprep.mubr.f32.mxu1 %v29947_v41  ;;  %v25685_v2 = vand.u32 4294901760, %v25670_v7 }
0x30a0   :  { %21340 = vmatmul.mubr.f32.gmra.mrb[48].mxu0 %v25639_v11  ;;  %29968 = vst [vmem:[#allocation42_spill] sm:$0xff] %v25685_v2 }
0x30a1   :  { %22335 = vmatpush1.bf16.msra.mxu1 %v25480_v60  ;;  %21342 = vmatprep.mubr.f32.mxu0 %v25644_v24 }
0x30a2   :  { %22337 = vmatprep.subr.bf16.mxu1 %v25478_v19  ;;  %v25690_v19 = vand.u32 4294901760, %v25674_v20 }
0x30a4   :  { %21343 = vmatmul.mubr.f32.gmra.mrb[50].mxu0 %v25662_v55  ;;  %11506 = vmatmul.mubr.f32.vlgmr.msra.gmra.mrb[64].mxu1 %v25283_v52  ;;  %29969 = vst [vmem:[#allocation43_spill] sm:$0xff] %v25690_v19  ;;  %v11711_v52 = vld [vmem:[%s29549_s14 + $0xb8] sm:$0xff] }
0x30a5   :  { %22339 = vmatpush1.bf16.msra.mxu1 %v25518_v26  ;;  %21345 = vmatprep.mubr.f32.mxu0 %v25667_v3  ;;  %v25705_v26 = vsub.f32 %v25385_v15, %v25403_v16  ;;  %v25720_v39 = vsel %vm10590_vm7, %v11711_v52, 0  ;;  %v25724_v15 = vsel %vm10590_vm7, %v11712_v4, 0  ;;  %v11713_v16 = vld [vmem:[%s29549_s14 + $0xc8] sm:$0xff]  ;;  %v11714_v52 = vld [vmem:[%s29549_s14 + $0xd0] sm:$0xff] }
0x30a6   :  { %22341 = vmatprep.subr.bf16.mxu1 %v25539_v47  ;;  %11600 = vmatprep.mubr.f32.mxu1 %v29947_v41  ;;  %v25712_v47 = vand.u32 4294901760, %v25693_v43  ;;  %29973 = vst [vmem:[#allocation47_spill] sm:$0xff] %v25724_v15  ;;  %v25745_v4 = vand.u32 4294901760, %v25724_v15  ;;  %v25786_v15 = vsel %vm10590_vm7, %v11716_v13, 0 }
0x30a7   :  { %29970 = vst [vmem:[#allocation44_spill] sm:$0xff] %v25705_v26  ;;  %v29978_v18 = vand.u32 4294901760, %v25705_v26 }
0x30a8   :  { %21346 = vmatmul.mubr.f32.gmra.mrb[52].mxu0 %v25685_v2  ;;  %29971 = vst [vmem:[#allocation45_spill] sm:$0xff] %v25712_v47  ;;  %29976 = vst [vmem:[#allocation50_spill] sm:$0xff] %v25745_v4 }
0x30a9   :  { %22343 = vmatpush1.bf16.msra.mxu1 %v25529_v14  ;;  %21348 = vmatprep.mubr.f32.mxu0 %v25690_v19  ;;  %v25732_v14 = vsub.f32 %v25389_v8, %v25413_v33  ;;  %v25748_v8 = vsel %vm10590_vm7, %v11713_v16, 0  ;;  %v25755_v33 = vsub.f32 %v25392_v45, %v25416_v32  ;;  %v12016_v16 = vsub.f32 %v25705_v26, %v29978_v18 }
0x30aa   :  { %22345 = vmatprep.subr.bf16.mxu1 %v25445_v1  ;;  %v25740_v1 = vand.u32 4294901760, %v25720_v39  ;;  %v25771_v45 = vsub.f32 %v25396_v62, %v25421_v54  ;;  %v25791_v54 = vsub.f32 %v25430_v31, %v25487_v53  ;;  %v25807_v62 = vand.u32 4294901760, %v25786_v15 }
0x30ab   :  { %29974 = vst [vmem:[#allocation48_spill] sm:$0xff] %v25732_v14  ;;  %29977 = vst [vmem:[#allocation51_spill] sm:$0xff] %v25755_v33  ;;  %v29983_v32 = vand.u32 4294901760, %v25732_v14  ;;  %v25814_v53 = vsub.f32 %v25449_v28, %v25503_v37  ;;  %v25830_v28 = vsub.f32 %v25490_v29, %v25524_v10  ;;  %v11720_v29 = vld [vmem:[%s29549_s14 + $0x100] sm:$0xff] }
0x30ac   :  { %21349 = vmatmul.mubr.f32.gmra.mrb[54].mxu0 %v25712_v47  ;;  %11602 = vmatmul.mubr.f32.vlgmr.msra.gmra.mrb[64].mxu1 %v25255_v21  ;;  %29975 = vst [vmem:[#allocation49_spill] sm:$0xff] %v25740_v1  ;;  %29979 = vst [vmem:[#allocation52_spill] sm:$0xff] %v25771_v45 }
0x30ad   :  { %22347 = vmatpush1.bf16.msra.mxu1 %v25435_v46  ;;  %21351 = vmatprep.mubr.f32.mxu0 %v25717_v0  ;;  %v25760_v46 = vsel %vm10590_vm7, %v11714_v52, 0  ;;  %v25778_v52 = vsel %vm10590_vm7, %v11715_v22, 0  ;;  %29982 = vst [vmem:[#allocation55_spill] sm:$0xff] %v25791_v54  ;;  %v12017_v22 = vand.u32 4294901760, %v12016_v16  ;;  %29985 = vst [vmem:[#allocation57_spill] sm:$0xff] %v25807_v62  ;;  %v11718_v16 = vld [vmem:[%s29549_s14 + $0xf0] sm:$0xff] }
0x30ae   :  { %22349 = vmatprep.subr.bf16.mxu1 %v25495_v5  ;;  %11680 = vmatprep.mubr.f32.mxu1 %v29947_v41  ;;  %v25775_v5 = vand.u32 4294901760, %v25748_v8  ;;  %v25783_v18 = vand.u32 4294901760, %v25760_v46  ;;  %v12026_v41 = vsub.f32 %v25732_v14, %v29983_v32  ;;  %v25804_v31 = vand.u32 4294901760, %v25778_v52  ;;  %29986 = vst [vmem:[#allocation58_spill] sm:$0xff] %v25814_v53  ;;  %v11719_v14 = vld [vmem:[%s29549_s14 + $0xf8] sm:$0xff]  ;;  %29989 = vst [vmem:[#allocation60_spill] sm:$0xff] %v25830_v28 }
0x30af   :  { %v29988_v32 = vand.u32 4294901760, %v25755_v33  ;;  %v25844_v26 = vsel %vm10590_vm7, %v11719_v14, 0 }
0x30b0   :  { %21352 = vmatmul.mubr.f32.gmra.mrb[56].mxu0 %v25740_v1  ;;  %29980 = vst [vmem:[#allocation53_spill] sm:$0xff] %v25775_v5  ;;  %29981 = vst [vmem:[#allocation54_spill] sm:$0xff] %v25783_v18  ;;  %v12027_v37 = vand.u32 4294901760, %v12026_v41  ;;  %v11722_v41 = vld [vmem:[%s29549_s14 + $0x110] sm:$0xff] }
0x30b1   :  { %22351 = vmatpush1.bf16.msra.mxu1 %v25480_v60  ;;  %21354 = vmatprep.mubr.f32.mxu0 %v25745_v4  ;;  %v11717_v60 = vld [vmem:[%s29549_s14 + $0xe8] sm:$0xff]  ;;  %29984 = vst [vmem:[#allocation56_spill] sm:$0xff] %v25804_v31  ;;  %v12036_v13 = vsub.f32 %v25755_v33, %v29988_v32 }
0x30b2   :  { %22353 = vmatprep.subr.bf16.mxu1 %v25226_v36 }
0x30b3   :  { %v12037_v14 = vand.u32 4294901760, %v12036_v13 }
0x30b4   :  { %21355 = vmatmul.mubr.f32.gmra.mrb[58].mxu0 %v25775_v5  ;;  %11682 = vmatmul.mubr.f32.vlgmr.msra.gmra.mrb[64].mxu1 %v25255_v21  ;;  %v25819_v21 = vsel %vm10590_vm7, %v11717_v60, 0  ;;  %v25834_v60 = vsel %vm10590_vm7, %v11718_v16, 0  ;;  %v29993_v16 = vand.u32 4294901760, %v25791_v54 }
0x30b5   :  { %22355 = vmatpush3.bf16.msra.mxu1 %v25226_v36  ;;  %21357 = vmatprep.mubr.f32.mxu0 %v25783_v18  ;;  %29987 = vst [vmem:[#allocation59_spill] sm:$0xff] %v25819_v21  ;;  %v29990_v36 = vand.u32 4294901760, %v25771_v45  ;;  %v25841_v33 = vand.u32 4294901760, %v25819_v21  ;;  %v25868_v21 = vsub.f32 %v25534_v25, %v25552_v63  ;;  %v29997_v25 = vand.u32 4294901760, %v25814_v53 }
0x30b6   :  { %22357 = vmatprep.subr.bf16.mxu1 %v25230_v56  ;;  %21214 = vmatprep.mubr.f32.mxu1 %v12017_v22  ;;  %v11721_v22 = vld [vmem:[%s29549_s14 + $0x108] sm:$0xff]  ;;  %v12056_v10 = vsub.f32 %v25791_v54, %v29993_v16  ;;  %v25878_v16 = vsel %vm10590_vm7, %v11720_v29, 0  ;;  %v25888_v54 = vsel %vm10590_vm7, %v11722_v41, 0  ;;  %v11723_v29 = vld [vmem:[%s29549_s14 + $0x118] sm:$0xff]  ;;  %v29999_v41 = vand.u32 4294901760, %v25830_v28 }
0x30b7   :  { %v12046_v32 = vsub.f32 %v25771_v45, %v29990_v36  ;;  %29991 = vst [vmem:[#allocation61_spill] sm:$0xff] %v25841_v33  ;;  %v25855_v36 = vsub.f32 %v25527_v48, %v25548_v38  ;;  %29994 = vst [vmem:[#allocation63_spill] sm:$0xff] %v25868_v21  ;;  %v25872_v48 = vand.u32 4294901760, %v25834_v60  ;;  %v25875_v38 = vand.u32 4294901760, %v25844_v26 }
0x30b8   :  { %21358 = vmatmul.mubr.f32.gmra.mrb[60].mxu0 %v25804_v31  ;;  %v25881_v45 = vsel %vm10590_vm7, %v11721_v22, 0  ;;  %v12066_v63 = vsub.f32 %v25814_v53, %v29997_v25  ;;  %v11724_v22 = vld [vmem:[%s29549_s14 + $0x120] sm:$0xff]  ;;  %v12057_v25 = vand.u32 4294901760, %v12056_v10  ;;  %v25919_v10 = vand.u32 4294901760, %v25888_v54 }
0x30b9   :  { %29992 = vst [vmem:[#allocation62_spill] sm:$0xff] %v25855_v36  ;;  %22359 = vmatpush3.bf16.msra.mxu1 %v25230_v56  ;;  %21360 = vmatprep.mubr.f32.mxu0 %v25807_v62  ;;  %29995 = vst [vmem:[#allocation64_spill] sm:$0xff] %v25872_v48  ;;  %v12047_v13 = vand.u32 4294901760, %v12046_v32  ;;  %v12076_v32 = vsub.f32 %v25830_v28, %v29999_v41  ;;  %v25908_v56 = vsub.f32 %v25559_v49, %v25573_v50  ;;  %v11725_v28 = vld [vmem:[%s29549_s14 + $0x128] sm:$0xff] }
0x30ba   :  { %22820 = vmatprep.subr.bf16.mxu1 %v25236_v34  ;;  %29996 = vst [vmem:[#allocation65_spill] sm:$0xff] %v25875_v38  ;;  %30003 = vst [vmem:[#allocation70_spill] sm:$0xff] %v25919_v10  ;;  %v25925_v41 = vsel %vm10590_vm7, %v11724_v22, 0  ;;  %v12067_v49 = vand.u32 4294901760, %v12066_v63  ;;  %v30004_v53 = vand.u32 4294901760, %v25855_v36  ;;  %v30006_v63 = vand.u32 4294901760, %v25868_v21 }
0x30bb   :  { %30000 = vst [vmem:[#allocation67_spill] sm:$0xff] %v25908_v56 }
0x30bc   :  { %21215 = vmatmul.mubr.f32.vlgmr.msra.gmra.mrb[66].mxu1 %v12027_v37  ;;  %21361 = vmatmul.mubr.f32.gmra.mrb[62].mxu0 %v25841_v33  ;;  %v25899_v37 = vsub.f32 %v25555_v59, %v25569_v23  ;;  %v25913_v59 = vand.u32 4294901760, %v25878_v16  ;;  %v12086_v50 = vsub.f32 %v25855_v36, %v30004_v53  ;;  %v12096_v22 = vsub.f32 %v25868_v21, %v30006_v63  ;;  %v11726_v23 = vld [vmem:[%s29549_s14 + $0x130] sm:$0xff] }
0x30bd   :  { %22822 = vmatpush3.bf16.msra.mxu1 %v25236_v34  ;;  %21217 = vmatprep.mubr.f32.mxu1 %v12037_v14  ;;  %v25916_v34 = vand.u32 4294901760, %v25881_v45  ;;  %v25922_v14 = vsel %vm10590_vm7, %v11723_v29, 0  ;;  %v25937_v29 = vsub.f32 %v25576_v61, %v25593_v35  ;;  %v25949_v36 = vsub.f32 %v25582_v12, %v25600_v44 }
0x30be   :  { %29998 = vst [vmem:[#allocation66_spill] sm:$0xff] %v25899_v37  ;;  %22821 = vmatprep.subr.bf16.mxu1 %v25240_v42  ;;  %21363 = vmatprep.mubr.f32.mxu0 %v25872_v48  ;;  %30001 = vst [vmem:[#allocation68_spill] sm:$0xff] %v25913_v59  ;;  %v30008_v61 = vmov 0.0|0.0   ;;  %v25964_v63 = vsub.f32 %v25603_v51, %v25617_v27  ;;  %v12087_v12 = vand.u32 4294901760, %v12086_v50  ;;  %v30012_v53 = vand.u32 4294901760, %v25899_v37 }
0x30bf   :  { %30002 = vst [vmem:[#allocation69_spill] sm:$0xff] %v25916_v34  ;;  %30005 = vst [vmem:[#allocation71_spill] sm:$0xff] %v25937_v29  ;;  %v25971_v35 = vsel %vm10590_vm7, %v11726_v23, 0  ;;  %v12097_v51 = vand.u32 4294901760, %v12096_v22  ;;  %v11728_v23 = vld [vmem:[%s29549_s14 + $0x140] sm:$0xff] }
0x30c0   :  { %21218 = vmatmul.mubr.f32.gmra.mrb[68].mxu1 %v12047_v13  ;;  %21364 = vmatmul.mubr.f32.gmra.mrb[64].mxu0 %v25875_v38  ;;  %v12077_v13 = vand.u32 4294901760, %v12076_v32  ;;  %30007 = vst [vmem:[#allocation72_spill] sm:$0xff] %v25949_v36  ;;  %v25957_v32 = vand.u32 4294901760, %v25925_v41  ;;  %30011 = vst [vmem:[#allocation75_spill] sm:$0xff] %v25964_v63  ;;  %v12106_v44 = vsub.f32 %v25899_v37, %v30012_v53  ;;  %v11729_v37 = vld [vmem:[%s29549_s14 + $0x148] sm:$0xff] }
0x30c1   :  { %22823 = vmatpush3.bf16.msra.mxu1 %v25240_v42  ;;  %21220 = vmatprep.mubr.f32.mxu1 %v12057_v25  ;;  %v25954_v42 = vand.u32 4294901760, %v25922_v14  ;;  %v25960_v25 = vsel %vm10590_vm7, %v11725_v28, 0  ;;  %v11727_v28 = vld [vmem:[%s29549_s14 + $0x138] sm:$0xff]  ;;  %v25987_v53 = vsub.f32 %v25607_v57, %v25621_v9  ;;  %v26004_v9 = vsel %vm10590_vm7, %v11728_v23, 0  ;;  %v11730_v23 = vld [vmem:[%s29549_s14 + $0x150] sm:$0xff] }
0x30c2   :  { %21366 = vmatprep.mubr.f32.mxu0 %v25913_v59  ;;  %22400 = vmatprep.subr.bf16.mxu1 %v30008_v61  ;;  %30010 = vst [vmem:[#allocation74_spill] sm:$0xff] %v25957_v32  ;;  %v25990_v61 = vand.u32 4294901760, %v25960_v25  ;;  %v25996_v22 = vsel %vm10590_vm7, %v11727_v28, 0  ;;  %v12107_v27 = vand.u32 4294901760, %v12106_v44  ;;  %30018 = vst [vmem:[#allocation79_spill] sm:$0xff] %v26004_v9  ;;  %v26011_v28 = vsub.f32 %v25624_v58, %v25639_v11 }
0x30c3   :  { %30009 = vst [vmem:[#allocation73_spill] sm:$0xff] %v25954_v42  ;;  %30014 = vst [vmem:[#allocation76_spill] sm:$0xff] %v25987_v53  ;;  %v30020_v44 = vand.u32 4294901760, %v25949_v36  ;;  %v26026_v58 = vand.u32 4294901760, %v25996_v22 }
0x30c4   :  { %21221 = vmatmul.mubr.f32.gmra.mrb[70].mxu1 %v12067_v49  ;;  %21367 = vmatmul.mubr.f32.gmra.mrb[66].mxu0 %v25916_v34  ;;  %v30013_v49 = vand.u32 4294901760, %v25908_v56  ;;  %30015 = vst [vmem:[#allocation77_spill] sm:$0xff] %v25990_v61  ;;  %30019 = vst [vmem:[#allocation80_spill] sm:$0xff] %v26011_v28 }
0x30c5   :  { %21223 = vmatprep.mubr.f32.mxu1 %v12077_v13  ;;  %21369 = vmatprep.mubr.f32.mxu0 %v25919_v10  ;;  %v25993_v13 = vand.u32 4294901760, %v25971_v35  ;;  %30022 = vst [vmem:[#allocation82_spill] sm:$0xff] %v26026_v58 }
0x30c6   :  { %v12116_v50 = vsub.f32 %v25908_v56, %v30013_v49  ;;  %v30017_v56 = vand.u32 4294901760, %v25937_v29  ;;  %v12136_v49 = vsub.f32 %v25949_v36, %v30020_v44  ;;  %v11731_v36 = vld [vmem:[%s29549_s14 + $0x158] sm:$0xff] }
0x30c7   :  { %30016 = vst [vmem:[#allocation78_spill] sm:$0xff] %v25993_v13 }
0x30c8   :  { %21224 = vmatmul.mubr.f32.gmra.mrb[72].mxu1 %v12087_v12  ;;  %21370 = vmatmul.mubr.f32.gmra.mrb[68].mxu0 %v25954_v42  ;;  %v12126_v57 = vsub.f32 %v25937_v29, %v30017_v56  ;;  %v12117_v12 = vand.u32 4294901760, %v12116_v50  ;;  %v26023_v29 = vsub.f32 %v25628_v6, %v25644_v24  ;;  %v30024_v50 = vand.u32 4294901760, %v25964_v63 }
0x30c9   :  { %21226 = vmatprep.mubr.f32.mxu1 %v12097_v51  ;;  %21372 = vmatprep.mubr.f32.mxu0 %v25957_v32  ;;  %v26029_v51 = vand.u32 4294901760, %v26004_v9  ;;  %v26035_v56 = vsel %vm10590_vm7, %v11729_v37, 0  ;;  %v26039_v6 = vsel %vm10590_vm7, %v11730_v23, 0  ;;  %v26047_v9 = vsub.f32 %v25647_v17, %v25662_v55 }
0x30ca   :  { %30021 = vst [vmem:[#allocation81_spill] sm:$0xff] %v26023_v29  ;;  %v12146_v44 = vsub.f32 %v25964_v63, %v30024_v50  ;;  %v12127_v11 = vand.u32 4294901760, %v12126_v57  ;;  %v30026_v37 = vand.u32 4294901760, %v25987_v53  ;;  %v11732_v50 = vld [vmem:[%s29549_s14 + $0x160] sm:$0xff]  ;;  %v26059_v24 = vsub.f32 %v25652_v30, %v25667_v3  ;;  %v11733_v3 = vld [vmem:[%s29549_s14 + $0x168] sm:$0xff] }
0x30cb   :  { %30023 = vst [vmem:[#allocation83_spill] sm:$0xff] %v26029_v51  ;;  %30025 = vst [vmem:[#allocation84_spill] sm:$0xff] %v26047_v9  ;;  %v26068_v55 = vsel %vm10590_vm7, %v11731_v36, 0  ;;  %v26075_v30 = vsel %vm10590_vm7, %v11732_v50, 0  ;;  %v11734_v36 = vld [vmem:[%s29549_s14 + $0x170] sm:$0xff]  ;;  %v30032_v50 = vand.u32 4294901760, %v26023_v29 }
0x30cc   :  { %21227 = vmatmul.mubr.f32.gmra.mrb[74].mxu1 %v12107_v27  ;;  %21373 = vmatmul.mubr.f32.gmra.mrb[70].mxu0 %v25990_v61  ;;  %v12137_v27 = vand.u32 4294901760, %v12136_v49  ;;  %v12156_v57 = vsub.f32 %v25987_v53, %v30026_v37  ;;  %30027 = vst [vmem:[#allocation85_spill] sm:$0xff] %v26059_v24  ;;  %v12147_v17 = vand.u32 4294901760, %v12146_v44  ;;  %v26065_v49 = vand.u32 4294901760, %v26039_v6 }
0x30cd   :  { %21229 = vmatprep.mubr.f32.mxu1 %v12117_v12  ;;  %21375 = vmatprep.mubr.f32.mxu0 %v25993_v13  ;;  %v26062_v12 = vand.u32 4294901760, %v26035_v56  ;;  %v30030_v37 = vand.u32 4294901760, %v26011_v28  ;;  %v12176_v44 = vsub.f32 %v26023_v29, %v30032_v50  ;;  %v26095_v53 = vsub.f32 %v25674_v20, %v25690_v19 }
0x30ce   :  { %30029 = vst [vmem:[#allocation87_spill] sm:$0xff] %v26065_v49  ;;  %v26098_v63 = vand.u32 4294901760, %v26068_v55 }
0x30cf   :  { %30028 = vst [vmem:[#allocation86_spill] sm:$0xff] %v26062_v12  ;;  %v12166_v23 = vsub.f32 %v26011_v28, %v30030_v37  ;;  %v12157_v37 = vand.u32 4294901760, %v12156_v57  ;;  %30033 = vst [vmem:[#allocation89_spill] sm:$0xff] %v26095_v53  ;;  %v26107_v57 = vsel %vm10590_vm7, %v11734_v36, 0  ;;  %v30036_v28 = vand.u32 4294901760, %v26047_v9 }
0x30d0   :  { %21230 = vmatmul.mubr.f32.gmra.mrb[76].mxu1 %v12127_v11  ;;  %21376 = vmatmul.mubr.f32.gmra.mrb[72].mxu0 %v26026_v58  ;;  %v26086_v11 = vsub.f32 %v25670_v7, %v25685_v2  ;;  %30034 = vst [vmem:[#allocation90_spill] sm:$0xff] %v26098_v63  ;;  %v26101_v7 = vand.u32 4294901760, %v26075_v30  ;;  %v11735_v2 = vld [vmem:[%s29549_s14 + $0x178] sm:$0xff] }
0x30d1   :  { %21232 = vmatprep.mubr.f32.mxu1 %v12137_v27  ;;  %21378 = vmatprep.mubr.f32.mxu0 %v26029_v51  ;;  %v26104_v27 = vsel %vm10590_vm7, %v11733_v3, 0  ;;  %v12167_v50 = vand.u32 4294901760, %v12166_v23  ;;  %v12186_v20 = vsub.f32 %v26047_v9, %v30036_v28  ;;  %v11736_v3 = vld [vmem:[%s29549_s14 + $0x180] sm:$0xff]  ;;  %v12177_v23 = vand.u32 4294901760, %v12176_v44 }
0x30d2   :  { %30031 = vst [vmem:[#allocation88_spill] sm:$0xff] %v26086_v11  ;;  %30035 = vst [vmem:[#allocation91_spill] sm:$0xff] %v26101_v7  ;;  %v30038_v28 = vand.u32 4294901760, %v26059_v24  ;;  %v26131_v9 = vsub.f32 %v25698_v40, %v25717_v0  ;;  %v26134_v29 = vand.u32 4294901760, %v26104_v27  ;;  %v26143_v44 = vsel %vm10590_vm7, %v11736_v3, 0  ;;  %v30045_v0 = vld [vmem:[#allocation47_spill] sm:$0xff] }
0x30d3   :  { %v30042_v19 = vand.u32 4294901760, %v26086_v11 }
0x30d4   :  { %21233 = vmatmul.mubr.f32.gmra.mrb[78].mxu1 %v12147_v17  ;;  %21379 = vmatmul.mubr.f32.gmra.mrb[74].mxu0 %v26062_v12  ;;  %v26122_v17 = vsub.f32 %v25693_v43, %v25712_v47  ;;  %v12196_v36 = vsub.f32 %v26059_v24, %v30038_v28  ;;  %30039 = vst [vmem:[#allocation93_spill] sm:$0xff] %v26131_v9  ;;  %30040 = vst [vmem:[#allocation94_spill] sm:$0xff] %v26134_v29  ;;  %v26137_v43 = vand.u32 4294901760, %v26107_v57  ;;  %v11737_v47 = vld [vmem:[%s29549_s14 + $0x188] sm:$0xff] }
0x30d5   :  { %21235 = vmatprep.mubr.f32.mxu1 %v12157_v37  ;;  %21381 = vmatprep.mubr.f32.mxu0 %v26065_v49  ;;  %v26140_v37 = vsel %vm10590_vm7, %v11735_v2, 0  ;;  %v12187_v28 = vand.u32 4294901760, %v12186_v20  ;;  %v12206_v40 = vsub.f32 %v26086_v11, %v30042_v19  ;;  %v26155_v2 = vsub.f32 %v25720_v39, %v25740_v1 }
0x30d6   :  { %30037 = vst [vmem:[#allocation92_spill] sm:$0xff] %v26122_v17  ;;  %30041 = vst [vmem:[#allocation95_spill] sm:$0xff] %v26137_v43  ;;  %v30044_v20 = vand.u32 4294901760, %v26095_v53  ;;  %v26164_v11 = vsub.f32 %v30045_v0, %v25745_v4  ;;  %v26167_v24 = vand.u32 4294901760, %v26140_v37  ;;  %v26170_v39 = vand.u32 4294901760, %v26143_v44 }
0x30d7   :  { %30043 = vst [vmem:[#allocation96_spill] sm:$0xff] %v26155_v2  ;;  %v29674_v0 = vand.u32 4294901760, %v26155_v2  ;;  %v26182_v4 = vsub.f32 %v25748_v8, %v25775_v5  ;;  %v26268_v5 = vsub.f32 %v25888_v54, %v25919_v10  ;;  %v30074_v54 = vld [vmem:[#allocation60_spill] sm:$0xff] }
0x30d8   :  { %21236 = vmatmul.mubr.f32.gmra.mrb[80].mxu1 %v12167_v50  ;;  %21382 = vmatmul.mubr.f32.gmra.mrb[76].mxu0 %v26098_v63  ;;  %v12197_v50 = vand.u32 4294901760, %v12196_v36  ;;  %v12216_v3 = vsub.f32 %v26095_v53, %v30044_v20  ;;  %30046 = vst [vmem:[#allocation47_spill] sm:$0xff] %v26164_v11  ;;  %30047 = vst [vmem:[#allocation97_spill] sm:$0xff] %v26167_v24  ;;  %v12207_v36 = vand.u32 4294901760, %v12206_v40  ;;  %v30049_v20 = vand.u32 4294901760, %v26122_v17 }
0x30d9   :  { %21238 = vmatprep.mubr.f32.mxu1 %v12177_v23  ;;  %21384 = vmatprep.mubr.f32.mxu0 %v26101_v7  ;;  %30048 = vst [vmem:[#allocation98_spill] sm:$0xff] %v26170_v39  ;;  %v26173_v23 = vsel %vm10590_vm7, %v11737_v47, 0  ;;  %30050 = vst [vmem:[#allocation99_spill] sm:$0xff] %v26182_v4  ;;  %v30051_v47 = vand.u32 4294901760, %v26131_v9  ;;  %v29677_v40 = vand.u32 4294901760, %v26164_v11  ;;  %v26191_v53 = vsub.f32 %v25760_v46, %v25783_v18 }
0x30da   :  { %v12226_v19 = vsub.f32 %v26122_v17, %v30049_v20  ;;  %v12217_v1 = vand.u32 4294901760, %v12216_v3  ;;  %v26194_v20 = vand.u32 4294901760, %v26173_v23  ;;  %v29680_v3 = vand.u32 4294901760, %v26182_v4 }
0x30db   :  { %30052 = vst [vmem:[#allocation100_spill] sm:$0xff] %v26191_v53  ;;  %v26212_v18 = vsub.f32 %v25786_v15, %v25807_v62  ;;  %v30058_v15 = vand.u32 4294901760, %v26191_v53  ;;  %v26230_v62 = vsub.f32 %v25834_v60, %v25872_v48  ;;  %v26248_v48 = vsub.f32 %v25878_v16, %v25913_v59 }
0x30dc   :  { %21239 = vmatmul.mubr.f32.gmra.mrb[82].mxu1 %v12187_v28  ;;  %21385 = vmatmul.mubr.f32.gmra.mrb[78].mxu0 %v26134_v29  ;;  %v12236_v28 = vsub.f32 %v26131_v9, %v30051_v47  ;;  %30053 = vst [vmem:[#allocation101_spill] sm:$0xff] %v26194_v20  ;;  %v12227_v8 = vand.u32 4294901760, %v12226_v19  ;;  %v26203_v47 = vsub.f32 %v25778_v52, %v25804_v31 }
0x30dd   :  { %21241 = vmatprep.mubr.f32.mxu1 %v12197_v50  ;;  %21387 = vmatprep.mubr.f32.mxu0 %v26137_v43  ;;  %v12246_v50 = vsub.f32 %v26155_v2, %v29674_v0  ;;  %30055 = vst [vmem:[#allocation103_spill] sm:$0xff] %v26212_v18  ;;  %v30064_v60 = vand.u32 4294901760, %v26212_v18  ;;  %v30069_v59 = vand.u32 4294901760, %v26230_v62 }
0x30de   :  { %30054 = vst [vmem:[#allocation102_spill] sm:$0xff] %v26203_v47  ;;  %v12237_v46 = vand.u32 4294901760, %v12236_v28  ;;  %v30056_v28 = vld [vmem:[#allocation59_spill] sm:$0xff] }
0x30df   :  { %v12247_v0 = vand.u32 4294901760, %v12246_v50  ;;  %v26221_v31 = vsub.f32 %v30056_v28, %v25841_v33  ;;  %30059 = vst [vmem:[#allocation59_spill] sm:$0xff] %v26230_v62  ;;  %v30061_v28 = vand.u32 4294901760, %v26203_v47  ;;  %v26239_v33 = vsub.f32 %v25844_v26, %v25875_v38  ;;  %v30067_v26 = vld [vmem:[#allocation52_spill] sm:$0xff] }
0x30e0   :  { %21242 = vmatmul.mubr.f32.gmra.mrb[84].mxu1 %v12207_v36  ;;  %21388 = vmatmul.mubr.f32.gmra.mrb[80].mxu0 %v26167_v24  ;;  %v12256_v36 = vsub.f32 %v26164_v11, %v29677_v40  ;;  %v30057_v40 = vld [vmem:[#allocation44_spill] sm:$0xff] }
0x30e1   :  { %21244 = vmatprep.mubr.f32.mxu1 %v12217_v1  ;;  %21390 = vmatprep.mubr.f32.mxu0 %v26170_v39  ;;  %v12266_v1 = vsub.f32 %v26182_v4, %v29680_v3  ;;  %v30060_v3 = vld [vmem:[#allocation48_spill] sm:$0xff]  ;;  %30062 = vst [vmem:[#allocation44_spill] sm:$0xff] %v26239_v33 }
0x30e2   :  { %v12257_v19 = vand.u32 4294901760, %v12256_v36  ;;  %v30066_v36 = vld [vmem:[#allocation51_spill] sm:$0xff] }
0x30e3   :  { %v12267_v52 = vand.u32 4294901760, %v12266_v1  ;;  %v26259_v1 = vsub.f32 %v25881_v45, %v25916_v34  ;;  %v30072_v45 = vld [vmem:[#allocation58_spill] sm:$0xff] }
0x30e4   :  { %21245 = vmatmul.mubr.f32.gmra.mrb[86].mxu1 %v12227_v8  ;;  %21391 = vmatmul.mubr.f32.gmra.mrb[82].mxu0 %v26194_v20  ;;  %v12276_v8 = vsub.f32 %v26191_v53, %v30058_v15  ;;  %v30063_v15 = vld [vmem:[#allocation17_spill] sm:$0xff] }
0x30e5   :  { %21247 = vmatprep.mubr.f32.mxu1 %v12237_v46  ;;  %21422 = vmatprep.mubr.f32.mxu0 %v30057_v40  ;;  %v12286_v46 = vsub.f32 %v26203_v47, %v30061_v28  ;;  %v30065_v28 = vld [vmem:[#allocation18_spill] sm:$0xff] }
0x30e6   :  { %v12277_v50 = vand.u32 4294901760, %v12276_v8 }
0x30e7   :  { %v12287_v38 = vand.u32 4294901760, %v12286_v46  ;;  %v26279_v46 = vsub.f32 %v25922_v14, %v25954_v42  ;;  %v30077_v14 = vand.u32 4294901760, %v26259_v1  ;;  %v26297_v42 = vsub.f32 %v25960_v25, %v25990_v61 }
0x30e8   :  { %21248 = vmatmul.mubr.f32.gmra.mrb[88].mxu1 %v12247_v0  ;;  %21423 = vmatmul.mubr.f32.vlgmr.msra.gmra.mrb[34].mxu0 %v30060_v3  ;;  %v12296_v0 = vsub.f32 %v26212_v18, %v30064_v60  ;;  %v30071_v60 = vld [vmem:[#allocation55_spill] sm:$0xff]  ;;  %v26315_v61 = vsub.f32 %v25996_v22, %v26026_v58  ;;  %v26333_v58 = vsub.f32 %v26035_v56, %v26062_v12 }
0x30e9   :  { %22379 = vmatpush3.bf16.msra.mxu0 %v30063_v15  ;;  %21250 = vmatprep.mubr.f32.mxu1 %v12257_v19  ;;  %v30068_v19 = vand.u32 4294901760, %v26221_v31  ;;  %v30079_v25 = vand.u32 4294901760, %v26279_v46  ;;  %v30084_v22 = vand.u32 4294901760, %v26297_v42  ;;  %v30087_v56 = vld [vmem:[#allocation75_spill] sm:$0xff] }
0x30ea   :  { %22381 = vmatprep.subr.bf16.mxu0 %v30065_v28  ;;  %21425 = vmatprep.mubr.f32.mxu0 %v30066_v36  ;;  %v12297_v16 = vand.u32 4294901760, %v12296_v0 }
0x30eb   :  { %v12306_v8 = vsub.f32 %v26221_v31, %v30068_v19  ;;  %v30070_v19 = vld [vmem:[#allocation19_spill] sm:$0xff] }
0x30ec   :  { %21251 = vmatmul.mubr.f32.gmra.mrb[90].mxu1 %v12267_v52  ;;  %21426 = vmatmul.mubr.f32.gmra.mrb[36].mxu0 %v30067_v26  ;;  %v12316_v52 = vsub.f32 %v26230_v62, %v30069_v59 }
0x30ed   :  { %22383 = vmatpush3.bf16.msra.mxu0 %v30065_v28  ;;  %21253 = vmatprep.mubr.f32.mxu1 %v12277_v50  ;;  %v12307_v34 = vand.u32 4294901760, %v12306_v8  ;;  %v30073_v50 = vand.u32 4294901760, %v26239_v33  ;;  %v30075_v28 = vand.u32 4294901760, %v26248_v48  ;;  %v29700_v8 = vand.u32 4294901760, %v26268_v5 }
0x30ee   :  { %22385 = vmatprep.subr.bf16.mxu0 %v30070_v19  ;;  %21428 = vmatprep.mubr.f32.mxu0 %v30071_v60  ;;  %v12317_v10 = vand.u32 4294901760, %v12316_v52 }
0x30ef   :  { %v12326_v0 = vsub.f32 %v26239_v33, %v30073_v50  ;;  %v30076_v50 = vld [vmem:[#allocation62_spill] sm:$0xff] }
0x30f0   :  { %21254 = vmatmul.mubr.f32.gmra.mrb[92].mxu1 %v12287_v38  ;;  %21429 = vmatmul.mubr.f32.gmra.mrb[38].mxu0 %v30072_v45  ;;  %v12336_v38 = vsub.f32 %v26248_v48, %v30075_v28  ;;  %v26288_v45 = vsub.f32 %v25925_v41, %v25957_v32 }
0x30f1   :  { %21256 = vmatprep.mubr.f32.mxu1 %v12297_v16  ;;  %21431 = vmatprep.mubr.f32.mxu0 %v30074_v54  ;;  %v12327_v59 = vand.u32 4294901760, %v12326_v0  ;;  %v12346_v16 = vsub.f32 %v26259_v1, %v30077_v14  ;;  %v26306_v0 = vsub.f32 %v25971_v35, %v25993_v13  ;;  %v30078_v14 = vld [vmem:[#allocation66_spill] sm:$0xff]  ;;  %v30082_v13 = vld [vmem:[#allocation79_spill] sm:$0xff] }
0x30f2   :  { %v12337_v28 = vand.u32 4294901760, %v12336_v38  ;;  %v30081_v35 = vand.u32 4294901760, %v26288_v45  ;;  %v26324_v32 = vsub.f32 %v30082_v13, %v26029_v51  ;;  %v26342_v51 = vsub.f32 %v26039_v6, %v26065_v49  ;;  %v30088_v6 = vld [vmem:[#allocation76_spill] sm:$0xff] }
0x30f3   :  { %v12347_v52 = vand.u32 4294901760, %v12346_v16  ;;  %v30086_v13 = vand.u32 4294901760, %v26306_v0 }
0x30f4   :  { %21257 = vmatmul.mubr.f32.gmra.mrb[94].mxu1 %v12307_v34  ;;  %21432 = vmatmul.mubr.f32.gmra.mrb[40].mxu0 %v30076_v50  ;;  %v12356_v34 = vsub.f32 %v26268_v5, %v29700_v8  ;;  %v30080_v8 = vld [vmem:[#allocation67_spill] sm:$0xff] }
0x30f5   :  { %21259 = vmatprep.mubr.f32.mxu1 %v12317_v10  ;;  %21434 = vmatprep.mubr.f32.mxu0 %v25868_v21  ;;  %v12366_v10 = vsub.f32 %v26279_v46, %v30079_v25  ;;  %v30083_v25 = vld [vmem:[#allocation71_spill] sm:$0xff] }
0x30f6   :  { %v12357_v41 = vand.u32 4294901760, %v12356_v34  ;;  %v29713_v34 = vand.u32 4294901760, %v26315_v61 }
0x30f7   :  { %v12367_v38 = vand.u32 4294901760, %v12366_v10  ;;  %v26355_v10 = vsub.f32 %v26075_v30, %v26101_v7  ;;  %v26369_v30 = vsub.f32 %v26107_v57, %v26137_v43  ;;  %v30092_v57 = vand.u32 4294901760, %v26342_v51 }
0x30f8   :  { %21260 = vmatmul.mubr.f32.gmra.mrb[96].mxu1 %v12327_v59  ;;  %21435 = vmatmul.mubr.f32.gmra.mrb[42].mxu0 %v30078_v14  ;;  %v12376_v59 = vsub.f32 %v26288_v45, %v30081_v35  ;;  %v30085_v35 = vld [vmem:[#allocation72_spill] sm:$0xff] }
0x30f9   :  { %21262 = vmatprep.mubr.f32.mxu1 %v12337_v28  ;;  %21437 = vmatprep.mubr.f32.mxu0 %v30080_v8  ;;  %v12386_v28 = vsub.f32 %v26297_v42, %v30084_v22  ;;  %v26346_v22 = vsub.f32 %v26068_v55, %v26098_v63  ;;  %v30089_v55 = vand.u32 4294901760, %v26324_v32  ;;  %v12436_v43 = vsub.f32 %v26342_v51, %v30092_v57  ;;  %v30094_v57 = vld [vmem:[#allocation84_spill] sm:$0xff] }
0x30fa   :  { %v12377_v16 = vand.u32 4294901760, %v12376_v59  ;;  %v12406_v59 = vsub.f32 %v26315_v61, %v29713_v34  ;;  %v26365_v34 = vsub.f32 %v26104_v27, %v26134_v29  ;;  %v30091_v27 = vld [vmem:[#allocation81_spill] sm:$0xff] }
0x30fc   :  { %21263 = vmatmul.mubr.f32.gmra.mrb[98].mxu1 %v12347_v52  ;;  %21438 = vmatmul.mubr.f32.gmra.mrb[44].mxu0 %v30083_v25  ;;  %v12396_v52 = vsub.f32 %v26306_v0, %v30086_v13  ;;  %v29720_v13 = vand.u32 4294901760, %v26333_v58 }
0x30fd   :  { %21265 = vmatprep.mubr.f32.mxu1 %v12357_v41  ;;  %21440 = vmatprep.mubr.f32.mxu0 %v30085_v35  ;;  %v12387_v41 = vand.u32 4294901760, %v12386_v28  ;;  %v30096_v28 = vld [vmem:[#allocation85_spill] sm:$0xff] }
0x30fe   :  { %v12397_v49 = vand.u32 4294901760, %v12396_v52  ;;  %v30090_v52 = vld [vmem:[#allocation80_spill] sm:$0xff]  ;;  %v12426_v63 = vsub.f32 %v26333_v58, %v29720_v13 }
0x3100   :  { %21266 = vmatmul.mubr.f32.gmra.mrb[100].mxu1 %v12367_v38  ;;  %21441 = vmatmul.mubr.f32.gmra.mrb[46].mxu0 %v30087_v56  ;;  %v12416_v38 = vsub.f32 %v26324_v32, %v30089_v55  ;;  %v12407_v55 = vand.u32 4294901760, %v12406_v59  ;;  %v30093_v59 = vand.u32 4294901760, %v26346_v22  ;;  %v12427_v12 = vand.u32 4294901760, %v12426_v63  ;;  %v11741_v63 = vld [vmem:[%s29549_s14 + $0x1a8] sm:$0xff] }
0x3101   :  { %21268 = vmatprep.mubr.f32.mxu1 %v12377_v16  ;;  %21443 = vmatprep.mubr.f32.mxu0 %v30088_v6  ;;  %v11738_v16 = vld [vmem:[%s29549_s14 + $0x190] sm:$0xff]  ;;  %v26428_v6 = vsub.f32 %v26173_v23, %v26194_v20  ;;  %v11743_v23 = vld [vmem:[%s29549_s14 + $0x1b8] sm:$0xff] }
0x3102   :  { %v12417_v29 = vand.u32 4294901760, %v12416_v38  ;;  %v11903_v7 = vsel %vm10590_vm7, %v11738_v16, 0  ;;  %v12446_v13 = vsub.f32 %v26346_v22, %v30093_v59  ;;  %v26394_v38 = vsub.f32 %v26140_v37, %v26167_v24  ;;  %v11740_v16 = vld [vmem:[%s29549_s14 + $0x1a0] sm:$0xff] }
0x3103   :  { %v26406_v37 = vsub.f32 %v26143_v44, %v26170_v39  ;;  %v26408_v24 = vand.u32 4294901760, %v11903_v7  ;;  %v30098_v39 = vand.u32 4294901760, %v26369_v30  ;;  %v11918_v25 = vsel %vm10590_vm7, %v11743_v23, 0 }
0x3104   :  { %21269 = vmatmul.mubr.f32.gmra.mrb[102].mxu1 %v12387_v41  ;;  %21444 = vmatmul.mubr.f32.gmra.mrb[48].mxu0 %v30090_v52  ;;  %v11739_v41 = vld [vmem:[%s29549_s14 + $0x198] sm:$0xff] }
0x3105   :  { %21271 = vmatprep.mubr.f32.mxu1 %v12397_v49  ;;  %21446 = vmatprep.mubr.f32.mxu0 %v30091_v27  ;;  %v30095_v27 = vand.u32 4294901760, %v26355_v10  ;;  %v12437_v49 = vand.u32 4294901760, %v12436_v43  ;;  %v11906_v52 = vsel %vm10590_vm7, %v11739_v41, 0  ;;  %v30097_v43 = vand.u32 4294901760, %v26365_v34 }
0x3106   :  { %v26430_v56 = vand.u32 4294901760, %v11906_v52 }
0x3107   :  { %v12456_v59 = vsub.f32 %v26355_v10, %v30095_v27  ;;  %v12447_v27 = vand.u32 4294901760, %v12446_v13  ;;  %v12466_v44 = vsub.f32 %v26365_v34, %v30097_v43  ;;  %v11912_v13 = vsel %vm10590_vm7, %v11741_v63, 0  ;;  %v30100_v43 = vld [vmem:[#allocation89_spill] sm:$0xff] }
0x3108   :  { %21272 = vmatmul.mubr.f32.gmra.mrb[104].mxu1 %v12407_v55  ;;  %21447 = vmatmul.mubr.f32.gmra.mrb[50].mxu0 %v30094_v57  ;;  %v11742_v55 = vld [vmem:[%s29549_s14 + $0x1b0] sm:$0xff]  ;;  %v11744_v63 = vld [vmem:[%s29549_s14 + $0x1c0] sm:$0xff]  ;;  %v26447_v20 = vand.u32 4294901760, %v11912_v13 }
0x3109   :  { %21274 = vmatprep.mubr.f32.mxu1 %v12417_v29  ;;  %21449 = vmatprep.mubr.f32.mxu0 %v30096_v28  ;;  %v11909_v29 = vsel %vm10590_vm7, %v11740_v16, 0  ;;  %v12476_v28 = vsub.f32 %v26369_v30, %v30098_v39  ;;  %v30099_v57 = vld [vmem:[#allocation88_spill] sm:$0xff]  ;;  %v11915_v16 = vsel %vm10590_vm7, %v11742_v55, 0  ;;  %v12457_v35 = vand.u32 4294901760, %v12456_v59 }
0x310a   :  { %v26439_v41 = vand.u32 4294901760, %v11909_v29  ;;  %v12467_v55 = vand.u32 4294901760, %v12466_v44  ;;  %30101 = vst [vmem:[#allocation48_spill] sm:$0xff] %v26447_v20  ;;  %v26449_v59 = vand.u32 4294901760, %v11915_v16  ;;  %v26473_v23 = vsub.f32 %v11912_v13, %v26447_v20 }
0x310c   :  { %21275 = vmatmul.mubr.f32.gmra.mrb[106].mxu1 %v12427_v12  ;;  %21450 = vmatmul.mubr.f32.gmra.mrb[52].mxu0 %v30099_v57  ;;  %v26437_v12 = vsub.f32 %v11903_v7, %v26408_v24  ;;  %v30102_v7 = vand.u32 4294901760, %v26394_v38  ;;  %v26457_v57 = vsub.f32 %v11906_v52, %v26430_v56  ;;  %v11745_v52 = vld [vmem:[%s29549_s14 + $0x1c8] sm:$0xff] }
0x310d   :  { %21277 = vmatprep.mubr.f32.mxu1 %v12437_v49  ;;  %21452 = vmatprep.mubr.f32.mxu0 %v30100_v43  ;;  %v12477_v49 = vand.u32 4294901760, %v12476_v28  ;;  %v30103_v28 = vand.u32 4294901760, %v26406_v37  ;;  %v26478_v43 = vand.u32 4294901760, %v11918_v25 }
0x310e   :  { %v12486_v39 = vsub.f32 %v26394_v38, %v30102_v7  ;;  %v11921_v7 = vsel %vm10590_vm7, %v11744_v63, 0  ;;  %v30105_v63 = vand.u32 4294901760, %v26428_v6  ;;  %v30107_v8 = vand.u32 4294901760, %v26437_v12 }
0x310f   :  { %30104 = vst [vmem:[#allocation51_spill] sm:$0xff] %v26478_v43 }
0x3110   :  { %21278 = vmatmul.mubr.f32.gmra.mrb[108].mxu1 %v12447_v27  ;;  %21453 = vmatmul.mubr.f32.gmra.mrb[54].mxu0 %v26122_v17  ;;  %v12496_v27 = vsub.f32 %v26406_v37, %v30103_v28  ;;  %v26466_v17 = vsub.f32 %v11909_v29, %v26439_v41  ;;  %v11746_v28 = vld [vmem:[%s29549_s14 + $0x1d0] sm:$0xff]  ;;  %v12487_v29 = vand.u32 4294901760, %v12486_v39  ;;  %v12506_v44 = vsub.f32 %v26428_v6, %v30105_v63  ;;  %v11747_v63 = vld [vmem:[%s29549_s14 + $0x1d8] sm:$0xff] }
0x3111   :  { %21280 = vmatprep.mubr.f32.mxu1 %v12457_v35  ;;  %21455 = vmatprep.mubr.f32.mxu0 %v26131_v9  ;;  %v26476_v35 = vsub.f32 %v11915_v16, %v26449_v59  ;;  %v26488_v9 = vand.u32 4294901760, %v11921_v7  ;;  %v12516_v14 = vsub.f32 %v26437_v12, %v30107_v8  ;;  %v11924_v39 = vsel %vm10590_vm7, %v11745_v52, 0  ;;  %v11748_v8 = vld [vmem:[%s29549_s14 + $0x1e0] sm:$0xff] }
0x3112   :  { %v12497_v16 = vand.u32 4294901760, %v12496_v27  ;;  %v26503_v27 = vsub.f32 %v11918_v25, %v26478_v43  ;;  %v12507_v52 = vand.u32 4294901760, %v12506_v44  ;;  %v26515_v13 = vand.u32 4294901760, %v11924_v39 }
0x3113   :  { %30106 = vst [vmem:[#allocation52_spill] sm:$0xff] %v26488_v9  ;;  %v12517_v25 = vand.u32 4294901760, %v12516_v14  ;;  %v11930_v44 = vsel %vm10590_vm7, %v11747_v63, 0  ;;  %v30113_v14 = vand.u32 4294901760, %v26476_v35  ;;  %v11750_v63 = vld [vmem:[%s29549_s14 + $0x1f0] sm:$0xff] }
0x3114   :  { %21281 = vmatmul.mubr.f32.gmra.mrb[110].mxu1 %v12467_v55  ;;  %21456 = vmatmul.mubr.f32.gmra.mrb[56].mxu0 %v26155_v2  ;;  %v11927_v2 = vsel %vm10590_vm7, %v11746_v28, 0  ;;  %v30108_v28 = vand.u32 4294901760, %v26457_v57  ;;  %30109 = vst [vmem:[#allocation19_spill] sm:$0xff] %v26515_v13  ;;  %v26541_v54 = vsub.f32 %v11924_v39, %v26515_v13  ;;  %v11751_v39 = vld [vmem:[%s29549_s14 + $0x1f8] sm:$0xff] }
0x3115   :  { %21283 = vmatprep.mubr.f32.mxu1 %v12477_v49  ;;  %21458 = vmatprep.mubr.f32.mxu0 %v26164_v11  ;;  %v26513_v11 = vsub.f32 %v11921_v7, %v26488_v9  ;;  %v30110_v49 = vand.u32 4294901760, %v26466_v17  ;;  %v26521_v21 = vand.u32 4294901760, %v11927_v2  ;;  %v11749_v7 = vld [vmem:[%s29549_s14 + $0x1e8] sm:$0xff] }
0x3116   :  { %v12526_v55 = vsub.f32 %v26457_v57, %v30108_v28  ;;  %v30112_v28 = vand.u32 4294901760, %v26473_v23 }
0x3117   :  { %30111 = vst [vmem:[#allocation79_spill] sm:$0xff] %v26521_v21 }
0x3118   :  { %21284 = vmatmul.mubr.f32.gmra.mrb[112].mxu1 %v12487_v29  ;;  %21459 = vmatmul.mubr.f32.gmra.mrb[58].mxu0 %v26182_v4  ;;  %v12536_v29 = vsub.f32 %v26466_v17, %v30110_v49  ;;  %v11933_v4 = vsel %vm10590_vm7, %v11748_v8, 0  ;;  %v12527_v8 = vand.u32 4294901760, %v12526_v55  ;;  %v26547_v49 = vsub.f32 %v11927_v2, %v26521_v21 }
0x3119   :  { %21286 = vmatprep.mubr.f32.mxu1 %v12497_v16  ;;  %21461 = vmatprep.mubr.f32.mxu0 %v26191_v53  ;;  %v12546_v16 = vsub.f32 %v26473_v23, %v30112_v28  ;;  %v12556_v53 = vsub.f32 %v26476_v35, %v30113_v14  ;;  %v26543_v28 = vand.u32 4294901760, %v11930_v44  ;;  %v26549_v60 = vand.u32 4294901760, %v11933_v4 }
0x311a   :  { %v12537_v14 = vand.u32 4294901760, %v12536_v29  ;;  %v11939_v55 = vsel %vm10590_vm7, %v11750_v63, 0  ;;  %v30117_v2 = vand.u32 4294901760, %v26513_v11 }
0x311b   :  { %30114 = vst [vmem:[#allocation104_spill] sm:$0xff] %v26543_v28  ;;  %30115 = vst [vmem:[#allocation105_spill] sm:$0xff] %v26549_v60  ;;  %v12547_v50 = vand.u32 4294901760, %v12546_v16  ;;  %v26565_v63 = vsub.f32 %v11930_v44, %v26543_v28  ;;  %v26572_v16 = vsub.f32 %v11933_v4, %v26549_v60 }
0x311c   :  { %21287 = vmatmul.mubr.f32.gmra.mrb[114].mxu1 %v12507_v52  ;;  %21462 = vmatmul.mubr.f32.gmra.mrb[60].mxu0 %v26203_v47  ;;  %v11936_v52 = vsel %vm10590_vm7, %v11749_v7, 0  ;;  %v12557_v47 = vand.u32 4294901760, %v12556_v53  ;;  %v12576_v29 = vsub.f32 %v26513_v11, %v30117_v2  ;;  %v29740_v7 = vand.u32 4294901760, %v26541_v54 }
0x311d   :  { %21289 = vmatprep.mubr.f32.mxu1 %v12517_v25  ;;  %21464 = vmatprep.mubr.f32.mxu0 %v26212_v18  ;;  %v30116_v25 = vand.u32 4294901760, %v26503_v27  ;;  %v26567_v15 = vand.u32 4294901760, %v11936_v52 }
0x311e   :  { %v12586_v44 = vsub.f32 %v26541_v54, %v29740_v7  ;;  %v12577_v4 = vand.u32 4294901760, %v12576_v29 }
0x311f   :  { %v12566_v18 = vsub.f32 %v26503_v27, %v30116_v25  ;;  %30118 = vst [vmem:[#allocation106_spill] sm:$0xff] %v26567_v15  ;;  %v11942_v25 = vsel %vm10590_vm7, %v11751_v39, 0  ;;  %v29745_v39 = vand.u32 4294901760, %v26572_v16 }
0x3120   :  { %21290 = vmatmul.mubr.f32.gmra.mrb[116].mxu1 %v12527_v8  ;;  %21465 = vmatmul.mubr.f32.gmra.mrb[62].mxu0 %v26221_v31  ;;  %v26574_v8 = vand.u32 4294901760, %v11939_v55  ;;  %v26585_v53 = vand.u32 4294901760, %v11942_v25 }
0x3121   :  { %21292 = vmatprep.mubr.f32.mxu1 %v12537_v14  ;;  %21467 = vmatprep.mubr.f32.mxu0 %v26230_v62  ;;  %v12567_v2 = vand.u32 4294901760, %v12566_v18  ;;  %v29741_v14 = vand.u32 4294901760, %v26565_v63  ;;  %v26583_v62 = vsub.f32 %v11936_v52, %v26567_v15  ;;  %v30120_v18 = vand.u32 4294901760, %v26547_v49 }
0x3122   :  { %30119 = vst [vmem:[#allocation107_spill] sm:$0xff] %v26574_v8  ;;  %v12587_v52 = vand.u32 4294901760, %v12586_v44  ;;  %v26601_v29 = vsub.f32 %v11942_v25, %v26585_v53 }
0x3123   :  { %v29742_v7 = vand.u32 4294901760, %v26583_v62 }
0x3124   :  { %21293 = vmatmul.mubr.f32.gmra.mrb[118].mxu1 %v12547_v50  ;;  %21468 = vmatmul.mubr.f32.gmra.mrb[64].mxu0 %v26239_v33  ;;  %v12596_v50 = vsub.f32 %v26547_v49, %v30120_v18  ;;  %v26593_v33 = vsub.f32 %v11939_v55, %v26574_v8  ;;  %v12616_v55 = vsub.f32 %v26572_v16, %v29745_v39  ;;  %v29743_v25 = vand.u32 4294901760, %v26601_v29 }
0x3125   :  { %21295 = vmatprep.mubr.f32.mxu1 %v12557_v47  ;;  %21470 = vmatprep.mubr.f32.mxu0 %v26248_v48  ;;  %v12606_v47 = vsub.f32 %v26565_v63, %v29741_v14  ;;  %v12626_v14 = vsub.f32 %v26583_v62, %v29742_v7 }
0x3126   :  { %v12597_v18 = vand.u32 4294901760, %v12596_v50 }
0x3127   :  { %v12607_v44 = vand.u32 4294901760, %v12606_v47  ;;  %v12646_v47 = vsub.f32 %v26601_v29, %v29743_v25 }
0x3128   :  { %21296 = vmatmul.mubr.f32.gmra.mrb[120].mxu1 %v12567_v2  ;;  %21471 = vmatmul.mubr.f32.gmra.mrb[66].mxu0 %v26259_v1  ;;  %v29744_v2 = vand.u32 4294901760, %v26593_v33 }
0x3129   :  { %21298 = vmatprep.mubr.f32.mxu1 %v12577_v4  ;;  %21473 = vmatprep.mubr.f32.mxu0 %v26268_v5  ;;  %v12617_v4 = vand.u32 4294901760, %v12616_v55  ;;  %v15458_v55 = vld [vmem:[%s29553_s18] sm:$0xff] }
0x312a   :  { %v12636_v50 = vsub.f32 %v26593_v33, %v29744_v2 }
0x312c   :  { %21299 = vmatmul.mubr.f32.gmra.mrb[122].mxu1 %v12587_v52  ;;  %21474 = vmatmul.mubr.f32.gmra.mrb[68].mxu0 %v26279_v46  ;;  %v12627_v52 = vand.u32 4294901760, %v12626_v14  ;;  %v12637_v7 = vand.u32 4294901760, %v12636_v50  ;;  %v30121_v14 = vld [vmem:[#allocation8_spill] sm:$0xff] }
0x312d   :  { %21301 = vmatprep.mubr.f32.mxu1 %v12597_v18  ;;  %21476 = vmatprep.mubr.f32.mxu0 %v26288_v45  ;;  %v12647_v18 = vand.u32 4294901760, %v12646_v47 }
0x3130   :  { %21302 = vmatmul.mubr.f32.gmra.mrb[124].mxu1 %v12607_v44  ;;  %21477 = vmatmul.mubr.f32.gmra.mrb[70].mxu0 %v26297_v42  ;;  %v30123_v44 = vld [vmem:[#allocation13_spill] sm:$0xff] }
0x3131   :  { %21304 = vmatprep.mubr.f32.mxu1 %v12617_v4  ;;  %21479 = vmatprep.mubr.f32.mxu0 %v26306_v0  ;;  %v15460_v4 = vsel %vm10590_vm7, %v15458_v55, 0 }
0x3132   :  { %v26647_v50 = vand.u32 4294901760, %v15460_v4 }
0x3134   :  { %21305 = vmatmul.mubr.f32.gmra.mrb[126].mxu1 %v12627_v52  ;;  %21480 = vmatmul.mubr.f32.gmra.mrb[72].mxu0 %v26315_v61  ;;  %v26654_v52 = vsub.f32 %v15460_v4, %v26647_v50 }
0x3135   :  { %21307 = vmatprep.mubr.f32.mxu1 %v12637_v7  ;;  %21482 = vmatprep.mubr.f32.mxu0 %v26324_v32  ;;  %v30122_v7 = vmov 0.0|0.0  }
0x3136   :  { %v15533_v47 = vand.u32 4294901760, %v26654_v52 }
0x3138   :  { %21308 = vmatmul.mubr.f32.gmra.mrb[128].mxu1 %v12647_v18  ;;  %21483 = vmatmul.mubr.f32.gmra.mrb[74].mxu0 %v26333_v58 }
0x3139   :  { %21393 = vmatprep.mubr.f32.mxu1 %v26408_v24  ;;  %21485 = vmatprep.mubr.f32.mxu0 %v26342_v51 }
0x313c   :  { %21394 = vmatmul.mubr.f32.vlgmr.msra.gmra.mrb[116].mxu1 %v26430_v56  ;;  %21486 = vmatmul.mubr.f32.gmra.mrb[76].mxu0 %v26346_v22 }
0x313d   :  { %22402 = vmatpush3.bf16.msra.mxu1 %v30121_v14  ;;  %21396 = vmatprep.mubr.f32.mxu1 %v26439_v41 }
0x313e   :  { %21488 = vmatprep.mubr.f32.mxu0 %v26355_v10  ;;  %22403 = vmatprep.subr.bf16.mxu1 %v30122_v7 }
0x3140   :  { %21397 = vmatmul.mubr.f32.gmra.mrb[118].mxu1 %v26447_v20  ;;  %21489 = vmatmul.mubr.f32.gmra.mrb[78].mxu0 %v26365_v34 }
0x3141   :  { %22405 = vmatpush3.bf16.msra.mxu1 %v30123_v44  ;;  %21399 = vmatprep.mubr.f32.mxu1 %v26449_v59 }
0x3142   :  { %21491 = vmatprep.mubr.f32.mxu0 %v26369_v30  ;;  %22406 = vmatprep.subr.bf16.mxu1 %v30122_v7 }
0x3144   :  { %21400 = vmatmul.mubr.f32.gmra.mrb[120].mxu1 %v26478_v43  ;;  %21492 = vmatmul.mubr.f32.gmra.mrb[80].mxu0 %v26394_v38 }
0x3145   :  { %21402 = vmatprep.mubr.f32.mxu1 %v26488_v9  ;;  %21494 = vmatprep.mubr.f32.mxu0 %v26406_v37 }
0x3148   :  { %21403 = vmatmul.mubr.f32.gmra.mrb[122].mxu1 %v26515_v13  ;;  %21495 = vmatmul.mubr.f32.gmra.mrb[82].mxu0 %v26428_v6 }
0x3149   :  { %21405 = vmatprep.mubr.f32.mxu1 %v26521_v21  ;;  %21497 = vmatprep.mubr.f32.mxu0 %v26437_v12 }
0x314c   :  { %21406 = vmatmul.mubr.f32.gmra.mrb[124].mxu1 %v26543_v28  ;;  %21498 = vmatmul.mubr.f32.gmra.mrb[84].mxu0 %v26457_v57 }
0x314d   :  { %21408 = vmatprep.mubr.f32.mxu1 %v26549_v60  ;;  %21500 = vmatprep.mubr.f32.mxu0 %v26466_v17  ;;  %v15534_v60 = vsub.f32 %v26654_v52, %v15533_v47 }
0x314f   :  { %v26661_v18 = vpop.f32.mrb[32].mxu0 }
0x3150   :  { %30124 = vst [vmem:[#allocation8_spill] sm:$0xff] %v26661_v18  ;;  %v26663_v55 = vpop.f32.mrb[33].mxu0  ;;  %21409 = vmatmul.mubr.f32.gmra.mrb[126].mxu1 %v26567_v15  ;;  %21501 = vmatmul.mubr.f32.gmra.mrb[86].mxu0 %v26473_v23  ;;  %v15956_v4 = vsel %vm15950_vm8, %v26661_v18, inf  ;;  %v15951_v25 = vsel %vm15950_vm8, %v26661_v18, -inf  ;;  %v26676_v15 = vsel %vm17573_vm9, %v26661_v18, inf  ;;  %v26686_v9 = vsel %vm17573_vm9, %v26661_v18, -inf }
0x3151   :  { %30125 = vst [vmem:[#allocation13_spill] sm:$0xff] %v26663_v55  ;;  %21411 = vmatprep.mubr.f32.mxu1 %v26574_v8  ;;  %21503 = vmatprep.mubr.f32.mxu0 %v26476_v35  ;;  %v15957_v2 = vsel %vm15950_vm8, %v26663_v55, inf  ;;  %v15952_v39 = vsel %vm15950_vm8, %v26663_v55, -inf  ;;  %30126 = vst [vmem:[#allocation108_spill] sm:$0xff] %v26676_v15  ;;  %v26680_v13 = vsel %vm17573_vm9, %v26663_v55, inf  ;;  %v26690_v43 = vsel %vm17573_vm9, %v26663_v55, -inf }
0x3152   :  { %v15958_v28 = vmin.f32 %v15956_v4, %v15957_v2  ;;  %v15953_v21 = vmax.f32 %v15951_v25, %v15952_v39  ;;  %30127 = vst [vmem:[#allocation109_spill] sm:$0xff] %v26680_v13  ;;  %30128 = vst [vmem:[#allocation110_spill] sm:$0xff] %v26686_v9  ;;  %v15535_v2 = vand.u32 4294901760, %v15534_v60  ;;  %v30130_v25 = vmov 0.0   ;;  %v30131_v4 = vld [vmem:[#allocation11_spill] sm:$0xff]  ;;  %v30133_v60 = vld [vmem:[#allocation9_spill] sm:$0xff] }
0x3153   :  { %30129 = vst [vmem:[#allocation111_spill] sm:$0xff] %v26690_v43  ;;  %v30139_v8 = vand.u32 4294901760, %v30057_v40  ;;  %v30143_v40 = vand.u32 4294901760, %v30067_v26  ;;  %v30287_v43 = vld [vmem:[#allocation19_spill] sm:$0xff]  ;;  %v30289_v13 = vld [vmem:[#allocation104_spill] sm:$0xff]  ;;  %v30290_v15 = vld [vmem:[#allocation105_spill] sm:$0xff] }
0x3154   :  { %15959 = vmin.xlane.f32.xlu1 %v15958_v28  ;;  %15954 = vmax.xlane.f32.xlu0 %v15953_v21  ;;  %v30132_v21 = vld [vmem:[#allocation16_spill] sm:$0xff]  ;;  %v30134_v28 = vld [vmem:[#allocation7_spill] sm:$0xff]  ;;  %v30291_v55 = vld [vmem:[#allocation106_spill] sm:$0xff] }
0x3155   :  { %21412 = vmatmul.mubr.f32.gmra.mrb[128].mxu1 %v26585_v53  ;;  %21504 = vmatmul.mubr.f32.gmra.mrb[88].mxu0 %v26503_v27  ;;  %v30288_v9 = vld [vmem:[#allocation79_spill] sm:$0xff] }
0x3156   :  { %21506 = vmatprep.mubr.f32.mxu0 %v26513_v11  ;;  %21838 = vmatprep.mubr.msk.f32.mxu1 %vm24051_vm1, %v30130_v25  ;;  %v30292_v18 = vld [vmem:[#allocation107_spill] sm:$0xff] }
0x3159   :  { %21507 = vmatmul.mubr.f32.gmra.mrb[90].mxu0 %v26541_v54  ;;  %21839 = vmatmul.mubr.f32.vlgmr.msra.gmra.mrb[130].mxu1 %v15535_v2  ;;  %v30135_v2 = vpack.c.bf16 %v30133_v60, %v30134_v28  ;;  %v30140_v60 = vand.u32 4294901760, %v30060_v3  ;;  %v30141_v28 = vld [vmem:[#allocation20_spill] sm:$0xff]  ;;  %v30144_v3 = vld [vmem:[#allocation17_spill] sm:$0xff] }
0x315a   :  { %22408 = vmatpush3.bf16.msra.mxu1 %v30131_v4  ;;  %21509 = vmatprep.mubr.f32.mxu0 %v26547_v49  ;;  %v30136_v4 = vld [vmem:[#allocation14_spill] sm:$0xff] }
0x315b   :  { %22409 = vmatprep.subr.bf16.mxu1 %v30122_v7  ;;  %21849 = vmatprep.mubr.msk.f32.mxu1 %vm24051_vm1, %v30130_v25 }
0x315d   :  { %21510 = vmatmul.mubr.f32.gmra.mrb[92].mxu0 %v26565_v63 }
0x315e   :  { %22411 = vmatpush3.bf16.msra.mxu1 %v30132_v21  ;;  %21512 = vmatprep.mubr.f32.mxu0 %v26572_v16  ;;  %v30137_v21 = vld [vmem:[#allocation12_spill] sm:$0xff] }
0x315f   :  { %22412 = vmatprep.subr.bf16.mxu1 %v30122_v7  ;;  %v30138_v39 = vpack.c.bf16 %v30136_v4, %v30137_v21  ;;  %v30150_v4 = vld [vmem:[#allocation60_spill] sm:$0xff]  ;;  %v30152_v21 = vld [vmem:[#allocation62_spill] sm:$0xff] }
0x3160   :  { %v30151_v26 = vand.u32 4294901760, %v30150_v4  ;;  %v30163_v4 = vld [vmem:[#allocation72_spill] sm:$0xff] }
0x3161   :  { %21513 = vmatmul.mubr.f32.gmra.mrb[94].mxu0 %v26583_v62  ;;  %21850 = vmatmul.mubr.f32.vlgmr.msra.gmra.mrb[130].mxu1 %v26647_v50 }
0x3162   :  { %22414 = vmatpush3.bf16.msra.mxu1 %v30135_v2  ;;  %21515 = vmatprep.mubr.f32.mxu0 %v26593_v33  ;;  %v30142_v2 = vand.u32 4294901760, %v30066_v36  ;;  %v30147_v36 = vld [vmem:[#allocation58_spill] sm:$0xff] }
0x3163   :  { %22415 = vmatprep.subr.bf16.mxu1 %v30122_v7  ;;  %21860 = vmatprep.mubr.msk.f32.mxu1 %vm24051_vm1, %v30130_v25 }
0x3165   :  { %21516 = vmatmul.mubr.f32.gmra.mrb[96].mxu0 %v26601_v29 }
0x3166   :  { %22417 = vmatpush3.bf16.msra.mxu1 %v30138_v39  ;;  %21526 = vmatprep.mubr.f32.mxu0 %v30139_v8  ;;  %v30149_v39 = vld [vmem:[#allocation10_spill] sm:$0xff] }
0x3167   :  { %22418 = vmatprep.subr.bf16.mxu1 %v30122_v7 }
0x3169   :  { %21527 = vmatmul.mubr.f32.vlgmr.msra.gmra.mrb[34].mxu0 %v30140_v60  ;;  %21861 = vmatmul.mubr.f32.vlgmr.msra.gmra.mrb[130].mxu1 %v26654_v52  ;;  %v30148_v52 = vand.u32 4294901760, %v30147_v36  ;;  %v30153_v60 = vand.u32 4294901760, %v30152_v21  ;;  %v30165_v21 = vld [vmem:[#allocation75_spill] sm:$0xff] }
0x316a   :  { %22387 = vmatpush3.bf16.msra.mxu0 %v30070_v19  ;;  %22420 = vmatpush3.bf16.msra.mxu1 %v30121_v14  ;;  %v30145_v19 = vld [vmem:[#allocation55_spill] sm:$0xff] }
0x316b   :  { %22389 = vmatprep.subr.bf16.mxu0 %v30141_v28  ;;  %21529 = vmatprep.mubr.f32.mxu0 %v30142_v2  ;;  %v30146_v8 = vand.u32 4294901760, %v30145_v19  ;;  %v30155_v2 = vld [vmem:[#allocation63_spill] sm:$0xff] }
0x316c   :  { %22421 = vmatprep.subr.bf16.mxu1 %v30122_v7  ;;  %21871 = vmatprep.mubr.msk.f32.mxu1 %vm24051_vm1, %v30130_v25 }
0x316d   :  { %21530 = vmatmul.mubr.f32.gmra.mrb[36].mxu0 %v30143_v40  ;;  %v30156_v40 = vand.u32 4294901760, %v30155_v2 }
0x316e   :  { %22391 = vmatpush3.bf16.msra.mxu0 %v30141_v28  ;;  %22423 = vmatpush3.bf16.msra.mxu1 %v30123_v44  ;;  %v30154_v28 = vld [vmem:[#allocation15_spill] sm:$0xff] }
0x316f   :  { %22393 = vmatprep.subr.bf16.mxu0 %v30144_v3  ;;  %21532 = vmatprep.mubr.f32.mxu0 %v30146_v8  ;;  %v30159_v8 = vld [vmem:[#allocation67_spill] sm:$0xff] }
0x3170   :  { %22424 = vmatprep.subr.bf16.mxu1 %v30122_v7  ;;  %v30160_v36 = vand.u32 4294901760, %v30159_v8 }
0x3171   :  { %21533 = vmatmul.mubr.f32.gmra.mrb[38].mxu0 %v30148_v52  ;;  %21872 = vmatmul.mubr.f32.vlgmr.msra.gmra.mrb[130].mxu1 %v15533_v47  ;;  %v30157_v47 = vld [vmem:[#allocation66_spill] sm:$0xff]  ;;  %v30161_v52 = vld [vmem:[#allocation71_spill] sm:$0xff] }
0x3172   :  { %22426 = vmatpush3.bf16.msra.mxu1 %v30149_v39  ;;  %21535 = vmatprep.mubr.f32.mxu0 %v30151_v26  ;;  %v30158_v19 = vand.u32 4294901760, %v30157_v47  ;;  %v30162_v39 = vand.u32 4294901760, %v30161_v52  ;;  %v30164_v26 = vand.u32 4294901760, %v30163_v4  ;;  %v30173_v47 = vld [vmem:[#allocation84_spill] sm:$0xff] }
0x3173   :  { %22427 = vmatprep.subr.bf16.mxu1 %v30122_v7  ;;  %21882 = vmatprep.mubr.msk.f32.mxu1 %vm24051_vm1, %v30130_v25  ;;  %v30181_v4 = vld [vmem:[#allocation92_spill] sm:$0xff] }
0x3175   :  { %21536 = vmatmul.mubr.f32.gmra.mrb[40].mxu0 %v30153_v60  ;;  %v30166_v60 = vand.u32 4294901760, %v30165_v21  ;;  %v30183_v21 = vld [vmem:[#allocation93_spill] sm:$0xff] }
0x3176   :  { %22429 = vmatpush3.bf16.msra.mxu1 %v30154_v28  ;;  %21538 = vmatprep.mubr.f32.mxu0 %v30156_v40 }
0x3177   :  { %22430 = vmatprep.subr.bf16.mxu1 %v30122_v7 }
0x3179   :  { %21539 = vmatmul.mubr.f32.gmra.mrb[42].mxu0 %v30158_v19  ;;  %21883 = vmatmul.mubr.f32.vlgmr.msra.gmra.mrb[130].mxu1 %v26647_v50  ;;  %v30174_v19 = vand.u32 4294901760, %v30173_v47  ;;  %v30191_v47 = vld [vmem:[#allocation100_spill] sm:$0xff] }
0x317a   :  { %22432 = vmatpush3.bf16.msra.mxu1 %v30121_v14  ;;  %21541 = vmatprep.mubr.f32.mxu0 %v30160_v36  ;;  %v30167_v14 = vld [vmem:[#allocation76_spill] sm:$0xff] }
0x317b   :  { %22433 = vmatprep.subr.bf16.mxu1 %v30122_v7  ;;  %21893 = vmatprep.mubr.msk.f32.mxu1 %vm24051_vm1, %v30130_v25  ;;  %v30168_v28 = vand.u32 4294901760, %v30167_v14  ;;  %v30169_v7 = vld [vmem:[#allocation80_spill] sm:$0xff]  ;;  %v30171_v25 = vld [vmem:[#allocation81_spill] sm:$0xff] }
0x317c   :  { %v30170_v2 = vand.u32 4294901760, %v30169_v7  ;;  %v30172_v40 = vand.u32 4294901760, %v30171_v25  ;;  %v30177_v36 = vld [vmem:[#allocation88_spill] sm:$0xff]  ;;  %v30187_v7 = vld [vmem:[#allocation47_spill] sm:$0xff] }
0x317d   :  { %21542 = vmatmul.mubr.f32.gmra.mrb[44].mxu0 %v30162_v39  ;;  %v30178_v52 = vand.u32 4294901760, %v30177_v36  ;;  %v30179_v39 = vld [vmem:[#allocation89_spill] sm:$0xff]  ;;  %v30185_v14 = vld [vmem:[#allocation96_spill] sm:$0xff]  ;;  %v30189_v25 = vld [vmem:[#allocation99_spill] sm:$0xff] }
0x317e   :  { %22435 = vmatpush3.bf16.msra.mxu1 %v30123_v44  ;;  %21544 = vmatprep.mubr.f32.mxu0 %v30164_v26  ;;  %v30175_v44 = vld [vmem:[#allocation85_spill] sm:$0xff]  ;;  %v30182_v26 = vand.u32 4294901760, %v30181_v4  ;;  %v30195_v36 = vld [vmem:[#allocation103_spill] sm:$0xff] }
0x317f   :  { %v30176_v8 = vand.u32 4294901760, %v30175_v44  ;;  %v30193_v44 = vld [vmem:[#allocation102_spill] sm:$0xff] }
0x3181   :  { %21545 = vmatmul.mubr.f32.gmra.mrb[46].mxu0 %v30166_v60  ;;  %21894 = vmatmul.mubr.f32.vlgmr.msra.gmra.mrb[130].mxu1 %v26647_v50  ;;  %v30180_v50 = vand.u32 4294901760, %v30179_v39  ;;  %v30184_v60 = vand.u32 4294901760, %v30183_v21  ;;  %v30197_v39 = vand.u32 4294901760, %v26221_v31  ;;  %v30206_v31 = vand.u32 4294901760, %v26288_v45 }
0x3182   :  { %21547 = vmatprep.mubr.f32.mxu0 %v30168_v28  ;;  %v30186_v28 = vand.u32 4294901760, %v30185_v14  ;;  %v30203_v14 = vand.u32 4294901760, %v26259_v1  ;;  %v30210_v1 = vand.u32 4294901760, %v26324_v32  ;;  %v30213_v45 = vand.u32 4294901760, %v26346_v22 }
0x3183   :  { %v30217_v32 = vand.u32 4294901760, %v26394_v38  ;;  %v30220_v22 = vand.u32 4294901760, %v26437_v12  ;;  %v30224_v38 = vand.u32 4294901760, %v26476_v35  ;;  %v30227_v12 = vand.u32 4294901760, %v26541_v54  ;;  %v30234_v54 = vld [vmem:[#allocation23_spill] sm:$0xff] }
0x3184   :  { %v30231_v35 = vand.u32 4294901760, %v26583_v62  ;;  %v30239_v62 = vld [vmem:[#allocation27_spill] sm:$0xff] }
0x3185   :  { %21548 = vmatmul.mubr.f32.gmra.mrb[48].mxu0 %v30170_v2  ;;  %v30188_v2 = vand.u32 4294901760, %v30187_v7  ;;  %v30205_v7 = vand.u32 4294901760, %v26279_v46  ;;  %v30212_v46 = vand.u32 4294901760, %v26342_v51  ;;  %v30219_v51 = vand.u32 4294901760, %v26428_v6 }
0x3186   :  { %21550 = vmatprep.mubr.f32.mxu0 %v30172_v40  ;;  %v30190_v40 = vand.u32 4294901760, %v30189_v25  ;;  %v30208_v25 = vand.u32 4294901760, %v26306_v0  ;;  %v30215_v0 = vand.u32 4294901760, %v26365_v34  ;;  %v30222_v34 = vand.u32 4294901760, %v26466_v17 }
0x3187   :  { %v30226_v6 = vand.u32 4294901760, %v26513_v11  ;;  %v30229_v17 = vand.u32 4294901760, %v26565_v63  ;;  %v30233_v11 = vand.u32 4294901760, %v26601_v29  ;;  %v30237_v63 = vld [vmem:[#allocation18_spill] sm:$0xff]  ;;  %v30241_v29 = vld [vmem:[#allocation29_spill] sm:$0xff] }
0x3189   :  { %21551 = vmatmul.mubr.f32.gmra.mrb[50].mxu0 %v30174_v19  ;;  %v30192_v19 = vand.u32 4294901760, %v30191_v47  ;;  %v30242_v47 = vld [vmem:[#allocation30_spill] sm:$0xff] }
0x318a   :  { %21553 = vmatprep.mubr.f32.mxu0 %v30176_v8  ;;  %v30194_v8 = vand.u32 4294901760, %v30193_v44  ;;  %v30244_v44 = vld [vmem:[#allocation32_spill] sm:$0xff] }
0x318d   :  { %21554 = vmatmul.mubr.f32.gmra.mrb[52].mxu0 %v30178_v52  ;;  %v30196_v52 = vand.u32 4294901760, %v30195_v36  ;;  %v30247_v36 = vld [vmem:[#allocation35_spill] sm:$0xff] }
0x318e   :  { %21556 = vmatprep.mubr.f32.mxu0 %v30180_v50  ;;  %v30198_v50 = vld [vmem:[#allocation59_spill] sm:$0xff] }
0x318f   :  { %v30199_v4 = vand.u32 4294901760, %v30198_v50  ;;  %v30250_v50 = vld [vmem:[#allocation38_spill] sm:$0xff] }
0x3191   :  { %21557 = vmatmul.mubr.f32.gmra.mrb[54].mxu0 %v30182_v26  ;;  %v30200_v26 = vld [vmem:[#allocation44_spill] sm:$0xff] }
0x3192   :  { %21559 = vmatprep.mubr.f32.mxu0 %v30184_v60  ;;  %v30201_v21 = vand.u32 4294901760, %v30200_v26  ;;  %v30202_v60 = vand.u32 4294901760, %v26248_v48  ;;  %v30209_v48 = vand.u32 4294901760, %v26315_v61  ;;  %v30216_v61 = vand.u32 4294901760, %v26369_v30  ;;  %v30252_v26 = vld [vmem:[#allocation40_spill] sm:$0xff] }
0x3193   :  { %v30223_v30 = vand.u32 4294901760, %v26473_v23  ;;  %v30230_v23 = vand.u32 4294901760, %v26572_v16  ;;  %v30238_v16 = vld [vmem:[#allocation26_spill] sm:$0xff] }
0x3195   :  { %21560 = vmatmul.mubr.f32.gmra.mrb[56].mxu0 %v30186_v28  ;;  %v30204_v28 = vand.u32 4294901760, %v26268_v5  ;;  %v30211_v5 = vand.u32 4294901760, %v26333_v58  ;;  %v30218_v58 = vand.u32 4294901760, %v26406_v37  ;;  %v30225_v37 = vand.u32 4294901760, %v26503_v27 }
0x3196   :  { %21562 = vmatprep.mubr.f32.mxu0 %v30188_v2  ;;  %v30207_v2 = vand.u32 4294901760, %v26297_v42  ;;  %v30214_v42 = vand.u32 4294901760, %v26355_v10  ;;  %v30221_v10 = vand.u32 4294901760, %v26457_v57  ;;  %v30228_v57 = vand.u32 4294901760, %v26547_v49  ;;  %v30236_v49 = vld [vmem:[#allocation25_spill] sm:$0xff] }
0x3197   :  { %v30232_v27 = vand.u32 4294901760, %v26593_v33  ;;  %v30240_v33 = vld [vmem:[#allocation28_spill] sm:$0xff] }
0x3199   :  { %21563 = vmatmul.mubr.f32.gmra.mrb[58].mxu0 %v30190_v40  ;;  %v30235_v40 = vld [vmem:[#allocation24_spill] sm:$0xff] }
0x319a   :  { %21565 = vmatprep.mubr.f32.mxu0 %v30192_v19  ;;  %v30243_v19 = vld [vmem:[#allocation31_spill] sm:$0xff] }
0x319d   :  { %21566 = vmatmul.mubr.f32.gmra.mrb[60].mxu0 %v30194_v8  ;;  %v30246_v8 = vld [vmem:[#allocation34_spill] sm:$0xff] }
0x319e   :  { %21568 = vmatprep.mubr.f32.mxu0 %v30196_v52  ;;  %v30248_v52 = vld [vmem:[#allocation36_spill] sm:$0xff] }
0x31a1   :  { %21569 = vmatmul.mubr.f32.gmra.mrb[62].mxu0 %v30197_v39  ;;  %v30249_v39 = vld [vmem:[#allocation37_spill] sm:$0xff] }
0x31a2   :  { %21571 = vmatprep.mubr.f32.mxu0 %v30199_v4  ;;  %v30251_v4 = vld [vmem:[#allocation39_spill] sm:$0xff] }
0x31a5   :  { %21572 = vmatmul.mubr.f32.gmra.mrb[64].mxu0 %v30201_v21  ;;  %v30253_v21 = vld [vmem:[#allocation41_spill] sm:$0xff] }
0x31a6   :  { %21574 = vmatprep.mubr.f32.mxu0 %v30202_v60  ;;  %v30254_v60 = vld [vmem:[#allocation42_spill] sm:$0xff] }
0x31a9   :  { %21575 = vmatmul.mubr.f32.gmra.mrb[66].mxu0 %v30203_v14  ;;  %v30255_v14 = vld [vmem:[#allocation43_spill] sm:$0xff] }
0x31aa   :  { %21577 = vmatprep.mubr.f32.mxu0 %v30204_v28  ;;  %v30256_v28 = vld [vmem:[#allocation45_spill] sm:$0xff] }
0x31ad   :  { %21578 = vmatmul.mubr.f32.gmra.mrb[68].mxu0 %v30205_v7  ;;  %v30257_v7 = vld [vmem:[#allocation46_spill] sm:$0xff] }
0x31ae   :  { %21580 = vmatprep.mubr.f32.mxu0 %v30206_v31  ;;  %v30258_v31 = vld [vmem:[#allocation49_spill] sm:$0xff] }
0x31b1   :  { %21581 = vmatmul.mubr.f32.gmra.mrb[70].mxu0 %v30207_v2  ;;  %v30259_v2 = vld [vmem:[#allocation50_spill] sm:$0xff] }
0x31b2   :  { %21583 = vmatprep.mubr.f32.mxu0 %v30208_v25  ;;  %v30260_v25 = vld [vmem:[#allocation53_spill] sm:$0xff] }
0x31b5   :  { %21584 = vmatmul.mubr.f32.gmra.mrb[72].mxu0 %v30209_v48  ;;  %v30261_v48 = vld [vmem:[#allocation54_spill] sm:$0xff] }
0x31b6   :  { %21586 = vmatprep.mubr.f32.mxu0 %v30210_v1  ;;  %v30262_v1 = vld [vmem:[#allocation56_spill] sm:$0xff] }
0x31b9   :  { %21587 = vmatmul.mubr.f32.gmra.mrb[74].mxu0 %v30211_v5  ;;  %v30263_v5 = vld [vmem:[#allocation57_spill] sm:$0xff] }
0x31ba   :  { %21589 = vmatprep.mubr.f32.mxu0 %v30212_v46  ;;  %v30264_v46 = vld [vmem:[#allocation61_spill] sm:$0xff] }
0x31bd   :  { %21590 = vmatmul.mubr.f32.gmra.mrb[76].mxu0 %v30213_v45  ;;  %v30265_v45 = vld [vmem:[#allocation64_spill] sm:$0xff] }
0x31be   :  { %21592 = vmatprep.mubr.f32.mxu0 %v30214_v42  ;;  %v30266_v42 = vld [vmem:[#allocation65_spill] sm:$0xff] }
0x31c1   :  { %21593 = vmatmul.mubr.f32.gmra.mrb[78].mxu0 %v30215_v0  ;;  %v30267_v0 = vld [vmem:[#allocation68_spill] sm:$0xff] }
0x31c2   :  { %21595 = vmatprep.mubr.f32.mxu0 %v30216_v61  ;;  %v30268_v61 = vld [vmem:[#allocation69_spill] sm:$0xff] }
0x31c5   :  { %21596 = vmatmul.mubr.f32.gmra.mrb[80].mxu0 %v30217_v32  ;;  %v30269_v32 = vld [vmem:[#allocation70_spill] sm:$0xff] }
0x31c6   :  { %21598 = vmatprep.mubr.f32.mxu0 %v30218_v58  ;;  %v30270_v58 = vld [vmem:[#allocation73_spill] sm:$0xff] }
0x31c9   :  { %21599 = vmatmul.mubr.f32.gmra.mrb[82].mxu0 %v30219_v51  ;;  %v30271_v51 = vld [vmem:[#allocation74_spill] sm:$0xff] }
0x31ca   :  { %21601 = vmatprep.mubr.f32.mxu0 %v30220_v22  ;;  %v30272_v22 = vld [vmem:[#allocation77_spill] sm:$0xff] }
0x31cd   :  { %21602 = vmatmul.mubr.f32.gmra.mrb[84].mxu0 %v30221_v10  ;;  %v30273_v10 = vld [vmem:[#allocation78_spill] sm:$0xff] }
0x31ce   :  { %21604 = vmatprep.mubr.f32.mxu0 %v30222_v34  ;;  %v30274_v34 = vld [vmem:[#allocation82_spill] sm:$0xff] }
0x31d1   :  { %21605 = vmatmul.mubr.f32.gmra.mrb[86].mxu0 %v30223_v30  ;;  %v30275_v30 = vld [vmem:[#allocation83_spill] sm:$0xff] }
0x31d2   :  { %21607 = vmatprep.mubr.f32.mxu0 %v30224_v38  ;;  %v30276_v38 = vld [vmem:[#allocation86_spill] sm:$0xff] }
0x31d5   :  { %21608 = vmatmul.mubr.f32.gmra.mrb[88].mxu0 %v30225_v37  ;;  %v30277_v37 = vld [vmem:[#allocation87_spill] sm:$0xff] }
0x31d6   :  { %21610 = vmatprep.mubr.f32.mxu0 %v30226_v6  ;;  %v30278_v6 = vld [vmem:[#allocation90_spill] sm:$0xff] }
0x31d9   :  { %21611 = vmatmul.mubr.f32.gmra.mrb[90].mxu0 %v30227_v12  ;;  %v30279_v12 = vld [vmem:[#allocation91_spill] sm:$0xff] }
0x31da   :  { %21613 = vmatprep.mubr.f32.mxu0 %v30228_v57  ;;  %v30280_v57 = vld [vmem:[#allocation94_spill] sm:$0xff] }
0x31dd   :  { %21614 = vmatmul.mubr.f32.gmra.mrb[92].mxu0 %v30229_v17  ;;  %v30281_v17 = vld [vmem:[#allocation95_spill] sm:$0xff] }
0x31de   :  { %21616 = vmatprep.mubr.f32.mxu0 %v30230_v23  ;;  %v30282_v23 = vld [vmem:[#allocation97_spill] sm:$0xff] }
0x31e1   :  { %21617 = vmatmul.mubr.f32.gmra.mrb[94].mxu0 %v30231_v35  ;;  %v30283_v35 = vld [vmem:[#allocation98_spill] sm:$0xff] }
0x31e2   :  { %21619 = vmatprep.mubr.f32.mxu0 %v30232_v27  ;;  %v30284_v27 = vld [vmem:[#allocation101_spill] sm:$0xff] }
0x31e5   :  { %21620 = vmatmul.mubr.f32.gmra.mrb[96].mxu0 %v30233_v11  ;;  %v30285_v11 = vld [vmem:[#allocation51_spill] sm:$0xff] }
0x31e6   :  { %21630 = vmatprep.mubr.f32.mxu0 %v30234_v54 }
0x31e9   :  { %21631 = vmatmul.mubr.f32.vlgmr.msra.gmra.mrb[34].mxu0 %v30235_v40 }
0x31ea   :  { %22395 = vmatpush3.bf16.msra.mxu0 %v30144_v3  ;;  %21633 = vmatprep.mubr.f32.mxu0 %v30236_v49  ;;  %v30245_v3 = vld [vmem:[#allocation33_spill] sm:$0xff] }
0x31eb   :  { %22397 = vmatprep.subr.bf16.mxu0 %v30237_v63 }
0x31ed   :  { %21634 = vmatmul.mubr.f32.gmra.mrb[36].mxu0 %v30238_v16 }
0x31ee   :  { %22399 = vmatpush3.bf16.msra.mxu0 %v30237_v63  ;;  %21636 = vmatprep.mubr.f32.mxu0 %v30239_v62  ;;  %v30286_v63 = vld [vmem:[#allocation52_spill] sm:$0xff] }
0x31f1   :  { %21637 = vmatmul.mubr.f32.gmra.mrb[38].mxu0 %v30240_v33 }
0x31f2   :  { %21639 = vmatprep.mubr.f32.mxu0 %v30241_v29 }
0x31f5   :  { %21640 = vmatmul.mubr.f32.gmra.mrb[40].mxu0 %v30242_v47 }
0x31f6   :  { %21642 = vmatprep.mubr.f32.mxu0 %v30243_v19 }
0x31f9   :  { %21643 = vmatmul.mubr.f32.gmra.mrb[42].mxu0 %v30244_v44 }
0x31fa   :  { %21645 = vmatprep.mubr.f32.mxu0 %v30245_v3 }
0x31fd   :  { %21646 = vmatmul.mubr.f32.gmra.mrb[44].mxu0 %v30246_v8 }
0x31fe   :  { %21648 = vmatprep.mubr.f32.mxu0 %v30247_v36 }
0x3201   :  { %21649 = vmatmul.mubr.f32.gmra.mrb[46].mxu0 %v30248_v52 }
0x3202   :  { %21651 = vmatprep.mubr.f32.mxu0 %v30249_v39 }
0x3205   :  { %21652 = vmatmul.mubr.f32.gmra.mrb[48].mxu0 %v30250_v50 }
0x3206   :  { %21654 = vmatprep.mubr.f32.mxu0 %v30251_v4 }
0x3209   :  { %21655 = vmatmul.mubr.f32.gmra.mrb[50].mxu0 %v30252_v26 }
0x320a   :  { %21657 = vmatprep.mubr.f32.mxu0 %v30253_v21 }
0x320d   :  { %21658 = vmatmul.mubr.f32.gmra.mrb[52].mxu0 %v30254_v60 }
0x320e   :  { %21660 = vmatprep.mubr.f32.mxu0 %v30255_v14 }
0x3211   :  { %21661 = vmatmul.mubr.f32.gmra.mrb[54].mxu0 %v30256_v28 }
0x3212   :  { %21663 = vmatprep.mubr.f32.mxu0 %v30257_v7 }
0x3215   :  { %21664 = vmatmul.mubr.f32.gmra.mrb[56].mxu0 %v30258_v31 }
0x3216   :  { %21666 = vmatprep.mubr.f32.mxu0 %v30259_v2 }
0x3219   :  { %21667 = vmatmul.mubr.f32.gmra.mrb[58].mxu0 %v30260_v25 }
0x321a   :  { %21669 = vmatprep.mubr.f32.mxu0 %v30261_v48 }
0x321d   :  { %21670 = vmatmul.mubr.f32.gmra.mrb[60].mxu0 %v30262_v1 }
0x321e   :  { %21672 = vmatprep.mubr.f32.mxu0 %v30263_v5 }
0x3221   :  { %21673 = vmatmul.mubr.f32.gmra.mrb[62].mxu0 %v30264_v46 }
0x3222   :  { %21675 = vmatprep.mubr.f32.mxu0 %v30265_v45 }
0x3225   :  { %21676 = vmatmul.mubr.f32.gmra.mrb[64].mxu0 %v30266_v42 }
0x3226   :  { %21678 = vmatprep.mubr.f32.mxu0 %v30267_v0 }
0x3229   :  { %21679 = vmatmul.mubr.f32.gmra.mrb[66].mxu0 %v30268_v61 }
0x322a   :  { %21681 = vmatprep.mubr.f32.mxu0 %v30269_v32 }
0x322d   :  { %21682 = vmatmul.mubr.f32.gmra.mrb[68].mxu0 %v30270_v58 }
0x322e   :  { %21684 = vmatprep.mubr.f32.mxu0 %v30271_v51 }
0x3231   :  { %21685 = vmatmul.mubr.f32.gmra.mrb[70].mxu0 %v30272_v22 }
0x3232   :  { %21687 = vmatprep.mubr.f32.mxu0 %v30273_v10 }
0x3235   :  { %21688 = vmatmul.mubr.f32.gmra.mrb[72].mxu0 %v30274_v34 }
0x3236   :  { %21690 = vmatprep.mubr.f32.mxu0 %v30275_v30 }
0x3239   :  { %21691 = vmatmul.mubr.f32.gmra.mrb[74].mxu0 %v30276_v38 }
0x323a   :  { %21693 = vmatprep.mubr.f32.mxu0 %v30277_v37 }
0x323d   :  { %21694 = vmatmul.mubr.f32.gmra.mrb[76].mxu0 %v30278_v6 }
0x323e   :  { %21696 = vmatprep.mubr.f32.mxu0 %v30279_v12 }
0x3241   :  { %21697 = vmatmul.mubr.f32.gmra.mrb[78].mxu0 %v30280_v57 }
0x3242   :  { %21699 = vmatprep.mubr.f32.mxu0 %v30281_v17 }
0x3245   :  { %21700 = vmatmul.mubr.f32.gmra.mrb[80].mxu0 %v30282_v23 }
0x3246   :  { %21702 = vmatprep.mubr.f32.mxu0 %v30283_v35 }
0x3249   :  { %21703 = vmatmul.mubr.f32.gmra.mrb[82].mxu0 %v30284_v27 }
0x324a   :  { %21705 = vmatprep.mubr.f32.mxu0 %v26408_v24 }
0x324d   :  { %21706 = vmatmul.mubr.f32.gmra.mrb[84].mxu0 %v26430_v56 }
0x324e   :  { %21708 = vmatprep.mubr.f32.mxu0 %v26439_v41 }
0x3251   :  { %21709 = vmatmul.mubr.f32.gmra.mrb[86].mxu0 %v26447_v20  ;;  %v26942_v20 = vpop.f32.mrb[64].mxu1 }
0x3252   :  { %21711 = vmatprep.mubr.f32.mxu0 %v26449_v59  ;;  %30293 = vst [vmem:[#allocation11_spill] sm:$0xff] %v26942_v20 }
0x3255   :  { %21712 = vmatmul.mubr.f32.gmra.mrb[88].mxu0 %v30285_v11  ;;  %v26945_v11 = vpop.f32.mrb[65].mxu1 }
0x3256   :  { %21714 = vmatprep.mubr.f32.mxu0 %v30286_v63  ;;  %30294 = vst [vmem:[#allocation16_spill] sm:$0xff] %v26945_v11  ;;  %v26947_v63 = vpop.f32.mrb[66].mxu1 }
0x3259   :  { %21715 = vmatmul.mubr.f32.gmra.mrb[90].mxu0 %v30287_v43 }
0x325a   :  { %21717 = vmatprep.mubr.f32.mxu0 %v30288_v9 }
0x325d   :  { %21718 = vmatmul.mubr.f32.gmra.mrb[92].mxu0 %v30289_v13 }
0x325e   :  { %21720 = vmatprep.mubr.f32.mxu0 %v30290_v15 }
0x3261   :  { %21721 = vmatmul.mubr.f32.gmra.mrb[94].mxu0 %v30291_v55 }
0x3262   :  { %21723 = vmatprep.mubr.f32.mxu0 %v30292_v18 }
0x3265   :  { %21724 = vmatmul.mubr.f32.gmra.mrb[96].mxu0 %v26585_v53 }
0x3266   :  { %21734 = vmatprep.mubr.f32.mxu0 %v30234_v54  ;;  %v26992_v54 = vpop.f32.mrb[67].mxu1 }
0x3269   :  { %21735 = vmatmul.mubr.f32.vlgmr.msra.gmra.mrb[34].mxu0 %v30235_v40  ;;  %v26995_v40 = vpop.f32.mrb[68].mxu1 }
0x326a   :  { %21737 = vmatprep.mubr.f32.mxu0 %v30236_v49  ;;  %v26998_v49 = vpop.f32.mrb[69].mxu1 }
0x326d   :  { %21738 = vmatmul.mubr.f32.gmra.mrb[36].mxu0 %v30238_v16  ;;  %v27001_v16 = vpop.f32.mrb[70].mxu1 }
0x326e   :  { %21740 = vmatprep.mubr.f32.mxu0 %v30239_v62  ;;  %v27004_v62 = vpop.f32.mrb[71].mxu1 }
0x3271   :  { %21741 = vmatmul.mubr.f32.gmra.mrb[38].mxu0 %v30240_v33  ;;  %v27007_v33 = vpop.f32.mrb[72].mxu1 }
0x3272   :  { %21743 = vmatprep.mubr.f32.mxu0 %v30241_v29  ;;  %v27010_v29 = vpop.f32.mrb[73].mxu1 }
0x3275   :  { %21744 = vmatmul.mubr.f32.gmra.mrb[40].mxu0 %v30242_v47  ;;  %v27013_v47 = vpop.f32.mrb[74].mxu1 }
0x3276   :  { %21746 = vmatprep.mubr.f32.mxu0 %v30243_v19  ;;  %v27016_v19 = vpop.f32.mrb[75].mxu1 }
0x3279   :  { %21747 = vmatmul.mubr.f32.gmra.mrb[42].mxu0 %v30244_v44  ;;  %v27019_v44 = vpop.f32.mrb[76].mxu1 }
0x327a   :  { %21749 = vmatprep.mubr.f32.mxu0 %v30245_v3  ;;  %v30295_v3 = vld [vmem:[#allocation48_spill] sm:$0xff] }
0x327d   :  { %21750 = vmatmul.mubr.f32.gmra.mrb[44].mxu0 %v30246_v8  ;;  %v27022_v8 = vpop.f32.mrb[77].mxu1 }
0x327e   :  { %21752 = vmatprep.mubr.f32.mxu0 %v30247_v36  ;;  %v27025_v36 = vpop.f32.mrb[78].mxu1 }
0x3281   :  { %21753 = vmatmul.mubr.f32.gmra.mrb[46].mxu0 %v30248_v52  ;;  %v30296_v52 = vld [vmem:[#allocation51_spill] sm:$0xff] }
0x3282   :  { %21755 = vmatprep.mubr.f32.mxu0 %v30249_v39  ;;  %v30297_v39 = vld [vmem:[#allocation52_spill] sm:$0xff] }
0x3285   :  { %21756 = vmatmul.mubr.f32.gmra.mrb[48].mxu0 %v30250_v50 }
0x3286   :  { %21758 = vmatprep.mubr.f32.mxu0 %v30251_v4 }
0x3289   :  { %21759 = vmatmul.mubr.f32.gmra.mrb[50].mxu0 %v30252_v26 }
0x328a   :  { %21761 = vmatprep.mubr.f32.mxu0 %v30253_v21 }
0x328d   :  { %21762 = vmatmul.mubr.f32.gmra.mrb[52].mxu0 %v30254_v60 }
0x328e   :  { %21764 = vmatprep.mubr.f32.mxu0 %v30255_v14 }
0x3291   :  { %21765 = vmatmul.mubr.f32.gmra.mrb[54].mxu0 %v30256_v28 }
0x3292   :  { %21767 = vmatprep.mubr.f32.mxu0 %v30257_v7 }
0x3295   :  { %21768 = vmatmul.mubr.f32.gmra.mrb[56].mxu0 %v30258_v31 }
0x3296   :  { %21770 = vmatprep.mubr.f32.mxu0 %v30259_v2 }
0x3299   :  { %21771 = vmatmul.mubr.f32.gmra.mrb[58].mxu0 %v30260_v25 }
0x329a   :  { %21773 = vmatprep.mubr.f32.mxu0 %v30261_v48 }
0x329d   :  { %21774 = vmatmul.mubr.f32.gmra.mrb[60].mxu0 %v30262_v1 }
0x329e   :  { %21776 = vmatprep.mubr.f32.mxu0 %v30263_v5 }
0x32a1   :  { %21777 = vmatmul.mubr.f32.gmra.mrb[62].mxu0 %v30264_v46 }
0x32a2   :  { %21779 = vmatprep.mubr.f32.mxu0 %v30265_v45 }
0x32a5   :  { %21780 = vmatmul.mubr.f32.gmra.mrb[64].mxu0 %v30266_v42 }
0x32a6   :  { %21782 = vmatprep.mubr.f32.mxu0 %v30267_v0 }
0x32a9   :  { %21783 = vmatmul.mubr.f32.gmra.mrb[66].mxu0 %v30268_v61 }
0x32aa   :  { %21785 = vmatprep.mubr.f32.mxu0 %v30269_v32 }
0x32ad   :  { %21786 = vmatmul.mubr.f32.gmra.mrb[68].mxu0 %v30270_v58 }
0x32ae   :  { %21788 = vmatprep.mubr.f32.mxu0 %v30271_v51 }
0x32b1   :  { %21789 = vmatmul.mubr.f32.gmra.mrb[70].mxu0 %v30272_v22 }
0x32b2   :  { %21791 = vmatprep.mubr.f32.mxu0 %v30273_v10 }
0x32b5   :  { %21792 = vmatmul.mubr.f32.gmra.mrb[72].mxu0 %v30274_v34 }
0x32b6   :  { %21794 = vmatprep.mubr.f32.mxu0 %v30275_v30 }
0x32b9   :  { %21795 = vmatmul.mubr.f32.gmra.mrb[74].mxu0 %v30276_v38 }
0x32ba   :  { %21797 = vmatprep.mubr.f32.mxu0 %v30277_v37 }
0x32bd   :  { %21798 = vmatmul.mubr.f32.gmra.mrb[76].mxu0 %v30278_v6 }
0x32be   :  { %21800 = vmatprep.mubr.f32.mxu0 %v30279_v12 }
0x32c1   :  { %21801 = vmatmul.mubr.f32.gmra.mrb[78].mxu0 %v30280_v57 }
0x32c2   :  { %21803 = vmatprep.mubr.f32.mxu0 %v30281_v17 }
0x32c5   :  { %21804 = vmatmul.mubr.f32.gmra.mrb[80].mxu0 %v30282_v23 }
0x32c6   :  { %21806 = vmatprep.mubr.f32.mxu0 %v30283_v35 }
0x32c9   :  { %21807 = vmatmul.mubr.f32.gmra.mrb[82].mxu0 %v30284_v27 }
0x32ca   :  { %21809 = vmatprep.mubr.f32.mxu0 %v26408_v24  ;;  %v27028_v24 = vpop.f32.mrb[79].mxu1 }
0x32cd   :  { %21810 = vmatmul.mubr.f32.gmra.mrb[84].mxu0 %v26430_v56  ;;  %v27031_v56 = vpop.f32.mrb[80].mxu1 }
0x32ce   :  { %21812 = vmatprep.mubr.f32.mxu0 %v26439_v41  ;;  %v27034_v41 = vpop.f32.mrb[81].mxu1 }
0x32cf   :  { %v27037_v50 = vpop.f32.mrb[82].mxu1 }
0x32d1   :  { %21813 = vmatmul.mubr.f32.gmra.mrb[86].mxu0 %v30295_v3 }
0x32d2   :  { %21815 = vmatprep.mubr.f32.mxu0 %v26449_v59  ;;  %v27040_v59 = vpop.f32.mrb[83].mxu1 }
0x32d3   :  { %v27043_v4 = vpop.f32.mrb[84].mxu1 }
0x32d4   :  { %v27047_v26 = vpop.f32.mrb[85].mxu1 }
0x32d5   :  { %21816 = vmatmul.mubr.f32.gmra.mrb[88].mxu0 %v30296_v52 }
0x32d6   :  { %21818 = vmatprep.mubr.f32.mxu0 %v30297_v39 }
0x32d9   :  { %21819 = vmatmul.mubr.f32.gmra.mrb[90].mxu0 %v30287_v43  ;;  %v27049_v43 = vpop.f32.mrb[86].mxu1 }
0x32da   :  { %21821 = vmatprep.mubr.f32.mxu0 %v30288_v9  ;;  %v27052_v9 = vpop.f32.mrb[87].mxu1 }
0x32db   :  { %v27054_v21 = vpop.f32.mrb[88].mxu1 }
0x32dd   :  { %21822 = vmatmul.mubr.f32.gmra.mrb[92].mxu0 %v30289_v13  ;;  %v27056_v13 = vpop.f32.mrb[89].mxu1 }
0x32de   :  { %21824 = vmatprep.mubr.f32.mxu0 %v30290_v15  ;;  %v27058_v60 = vpop.f32.mrb[90].mxu1 }
0x32df   :  { %v27060_v15 = vpop.f32.mrb[91].mxu1 }
0x32e0   :  { %v27062_v14 = vpop.f32.mrb[92].mxu1 }
0x32e1   :  { %21825 = vmatmul.mubr.f32.gmra.mrb[94].mxu0 %v30291_v55  ;;  %v27064_v55 = vpop.f32.mrb[93].mxu1 }
0x32e2   :  { %21827 = vmatprep.mubr.f32.mxu0 %v30292_v18  ;;  %v27066_v18 = vpop.f32.mrb[94].mxu1 }
0x32e3   :  { %v27068_v28 = vpop.f32.mrb[95].mxu1 }
0x32e4   :  { %v27070_v7 = vpop.f32.mrb[96].mxu1 }
0x32e5   :  { %21828 = vmatmul.mubr.f32.gmra.mrb[96].mxu0 %v26585_v53  ;;  %v27072_v53 = vpop.f32.mrb[97].mxu1 }
0x32e6   :  { %v27074_v31 = vpop.f32.mrb[98].mxu1 }
0x32e7   :  { %v27076_v2 = vpop.f32.mrb[99].mxu1 }
0x32e8   :  { %v27078_v25 = vpop.f32.mrb[100].mxu1 }
0x32e9   :  { %v27080_v48 = vpop.f32.mrb[101].mxu1 }
0x32ea   :  { %v27082_v1 = vpop.f32.mrb[102].mxu1 }
0x32eb   :  { %v27084_v5 = vpop.f32.mrb[103].mxu1 }
0x32ec   :  { %v27086_v46 = vpop.f32.mrb[104].mxu1 }
0x32ed   :  { %v27088_v45 = vpop.f32.mrb[105].mxu1 }
0x32ee   :  { %v27090_v42 = vpop.f32.mrb[106].mxu1 }
0x32ef   :  { %v27092_v0 = vpop.f32.mrb[107].mxu1 }
0x32f0   :  { %v27094_v61 = vpop.f32.mrb[108].mxu1 }
0x32f1   :  { %v27096_v32 = vpop.f32.mrb[109].mxu1 }
0x32f2   :  { %v27098_v58 = vpop.f32.mrb[110].mxu1 }
0x32f3   :  { %v27100_v51 = vpop.f32.mrb[111].mxu1 }
0x32f4   :  { %v27102_v22 = vpop.f32.mrb[112].mxu1 }
0x32f5   :  { %v27104_v10 = vpop.f32.mrb[113].mxu1 }
0x32f6   :  { %v27106_v34 = vpop.f32.mrb[114].mxu1 }
0x32f7   :  { %v27108_v30 = vpop.f32.mrb[115].mxu1 }
0x32f8   :  { %v27110_v38 = vpop.f32.mrb[116].mxu1 }
0x32f9   :  { %v27112_v37 = vpop.f32.mrb[117].mxu1 }
0x32fa   :  { %30298 = vst [vmem:[#allocation9_spill] sm:$0xff] %v27112_v37  ;;  %v27114_v6 = vpop.f32.mrb[118].mxu1 }
0x32fb   :  { %30299 = vst [vmem:[#allocation7_spill] sm:$0xff] %v27114_v6  ;;  %v27116_v12 = vpop.f32.mrb[119].mxu1 }
0x32fc   :  { %30300 = vst [vmem:[#allocation14_spill] sm:$0xff] %v27116_v12  ;;  %v27118_v57 = vpop.f32.mrb[120].mxu1 }
0x32fd   :  { %30301 = vst [vmem:[#allocation12_spill] sm:$0xff] %v27118_v57  ;;  %v27120_v17 = vpop.f32.mrb[121].mxu1 }
0x32fe   :  { %30302 = vst [vmem:[#allocation20_spill] sm:$0xff] %v27120_v17  ;;  %v27122_v23 = vpop.f32.mrb[122].mxu1  ;;  %v15139_v17 = vld [vmem:[%s29550_s15 + $0x8] sm:$0xff] }
0x32ff   :  { %30303 = vst [vmem:[#allocation17_spill] sm:$0xff] %v27122_v23  ;;  %v27124_v35 = vpop.f32.mrb[123].mxu1 }
0x3300   :  { %30304 = vst [vmem:[#allocation55_spill] sm:$0xff] %v27124_v35  ;;  %v27126_v27 = vpop.f32.mrb[124].mxu1 }
0x3301   :  { %30305 = vst [vmem:[#allocation58_spill] sm:$0xff] %v27126_v27  ;;  %v27128_v3 = vpop.f32.mrb[125].mxu1 }
0x3302   :  { %30306 = vst [vmem:[#allocation10_spill] sm:$0xff] %v27128_v3  ;;  %v27130_v52 = vpop.f32.mrb[126].mxu1  ;;  %v15138_v3 = vld [vmem:[%s29550_s15] sm:$0xff] }
0x3303   :  { %30307 = vst [vmem:[#allocation60_spill] sm:$0xff] %v27130_v52  ;;  %v27132_v39 = vpop.f32.mrb[127].mxu1 }
0x3304   :  { %30308 = vst [vmem:[#allocation62_spill] sm:$0xff] %v27132_v39  ;;  %v27134_v11 = vpop.f32.mrb[128].mxu1 }
0x3305   :  { %30309 = vst [vmem:[#allocation15_spill] sm:$0xff] %v27134_v11  ;;  %v27136_v20 = vpop.f32.mrb[129].mxu1 }
0x3306   :  { %30310 = vst [vmem:[#allocation63_spill] sm:$0xff] %v27136_v20  ;;  %v15141_v20 = vld [vmem:[%s29550_s15 + $0x18] sm:$0xff] }
0x333c   :  { %v21736_v12 = vpop.f32.mrb[34].mxu0 }
0x333d   :  { %v22848_v23 = vadd.f32 %v21736_v12, %v26947_v63  ;;  %v14756_v35 = vpop.f32.mrb[35].mxu0  ;;  %v15140_v63 = vld [vmem:[%s29550_s15 + $0x10] sm:$0xff] }
0x333e   :  { %v22849_v52 = vadd.f32 %v14756_v35, %v26992_v54 }
0x333f   :  { %v15203_v27 = vmul.f32 %v22848_v23, %v15139_v17 }
0x3340   :  { %v21739_v39 = vpop.f32.mrb[36].mxu0  ;;  %v15202_v57 = vmul.f32 %v22849_v52, %v15138_v3 }
0x3341   :  { %v22850_v11 = vadd.f32 %v21739_v39, %v26995_v40  ;;  %v14768_v6 = vpop.f32.mrb[37].mxu0  ;;  %v15269_v37 = vsel %vm672_vm2, %v15203_v27, 0.0  ;;  %v15143_v40 = vld [vmem:[%s29550_s15 + $0x28] sm:$0xff] }
0x3342   :  { %v22851_v12 = vadd.f32 %v14768_v6, %v26998_v49  ;;  %15270 = vadd.xlane.f32.xlu0 %v15269_v37  ;;  %v15266_v54 = vsel %vm672_vm2, %v15202_v57, 0.0  ;;  %v15142_v49 = vld [vmem:[%s29550_s15 + $0x20] sm:$0xff] }
0x3343   :  { %15267 = vadd.xlane.f32.xlu1 %v15266_v54  ;;  %v15205_v17 = vmul.f32 %v22850_v11, %v15141_v20 }
0x3344   :  { %v21742_v23 = vpop.f32.mrb[38].mxu0  ;;  %v15204_v35 = vmul.f32 %v22851_v12, %v15140_v63 }
0x3345   :  { %v22852_v3 = vadd.f32 %v21742_v23, %v27001_v16  ;;  %v14780_v27 = vpop.f32.mrb[39].mxu0  ;;  %v15275_v52 = vsel %vm672_vm2, %v15205_v17, 0.0  ;;  %v15145_v16 = vld [vmem:[%s29550_s15 + $0x38] sm:$0xff] }
0x3346   :  { %v22853_v37 = vadd.f32 %v14780_v27, %v27004_v62  ;;  %15276 = vadd.xlane.f32.xlu0 %v15275_v52  ;;  %v15272_v20 = vsel %vm672_vm2, %v15204_v35, 0.0  ;;  %v15144_v62 = vld [vmem:[%s29550_s15 + $0x30] sm:$0xff] }
0x3347   :  { %15273 = vadd.xlane.f32.xlu1 %v15272_v20  ;;  %v15207_v11 = vmul.f32 %v22852_v3, %v15143_v40 }
0x3348   :  { %v21745_v6 = vpop.f32.mrb[40].mxu0  ;;  %v15206_v57 = vmul.f32 %v22853_v37, %v15142_v49 }
0x3349   :  { %v22854_v39 = vadd.f32 %v21745_v6, %v27007_v33  ;;  %v14792_v63 = vpop.f32.mrb[41].mxu0  ;;  %v15281_v12 = vsel %vm672_vm2, %v15207_v11, 0.0  ;;  %v15147_v33 = vld [vmem:[%s29550_s15 + $0x48] sm:$0xff] }
0x334a   :  { %v22855_v54 = vadd.f32 %v14792_v63, %v27010_v29  ;;  %15282 = vadd.xlane.f32.xlu0 %v15281_v12  ;;  %v15278_v17 = vsel %vm672_vm2, %v15206_v57, 0.0  ;;  %v15146_v29 = vld [vmem:[%s29550_s15 + $0x40] sm:$0xff] }
0x334b   :  { %15279 = vadd.xlane.f32.xlu1 %v15278_v17  ;;  %v15209_v23 = vmul.f32 %v22854_v39, %v15145_v16 }
0x334c   :  { %v21748_v35 = vpop.f32.mrb[42].mxu0  ;;  %v15208_v40 = vmul.f32 %v22855_v54, %v15144_v62 }
0x334d   :  { %v22856_v3 = vadd.f32 %v21748_v35, %v27013_v47  ;;  %v14804_v27 = vpop.f32.mrb[43].mxu0  ;;  %v15287_v52 = vsel %vm672_vm2, %v15209_v23, 0.0  ;;  %v15149_v47 = vld [vmem:[%s29550_s15 + $0x58] sm:$0xff] }
0x334e   :  { %v22857_v49 = vadd.f32 %v14804_v27, %v27016_v19  ;;  %15288 = vadd.xlane.f32.xlu0 %v15287_v52  ;;  %v15284_v37 = vsel %vm672_vm2, %v15208_v40, 0.0  ;;  %v15148_v19 = vld [vmem:[%s29550_s15 + $0x50] sm:$0xff] }
0x334f   :  { %15285 = vadd.xlane.f32.xlu1 %v15284_v37  ;;  %v15211_v20 = vmul.f32 %v22856_v3, %v15147_v33 }
0x3350   :  { %v21751_v11 = vpop.f32.mrb[44].mxu0  ;;  %v15210_v6 = vmul.f32 %v22857_v49, %v15146_v29 }
0x3351   :  { %v22858_v57 = vadd.f32 %v21751_v11, %v27019_v44  ;;  %v14816_v16 = vpop.f32.mrb[45].mxu0  ;;  %v15293_v39 = vsel %vm672_vm2, %v15211_v20, 0.0  ;;  %v15151_v44 = vld [vmem:[%s29550_s15 + $0x68] sm:$0xff] }
0x3352   :  { %v22859_v63 = vadd.f32 %v14816_v16, %v27022_v8  ;;  %15294 = vadd.xlane.f32.xlu0 %v15293_v39  ;;  %v15290_v12 = vsel %vm672_vm2, %v15210_v6, 0.0  ;;  %v15150_v8 = vld [vmem:[%s29550_s15 + $0x60] sm:$0xff] }
0x3353   :  { %15291 = vadd.xlane.f32.xlu1 %v15290_v12  ;;  %v15213_v62 = vmul.f32 %v22858_v57, %v15149_v47 }
0x3354   :  { %v21754_v54 = vpop.f32.mrb[46].mxu0  ;;  %v15212_v17 = vmul.f32 %v22859_v63, %v15148_v19 }
0x3355   :  { %v22860_v23 = vadd.f32 %v21754_v54, %v27025_v36  ;;  %v14828_v35 = vpop.f32.mrb[47].mxu0  ;;  %v15299_v40 = vsel %vm672_vm2, %v15213_v62, 0.0  ;;  %v15153_v36 = vld [vmem:[%s29550_s15 + $0x78] sm:$0xff]  ;;  %v15154_v62 = vld [vmem:[%s29550_s15 + $0x80] sm:$0xff] }
0x3356   :  { %v22861_v33 = vadd.f32 %v14828_v35, %v27028_v24  ;;  %15300 = vadd.xlane.f32.xlu0 %v15299_v40  ;;  %v15296_v3 = vsel %vm672_vm2, %v15212_v17, 0.0  ;;  %v15152_v24 = vld [vmem:[%s29550_s15 + $0x70] sm:$0xff]  ;;  %v15157_v40 = vld [vmem:[%s29550_s15 + $0x98] sm:$0xff] }
0x3357   :  { %15297 = vadd.xlane.f32.xlu1 %v15296_v3  ;;  %v15215_v27 = vmul.f32 %v22860_v23, %v15151_v44 }
0x3358   :  { %v21757_v52 = vpop.f32.mrb[48].mxu0  ;;  %v15214_v29 = vmul.f32 %v22861_v33, %v15150_v8 }
0x3359   :  { %v22862_v49 = vadd.f32 %v21757_v52, %v27031_v56  ;;  %v14840_v37 = vpop.f32.mrb[49].mxu0  ;;  %v15305_v20 = vsel %vm672_vm2, %v15215_v27, 0.0  ;;  %v15155_v56 = vld [vmem:[%s29550_s15 + $0x88] sm:$0xff] }
0x335a   :  { %v22863_v11 = vadd.f32 %v14840_v37, %v27034_v41  ;;  %15306 = vadd.xlane.f32.xlu0 %v15305_v20  ;;  %v15302_v6 = vsel %vm672_vm2, %v15214_v29, 0.0 }
0x335b   :  { %15303 = vadd.xlane.f32.xlu1 %v15302_v6  ;;  %v15217_v47 = vmul.f32 %v22862_v49, %v15153_v36  ;;  %v15158_v36 = vld [vmem:[%s29550_s15 + $0xa0] sm:$0xff]  ;;  %v15159_v49 = vld [vmem:[%s29550_s15 + $0xa8] sm:$0xff] }
0x335c   :  { %v21760_v57 = vpop.f32.mrb[50].mxu0  ;;  %v15216_v16 = vmul.f32 %v22863_v11, %v15152_v24 }
0x335d   :  { %v22864_v39 = vadd.f32 %v21760_v57, %v27037_v50  ;;  %v14852_v19 = vpop.f32.mrb[51].mxu0  ;;  %v15311_v63 = vsel %vm672_vm2, %v15217_v47, 0.0  ;;  %v15160_v47 = vld [vmem:[%s29550_s15 + $0xb0] sm:$0xff] }
0x335e   :  { %v22865_v12 = vadd.f32 %v14852_v19, %v27040_v59  ;;  %15312 = vadd.xlane.f32.xlu0 %v15311_v63  ;;  %v15308_v41 = vsel %vm672_vm2, %v15216_v16, 0.0  ;;  %v15156_v59 = vld [vmem:[%s29550_s15 + $0x90] sm:$0xff] }
0x335f   :  { %15309 = vadd.xlane.f32.xlu1 %v15308_v41  ;;  %v15219_v54 = vmul.f32 %v22864_v39, %v15155_v56  ;;  %v15162_v41 = vld [vmem:[%s29550_s15 + $0xc0] sm:$0xff] }
0x3360   :  { %v21763_v17 = vpop.f32.mrb[52].mxu0  ;;  %v15218_v35 = vmul.f32 %v22865_v12, %v15154_v62 }
0x3361   :  { %v22866_v44 = vadd.f32 %v21763_v17, %v27043_v4  ;;  %v14864_v23 = vpop.f32.mrb[53].mxu0  ;;  %v15317_v50 = vsel %vm672_vm2, %v15219_v54, 0.0 }
0x3362   :  { %v22867_v8 = vadd.f32 %v14864_v23, %v27047_v26  ;;  %15318 = vadd.xlane.f32.xlu0 %v15317_v50  ;;  %v15314_v29 = vsel %vm672_vm2, %v15218_v35, 0.0 }
0x3363   :  { %v15221_v27 = vmul.f32 %v22866_v44, %v15157_v40 }
0x3364   :  { %v21766_v33 = vpop.f32.mrb[54].mxu0  ;;  %v15220_v3 = vmul.f32 %v22867_v8, %v15156_v59  ;;  %v15164_v59 = vld [vmem:[%s29550_s15 + $0xd0] sm:$0xff] }
0x3365   :  { %v22868_v4 = vadd.f32 %v21766_v33, %v27049_v43  ;;  %v14876_v52 = vpop.f32.mrb[55].mxu0  ;;  %v15323_v57 = vsel %vm672_vm2, %v15221_v27, 0.0 }
0x3366   :  { %v22869_v37 = vadd.f32 %v14876_v52, %v27052_v9  ;;  %15315 = vadd.xlane.f32.xlu0 %v15314_v29  ;;  %v15320_v26 = vsel %vm672_vm2, %v15220_v3, 0.0  ;;  %v15161_v9 = vld [vmem:[%s29550_s15 + $0xb8] sm:$0xff]  ;;  %v15166_v29 = vld [vmem:[%s29550_s15 + $0xe0] sm:$0xff] }
0x3367   :  { %15321 = vadd.xlane.f32.xlu1 %v15320_v26  ;;  %v15223_v43 = vmul.f32 %v22868_v4, %v15159_v49 }
0x3368   :  { %v21769_v20 = vpop.f32.mrb[56].mxu0  ;;  %v15222_v24 = vmul.f32 %v22869_v37, %v15158_v36 }
0x3369   :  { %v22870_v11 = vadd.f32 %v21769_v20, %v27054_v21  ;;  %v14888_v6 = vpop.f32.mrb[57].mxu0  ;;  %v15329_v62 = vsel %vm672_vm2, %v15223_v43, 0.0 }
0x336a   :  { %v22871_v16 = vadd.f32 %v14888_v6, %v27056_v13  ;;  %15324 = vadd.xlane.f32.xlu0 %v15323_v57  ;;  %v15326_v56 = vsel %vm672_vm2, %v15222_v24, 0.0  ;;  %v15163_v13 = vld [vmem:[%s29550_s15 + $0xc8] sm:$0xff] }
0x336b   :  { %15327 = vadd.xlane.f32.xlu1 %v15326_v56  ;;  %v15225_v21 = vmul.f32 %v22870_v11, %v15161_v9  ;;  %v15168_v11 = vld [vmem:[%s29550_s15 + $0xf0] sm:$0xff] }
0x336c   :  { %v15224_v39 = vmul.f32 %v22871_v16, %v15160_v47  ;;  %v21772_v19 = vpop.f32.mrb[58].mxu0 }
0x336d   :  { %v22872_v63 = vadd.f32 %v21772_v19, %v27058_v60  ;;  %v14900_v12 = vpop.f32.mrb[59].mxu0  ;;  %v15335_v40 = vsel %vm672_vm2, %v15225_v21, 0.0 }
0x336e   :  { %v22873_v54 = vadd.f32 %v14900_v12, %v27060_v15  ;;  %15330 = vadd.xlane.f32.xlu0 %v15329_v62  ;;  %v15332_v17 = vsel %vm672_vm2, %v15224_v39, 0.0  ;;  %v15165_v15 = vld [vmem:[%s29550_s15 + $0xd8] sm:$0xff] }
0x336f   :  { %15333 = vadd.xlane.f32.xlu1 %v15332_v17  ;;  %v15227_v60 = vmul.f32 %v22872_v63, %v15163_v13 }
0x3370   :  { %v15226_v44 = vmul.f32 %v22873_v54, %v15162_v41  ;;  %v21775_v23 = vpop.f32.mrb[60].mxu0 }
0x3371   :  { %v22874_v50 = vadd.f32 %v21775_v23, %v27062_v14  ;;  %v14912_v35 = vpop.f32.mrb[61].mxu0  ;;  %v15341_v36 = vsel %vm672_vm2, %v15227_v60, 0.0 }
0x3372   :  { %v22875_v8 = vadd.f32 %v14912_v35, %v27064_v55  ;;  %15336 = vadd.xlane.f32.xlu0 %v15335_v40  ;;  %v15338_v33 = vsel %vm672_vm2, %v15226_v44, 0.0  ;;  %v15167_v55 = vld [vmem:[%s29550_s15 + $0xe8] sm:$0xff] }
0x3373   :  { %15339 = vadd.xlane.f32.xlu1 %v15338_v33  ;;  %v15229_v14 = vmul.f32 %v22874_v50, %v15165_v15 }
0x3374   :  { %v15228_v3 = vmul.f32 %v22875_v8, %v15164_v59  ;;  %v21778_v27 = vpop.f32.mrb[62].mxu0 }
0x3375   :  { %v22876_v4 = vadd.f32 %v21778_v27, %v27066_v18  ;;  %v14924_v52 = vpop.f32.mrb[63].mxu0  ;;  %v15347_v6 = vsel %vm672_vm2, %v15229_v14, 0.0 }
0x3376   :  { %v22877_v49 = vadd.f32 %v14924_v52, %v27068_v28  ;;  %15342 = vadd.xlane.f32.xlu0 %v15341_v36  ;;  %v15344_v37 = vsel %vm672_vm2, %v15228_v3, 0.0  ;;  %v15169_v28 = vld [vmem:[%s29550_s15 + $0xf8] sm:$0xff] }
0x3377   :  { %15345 = vadd.xlane.f32.xlu1 %v15344_v37  ;;  %v15231_v18 = vmul.f32 %v22876_v4, %v15167_v55  ;;  %v30318_v55 = vld [vmem:[#allocation7_spill] sm:$0xff]  ;;  %v30319_v37 = vld [vmem:[#allocation14_spill] sm:$0xff] }
0x3378   :  { %v15230_v26 = vmul.f32 %v22877_v49, %v15166_v29  ;;  %v21781_v20 = vpop.f32.mrb[64].mxu0  ;;  %v30317_v29 = vld [vmem:[#allocation9_spill] sm:$0xff] }
0x3379   :  { %v22878_v24 = vadd.f32 %v21781_v20, %v27070_v7  ;;  %v14936_v43 = vpop.f32.mrb[65].mxu0  ;;  %v15353_v19 = vsel %vm672_vm2, %v15231_v18, 0.0  ;;  %v30320_v20 = vld [vmem:[#allocation12_spill] sm:$0xff] }
0x337a   :  { %v22879_v47 = vadd.f32 %v14936_v43, %v27072_v53  ;;  %15348 = vadd.xlane.f32.xlu0 %v15347_v6  ;;  %v15350_v57 = vsel %vm672_vm2, %v15230_v26, 0.0 }
0x337b   :  { %15351 = vadd.xlane.f32.xlu1 %v15350_v57  ;;  %v15233_v7 = vmul.f32 %v22878_v24, %v15169_v28  ;;  %v30321_v24 = vld [vmem:[#allocation20_spill] sm:$0xff] }
0x337c   :  { %v15232_v9 = vmul.f32 %v22879_v47, %v15168_v11  ;;  %v21784_v16 = vpop.f32.mrb[66].mxu0  ;;  %v30322_v11 = vld [vmem:[#allocation17_spill] sm:$0xff]  ;;  %v30323_v47 = vld [vmem:[#allocation55_spill] sm:$0xff] }
0x337d   :  { %v27296_v56 = vadd.f32 %v21784_v16, %v27074_v31  ;;  %v14948_v39 = vpop.f32.mrb[67].mxu0  ;;  %v15359_v62 = vsel %vm672_vm2, %v15233_v7, 0.0  ;;  %v30324_v16 = vld [vmem:[#allocation58_spill] sm:$0xff] }
0x337e   :  { %v27300_v21 = vadd.f32 %v14948_v39, %v27076_v2  ;;  %15354 = vadd.xlane.f32.xlu0 %v15353_v19  ;;  %v15356_v63 = vsel %vm672_vm2, %v15232_v9, 0.0  ;;  %v30325_v19 = vld [vmem:[#allocation10_spill] sm:$0xff] }
0x337f   :  { %15357 = vadd.xlane.f32.xlu1 %v15356_v63 }
0x3380   :  { %v21787_v53 = vpop.f32.mrb[68].mxu0 }
0x3381   :  { %v27304_v12 = vadd.f32 %v21787_v53, %v27078_v25  ;;  %v14960_v41 = vpop.f32.mrb[69].mxu0 }
0x3382   :  { %v27308_v31 = vadd.f32 %v14960_v41, %v27080_v48  ;;  %15360 = vadd.xlane.f32.xlu0 %v15359_v62  ;;  %v30327_v41 = vld [vmem:[#allocation60_spill] sm:$0xff] }
0x3384   :  { %v21790_v13 = vpop.f32.mrb[70].mxu0 }
0x3385   :  { %v27311_v54 = vadd.f32 %v21790_v13, %v27082_v1  ;;  %v14972_v2 = vpop.f32.mrb[71].mxu0 }
0x3386   :  { %v27314_v17 = vadd.f32 %v14972_v2, %v27084_v5  ;;  %v30329_v2 = vld [vmem:[#allocation62_spill] sm:$0xff] }
0x3388   :  { %v21793_v44 = vpop.f32.mrb[72].mxu0 }
0x3389   :  { %v27317_v23 = vadd.f32 %v21793_v44, %v27086_v46  ;;  %v14984_v25 = vpop.f32.mrb[73].mxu0 }
0x338a   :  { %v27320_v60 = vadd.f32 %v14984_v25, %v27088_v45 }
0x338c   :  { %v21796_v50 = vpop.f32.mrb[74].mxu0 }
0x338d   :  { %v27323_v48 = vadd.f32 %v21796_v50, %v27090_v42  ;;  %v14996_v35 = vpop.f32.mrb[75].mxu0  ;;  %v30331_v50 = vld [vmem:[#allocation15_spill] sm:$0xff] }
0x338e   :  { %v27326_v1 = vadd.f32 %v14996_v35, %v27092_v0 }
0x3390   :  { %v21799_v59 = vpop.f32.mrb[76].mxu0 }
0x3391   :  { %v27329_v5 = vadd.f32 %v21799_v59, %v27094_v61  ;;  %v15008_v40 = vpop.f32.mrb[77].mxu0 }
0x3392   :  { %v27332_v46 = vadd.f32 %v15008_v40, %v27096_v32  ;;  %v30333_v40 = vld [vmem:[#allocation63_spill] sm:$0xff] }
0x3393   :  { %30311 = vst [vmem:[#allocation66_spill] sm:$0xff] %v27329_v5 }
0x3394   :  { %30312 = vst [vmem:[#allocation67_spill] sm:$0xff] %v27332_v46  ;;  %v21802_v15 = vpop.f32.mrb[78].mxu0 }
0x3395   :  { %v27335_v45 = vadd.f32 %v21802_v15, %v27098_v58  ;;  %v15020_v8 = vpop.f32.mrb[79].mxu0 }
0x3396   :  { %v27338_v42 = vadd.f32 %v15020_v8, %v27100_v51  ;;  %v15960_v8 = vpop.xlane.xlu1 %15959 }
0x3397   :  { %30313 = vst [vmem:[#allocation71_spill] sm:$0xff] %v27335_v45 }
0x3398   :  { %30314 = vst [vmem:[#allocation72_spill] sm:$0xff] %v27338_v42  ;;  %v21805_v33 = vpop.f32.mrb[80].mxu0 }
0x3399   :  { %v27341_v0 = vadd.f32 %v21805_v33, %v27102_v22  ;;  %v15032_v3 = vpop.f32.mrb[81].mxu0  ;;  %v15955_v33 = vpop.xlane.xlu0 %15954 }
0x339a   :  { %v27344_v61 = vadd.f32 %v15032_v3, %v27104_v10  ;;  %v30335_v3 = vld [vmem:[#allocation21_spill] sm:$0xff] }
0x339b   :  { %30315 = vst [vmem:[#allocation75_spill] sm:$0xff] %v27341_v0 }
0x339c   :  { %30316 = vst [vmem:[#allocation76_spill] sm:$0xff] %v27344_v61  ;;  %v21808_v27 = vpop.f32.mrb[82].mxu0 }
0x339d   :  { %v27347_v32 = vadd.f32 %v21808_v27, %v27106_v34  ;;  %v15044_v14 = vpop.f32.mrb[83].mxu0  ;;  %v27395_v27 = vrot.slane %v15960_v8, %v30335_v3 }
0x339e   :  { %v27350_v58 = vadd.f32 %v15044_v14, %v27108_v30  ;;  %v27398_v14 = vrot.slane %v15955_v33, %v30335_v3 }
0x33a0   :  { %v21811_v4 = vpop.f32.mrb[84].mxu0 }
0x33a1   :  { %v27353_v51 = vadd.f32 %v21811_v4, %v27110_v38  ;;  %v15056_v52 = vpop.f32.mrb[85].mxu0 }
0x33a2   :  { %v27356_v22 = vadd.f32 %v15056_v52, %v30317_v29 }
0x33a4   :  { %v21814_v36 = vpop.f32.mrb[86].mxu0 }
0x33a5   :  { %v27359_v10 = vadd.f32 %v21814_v36, %v30318_v55  ;;  %v15068_v49 = vpop.f32.mrb[87].mxu0 }
0x33a6   :  { %v27362_v34 = vadd.f32 %v15068_v49, %v30319_v37  ;;  %v30336_v37 = vld [vmem:[#allocation8_spill] sm:$0xff] }
0x33a8   :  { %v21817_v26 = vpop.f32.mrb[88].mxu0 }
0x33a9   :  { %v27365_v30 = vadd.f32 %v21817_v26, %v30320_v20  ;;  %v15080_v18 = vpop.f32.mrb[89].mxu0  ;;  %v27406_v26 = vrot.slane %v30336_v37, %v30335_v3 }
0x33aa   :  { %v27368_v38 = vadd.f32 %v15080_v18, %v30321_v24  ;;  %v30337_v18 = vld [vmem:[#allocation13_spill] sm:$0xff] }
0x33ab   :  { %v27410_v24 = vrot.slane %v30337_v18, %v30335_v3 }
0x33ac   :  { %v21820_v43 = vpop.f32.mrb[90].mxu0 }
0x33ad   :  { %v27371_v6 = vadd.f32 %v21820_v43, %v30322_v11  ;;  %v15092_v28 = vpop.f32.mrb[91].mxu0 }
0x33ae   :  { %v27374_v57 = vadd.f32 %v15092_v28, %v30323_v47 }
0x33b0   :  { %v21823_v9 = vpop.f32.mrb[92].mxu0 }
0x33b1   :  { %v27377_v7 = vadd.f32 %v21823_v9, %v30324_v16  ;;  %v15104_v39 = vpop.f32.mrb[93].mxu0 }
0x33b2   :  { %v27380_v63 = vadd.f32 %v15104_v39, %v30325_v19 }
0x33b4   :  { %30326 = vst [vmem:[#allocation80_spill] sm:$0xff] %v27380_v63  ;;  %v21826_v53 = vpop.f32.mrb[94].mxu0 }
0x33b5   :  { %v27383_v62 = vadd.f32 %v21826_v53, %v30327_v41  ;;  %v15116_v13 = vpop.f32.mrb[95].mxu0 }
0x33b6   :  { %v27386_v44 = vadd.f32 %v15116_v13, %v30329_v2 }
0x33b7   :  { %30328 = vst [vmem:[#allocation81_spill] sm:$0xff] %v27383_v62 }
0x33b8   :  { %30330 = vst [vmem:[#allocation84_spill] sm:$0xff] %v27386_v44  ;;  %v21829_v25 = vpop.f32.mrb[96].mxu0 }
0x33b9   :  { %v27389_v35 = vadd.f32 %v21829_v25, %v30331_v50  ;;  %v15128_v59 = vpop.f32.mrb[97].mxu0 }
0x33ba   :  { %v27392_v15 = vadd.f32 %v15128_v59, %v30333_v40 }
0x33bb   :  { %30332 = vst [vmem:[#allocation85_spill] sm:$0xff] %v27389_v35 }
0x33bc   :  { %30334 = vst [vmem:[#allocation88_spill] sm:$0xff] %v27392_v15 }
0x33cf   :  { %v15271_v4 = vpop.xlane.xlu0 %15270 }
0x33d0   :  { %v15966_v52 = vmul.f32 %v27398_v14, %v15271_v4  ;;  %v16002_v29 = vmul.f32 %v27395_v27, %v15271_v4  ;;  %v15268_v36 = vpop.xlane.xlu1 %15267  ;;  %v16075_v43 = vmul.f32 %v27406_v26, %v15271_v4  ;;  %v16076_v28 = vmul.f32 %v27410_v24, %v15271_v4 }
0x33d1   :  { %v15965_v55 = vmul.f32 %v27398_v14, %v15268_v36  ;;  %v16001_v49 = vmul.f32 %v27395_v27, %v15268_v36  ;;  %v16073_v9 = vmul.f32 %v27406_v26, %v15268_v36  ;;  %v16074_v39 = vmul.f32 %v27410_v24, %v15268_v36 }
0x33d2   :  { %v16034_v20 = vmax.f32 %v15966_v52, %v16002_v29 }
0x33d3   :  { %v16033_v11 = vmax.f32 %v15965_v55, %v16001_v49  ;;  %v15277_v19 = vpop.xlane.xlu0 %15276 }
0x33d4   :  { %v16139_v47 = vsub.f32 %v16075_v43, %v16034_v20  ;;  %v16140_v16 = vsub.f32 %v16076_v28, %v16034_v20  ;;  %v15274_v13 = vpop.xlane.xlu1 %15273  ;;  %v15968_v25 = vmul.f32 %v27398_v14, %v15277_v19  ;;  %v16004_v50 = vmul.f32 %v27395_v27, %v15277_v19 }
0x33d5   :  { %v16137_v53 = vsub.f32 %v16073_v9, %v16033_v11  ;;  %v16138_v41 = vsub.f32 %v16074_v39, %v16033_v11  ;;  %v15967_v8 = vmul.f32 %v27398_v14, %v15274_v13  ;;  %v16003_v33 = vmul.f32 %v27395_v27, %v15274_v13 }
0x33d6   :  { %v16205_v2 = vmul.f32 1.442695, %v16139_v47  ;;  %v16207_v59 = vmul.f32 1.442695, %v16140_v16  ;;  %v16036_v52 = vmax.f32 %v15968_v25, %v16004_v50  ;;  %v16079_v29 = vmul.f32 %v27406_v26, %v15277_v19 }
0x33d7   :  { %v16201_v40 = vmul.f32 1.442695, %v16137_v53  ;;  %v16203_v4 = vmul.f32 1.442695, %v16138_v41  ;;  %v16035_v36 = vmax.f32 %v15967_v8, %v16003_v33  ;;  %v16080_v55 = vmul.f32 %v27410_v24, %v15277_v19  ;;  %v15283_v49 = vpop.xlane.xlu0 %15282 }
0x33d8   :  { %23578 = vpow2.f32 %v16205_v2  ;;  %v16143_v20 = vsub.f32 %v16079_v29, %v16036_v52  ;;  %v16077_v43 = vmul.f32 %v27406_v26, %v15274_v13  ;;  %v16078_v28 = vmul.f32 %v27410_v24, %v15274_v13  ;;  %v15280_v47 = vpop.xlane.xlu1 %15279 }
0x33d9   :  { %23580 = vpow2.f32 %v16207_v59  ;;  %v16144_v11 = vsub.f32 %v16080_v55, %v16036_v52  ;;  %v15970_v16 = vmul.f32 %v27398_v14, %v15283_v49  ;;  %v16006_v39 = vmul.f32 %v27395_v27, %v15283_v49 }
0x33da   :  { %23582 = vpow2.f32 %v16201_v40  ;;  %v16141_v9 = vsub.f32 %v16077_v43, %v16035_v36  ;;  %v16142_v53 = vsub.f32 %v16078_v28, %v16035_v36  ;;  %v16213_v41 = vmul.f32 1.442695, %v16143_v20 }
0x33db   :  { %23584 = vpow2.f32 %v16203_v4  ;;  %v15969_v2 = vmul.f32 %v27398_v14, %v15280_v47  ;;  %v16005_v25 = vmul.f32 %v27395_v27, %v15280_v47  ;;  %v16215_v19 = vmul.f32 1.442695, %v16144_v11 }
0x33dc   :  { %v16209_v59 = vmul.f32 1.442695, %v16141_v9  ;;  %v16038_v40 = vmax.f32 %v15970_v16, %v16006_v39  ;;  %v16211_v33 = vmul.f32 1.442695, %v16142_v53  ;;  %23586 = vpow2.f32 %v16213_v41  ;;  %v30338_v53 = vld [vmem:[#allocation11_spill] sm:$0xff] }
0x33dd   :  { %v16083_v13 = vmul.f32 %v27406_v26, %v15283_v49  ;;  %v16037_v52 = vmax.f32 %v15969_v2, %v16005_v25  ;;  %23588 = vpow2.f32 %v16215_v19  ;;  %v16084_v36 = vmul.f32 %v27410_v24, %v15283_v49  ;;  %v15289_v25 = vpop.xlane.xlu0 %15288  ;;  %v30339_v49 = vld [vmem:[#allocation16_spill] sm:$0xff] }
0x33de   :  { %23590 = vpow2.f32 %v16209_v59  ;;  %v16081_v20 = vmul.f32 %v27406_v26, %v15280_v47  ;;  %v16082_v11 = vmul.f32 %v27410_v24, %v15280_v47  ;;  %v27434_v41 = vrot.slane %v30338_v53, %v30335_v3 }
0x33df   :  { %v16147_v55 = vsub.f32 %v16083_v13, %v16038_v40  ;;  %23592 = vpow2.f32 %v16211_v33  ;;  %v16148_v43 = vsub.f32 %v16084_v36, %v16038_v40  ;;  %v27438_v19 = vrot.slane %v30339_v49, %v30335_v3  ;;  %v15286_v33 = vpop.xlane.xlu1 %15285 }
0x33e0   :  { %v16145_v9 = vsub.f32 %v16081_v20, %v16037_v52  ;;  %v16146_v39 = vsub.f32 %v16082_v11, %v16037_v52  ;;  %v15972_v52 = vmul.f32 %v27398_v14, %v15289_v25  ;;  %v16008_v36 = vmul.f32 %v27395_v27, %v15289_v25 }
0x33e1   :  { %v16221_v2 = vmul.f32 1.442695, %v16147_v55  ;;  %v16223_v59 = vmul.f32 1.442695, %v16148_v43  ;;  %v15971_v43 = vmul.f32 %v27398_v14, %v15286_v33  ;;  %v16085_v61 = vmul.f32 %v27406_v26, %v15286_v33 }
0x33e2   :  { %v23579_v50 = vpop.eup %23578  ;;  %v16217_v40 = vmul.f32 1.442695, %v16145_v9  ;;  %v16219_v13 = vmul.f32 1.442695, %v16146_v39  ;;  %v16007_v9 = vmul.f32 %v27395_v27, %v15286_v33  ;;  %v16040_v53 = vmax.f32 %v15972_v52, %v16008_v36 }
0x33e3   :  { %v23581_v8 = vpop.eup %23580  ;;  %v16435_v47 = vmul.f32 %v23579_v50, %v27434_v41  ;;  %23594 = vpow2.f32 %v16221_v2 }
0x33e4   :  { %v23583_v4 = vpop.eup %23582  ;;  %v16332_v28 = vadd.f32 %v23581_v8, %v23579_v50  ;;  %v16436_v20 = vmul.f32 %v23581_v8, %v27438_v19  ;;  %23596 = vpow2.f32 %v16223_v59  ;;  %v16087_v8 = vmul.f32 %v27406_v26, %v15289_v25  ;;  %v15295_v59 = vpop.xlane.xlu0 %15294 }
0x33e5   :  { %v23585_v29 = vpop.eup %23584  ;;  %v16433_v55 = vmul.f32 %v23583_v4, %v27434_v41  ;;  %23598 = vpow2.f32 %v16217_v40  ;;  %v16086_v40 = vmul.f32 %v27410_v24, %v15286_v33  ;;  %v15974_v52 = vmul.f32 %v27398_v14, %v15295_v59 }
0x33e6   :  { %v16329_v16 = vadd.f32 %v23585_v29, %v23583_v4  ;;  %16333 = vadd.xlane.f32.xlu0 %v16332_v28  ;;  %v23587_v11 = vpop.eup %23586  ;;  %v16434_v28 = vmul.f32 %v23585_v29, %v27438_v19  ;;  %v16500_v50 = vadd.f32 %v16436_v20, %v16435_v47  ;;  %23600 = vpow2.f32 %v16219_v13 }
0x33e7   :  { %v23589_v3 = vpop.eup %23588  ;;  %v16039_v4 = vmax.f32 %v15971_v43, %v16007_v9  ;;  %v16088_v29 = vmul.f32 %v27410_v24, %v15289_v25  ;;  %v16151_v37 = vsub.f32 %v16087_v8, %v16040_v53  ;;  %v16010_v36 = vmul.f32 %v27395_v27, %v15295_v59  ;;  %v15292_v25 = vpop.xlane.xlu1 %15291 }
0x33e8   :  { %16330 = vadd.xlane.f32.xlu1 %v16329_v16  ;;  %v23591_v16 = vpop.eup %23590  ;;  %v16497_v39 = vadd.f32 %v16434_v28, %v16433_v55  ;;  %v16338_v2 = vadd.f32 %v23589_v3, %v23587_v11  ;;  %v16439_v20 = vmul.f32 %v23587_v11, %v27434_v41  ;;  %v16440_v43 = vmul.f32 %v23589_v3, %v27438_v19 }
0x33e9   :  { %v23593_v49 = vpop.eup %23592  ;;  %v16152_v47 = vsub.f32 %v16088_v29, %v16040_v53  ;;  %v16149_v13 = vsub.f32 %v16085_v61, %v16039_v4  ;;  %v16150_v28 = vsub.f32 %v16086_v40, %v16039_v4  ;;  %v16437_v9 = vmul.f32 %v23591_v16, %v27434_v41 }
0x33ea   :  { %16501 = vadd.xlane.f32.xlu0 %v16500_v50  ;;  %v16335_v18 = vadd.f32 %v23593_v49, %v23591_v16  ;;  %v16438_v50 = vmul.f32 %v23593_v49, %v27438_v19  ;;  %v16506_v61 = vadd.f32 %v16440_v43, %v16439_v20  ;;  %v15973_v0 = vmul.f32 %v27398_v14, %v15292_v25  ;;  %v15301_v20 = vpop.xlane.xlu0 %15300 }
0x33eb   :  { %v16225_v29 = vmul.f32 1.442695, %v16149_v13  ;;  %v16009_v11 = vmul.f32 %v27395_v27, %v15292_v25  ;;  %v16227_v4 = vmul.f32 1.442695, %v16150_v28  ;;  %v16042_v40 = vmax.f32 %v15974_v52, %v16010_v36  ;;  %v15298_v52 = vpop.xlane.xlu1 %15297 }
0x33ec   :  { %16498 = vadd.xlane.f32.xlu1 %v16497_v39  ;;  %v16229_v39 = vmul.f32 1.442695, %v16151_v37  ;;  %v16503_v8 = vadd.f32 %v16438_v50, %v16437_v9  ;;  %v16091_v49 = vmul.f32 %v27406_v26, %v15295_v59  ;;  %v16089_v28 = vmul.f32 %v27406_v26, %v15292_v25 }
0x33ed   :  { %v23595_v55 = vpop.eup %23594  ;;  %v16041_v16 = vmax.f32 %v15973_v0, %v16009_v11  ;;  %v16090_v43 = vmul.f32 %v27410_v24, %v15292_v25  ;;  %v15976_v50 = vmul.f32 %v27398_v14, %v15301_v20  ;;  %v15975_v0 = vmul.f32 %v27398_v14, %v15298_v52 }
0x33ee   :  { %16339 = vadd.xlane.f32.xlu0 %v16338_v2  ;;  %v23597_v53 = vpop.eup %23596  ;;  %23602 = vpow2.f32 %v16229_v39  ;;  %v16155_v13 = vsub.f32 %v16091_v49, %v16042_v40  ;;  %v16012_v39 = vmul.f32 %v27395_v27, %v15301_v20 }
0x33ef   :  { %v23599_v33 = vpop.eup %23598  ;;  %v16344_v3 = vadd.f32 %v23597_v53, %v23595_v55  ;;  %v16153_v9 = vsub.f32 %v16089_v28, %v16041_v16  ;;  %v16095_v28 = vmul.f32 %v27406_v26, %v15301_v20 }
0x33f0   :  { %16336 = vadd.xlane.f32.xlu1 %v16335_v18  ;;  %v16231_v18 = vmul.f32 1.442695, %v16152_v47  ;;  %v23601_v2 = vpop.eup %23600  ;;  %v16092_v47 = vmul.f32 %v27410_v24, %v15295_v59  ;;  %v16011_v59 = vmul.f32 %v27395_v27, %v15298_v52  ;;  %v16441_v11 = vmul.f32 %v23599_v33, %v27434_v41 }
0x33f1   :  { %v16341_v37 = vadd.f32 %v23601_v2, %v23599_v33  ;;  %v16233_v49 = vmul.f32 1.442695, %v16153_v9 }
0x33f2   :  { %16507 = vadd.xlane.f32.xlu0 %v16506_v61  ;;  %23604 = vpow2.f32 %v16231_v18  ;;  %v16156_v36 = vsub.f32 %v16092_v47, %v16042_v40  ;;  %v16237_v18 = vmul.f32 1.442695, %v16155_v13  ;;  %v16154_v61 = vsub.f32 %v16090_v43, %v16041_v16  ;;  %v15307_v40 = vpop.xlane.xlu0 %15306 }
0x33f3   :  { %23606 = vpow2.f32 %v16225_v29  ;;  %v16444_v29 = vmul.f32 %v23597_v53, %v27438_v19  ;;  %v16442_v47 = vmul.f32 %v23601_v2, %v27438_v19  ;;  %v16096_v16 = vmul.f32 %v27410_v24, %v15301_v20 }
0x33f4   :  { %16504 = vadd.xlane.f32.xlu1 %v16503_v8  ;;  %23608 = vpow2.f32 %v16227_v4  ;;  %v16443_v8 = vmul.f32 %v23595_v55, %v27434_v41  ;;  %v16239_v4 = vmul.f32 1.442695, %v16156_v36  ;;  %v16043_v43 = vmax.f32 %v15975_v0, %v16011_v59  ;;  %v15304_v55 = vpop.xlane.xlu1 %15303 }
0x33f5   :  { %23610 = vpow2.f32 %v16237_v18  ;;  %v16235_v53 = vmul.f32 1.442695, %v16154_v61  ;;  %v15978_v33 = vmul.f32 %v27398_v14, %v15307_v40  ;;  %v16014_v36 = vmul.f32 %v27395_v27, %v15307_v40 }
0x33f6   :  { %16345 = vadd.xlane.f32.xlu0 %v16344_v3  ;;  %v16044_v3 = vmax.f32 %v15976_v50, %v16012_v39  ;;  %v16509_v9 = vadd.f32 %v16442_v47, %v16441_v11  ;;  %23612 = vpow2.f32 %v16239_v4  ;;  %v16093_v2 = vmul.f32 %v27406_v26, %v15298_v52  ;;  %v15313_v35 = vpop.xlane.xlu0 %15312 }
0x33f7   :  { %v16094_v39 = vmul.f32 %v27410_v24, %v15298_v52  ;;  %23614 = vpow2.f32 %v16233_v49  ;;  %v15977_v61 = vmul.f32 %v27398_v14, %v15304_v55  ;;  %v16046_v11 = vmax.f32 %v15978_v33, %v16014_v36 }
0x33f8   :  { %16342 = vadd.xlane.f32.xlu1 %v16341_v37  ;;  %v23603_v25 = vpop.eup %23602  ;;  %v16512_v37 = vadd.f32 %v16444_v29, %v16443_v8  ;;  %v16159_v18 = vsub.f32 %v16095_v28, %v16044_v3  ;;  %v16160_v8 = vsub.f32 %v16096_v16, %v16044_v3  ;;  %v16157_v0 = vsub.f32 %v16093_v2, %v16043_v43 }
0x33f9   :  { %v16158_v59 = vsub.f32 %v16094_v39, %v16043_v43  ;;  %v16013_v29 = vmul.f32 %v27395_v27, %v15304_v55  ;;  %23616 = vpow2.f32 %v16235_v53  ;;  %v16099_v52 = vmul.f32 %v27406_v26, %v15307_v40 }
0x33fa   :  { %16513 = vadd.xlane.f32.xlu0 %v16512_v37  ;;  %v15310_v37 = vpop.xlane.xlu1 %15309  ;;  %v16245_v47 = vmul.f32 1.442695, %v16159_v18  ;;  %v16247_v42 = vmul.f32 1.442695, %v16160_v8  ;;  %v16100_v49 = vmul.f32 %v27410_v24, %v15307_v40  ;;  %v16241_v3 = vmul.f32 1.442695, %v16157_v0  ;;  %v15319_v18 = vpop.xlane.xlu0 %15318 }
0x33fb   :  { %v16243_v28 = vmul.f32 1.442695, %v16158_v59  ;;  %v16045_v16 = vmax.f32 %v15977_v61, %v16013_v29  ;;  %v16097_v43 = vmul.f32 %v27406_v26, %v15304_v55  ;;  %v15980_v2 = vmul.f32 %v27398_v14, %v15313_v35 }
0x33fc   :  { %v23605_v13 = vpop.eup %23604  ;;  %16510 = vadd.xlane.f32.xlu1 %v16509_v9  ;;  %v16163_v9 = vsub.f32 %v16099_v52, %v16046_v11  ;;  %v16016_v53 = vmul.f32 %v27395_v27, %v15313_v35  ;;  %v15979_v33 = vmul.f32 %v27398_v14, %v15310_v37  ;;  %v16015_v39 = vmul.f32 %v27395_v27, %v15310_v37 }
0x33fd   :  { %v23607_v15 = vpop.eup %23606  ;;  %v16350_v20 = vadd.f32 %v23605_v13, %v23603_v25  ;;  %v16447_v8 = vmul.f32 %v23603_v25, %v27434_v41  ;;  %v16448_v40 = vmul.f32 %v23605_v13, %v27438_v19  ;;  %23618 = vpow2.f32 %v16245_v47 }
0x33fe   :  { %v23609_v50 = vpop.eup %23608  ;;  %v16164_v0 = vsub.f32 %v16100_v49, %v16046_v11  ;;  %v16098_v59 = vmul.f32 %v27410_v24, %v15304_v55  ;;  %23620 = vpow2.f32 %v16247_v42  ;;  %v16161_v29 = vsub.f32 %v16097_v43, %v16045_v16  ;;  %v15316_v43 = vpop.xlane.xlu0 %15315 }
0x33ff   :  { %16351 = vadd.xlane.f32.xlu0 %v16350_v20  ;;  %v16347_v4 = vadd.f32 %v23609_v50, %v23607_v15  ;;  %v23611_v36 = vpop.eup %23610  ;;  %v16445_v20 = vmul.f32 %v23607_v15, %v27434_v41  ;;  %v16446_v52 = vmul.f32 %v23609_v50, %v27438_v19  ;;  %23622 = vpow2.f32 %v16241_v3 }
0x3400   :  { %v23613_v61 = vpop.eup %23612  ;;  %v16253_v44 = vmul.f32 1.442695, %v16163_v9  ;;  %v16162_v62 = vsub.f32 %v16098_v59, %v16045_v16  ;;  %23624 = vpow2.f32 %v16243_v28  ;;  %v16048_v25 = vmax.f32 %v15980_v2, %v16016_v53 }
0x3401   :  { %16348 = vadd.xlane.f32.xlu1 %v16347_v4  ;;  %v16518_v4 = vadd.f32 %v16448_v40, %v16447_v8  ;;  %v23615_v45 = vpop.eup %23614  ;;  %v16047_v46 = vmax.f32 %v15979_v33, %v16015_v39  ;;  %v16515_v13 = vadd.f32 %v16446_v52, %v16445_v20  ;;  %v16255_v47 = vmul.f32 1.442695, %v16164_v0 }
0x3402   :  { %v16103_v11 = vmul.f32 %v27406_v26, %v15313_v35  ;;  %v15982_v55 = vmul.f32 %v27398_v14, %v15319_v18  ;;  %v16018_v42 = vmul.f32 %v27395_v27, %v15319_v18  ;;  %v16249_v49 = vmul.f32 1.442695, %v16161_v29 }
0x3403   :  { %16519 = vadd.xlane.f32.xlu0 %v16518_v4  ;;  %v23617_v15 = vpop.eup %23616  ;;  %v16104_v50 = vmul.f32 %v27410_v24, %v15313_v35  ;;  %v16101_v3 = vmul.f32 %v27406_v26, %v15310_v37  ;;  %v16356_v28 = vadd.f32 %v23613_v61, %v23611_v36  ;;  %23626 = vpow2.f32 %v16253_v44  ;;  %v15322_v44 = vpop.xlane.xlu1 %15321 }
0x3404   :  { %v16251_v16 = vmul.f32 1.442695, %v16162_v62  ;;  %v16102_v9 = vmul.f32 %v27410_v24, %v15310_v37  ;;  %v16167_v2 = vsub.f32 %v16103_v11, %v16048_v25  ;;  %v16353_v39 = vadd.f32 %v23617_v15, %v23615_v45 }
0x3405   :  { %16516 = vadd.xlane.f32.xlu1 %v16515_v13  ;;  %v16168_v53 = vsub.f32 %v16104_v50, %v16048_v25  ;;  %v16165_v33 = vsub.f32 %v16101_v3, %v16047_v46  ;;  %23628 = vpow2.f32 %v16255_v47  ;;  %v16050_v8 = vmax.f32 %v15982_v55, %v16018_v42  ;;  %v15325_v25 = vpop.xlane.xlu0 %15324 }
0x3406   :  { %23630 = vpow2.f32 %v16249_v49  ;;  %v16166_v40 = vsub.f32 %v16102_v9, %v16047_v46  ;;  %v15981_v35 = vmul.f32 %v27398_v14, %v15316_v43  ;;  %v16017_v20 = vmul.f32 %v27395_v27, %v15316_v43 }
0x3407   :  { %16357 = vadd.xlane.f32.xlu0 %v16356_v28  ;;  %v23619_v0 = vpop.eup %23618  ;;  %23632 = vpow2.f32 %v16251_v16  ;;  %v16107_v62 = vmul.f32 %v27406_v26, %v15319_v18  ;;  %v16261_v59 = vmul.f32 1.442695, %v16167_v2  ;;  %v16263_v29 = vmul.f32 1.442695, %v16168_v53 }
0x3408   :  { %v23621_v37 = vpop.eup %23620  ;;  %v16257_v4 = vmul.f32 1.442695, %v16165_v33  ;;  %v16108_v52 = vmul.f32 %v27410_v24, %v15319_v18  ;;  %v16451_v46 = vmul.f32 %v23611_v36, %v27434_v41  ;;  %v16452_v11 = vmul.f32 %v23613_v61, %v27438_v19 }
0x3409   :  { %16354 = vadd.xlane.f32.xlu1 %v16353_v39  ;;  %v23623_v13 = vpop.eup %23622  ;;  %v16171_v47 = vsub.f32 %v16107_v62, %v16050_v8  ;;  %v16449_v55 = vmul.f32 %v23615_v45, %v27434_v41  ;;  %v16259_v49 = vmul.f32 1.442695, %v16166_v40  ;;  %v16049_v50 = vmax.f32 %v15981_v35, %v16017_v20  ;;  %v15328_v39 = vpop.xlane.xlu1 %15327 }
0x340a   :  { %v23625_v42 = vpop.eup %23624  ;;  %v15983_v3 = vmul.f32 %v27398_v14, %v15322_v44  ;;  %v16019_v28 = vmul.f32 %v27395_v27, %v15322_v44  ;;  %v15984_v16 = vmul.f32 %v27398_v14, %v15325_v25  ;;  %v16020_v18 = vmul.f32 %v27395_v27, %v15325_v25 }
0x340b   :  { %v16524_v9 = vadd.f32 %v16452_v11, %v16451_v46  ;;  %v16450_v2 = vmul.f32 %v23617_v15, %v27438_v19  ;;  %23634 = vpow2.f32 %v16261_v59  ;;  %v16105_v36 = vmul.f32 %v27406_v26, %v15316_v43 }
0x340c   :  { %v16106_v61 = vmul.f32 %v27410_v24, %v15316_v43  ;;  %23636 = vpow2.f32 %v16263_v29  ;;  %v16172_v53 = vsub.f32 %v16108_v52, %v16050_v8  ;;  %v16269_v33 = vmul.f32 1.442695, %v16171_v47 }
0x340d   :  { %v27512_v45 = vpop.eup %23626  ;;  %16525 = vadd.xlane.f32.xlu0 %v16524_v9  ;;  %v16521_v40 = vadd.f32 %v16450_v2, %v16449_v55  ;;  %23638 = vpow2.f32 %v16257_v4  ;;  %v16169_v35 = vsub.f32 %v16105_v36, %v16049_v50  ;;  %v16051_v62 = vmax.f32 %v15983_v3, %v16019_v28  ;;  %v15331_v55 = vpop.xlane.xlu0 %15330 }
0x340e   :  { %v16170_v20 = vsub.f32 %v16106_v61, %v16049_v50  ;;  %23640 = vpow2.f32 %v16259_v49  ;;  %v16052_v15 = vmax.f32 %v15984_v16, %v16020_v18  ;;  %v16362_v59 = vadd.f32 %v23621_v37, %v23619_v0 }
0x340f   :  { %v23629_v46 = vpop.eup %23628  ;;  %16522 = vadd.xlane.f32.xlu1 %v16521_v40  ;;  %v16109_v43 = vmul.f32 %v27406_v26, %v15322_v44  ;;  %v16110_v5 = vmul.f32 %v27410_v24, %v15322_v44  ;;  %v15985_v8 = vmul.f32 %v27398_v14, %v15328_v39  ;;  %v16021_v29 = vmul.f32 %v27395_v27, %v15328_v39 }
0x3410   :  { %v23631_v11 = vpop.eup %23630  ;;  %23642 = vpow2.f32 %v16269_v33  ;;  %v16271_v4 = vmul.f32 1.442695, %v16172_v53  ;;  %v16111_v47 = vmul.f32 %v27406_v26, %v15325_v25  ;;  %v16359_v49 = vadd.f32 %v23625_v42, %v23623_v13 }
0x3411   :  { %v23633_v52 = vpop.eup %23632  ;;  %16363 = vadd.xlane.f32.xlu0 %v16362_v59  ;;  %v16265_v50 = vmul.f32 1.442695, %v16169_v35  ;;  %v16267_v3 = vmul.f32 1.442695, %v16170_v20  ;;  %v16173_v28 = vsub.f32 %v16109_v43, %v16051_v62  ;;  %v16174_v16 = vsub.f32 %v16110_v5, %v16051_v62 }
0x3412   :  { %v16175_v18 = vsub.f32 %v16111_v47, %v16052_v15  ;;  %v16455_v44 = vmul.f32 %v23619_v0, %v27434_v41  ;;  %v16456_v9 = vmul.f32 %v23621_v37, %v27438_v19  ;;  %v16453_v2 = vmul.f32 %v23623_v13, %v27434_v41  ;;  %v15334_v13 = vpop.xlane.xlu1 %15333 }
0x3413   :  { %16360 = vadd.xlane.f32.xlu1 %v16359_v49  ;;  %v16053_v36 = vmax.f32 %v15985_v8, %v16021_v29  ;;  %v15986_v61 = vmul.f32 %v27398_v14, %v15331_v55  ;;  %v16022_v53 = vmul.f32 %v27395_v27, %v15331_v55  ;;  %v16454_v33 = vmul.f32 %v23625_v42, %v27438_v19 }
0x3414   :  { %23644 = vpow2.f32 %v16271_v4  ;;  %v16112_v40 = vmul.f32 %v27410_v24, %v15325_v25  ;;  %v16113_v5 = vmul.f32 %v27406_v26, %v15328_v39  ;;  %v16530_v35 = vadd.f32 %v16456_v9, %v16455_v44 }
0x3415   :  { %v27527_v20 = vpop.eup %23634  ;;  %23646 = vpow2.f32 %v16265_v50  ;;  %v16273_v0 = vmul.f32 1.442695, %v16173_v28  ;;  %v16114_v37 = vmul.f32 %v27410_v24, %v15328_v39  ;;  %v16527_v62 = vadd.f32 %v16454_v33, %v16453_v2 }
0x3416   :  { %v27530_v59 = vpop.eup %23636  ;;  %23648 = vpow2.f32 %v16267_v3  ;;  %v16275_v43 = vmul.f32 1.442695, %v16174_v16  ;;  %v16176_v8 = vsub.f32 %v16112_v40, %v16052_v15  ;;  %v16277_v42 = vmul.f32 1.442695, %v16175_v18  ;;  %16531 = vadd.xlane.f32.xlu0 %v16530_v35 }
0x3417   :  { %v27532_v29 = vpop.eup %23638  ;;  %v16177_v25 = vsub.f32 %v16113_v5, %v16053_v36  ;;  %v16178_v4 = vsub.f32 %v16114_v37, %v16053_v36  ;;  %v16054_v47 = vmax.f32 %v15986_v61, %v16022_v53  ;;  %v16115_v49 = vmul.f32 %v27406_v26, %v15331_v55  ;;  %16528 = vadd.xlane.f32.xlu1 %v16527_v62  ;;  %v15337_v61 = vpop.xlane.xlu0 %15336 }
0x3418   :  { %v27535_v50 = vpop.eup %23640  ;;  %v15987_v39 = vmul.f32 %v27398_v14, %v15334_v13  ;;  %v16368_v28 = vadd.f32 %v23629_v46, %v27512_v45  ;;  %v16459_v3 = vmul.f32 %v27512_v45, %v27434_v41  ;;  %v16460_v15 = vmul.f32 %v23629_v46, %v27438_v19 }
0x3419   :  { %v16023_v16 = vmul.f32 %v27395_v27, %v15334_v13  ;;  %v16365_v18 = vadd.f32 %v23633_v52, %v23631_v11  ;;  %v16457_v44 = vmul.f32 %v23631_v11, %v27434_v41  ;;  %v16458_v9 = vmul.f32 %v23633_v52, %v27438_v19 }
0x341a   :  { %v23643_v2 = vpop.eup %23642  ;;  %v16279_v36 = vmul.f32 1.442695, %v16176_v8  ;;  %16369 = vadd.xlane.f32.xlu0 %v16368_v28  ;;  %23650 = vpow2.f32 %v16273_v0  ;;  %v16281_v53 = vmul.f32 1.442695, %v16177_v25  ;;  %v16179_v33 = vsub.f32 %v16115_v49, %v16054_v47  ;;  %v15340_v25 = vpop.xlane.xlu1 %15339 }
0x341b   :  { %16366 = vadd.xlane.f32.xlu1 %v16365_v18  ;;  %23652 = vpow2.f32 %v16275_v43  ;;  %v16283_v40 = vmul.f32 1.442695, %v16178_v4  ;;  %v16536_v45 = vadd.f32 %v16460_v15, %v16459_v3  ;;  %v16116_v46 = vmul.f32 %v27410_v24, %v15331_v55  ;;  %v15343_v4 = vpop.xlane.xlu0 %15342 }
0x341c   :  { %23654 = vpow2.f32 %v16277_v42  ;;  %v16055_v5 = vmax.f32 %v15987_v39, %v16023_v16  ;;  %v16533_v35 = vadd.f32 %v16458_v9, %v16457_v44  ;;  %v15988_v11 = vmul.f32 %v27398_v14, %v15337_v61 }
0x341d   :  { %23656 = vpow2.f32 %v16279_v36  ;;  %v16024_v52 = vmul.f32 %v27395_v27, %v15337_v61  ;;  %v16180_v0 = vsub.f32 %v16116_v46, %v16054_v47  ;;  %v16285_v8 = vmul.f32 1.442695, %v16179_v33 }
0x341e   :  { %v23645_v37 = vpop.eup %23644  ;;  %16537 = vadd.xlane.f32.xlu0 %v16536_v45  ;;  %23658 = vpow2.f32 %v16281_v53  ;;  %v16117_v43 = vmul.f32 %v27406_v26, %v15334_v13  ;;  %v16118_v55 = vmul.f32 %v27410_v24, %v15334_v13  ;;  %v16374_v49 = vadd.f32 %v27530_v59, %v27527_v20 }
0x341f   :  { %v23647_v62 = vpop.eup %23646  ;;  %16534 = vadd.xlane.f32.xlu1 %v16533_v35  ;;  %23660 = vpow2.f32 %v16283_v40  ;;  %v16119_v28 = vmul.f32 %v27406_v26, %v15337_v61  ;;  %v16120_v3 = vmul.f32 %v27410_v24, %v15337_v61  ;;  %v16371_v47 = vadd.f32 %v27535_v50, %v27532_v29 }
0x3420   :  { %v23649_v42 = vpop.eup %23648  ;;  %v16181_v39 = vsub.f32 %v16117_v43, %v16055_v5  ;;  %v16182_v15 = vsub.f32 %v16118_v55, %v16055_v5  ;;  %v16056_v16 = vmax.f32 %v15988_v11, %v16024_v52  ;;  %v15989_v18 = vmul.f32 %v27398_v14, %v15340_v25 }
0x3421   :  { %v16025_v44 = vmul.f32 %v27395_v27, %v15340_v25  ;;  %23662 = vpow2.f32 %v16285_v8  ;;  %v16287_v13 = vmul.f32 1.442695, %v16180_v0  ;;  %v16121_v9 = vmul.f32 %v27406_v26, %v15340_v25 }
0x3422   :  { %16375 = vadd.xlane.f32.xlu0 %v16374_v49  ;;  %v15990_v36 = vmul.f32 %v27398_v14, %v15343_v4  ;;  %v16026_v53 = vmul.f32 %v27395_v27, %v15343_v4  ;;  %v16380_v61 = vadd.f32 %v23645_v37, %v23643_v2  ;;  %v16467_v33 = vmul.f32 %v23643_v2, %v27434_v41  ;;  %v15346_v49 = vpop.xlane.xlu1 %15345 }
0x3423   :  { %16372 = vadd.xlane.f32.xlu1 %v16371_v47  ;;  %v16468_v40 = vmul.f32 %v23645_v37, %v27438_v19  ;;  %v16289_v46 = vmul.f32 1.442695, %v16181_v39  ;;  %v16377_v5 = vadd.f32 %v23649_v42, %v23647_v62  ;;  %v16465_v35 = vmul.f32 %v23647_v62, %v27434_v41 }
0x3424   :  { %v23651_v45 = vpop.eup %23650  ;;  %v16466_v11 = vmul.f32 %v23649_v42, %v27438_v19  ;;  %v16291_v0 = vmul.f32 1.442695, %v16182_v15  ;;  %v16183_v8 = vsub.f32 %v16119_v28, %v16056_v16  ;;  %v16057_v43 = vmax.f32 %v15989_v18, %v16025_v44 }
0x3425   :  { %v23653_v52 = vpop.eup %23652  ;;  %v16122_v55 = vmul.f32 %v27410_v24, %v15340_v25  ;;  %23664 = vpow2.f32 %v16287_v13  ;;  %v16184_v2 = vsub.f32 %v16120_v3, %v16056_v16  ;;  %v16463_v37 = vmul.f32 %v27527_v20, %v27434_v41 }
0x3426   :  { %16381 = vadd.xlane.f32.xlu0 %v16380_v61  ;;  %v23655_v47 = vpop.eup %23654  ;;  %v16464_v62 = vmul.f32 %v27530_v59, %v27438_v19  ;;  %v16058_v42 = vmax.f32 %v15990_v36, %v16026_v53  ;;  %v16548_v63 = vadd.f32 %v16468_v40, %v16467_v33  ;;  %v16461_v28 = vmul.f32 %v27532_v29, %v27434_v41  ;;  %v15349_v33 = vpop.xlane.xlu0 %15348 }
0x3427   :  { %16378 = vadd.xlane.f32.xlu1 %v16377_v5  ;;  %v23657_v39 = vpop.eup %23656  ;;  %v16462_v25 = vmul.f32 %v27535_v50, %v27438_v19  ;;  %v15991_v18 = vmul.f32 %v27398_v14, %v15346_v49  ;;  %v16027_v3 = vmul.f32 %v27395_v27, %v15346_v49  ;;  %v16545_v16 = vadd.f32 %v16466_v11, %v16465_v35 }
0x3428   :  { %v23659_v15 = vpop.eup %23658  ;;  %v27576_v44 = vadd.f32 %v16464_v62, %v16463_v37  ;;  %v16293_v13 = vmul.f32 1.442695, %v16183_v8  ;;  %v16185_v59 = vsub.f32 %v16121_v9, %v16057_v43  ;;  %v16123_v36 = vmul.f32 %v27406_v26, %v15343_v4 }
0x3429   :  { %v23661_v20 = vpop.eup %23660  ;;  %v27579_v53 = vadd.f32 %v16462_v25, %v16461_v28  ;;  %23666 = vpow2.f32 %v16289_v46  ;;  %v16295_v29 = vmul.f32 1.442695, %v16184_v2  ;;  %v16186_v61 = vsub.f32 %v16122_v55, %v16057_v43 }
0x342a   :  { %16549 = vadd.xlane.f32.xlu0 %v16548_v63  ;;  %v16124_v50 = vmul.f32 %v27410_v24, %v15343_v4  ;;  %v16187_v40 = vsub.f32 %v16123_v36, %v16058_v42  ;;  %v16386_v5 = vadd.f32 %v23657_v39, %v23655_v47  ;;  %v16471_v35 = vmul.f32 %v23655_v47, %v27434_v41 }
0x342b   :  { %16546 = vadd.xlane.f32.xlu1 %v16545_v16  ;;  %v16472_v11 = vmul.f32 %v23657_v39, %v27438_v19  ;;  %v23663_v8 = vpop.eup %23662  ;;  %v16059_v9 = vmax.f32 %v15991_v18, %v16027_v3  ;;  %v16383_v37 = vadd.f32 %v23653_v52, %v23651_v45  ;;  %v16469_v63 = vmul.f32 %v23651_v45, %v27434_v41  ;;  %v15352_v39 = vpop.xlane.xlu1 %15351 }
0x342c   :  { %v16470_v62 = vmul.f32 %v23653_v52, %v27438_v19  ;;  %23668 = vpow2.f32 %v16293_v13  ;;  %v16297_v46 = vmul.f32 1.442695, %v16185_v59  ;;  %v15992_v43 = vmul.f32 %v27398_v14, %v15349_v33 }
0x342d   :  { %v16028_v4 = vmul.f32 %v27395_v27, %v15349_v33  ;;  %23670 = vpow2.f32 %v16295_v29  ;;  %v16188_v55 = vsub.f32 %v16124_v50, %v16058_v42  ;;  %v16125_v47 = vmul.f32 %v27406_v26, %v15346_v49  ;;  %v15355_v50 = vpop.xlane.xlu0 %15354 }
0x342e   :  { %16387 = vadd.xlane.f32.xlu0 %v16386_v5  ;;  %23672 = vpow2.f32 %v16291_v0  ;;  %v16301_v2 = vmul.f32 1.442695, %v16187_v40  ;;  %v16554_v28 = vadd.f32 %v16472_v11, %v16471_v35  ;;  %v16299_v45 = vmul.f32 1.442695, %v16186_v61 }
0x342f   :  { %16384 = vadd.xlane.f32.xlu1 %v16383_v37  ;;  %v23665_v25 = vpop.eup %23664  ;;  %v16126_v52 = vmul.f32 %v27410_v24, %v15346_v49  ;;  %v16189_v18 = vsub.f32 %v16125_v47, %v16059_v9  ;;  %v16551_v3 = vadd.f32 %v16470_v62, %v16469_v63  ;;  %23674 = vpow2.f32 %v16297_v46 }
0x3430   :  { %v16060_v16 = vmax.f32 %v15992_v43, %v16028_v4  ;;  %v16127_v13 = vmul.f32 %v27406_v26, %v15349_v33  ;;  %v16128_v59 = vmul.f32 %v27410_v24, %v15349_v33  ;;  %v16303_v42 = vmul.f32 1.442695, %v16188_v55 }
0x3431   :  { %v16190_v36 = vsub.f32 %v16126_v52, %v16059_v9  ;;  %v15993_v0 = vmul.f32 %v27398_v14, %v15352_v39  ;;  %v16029_v29 = vmul.f32 %v27395_v27, %v15352_v39  ;;  %23676 = vpow2.f32 %v16301_v2 }
0x3432   :  { %16555 = vadd.xlane.f32.xlu0 %v16554_v28  ;;  %v16392_v61 = vadd.f32 %v23665_v25, %v23663_v8  ;;  %v16475_v49 = vmul.f32 %v23663_v8, %v27434_v41  ;;  %v16476_v40 = vmul.f32 %v23665_v25, %v27438_v19  ;;  %v16305_v35 = vmul.f32 1.442695, %v16189_v18 }
0x3433   :  { %16552 = vadd.xlane.f32.xlu1 %v16551_v3  ;;  %v23667_v5 = vpop.eup %23666  ;;  %v16389_v11 = vadd.f32 %v23661_v20, %v23659_v15  ;;  %v16473_v33 = vmul.f32 %v23659_v15, %v27434_v41  ;;  %v16474_v37 = vmul.f32 %v23661_v20, %v27438_v19  ;;  %v16191_v9 = vsub.f32 %v16127_v13, %v16060_v16  ;;  %v15358_v20 = vpop.xlane.xlu1 %15357 }
0x3434   :  { %v16192_v63 = vsub.f32 %v16128_v59, %v16060_v16  ;;  %v15994_v62 = vmul.f32 %v27398_v14, %v15355_v50  ;;  %v16030_v46 = vmul.f32 %v27395_v27, %v15355_v50  ;;  %23678 = vpow2.f32 %v16303_v42  ;;  %v15361_v42 = vpop.xlane.xlu0 %15360 }
0x3435   :  { %v16061_v43 = vmax.f32 %v15993_v0, %v16029_v29  ;;  %23680 = vpow2.f32 %v16299_v45  ;;  %v16560_v4 = vadd.f32 %v16476_v40, %v16475_v49  ;;  %v16307_v47 = vmul.f32 1.442695, %v16190_v36 }
0x3436   :  { %16393 = vadd.xlane.f32.xlu0 %v16392_v61  ;;  %v23669_v8 = vpop.eup %23668  ;;  %v16129_v2 = vmul.f32 %v27406_v26, %v15352_v39  ;;  %v16130_v15 = vmul.f32 %v27410_v24, %v15352_v39  ;;  %v16557_v28 = vadd.f32 %v16474_v37, %v16473_v33  ;;  %23682 = vpow2.f32 %v16305_v35 }
0x3437   :  { %16390 = vadd.xlane.f32.xlu1 %v16389_v11  ;;  %v23671_v55 = vpop.eup %23670  ;;  %v16309_v52 = vmul.f32 1.442695, %v16191_v9  ;;  %v16311_v18 = vmul.f32 1.442695, %v16192_v63  ;;  %v16062_v3 = vmax.f32 %v15994_v62, %v16030_v46  ;;  %v16131_v59 = vmul.f32 %v27406_v26, %v15355_v50 }
0x3438   :  { %v23673_v25 = vpop.eup %23672  ;;  %v16193_v16 = vsub.f32 %v16129_v2, %v16061_v43  ;;  %v16194_v13 = vsub.f32 %v16130_v15, %v16061_v43  ;;  %v16132_v45 = vmul.f32 %v27410_v24, %v15355_v50  ;;  %v15995_v0 = vmul.f32 %v27398_v14, %v15358_v20 }
0x3439   :  { %v23675_v36 = vpop.eup %23674  ;;  %v16398_v39 = vadd.f32 %v23671_v55, %v23669_v8  ;;  %v16479_v29 = vmul.f32 %v23669_v8, %v27434_v41  ;;  %v16480_v61 = vmul.f32 %v23671_v55, %v27438_v19  ;;  %v16031_v49 = vmul.f32 %v27395_v27, %v15358_v20 }
0x343a   :  { %16561 = vadd.xlane.f32.xlu0 %v16560_v4  ;;  %v16395_v40 = vadd.f32 %v23673_v25, %v23667_v5  ;;  %v16477_v35 = vmul.f32 %v23667_v5, %v27434_v41  ;;  %v16478_v11 = vmul.f32 %v23673_v25, %v27438_v19  ;;  %23684 = vpow2.f32 %v16309_v52 }
0x343b   :  { %16558 = vadd.xlane.f32.xlu1 %v16557_v28  ;;  %v23677_v33 = vpop.eup %23676  ;;  %v16195_v50 = vsub.f32 %v16131_v59, %v16062_v3  ;;  %v15996_v37 = vmul.f32 %v27398_v14, %v15361_v42  ;;  %v16032_v9 = vmul.f32 %v27395_v27, %v15361_v42  ;;  %23686 = vpow2.f32 %v16311_v18 }
0x343c   :  { %v16313_v63 = vmul.f32 1.442695, %v16193_v16  ;;  %v16196_v62 = vsub.f32 %v16132_v45, %v16062_v3  ;;  %23688 = vpow2.f32 %v16307_v47  ;;  %v16566_v46 = vadd.f32 %v16480_v61, %v16479_v29 }
0x343d   :  { %v16063_v8 = vmax.f32 %v15995_v0, %v16031_v49  ;;  %v16563_v4 = vadd.f32 %v16478_v11, %v16477_v35  ;;  %v16315_v55 = vmul.f32 1.442695, %v16194_v13  ;;  %v16317_v2 = vmul.f32 1.442695, %v16195_v50 }
0x343e   :  { %16399 = vadd.xlane.f32.xlu0 %v16398_v39  ;;  %v23679_v43 = vpop.eup %23678  ;;  %v16064_v15 = vmax.f32 %v15996_v37, %v16032_v9  ;;  %23690 = vpow2.f32 %v16313_v63  ;;  %v16319_v28 = vmul.f32 1.442695, %v16196_v62  ;;  %v16133_v14 = vmul.f32 %v27406_v26, %v15358_v20 }
0x343f   :  { %16396 = vadd.xlane.f32.xlu1 %v16395_v40  ;;  %v23681_v5 = vpop.eup %23680  ;;  %v16135_v27 = vmul.f32 %v27406_v26, %v15361_v42  ;;  %v16136_v52 = vmul.f32 %v27410_v24, %v15361_v42  ;;  %v16404_v47 = vadd.f32 %v23679_v43, %v23677_v33  ;;  %v16483_v18 = vmul.f32 %v23677_v33, %v27434_v41 }
0x3440   :  { %v23683_v25 = vpop.eup %23682  ;;  %v16484_v3 = vmul.f32 %v23679_v43, %v27438_v19  ;;  %v16197_v16 = vsub.f32 %v16133_v14, %v16063_v8  ;;  %v16401_v13 = vadd.f32 %v23681_v5, %v23675_v36  ;;  %v16481_v59 = vmul.f32 %v23675_v36, %v27434_v41 }
0x3441   :  { %v16482_v45 = vmul.f32 %v23681_v5, %v27438_v19  ;;  %23692 = vpow2.f32 %v16317_v2  ;;  %v16134_v0 = vmul.f32 %v27410_v24, %v15358_v20  ;;  %v16199_v39 = vsub.f32 %v16135_v27, %v16064_v15 }
0x3442   :  { %16567 = vadd.xlane.f32.xlu0 %v16566_v46  ;;  %23694 = vpow2.f32 %v16319_v28  ;;  %v16200_v26 = vsub.f32 %v16136_v52, %v16064_v15  ;;  %v16572_v61 = vadd.f32 %v16484_v3, %v16483_v18  ;;  %v16321_v40 = vmul.f32 1.442695, %v16197_v16 }
0x3443   :  { %16564 = vadd.xlane.f32.xlu1 %v16563_v4  ;;  %23696 = vpow2.f32 %v16315_v55  ;;  %v16198_v29 = vsub.f32 %v16134_v0, %v16063_v8  ;;  %v16569_v35 = vadd.f32 %v16482_v45, %v16481_v59  ;;  %v16325_v33 = vmul.f32 1.442695, %v16199_v39 }
0x3444   :  { %v23685_v42 = vpop.eup %23684  ;;  %v16327_v36 = vmul.f32 1.442695, %v16200_v26  ;;  %23698 = vpow2.f32 %v16321_v40  ;;  %v16485_v62 = vmul.f32 %v23683_v25, %v27434_v41 }
0x3445   :  { %v23687_v49 = vpop.eup %23686  ;;  %v16323_v50 = vmul.f32 1.442695, %v16198_v29  ;;  %v16487_v24 = vmul.f32 %v23685_v42, %v27434_v41  ;;  %23700 = vpow2.f32 %v16325_v33 }
0x3446   :  { %16405 = vadd.xlane.f32.xlu0 %v16404_v47  ;;  %v23689_v11 = vpop.eup %23688  ;;  %v16410_v37 = vadd.f32 %v23687_v49, %v23685_v42  ;;  %v16488_v20 = vmul.f32 %v23687_v49, %v27438_v19  ;;  %23702 = vpow2.f32 %v16327_v36 }
0x3447   :  { %16402 = vadd.xlane.f32.xlu1 %v16401_v13  ;;  %v16407_v63 = vadd.f32 %v23689_v11, %v23683_v25  ;;  %v16486_v46 = vmul.f32 %v23689_v11, %v27438_v19  ;;  %23704 = vpow2.f32 %v16323_v50  ;;  %v15186_v11 = vld [vmem:[%s29550_s15 + $0x180] sm:$0xff]  ;;  %v30340_v50 = vld [vmem:[#allocation108_spill] sm:$0xff] }
0x3448   :  { %v23691_v9 = vpop.eup %23690  ;;  %v16578_v8 = vadd.f32 %v16488_v20, %v16487_v24 }
0x3449   :  { %v16575_v5 = vadd.f32 %v16486_v46, %v16485_v62  ;;  %v16489_v27 = vmul.f32 %v23691_v9, %v27434_v41  ;;  %v30344_v62 = vld [vmem:[#allocation111_spill] sm:$0xff] }
0x344a   :  { %16573 = vadd.xlane.f32.xlu0 %v16572_v61 }
0x344b   :  { %16570 = vadd.xlane.f32.xlu1 %v16569_v35  ;;  %v23693_v43 = vpop.eup %23692  ;;  %v15187_v35 = vld [vmem:[%s29550_s15 + $0x188] sm:$0xff] }
0x344c   :  { %v23695_v4 = vpop.eup %23694  ;;  %v16491_v15 = vmul.f32 %v23693_v43, %v27434_v41 }
0x344d   :  { %v23697_v55 = vpop.eup %23696  ;;  %v16416_v2 = vadd.f32 %v23695_v4, %v23693_v43  ;;  %v16492_v28 = vmul.f32 %v23695_v4, %v27438_v19 }
0x344e   :  { %16411 = vadd.xlane.f32.xlu0 %v16410_v37  ;;  %v16413_v14 = vadd.f32 %v23697_v55, %v23691_v9  ;;  %v16490_v25 = vmul.f32 %v23697_v55, %v27438_v19  ;;  %v23699_v52 = vpop.eup %23698  ;;  %v30341_v37 = vld [vmem:[#allocation109_spill] sm:$0xff]  ;;  %v23962_v55 = vld [vmem:[%s29550_s15 + $0x8] sm:$0xff] }
0x344f   :  { %16408 = vadd.xlane.f32.xlu1 %v16407_v63  ;;  %v23701_v47 = vpop.eup %23700  ;;  %v16584_v18 = vadd.f32 %v16492_v28, %v16491_v15  ;;  %v16493_v29 = vmul.f32 %v23699_v52, %v27434_v41  ;;  %v30342_v24 = vmin.f32 %v30340_v50, %v30341_v37  ;;  %v15170_v9 = vld [vmem:[%s29550_s15 + $0x100] sm:$0xff]  ;;  %v15189_v28 = vld [vmem:[%s29550_s15 + $0x198] sm:$0xff] }
0x3450   :  { %v23703_v3 = vpop.eup %23702  ;;  %v16581_v16 = vadd.f32 %v16490_v25, %v16489_v27  ;;  %v16495_v39 = vmul.f32 %v23701_v47, %v27434_v41  ;;  %v30343_v63 = vld [vmem:[#allocation110_spill] sm:$0xff]  ;;  %v15234_v15 = vmul.f32 %v27300_v21, %v15170_v9  ;;  %v15188_v25 = vld [vmem:[%s29550_s15 + $0x190] sm:$0xff]  ;;  %v23964_v37 = vld [vmem:[%s29550_s15 + $0x18] sm:$0xff] }
0x3451   :  { %v23705_v13 = vpop.eup %23704  ;;  %v16422_v59 = vadd.f32 %v23703_v3, %v23701_v47  ;;  %v16496_v26 = vmul.f32 %v23703_v3, %v27438_v19  ;;  %v30345_v46 = vmax.f32 %v30343_v63, %v30344_v62  ;;  %v15253_v47 = vmul.f32 %v27353_v51, %v15189_v28 }
0x3452   :  { %16579 = vadd.xlane.f32.xlu0 %v16578_v8  ;;  %v16419_v45 = vadd.f32 %v23705_v13, %v23699_v52  ;;  %v16494_v61 = vmul.f32 %v23705_v13, %v27438_v19  ;;  %v15251_v19 = vmul.f32 %v27347_v32, %v15187_v35  ;;  %v15252_v13 = vmul.f32 %v27356_v22, %v15188_v25  ;;  %v15191_v35 = vld [vmem:[%s29550_s15 + $0x1a8] sm:$0xff] }
0x3453   :  { %16576 = vadd.xlane.f32.xlu1 %v16575_v5  ;;  %v16590_v49 = vadd.f32 %v16496_v26, %v16495_v39  ;;  %v15172_v39 = vld [vmem:[%s29550_s15 + $0x110] sm:$0xff] }
0x3454   :  { %v16587_v40 = vadd.f32 %v16494_v61, %v16493_v29  ;;  %v15413_v5 = vsel %vm672_vm2, %v15251_v19, 0.0  ;;  %v15419_v61 = vsel %vm672_vm2, %v15253_v47, 0.0 }
0x3456   :  { %16417 = vadd.xlane.f32.xlu0 %v16416_v2 }
0x3457   :  { %16414 = vadd.xlane.f32.xlu1 %v16413_v14 }
0x345a   :  { %16585 = vadd.xlane.f32.xlu0 %v16584_v18 }
0x345b   :  { %16582 = vadd.xlane.f32.xlu1 %v16581_v16  ;;  %v15173_v16 = vld [vmem:[%s29550_s15 + $0x118] sm:$0xff] }
0x345c   :  { %v15237_v29 = vmul.f32 %v27304_v12, %v15173_v16 }
0x345e   :  { %16423 = vadd.xlane.f32.xlu0 %v16422_v59  ;;  %v15362_v59 = vsel %vm672_vm2, %v15234_v15, 0.0  ;;  %v15371_v50 = vsel %vm672_vm2, %v15237_v29, 0.0  ;;  %v15192_v15 = vld [vmem:[%s29550_s15 + $0x1b0] sm:$0xff] }
0x345f   :  { %16420 = vadd.xlane.f32.xlu1 %v16419_v45 }
0x3462   :  { %16543 = vadd.xlane.f32.xlu0 %v27576_v44  ;;  %v15171_v44 = vld [vmem:[%s29550_s15 + $0x108] sm:$0xff] }
0x3463   :  { %16540 = vadd.xlane.f32.xlu1 %v27579_v53  ;;  %v15250_v53 = vmul.f32 %v27350_v58, %v15186_v11  ;;  %v15235_v58 = vmul.f32 %v27296_v56, %v15171_v44  ;;  %v23963_v56 = vld [vmem:[%s29550_s15] sm:$0xff]  ;;  %v15416_v11 = vsel %vm672_vm2, %v15252_v13, 0.0 }
0x3465   :  { %v15410_v14 = vsel %vm672_vm2, %v15250_v53, 0.0  ;;  %v15365_v18 = vsel %vm672_vm2, %v15235_v58, 0.0  ;;  %v15255_v53 = vmul.f32 %v27359_v10, %v15191_v35  ;;  %v23965_v10 = vld [vmem:[%s29550_s15 + $0x10] sm:$0xff] }
0x3466   :  { %16591 = vadd.xlane.f32.xlu0 %v16590_v49 }
0x3467   :  { %16588 = vadd.xlane.f32.xlu1 %v16587_v40  ;;  %v15236_v40 = vmul.f32 %v27308_v31, %v15172_v39  ;;  %v15190_v31 = vld [vmem:[%s29550_s15 + $0x1a0] sm:$0xff] }
0x3468   :  { %v15254_v9 = vmul.f32 %v27362_v34, %v15190_v31 }
0x3469   :  { %v15368_v63 = vsel %vm672_vm2, %v15236_v40, 0.0 }
0x346a   :  { %17582 = vmin.xlane.f32.xlu0 %v30342_v24 }
0x346b   :  { %17577 = vmax.xlane.f32.xlu1 %v30345_v46  ;;  %v15174_v46 = vld [vmem:[%s29550_s15 + $0x120] sm:$0xff] }
0x346c   :  { %v15238_v58 = vmul.f32 %v27314_v17, %v15174_v46 }
0x346e   :  { %15414 = vadd.xlane.f32.xlu0 %v15413_v5  ;;  %v15193_v5 = vld [vmem:[%s29550_s15 + $0x1b8] sm:$0xff] }
0x346f   :  { %15411 = vadd.xlane.f32.xlu1 %v15410_v14  ;;  %v15257_v47 = vmul.f32 %v27365_v30, %v15193_v5  ;;  %v15176_v30 = vld [vmem:[%s29550_s15 + $0x130] sm:$0xff] }
0x3470   :  { %v15240_v31 = vmul.f32 %v27320_v60, %v15176_v30 }
0x3472   :  { %15366 = vadd.xlane.f32.xlu0 %v15365_v18 }
0x3473   :  { %v16334_v0 = vpop.xlane.xlu0 %16333  ;;  %15363 = vadd.xlane.f32.xlu1 %v15362_v59  ;;  %v15177_v59 = vld [vmem:[%s29550_s15 + $0x138] sm:$0xff] }
0x3474   :  { %23706 = vrcp.f32 %v16334_v0  ;;  %v15241_v35 = vmul.f32 %v27317_v23, %v15177_v59 }
0x3475   :  { %v16331_v42 = vpop.xlane.xlu1 %16330 }
0x3476   :  { %23708 = vrcp.f32 %v16331_v42  ;;  %15420 = vadd.xlane.f32.xlu0 %v15419_v61 }
0x3477   :  { %v16502_v41 = vpop.xlane.xlu0 %16501  ;;  %15417 = vadd.xlane.f32.xlu1 %v15416_v11  ;;  %v15431_v11 = vsel %vm672_vm2, %v15257_v47, 0.0 }
0x3479   :  { %v16499_v33 = vpop.xlane.xlu1 %16498 }
0x347a   :  { %15372 = vadd.xlane.f32.xlu0 %v15371_v50 }
0x347b   :  { %v16340_v43 = vpop.xlane.xlu0 %16339  ;;  %15369 = vadd.xlane.f32.xlu1 %v15368_v63 }
0x347c   :  { %23710 = vrcp.f32 %v16340_v43 }
0x347d   :  { %v16337_v4 = vpop.xlane.xlu1 %16336 }
0x347e   :  { %v23707_v36 = vpop.eup %23706  ;;  %23712 = vrcp.f32 %v16337_v4 }
0x347f   :  { %v16596_v32 = vmul.f32 %v23707_v36, %v16502_v41  ;;  %v16508_v45 = vpop.xlane.xlu0 %16507 }
0x3480   :  { %v23709_v20 = vpop.eup %23708 }
0x3481   :  { %v16594_v8 = vmul.f32 %v23709_v20, %v16499_v33  ;;  %v27659_v2 = vmul.f32 %v23962_v55, %v16596_v32  ;;  %v16505_v0 = vpop.xlane.xlu1 %16504  ;;  %v15175_v20 = vld [vmem:[%s29550_s15 + $0x128] sm:$0xff]  ;;  %v15422_v55 = vsel %vm672_vm2, %v15254_v9, 0.0  ;;  %v15383_v9 = vsel %vm672_vm2, %v15241_v35, 0.0 }
0x3482   :  { %v15239_v34 = vmul.f32 %v27311_v54, %v15175_v20  ;;  %15423 = vadd.xlane.f32.xlu1 %v15422_v55 }
0x3483   :  { %v27669_v27 = vmul.f32 %v23963_v56, %v16594_v8  ;;  %v16696_v21 = vand.u32 4294901760, %v27659_v2  ;;  %v16346_v41 = vpop.xlane.xlu0 %16345  ;;  %v15425_v8 = vsel %vm672_vm2, %v15255_v53, 0.0  ;;  %v15194_v53 = vld [vmem:[%s29550_s15 + $0x1c0] sm:$0xff] }
0x3484   :  { %23714 = vrcp.f32 %v16346_v41  ;;  %15426 = vadd.xlane.f32.xlu0 %v15425_v8  ;;  %v15377_v18 = vsel %vm672_vm2, %v15239_v34, 0.0  ;;  %v23967_v41 = vld [vmem:[%s29550_s15 + $0x20] sm:$0xff]  ;;  %v15380_v34 = vsel %vm672_vm2, %v15240_v31, 0.0 }
0x3485   :  { %v16693_v52 = vand.u32 4294901760, %v27669_v27  ;;  %v27681_v3 = vsub.f32 %v27659_v2, %v16696_v21  ;;  %v16343_v33 = vpop.xlane.xlu1 %16342  ;;  %v15178_v8 = vld [vmem:[%s29550_s15 + $0x140] sm:$0xff]  ;;  %v23979_v2 = vld [vmem:[%s29550_s15 + $0x90] sm:$0xff] }
0x3486   :  { %v23711_v49 = vpop.eup %23710  ;;  %23716 = vrcp.f32 %v16343_v33  ;;  %v15242_v47 = vmul.f32 %v27326_v1, %v15178_v8 }
0x3487   :  { %v27691_v51 = vsub.f32 %v27669_v27, %v16693_v52  ;;  %v29781_v26 = vand.u32 4294901760, %v27681_v3  ;;  %v16600_v36 = vmul.f32 %v23711_v49, %v16508_v45  ;;  %v16514_v17 = vpop.xlane.xlu0 %16513  ;;  %v15256_v45 = vmul.f32 %v27368_v38, %v15192_v15  ;;  %v23966_v38 = vld [vmem:[%s29550_s15 + $0x28] sm:$0xff] }
0x3488   :  { %v23713_v12 = vpop.eup %23712  ;;  %15378 = vadd.xlane.f32.xlu0 %v15377_v18 }
0x3489   :  { %v29784_v42 = vand.u32 4294901760, %v27691_v51  ;;  %v16598_v44 = vmul.f32 %v23713_v12, %v16505_v0  ;;  %v27721_v24 = vmul.f32 %v23964_v37, %v16600_v36  ;;  %v16511_v16 = vpop.xlane.xlu1 %16510  ;;  %v15374_v0 = vsel %vm672_vm2, %v15238_v58, 0.0  ;;  %v15195_v36 = vld [vmem:[%s29550_s15 + $0x1c8] sm:$0xff] }
0x348a   :  { %15375 = vadd.xlane.f32.xlu1 %v15374_v0  ;;  %v15179_v37 = vld [vmem:[%s29550_s15 + $0x148] sm:$0xff]  ;;  %v15259_v20 = vmul.f32 %v27371_v6, %v15195_v36  ;;  %v15180_v36 = vld [vmem:[%s29550_s15 + $0x150] sm:$0xff] }
0x348b   :  { %v27711_v19 = vpack.c.bf16 %v29781_v26, %v29784_v42  ;;  %v27731_v62 = vmul.f32 %v23965_v10, %v16598_v44  ;;  %v16702_v32 = vand.u32 4294901760, %v27721_v24  ;;  %v15428_v44 = vsel %vm672_vm2, %v15256_v45, 0.0 }
0x348c   :  { %v16352_v49 = vpop.xlane.xlu0 %16351  ;;  %15432 = vadd.xlane.f32.xlu0 %v15431_v11  ;;  %v15258_v10 = vmul.f32 %v27374_v57, %v15194_v53  ;;  %v15243_v5 = vmul.f32 %v27323_v48, %v15179_v37  ;;  %v15197_v57 = vld [vmem:[%s29550_s15 + $0x1d8] sm:$0xff]  ;;  %v15437_v15 = vsel %vm672_vm2, %v15259_v20, 0.0  ;;  %v23969_v53 = vld [vmem:[%s29550_s15 + $0x30] sm:$0xff] }
0x348d   :  { %30346 = vst [vmem:[#allocation89_spill] sm:$0xff] %v27711_v19  ;;  %v16699_v43 = vand.u32 4294901760, %v27731_v62  ;;  %v27743_v4 = vsub.f32 %v27721_v24, %v16702_v32  ;;  %23718 = vrcp.f32 %v16352_v49  ;;  %v15261_v1 = vmul.f32 %v27377_v7, %v15197_v57  ;;  %v23968_v49 = vld [vmem:[%s29550_s15 + $0x38] sm:$0xff]  ;;  %v30359_v57 = vld [vmem:[#allocation67_spill] sm:$0xff]  ;;  %v23981_v24 = vld [vmem:[%s29550_s15 + $0xa0] sm:$0xff] }
0x348e   :  { %v23715_v25 = vpop.eup %23714  ;;  %v16349_v12 = vpop.xlane.xlu1 %16348  ;;  %15429 = vadd.xlane.f32.xlu1 %v15428_v44  ;;  %v15434_v18 = vsel %vm672_vm2, %v15258_v10, 0.0  ;;  %v15386_v7 = vsel %vm672_vm2, %v15242_v47, 0.0 }
0x348f   :  { %30347 = vst [vmem:[#allocation92_spill] sm:$0xff] %v27743_v4  ;;  %v27753_v54 = vsub.f32 %v27731_v62, %v16699_v43  ;;  %v29779_v28 = vand.u32 4294901760, %v27743_v4  ;;  %v16604_v39 = vmul.f32 %v23715_v25, %v16514_v17  ;;  %23720 = vrcp.f32 %v16349_v12 }
0x3490   :  { %v23717_v13 = vpop.eup %23716  ;;  %15384 = vadd.xlane.f32.xlu0 %v15383_v9  ;;  %v16520_v55 = vpop.xlane.xlu0 %16519  ;;  %v30356_v9 = vld [vmem:[#allocation66_spill] sm:$0xff] }
0x3491   :  { %30348 = vst [vmem:[#allocation93_spill] sm:$0xff] %v27753_v54  ;;  %v29780_v14 = vand.u32 4294901760, %v27753_v54  ;;  %v16602_v61 = vmul.f32 %v23717_v13, %v16511_v16  ;;  %v27781_v40 = vmul.f32 %v23966_v38, %v16604_v39  ;;  %v27840_v16 = vld [vmem:[%s29552_s17] sm:$0xff]  ;;  %v15196_v13 = vld [vmem:[%s29550_s15 + $0x1d0] sm:$0xff]  ;;  %v15389_v39 = vsel %vm672_vm2, %v15243_v5, 0.0 }
0x3492   :  { %15381 = vadd.xlane.f32.xlu1 %v15380_v34  ;;  %v16517_v48 = vpop.xlane.xlu1 %16516  ;;  %v16690_v45 = vcombine.high %v27840_v16, %v27840_v16  ;;  %v15443_v5 = vsel %vm672_vm2, %v15261_v1, 0.0 }
0x3493   :  { %v27773_v29 = vpack.c.bf16 %v29779_v28, %v29780_v14  ;;  %v27788_v33 = vmul.f32 %v23967_v41, %v16602_v61  ;;  %v29793_v23 = vand.u32 4294901760, %v27781_v40  ;;  %v15181_v61 = vld [vmem:[%s29550_s15 + $0x158] sm:$0xff]  ;;  %v23975_v14 = vld [vmem:[%s29550_s15 + $0x60] sm:$0xff] }
0x3494   :  { %15438 = vadd.xlane.f32.xlu0 %v15437_v15  ;;  %v16358_v30 = vpop.xlane.xlu0 %16357  ;;  %v27857_v11 = vand.u32 4294901760, %v16690_v45  ;;  %v30354_v41 = vld [vmem:[#allocation80_spill] sm:$0xff]  ;;  %v15245_v10 = vmul.f32 %v30356_v9, %v15181_v61  ;;  %v15244_v15 = vmul.f32 %v30359_v57, %v15180_v36  ;;  %v30364_v57 = vld [vmem:[#allocation71_spill] sm:$0xff] }
0x3495   :  { %30349 = vst [vmem:[#allocation96_spill] sm:$0xff] %v27773_v29  ;;  %v29796_v50 = vand.u32 4294901760, %v27788_v33  ;;  %v27803_v60 = vsub.f32 %v27781_v40, %v29793_v23  ;;  %23722 = vrcp.f32 %v16358_v30  ;;  %v15260_v12 = vmul.f32 %v30354_v41, %v15196_v13  ;;  %v15182_v41 = vld [vmem:[%s29550_s15 + $0x160] sm:$0xff] }
0x3496   :  { %15435 = vadd.xlane.f32.xlu1 %v15434_v18  ;;  %30353 = vst [vmem:[#allocation102_spill] sm:$0xff] %v27857_v11  ;;  %v16355_v31 = vpop.xlane.xlu1 %16354  ;;  %v27871_v20 = vsub.f32 %v16690_v45, %v27857_v11  ;;  %v15198_v18 = vld [vmem:[%s29550_s15 + $0x1e0] sm:$0xff]  ;;  %v15395_v45 = vsel %vm672_vm2, %v15245_v10, 0.0 }
0x3497   :  { %30350 = vst [vmem:[#allocation47_spill] sm:$0xff] %v27803_v60  ;;  %v27813_v63 = vsub.f32 %v27788_v33, %v29796_v50  ;;  %v29778_v46 = vand.u32 4294901760, %v27803_v60  ;;  %v23719_v25 = vpop.eup %23718  ;;  %23724 = vrcp.f32 %v16355_v31  ;;  %v15440_v47 = vsel %vm672_vm2, %v15260_v12, 0.0  ;;  %v30362_v12 = vld [vmem:[#allocation84_spill] sm:$0xff] }
0x3498   :  { %v16608_v59 = vmul.f32 %v23719_v25, %v16520_v55  ;;  %15390 = vadd.xlane.f32.xlu0 %v15389_v39  ;;  %30355 = vst [vmem:[#allocation103_spill] sm:$0xff] %v27871_v20  ;;  %v27882_v55 = vand.u32 4294901760, %v27871_v20  ;;  %v15199_v25 = vld [vmem:[%s29550_s15 + $0x1e8] sm:$0xff]  ;;  %v15392_v31 = vsel %vm672_vm2, %v15244_v15, 0.0 }
0x3499   :  { %30351 = vst [vmem:[#allocation99_spill] sm:$0xff] %v27813_v63  ;;  %v29777_v6 = vand.u32 4294901760, %v27813_v63  ;;  %v23721_v0 = vpop.eup %23720 }
0x349a   :  { %v27855_v38 = vmul.f32 %v23968_v49, %v16608_v59  ;;  %v16606_v35 = vmul.f32 %v23721_v0, %v16517_v48  ;;  %15387 = vadd.xlane.f32.xlu1 %v15386_v7  ;;  %30358 = vst [vmem:[#allocation44_spill] sm:$0xff] %v27882_v55  ;;  %v16791_v59 = vsub.f32 %v27871_v20, %v27882_v55  ;;  %v30360_v0 = vld [vmem:[#allocation81_spill] sm:$0xff]  ;;  %v16526_v30 = vpop.xlane.xlu0 %16525 }
0x349b   :  { %v27833_v17 = vpack.c.bf16 %v29778_v46, %v29777_v6  ;;  %v15263_v1 = vmul.f32 %v30360_v0, %v15199_v25  ;;  %v15262_v7 = vmul.f32 %v30362_v12, %v15198_v18  ;;  %v23970_v0 = vld [vmem:[%s29550_s15 + $0x48] sm:$0xff] }
0x349c   :  { %v29791_v44 = vand.u32 4294901760, %v27855_v38  ;;  %v27868_v37 = vmul.f32 %v23969_v53, %v16606_v35  ;;  %15444 = vadd.xlane.f32.xlu0 %v15443_v5  ;;  %v27903_v61 = vand.u32 4294901760, %v16791_v59  ;;  %v15183_v35 = vld [vmem:[%s29550_s15 + $0x168] sm:$0xff]  ;;  %v16523_v53 = vpop.xlane.xlu1 %16522 }
0x349d   :  { %30352 = vst [vmem:[#allocation100_spill] sm:$0xff] %v27833_v17  ;;  %v15247_v25 = vmul.f32 %v30364_v57, %v15183_v35  ;;  %v15449_v59 = vsel %vm672_vm2, %v15263_v1, 0.0  ;;  %v15200_v1 = vld [vmem:[%s29550_s15 + $0x1f0] sm:$0xff]  ;;  %v23974_v46 = vld [vmem:[%s29550_s15 + $0x68] sm:$0xff] }
0x349e   :  { %v27877_v34 = vsub.f32 %v27855_v38, %v29791_v44  ;;  %v29792_v8 = vand.u32 4294901760, %v27868_v37  ;;  %15441 = vadd.xlane.f32.xlu1 %v15440_v47  ;;  %30361 = vst [vmem:[#allocation23_spill] sm:$0xff] %v27903_v61  ;;  %16793 = vmatprep.mubr.f32.mxu1 %v27903_v61  ;;  %v30365_v47 = vld [vmem:[#allocation72_spill] sm:$0xff]  ;;  %v16364_v15 = vpop.xlane.xlu0 %16363 }
0x349f   :  { %v23723_v36 = vpop.eup %23722  ;;  %v15246_v18 = vmul.f32 %v30365_v47, %v15182_v41  ;;  %23726 = vrcp.f32 %v16364_v15  ;;  %v30367_v47 = vld [vmem:[#allocation88_spill] sm:$0xff] }
0x34a0   :  { %30357 = vst [vmem:[#allocation59_spill] sm:$0xff] %v27877_v34  ;;  %v29776_v48 = vand.u32 4294901760, %v27877_v34  ;;  %v27896_v13 = vsub.f32 %v27868_v37, %v29792_v8  ;;  %15396 = vadd.xlane.f32.xlu0 %v15395_v45  ;;  %v16612_v10 = vmul.f32 %v23723_v36, %v16526_v30  ;;  %v15201_v45 = vld [vmem:[%s29550_s15 + $0x1f8] sm:$0xff]  ;;  %v15446_v30 = vsel %vm672_vm2, %v15262_v7, 0.0  ;;  %v16361_v35 = vpop.xlane.xlu1 %16360  ;;  %v23971_v36 = vld [vmem:[%s29550_s15 + $0x40] sm:$0xff] }
0x34a1   :  { %v23725_v5 = vpop.eup %23724  ;;  %23728 = vrcp.f32 %v16361_v35  ;;  %v15185_v7 = vld [vmem:[%s29550_s15 + $0x178] sm:$0xff] }
0x34a2   :  { %v29773_v39 = vand.u32 4294901760, %v27896_v13  ;;  %15393 = vadd.xlane.f32.xlu1 %v15392_v31  ;;  %v27931_v12 = vmul.f32 %v23970_v0, %v16612_v10  ;;  %v16610_v31 = vmul.f32 %v23725_v5, %v16523_v53  ;;  %v30366_v53 = vld [vmem:[#allocation85_spill] sm:$0xff]  ;;  %v15401_v5 = vsel %vm672_vm2, %v15247_v25, 0.0  ;;  %v15184_v25 = vld [vmem:[%s29550_s15 + $0x170] sm:$0xff] }
0x34a3   :  { %v15265_v10 = vmul.f32 %v30366_v53, %v15201_v45  ;;  %v16532_v45 = vpop.xlane.xlu0 %16531 }
0x34a4   :  { %v27920_v9 = vpack.c.bf16 %v29776_v48, %v29773_v39  ;;  %15450 = vadd.xlane.f32.xlu0 %v15449_v59  ;;  %v29789_v41 = vand.u32 4294901760, %v27931_v12  ;;  %v27941_v57 = vmul.f32 %v23971_v36, %v16610_v31  ;;  %v15264_v59 = vmul.f32 %v30367_v47, %v15200_v1  ;;  %v16529_v35 = vpop.xlane.xlu1 %16528  ;;  %v30368_v36 = vld [vmem:[#allocation75_spill] sm:$0xff]  ;;  %v30369_v47 = vld [vmem:[#allocation76_spill] sm:$0xff] }
0x34a5   :  { %v15398_v31 = vsel %vm672_vm2, %v15246_v18, 0.0  ;;  %v15249_v53 = vmul.f32 %v30368_v36, %v15185_v7  ;;  %v15248_v18 = vmul.f32 %v30369_v47, %v15184_v25 }
0x34a6   :  { %30363 = vst [vmem:[#allocation24_spill] sm:$0xff] %v27920_v9  ;;  %15447 = vadd.xlane.f32.xlu1 %v15446_v30  ;;  %v27952_v15 = vsub.f32 %v27931_v12, %v29789_v41  ;;  %v29790_v0 = vand.u32 4294901760, %v27941_v57  ;;  %v15452_v58 = vsel %vm672_vm2, %v15264_v59, 0.0  ;;  %v23976_v41 = vld [vmem:[%s29550_s15 + $0x88] sm:$0xff]  ;;  %v30387_v9 = vand.u32 4294901760, %v27868_v37 }
0x34a7   :  { %v16370_v56 = vpop.xlane.xlu0 %16369  ;;  %v15407_v25 = vsel %vm672_vm2, %v15249_v53, 0.0  ;;  %v15404_v59 = vsel %vm672_vm2, %v15248_v18, 0.0  ;;  %v30392_v29 = vand.u32 4294901760, %v27941_v57 }
0x34a8   :  { %15402 = vadd.xlane.f32.xlu0 %v15401_v5  ;;  %v29775_v30 = vand.u32 4294901760, %v27952_v15  ;;  %v27963_v1 = vsub.f32 %v27941_v57, %v29790_v0  ;;  %v15455_v5 = vsel %vm672_vm2, %v15265_v10, 0.0  ;;  %23730 = vrcp.f32 %v16370_v56  ;;  %v16367_v39 = vpop.xlane.xlu1 %16366  ;;  %v23987_v57 = vld [vmem:[%s29550_s15 + $0xd0] sm:$0xff] }
0x34a9   :  { %v23727_v22 = vpop.eup %23726  ;;  %23732 = vrcp.f32 %v16367_v39 }
0x34aa   :  { %15399 = vadd.xlane.f32.xlu1 %v15398_v31  ;;  %v29774_v49 = vand.u32 4294901760, %v27963_v1  ;;  %v16616_v7 = vmul.f32 %v23727_v22, %v16532_v45  ;;  %v23973_v22 = vld [vmem:[%s29550_s15 + $0x50] sm:$0xff] }
0x34ab   :  { %v23729_v36 = vpop.eup %23728  ;;  %v16538_v47 = vpop.xlane.xlu0 %16537 }
0x34ac   :  { %15456 = vadd.xlane.f32.xlu0 %v15455_v5  ;;  %v27976_v10 = vpack.c.bf16 %v29775_v30, %v29774_v49  ;;  %v16614_v5 = vmul.f32 %v23729_v36, %v16529_v35  ;;  %v16535_v31 = vpop.xlane.xlu1 %16534 }
0x34ae   :  { %15453 = vadd.xlane.f32.xlu1 %v15452_v58  ;;  %30370 = vst [vmem:[#allocation25_spill] sm:$0xff] %v27976_v10  ;;  %v23972_v58 = vld [vmem:[%s29550_s15 + $0x58] sm:$0xff]  ;;  %v27989_v39 = vmul.f32 %v23973_v22, %v16614_v5 }
0x34af   :  { %v27983_v56 = vmul.f32 %v23972_v58, %v16616_v7  ;;  %v27997_v18 = vpop.xlane.xlu0 %16375 }
0x34b0   :  { %15408 = vadd.xlane.f32.xlu0 %v15407_v25  ;;  %v29788_v53 = vand.u32 4294901760, %v27989_v39  ;;  %v27999_v35 = vpop.xlane.xlu1 %16372 }
0x34b1   :  { %v29786_v49 = vand.u32 4294901760, %v27983_v56 }
0x34b2   :  { %15405 = vadd.xlane.f32.xlu1 %v15404_v59  ;;  %v28004_v7 = vsub.f32 %v27989_v39, %v29788_v53  ;;  %v23731_v25 = vpop.eup %23730 }
0x34b3   :  { %v27994_v45 = vsub.f32 %v27983_v56, %v29786_v49  ;;  %v23733_v59 = vpop.eup %23732  ;;  %v16620_v5 = vmul.f32 %v23731_v25, %v16538_v47  ;;  %v16382_v22 = vpop.xlane.xlu0 %16381 }
0x34b4   :  { %v29782_v58 = vand.u32 4294901760, %v28004_v7  ;;  %v16618_v48 = vmul.f32 %v23733_v59, %v16535_v31  ;;  %23734 = vrcp.f32 %v16382_v22  ;;  %v16379_v6 = vpop.xlane.xlu1 %16378 }
0x34b5   :  { %v29783_v36 = vand.u32 4294901760, %v27994_v45  ;;  %v28013_v28 = vmul.f32 %v23974_v46, %v16620_v5  ;;  %23736 = vrcp.f32 %v16379_v6 }
0x34b6   :  { %v28018_v26 = vmul.f32 %v23975_v14, %v16618_v48 }
0x34b7   :  { %v28024_v31 = vpack.c.bf16 %v29783_v36, %v29782_v58  ;;  %v29785_v47 = vand.u32 4294901760, %v28013_v28  ;;  %v16550_v25 = vpop.xlane.xlu0 %16549 }
0x34b8   :  { %v29787_v59 = vand.u32 4294901760, %v28018_v26  ;;  %v16547_v46 = vpop.xlane.xlu1 %16546 }
0x34b9   :  { %30371 = vst [vmem:[#allocation18_spill] sm:$0xff] %v28024_v31  ;;  %v28031_v6 = vsub.f32 %v28013_v28, %v29785_v47 }
0x34ba   :  { %v28036_v14 = vsub.f32 %v28018_v26, %v29787_v59 }
0x34bb   :  { %v29795_v48 = vand.u32 4294901760, %v28031_v6  ;;  %v16388_v5 = vpop.xlane.xlu0 %16387 }
0x34bc   :  { %v29794_v22 = vand.u32 4294901760, %v28036_v14  ;;  %23738 = vrcp.f32 %v16388_v5  ;;  %v16385_v30 = vpop.xlane.xlu1 %16384 }
0x34bd   :  { %23740 = vrcp.f32 %v16385_v30  ;;  %v23977_v30 = vld [vmem:[%s29550_s15 + $0x80] sm:$0xff] }
0x34be   :  { %v23735_v58 = vpop.eup %23734  ;;  %v28044_v36 = vpack.c.bf16 %v29795_v48, %v29794_v22 }
0x34bf   :  { %v23737_v42 = vpop.eup %23736  ;;  %v16628_v47 = vmul.f32 %v23735_v58, %v16550_v25  ;;  %v16556_v49 = vpop.xlane.xlu0 %16555 }
0x34c0   :  { %30372 = vst [vmem:[#allocation26_spill] sm:$0xff] %v28044_v36  ;;  %v16626_v59 = vmul.f32 %v23737_v42, %v16547_v46  ;;  %v16553_v53 = vpop.xlane.xlu1 %16552  ;;  %v30382_v36 = vand.u32 4294901760, %v27788_v33 }
0x34c1   :  { %v16674_v0 = vmul.f32 %v23976_v41, %v16628_v47 }
0x34c2   :  { %v16673_v5 = vmul.f32 %v23977_v30, %v16626_v59  ;;  %v28062_v59 = vpack.c.bf16 %v16696_v21, %v16693_v52 }
0x34c3   :  { %v16744_v44 = vand.u32 4294901760, %v16674_v0  ;;  %v16394_v8 = vpop.xlane.xlu0 %16393 }
0x34c4   :  { %v16741_v23 = vand.u32 4294901760, %v16673_v5  ;;  %23742 = vrcp.f32 %v16394_v8  ;;  %v16391_v22 = vpop.xlane.xlu1 %16390  ;;  %30374 = vst [vmem:[#allocation28_spill] sm:$0xff] %v28062_v59 }
0x34c5   :  { %v28052_v48 = vsub.f32 %v16674_v0, %v16744_v44  ;;  %23744 = vrcp.f32 %v16391_v22 }
0x34c6   :  { %v23739_v42 = vpop.eup %23738  ;;  %v28054_v58 = vsub.f32 %v16673_v5, %v16741_v23  ;;  %v28056_v25 = vpack.c.bf16 %v16744_v44, %v16741_v23  ;;  %v23978_v44 = vld [vmem:[%s29550_s15 + $0x98] sm:$0xff] }
0x34c7   :  { %v23741_v46 = vpop.eup %23740  ;;  %v16632_v41 = vmul.f32 %v23739_v42, %v16556_v49  ;;  %v16562_v47 = vpop.xlane.xlu0 %16561  ;;  %v29798_v8 = vand.u32 4294901760, %v28052_v48 }
0x34c8   :  { %30373 = vst [vmem:[#allocation27_spill] sm:$0xff] %v28056_v25  ;;  %v16630_v30 = vmul.f32 %v23741_v46, %v16553_v53  ;;  %22437 = vmatprep.subr.bf16.mxu1 %v28056_v25  ;;  %v16559_v0 = vpop.xlane.xlu1 %16558  ;;  %v29797_v22 = vand.u32 4294901760, %v28054_v58 }
0x34c9   :  { %v16676_v27 = vmul.f32 %v23978_v44, %v16632_v41  ;;  %22439 = vmatpush3.bf16.msra.mxu1 %v28062_v59 }
0x34ca   :  { %v16675_v21 = vmul.f32 %v23979_v2, %v16630_v30  ;;  %v28080_v52 = vpack.c.bf16 %v29798_v8, %v29797_v22  ;;  %v28092_v22 = vpack.c.bf16 %v16702_v32, %v16699_v43 }
0x34cb   :  { %v16750_v49 = vand.u32 4294901760, %v16676_v27  ;;  %v16400_v53 = vpop.xlane.xlu0 %16399 }
0x34cc   :  { %30375 = vst [vmem:[#allocation29_spill] sm:$0xff] %v28080_v52  ;;  %v16747_v5 = vand.u32 4294901760, %v16675_v21  ;;  %23746 = vrcp.f32 %v16400_v53  ;;  %v16397_v42 = vpop.xlane.xlu1 %16396  ;;  %30377 = vst [vmem:[#allocation31_spill] sm:$0xff] %v28092_v22  ;;  %v30403_v52 = vand.u32 4294901760, %v28018_v26  ;;  %v23991_v26 = vld [vmem:[%s29550_s15 + $0x70] sm:$0xff] }
0x34cd   :  { %v28082_v46 = vsub.f32 %v16676_v27, %v16750_v49  ;;  %23748 = vrcp.f32 %v16397_v42 }
0x34ce   :  { %v23743_v41 = vpop.eup %23742  ;;  %v28084_v44 = vsub.f32 %v16675_v21, %v16747_v5  ;;  %v28086_v23 = vpack.c.bf16 %v16750_v49, %v16747_v5 }
0x34cf   :  { %v23745_v30 = vpop.eup %23744  ;;  %v16636_v2 = vmul.f32 %v23743_v41, %v16562_v47  ;;  %v16568_v50 = vpop.xlane.xlu0 %16567  ;;  %v29800_v53 = vand.u32 4294901760, %v28082_v46  ;;  %v23980_v47 = vld [vmem:[%s29550_s15 + $0xa8] sm:$0xff] }
0x34d0   :  { %30376 = vst [vmem:[#allocation30_spill] sm:$0xff] %v28086_v23  ;;  %v16634_v8 = vmul.f32 %v23745_v30, %v16559_v0  ;;  %22441 = vmatprep.subr.bf16.mxu1 %v28086_v23  ;;  %v16565_v27 = vpop.xlane.xlu1 %16564  ;;  %v29801_v21 = vand.u32 4294901760, %v28084_v44 }
0x34d1   :  { %v16678_v62 = vmul.f32 %v23980_v47, %v16636_v2  ;;  %22443 = vmatpush3.bf16.msra.mxu1 %v28092_v22 }
0x34d2   :  { %v16677_v32 = vmul.f32 %v23981_v24, %v16634_v8  ;;  %v28110_v43 = vpack.c.bf16 %v29800_v53, %v29801_v21  ;;  %v30383_v53 = vand.u32 4294901760, %v27781_v40  ;;  %v23983_v40 = vld [vmem:[%s29550_s15 + $0xb0] sm:$0xff] }
0x34d3   :  { %v16756_v0 = vand.u32 4294901760, %v16678_v62  ;;  %v16406_v5 = vpop.xlane.xlu0 %16405 }
0x34d4   :  { %30378 = vst [vmem:[#allocation32_spill] sm:$0xff] %v28110_v43  ;;  %v16753_v42 = vand.u32 4294901760, %v16677_v32  ;;  %23750 = vrcp.f32 %v16406_v5  ;;  %v16403_v41 = vpop.xlane.xlu1 %16402  ;;  %v28122_v21 = vpack.c.bf16 %v30383_v53, %v30382_v36 }
0x34d5   :  { %v28112_v30 = vsub.f32 %v16678_v62, %v16756_v0  ;;  %23752 = vrcp.f32 %v16403_v41 }
0x34d6   :  { %v23747_v2 = vpop.eup %23746  ;;  %v28114_v47 = vsub.f32 %v16677_v32, %v16753_v42  ;;  %v28116_v49 = vpack.c.bf16 %v16756_v0, %v16753_v42  ;;  %30384 = vst [vmem:[#allocation36_spill] sm:$0xff] %v28122_v21 }
0x34d7   :  { %30379 = vst [vmem:[#allocation33_spill] sm:$0xff] %v28112_v30  ;;  %v23749_v8 = vpop.eup %23748  ;;  %v16640_v24 = vmul.f32 %v23747_v2, %v16568_v50  ;;  %v16574_v61 = vpop.xlane.xlu0 %16573  ;;  %v29802_v5 = vand.u32 4294901760, %v28112_v30  ;;  %v23982_v50 = vld [vmem:[%s29550_s15 + $0xb8] sm:$0xff]  ;;  %v30424_v59 = vand.u32 4294901760, %v28112_v30 }
0x34d8   :  { %30380 = vst [vmem:[#allocation34_spill] sm:$0xff] %v28114_v47  ;;  %30381 = vst [vmem:[#allocation35_spill] sm:$0xff] %v28116_v49  ;;  %v16638_v31 = vmul.f32 %v23749_v8, %v16565_v27  ;;  %22445 = vmatprep.subr.bf16.mxu1 %v28116_v49  ;;  %v16571_v62 = vpop.xlane.xlu1 %16570  ;;  %v29803_v32 = vand.u32 4294901760, %v28114_v47 }
0x34d9   :  { %v16680_v33 = vmul.f32 %v23982_v50, %v16640_v24  ;;  %22447 = vmatpush3.bf16.msra.mxu1 %v28122_v21 }
0x34da   :  { %v16679_v36 = vmul.f32 %v23983_v40, %v16638_v31  ;;  %v28140_v53 = vpack.c.bf16 %v29802_v5, %v29803_v32  ;;  %v30388_v5 = vand.u32 4294901760, %v27855_v38  ;;  %v23985_v38 = vld [vmem:[%s29550_s15 + $0xc0] sm:$0xff] }
0x34db   :  { %v16762_v27 = vand.u32 4294901760, %v16680_v33  ;;  %v16412_v42 = vpop.xlane.xlu0 %16411 }
0x34dc   :  { %30385 = vst [vmem:[#allocation37_spill] sm:$0xff] %v28140_v53  ;;  %v16759_v41 = vand.u32 4294901760, %v16679_v36  ;;  %23754 = vrcp.f32 %v16412_v42  ;;  %v16409_v2 = vpop.xlane.xlu1 %16408  ;;  %v28152_v32 = vpack.c.bf16 %v30388_v5, %v30387_v9 }
0x34dd   :  { %v28142_v8 = vsub.f32 %v16680_v33, %v16762_v27  ;;  %23756 = vrcp.f32 %v16409_v2 }
0x34de   :  { %v23751_v24 = vpop.eup %23750  ;;  %v28144_v50 = vsub.f32 %v16679_v36, %v16759_v41  ;;  %v28146_v0 = vpack.c.bf16 %v16762_v27, %v16759_v41  ;;  %30389 = vst [vmem:[#allocation39_spill] sm:$0xff] %v28152_v32 }
0x34df   :  { %v23753_v31 = vpop.eup %23752  ;;  %v16644_v40 = vmul.f32 %v23751_v24, %v16574_v61  ;;  %v16580_v10 = vpop.xlane.xlu0 %16579  ;;  %v29804_v42 = vand.u32 4294901760, %v28142_v8  ;;  %v23984_v61 = vld [vmem:[%s29550_s15 + $0xc8] sm:$0xff] }
0x34e0   :  { %30386 = vst [vmem:[#allocation38_spill] sm:$0xff] %v28146_v0  ;;  %v16642_v17 = vmul.f32 %v23753_v31, %v16571_v62  ;;  %22449 = vmatprep.subr.bf16.mxu1 %v28146_v0  ;;  %v16577_v33 = vpop.xlane.xlu1 %16576  ;;  %v29805_v36 = vand.u32 4294901760, %v28144_v50  ;;  %v30415_v0 = vld [vmem:[#allocation22_spill] sm:$0xff] }
0x34e1   :  { %v16682_v37 = vmul.f32 %v23984_v61, %v16644_v40  ;;  %22451 = vmatpush3.bf16.msra.mxu1 %v28152_v32 }
0x34e2   :  { %v16681_v9 = vmul.f32 %v23985_v38, %v16642_v17  ;;  %v28170_v5 = vpack.c.bf16 %v29804_v42, %v29805_v36  ;;  %v30393_v42 = vand.u32 4294901760, %v27931_v12 }
0x34e3   :  { %v16768_v62 = vand.u32 4294901760, %v16682_v37  ;;  %v16418_v41 = vpop.xlane.xlu0 %16417 }
0x34e4   :  { %30390 = vst [vmem:[#allocation40_spill] sm:$0xff] %v28170_v5  ;;  %v16765_v2 = vand.u32 4294901760, %v16681_v9  ;;  %23758 = vrcp.f32 %v16418_v41  ;;  %v16415_v24 = vpop.xlane.xlu1 %16414  ;;  %v28182_v36 = vpack.c.bf16 %v30393_v42, %v30392_v29  ;;  %v23986_v29 = vld [vmem:[%s29550_s15 + $0xd8] sm:$0xff]  ;;  %v30397_v5 = vand.u32 4294901760, %v27989_v39 }
0x34e5   :  { %v28172_v31 = vsub.f32 %v16682_v37, %v16768_v62  ;;  %23760 = vrcp.f32 %v16415_v24 }
0x34e6   :  { %v23755_v40 = vpop.eup %23754  ;;  %v28174_v61 = vsub.f32 %v16681_v9, %v16765_v2  ;;  %v28176_v27 = vpack.c.bf16 %v16768_v62, %v16765_v2  ;;  %30394 = vst [vmem:[#allocation42_spill] sm:$0xff] %v28182_v36  ;;  %23762 = vrcp.f32 %v27997_v18 }
0x34e7   :  { %v23757_v17 = vpop.eup %23756  ;;  %v16648_v38 = vmul.f32 %v23755_v40, %v16580_v10  ;;  %v16586_v53 = vpop.xlane.xlu0 %16585  ;;  %v29806_v41 = vand.u32 4294901760, %v28172_v31  ;;  %23764 = vrcp.f32 %v27999_v35 }
0x34e8   :  { %30391 = vst [vmem:[#allocation41_spill] sm:$0xff] %v28176_v27  ;;  %v16646_v37 = vmul.f32 %v23757_v17, %v16577_v33  ;;  %22453 = vmatprep.subr.bf16.mxu1 %v28176_v27  ;;  %v16583_v9 = vpop.xlane.xlu1 %16582  ;;  %v29807_v62 = vand.u32 4294901760, %v28174_v61 }
0x34e9   :  { %v16684_v12 = vmul.f32 %v23986_v29, %v16648_v38  ;;  %22455 = vmatpush3.bf16.msra.mxu1 %v28182_v36  ;;  %v30411_v36 = vand.u32 4294901760, %v28084_v44 }
0x34ea   :  { %v16683_v18 = vmul.f32 %v23987_v57, %v16646_v37  ;;  %v28202_v42 = vpack.c.bf16 %v29806_v41, %v29807_v62  ;;  %v30398_v41 = vand.u32 4294901760, %v27983_v56  ;;  %v23988_v56 = vld [vmem:[%s29550_s15 + $0xe8] sm:$0xff] }
0x34eb   :  { %v16774_v33 = vand.u32 4294901760, %v16684_v12  ;;  %v16424_v35 = vpop.xlane.xlu0 %16423 }
0x34ec   :  { %30395 = vst [vmem:[#allocation43_spill] sm:$0xff] %v28202_v42  ;;  %v16771_v2 = vand.u32 4294901760, %v16683_v18  ;;  %23766 = vrcp.f32 %v16424_v35  ;;  %v16421_v24 = vpop.xlane.xlu1 %16420  ;;  %v28214_v62 = vpack.c.bf16 %v30398_v41, %v30397_v5  ;;  %v28217_v35 = vand.u32 4294901760, %v27840_v16  ;;  %v23989_v41 = vld [vmem:[%s29550_s15 + $0xe0] sm:$0xff] }
0x34ed   :  { %v28204_v40 = vsub.f32 %v16684_v12, %v16774_v33  ;;  %23768 = vrcp.f32 %v16421_v24 }
0x34ee   :  { %v23759_v17 = vpop.eup %23758  ;;  %v28206_v38 = vsub.f32 %v16683_v18, %v16771_v2  ;;  %v28208_v29 = vpack.c.bf16 %v16774_v33, %v16771_v2  ;;  %30399 = vst [vmem:[#allocation46_spill] sm:$0xff] %v28214_v62 }
0x34ef   :  { %v23761_v37 = vpop.eup %23760  ;;  %v16652_v57 = vmul.f32 %v23759_v17, %v16586_v53  ;;  %v16544_v10 = vpop.xlane.xlu0 %16543  ;;  %v29809_v12 = vand.u32 4294901760, %v28204_v40 }
0x34f0   :  { %30396 = vst [vmem:[#allocation45_spill] sm:$0xff] %v28208_v29  ;;  %v16650_v24 = vmul.f32 %v23761_v37, %v16583_v9  ;;  %22457 = vmatprep.subr.bf16.mxu1 %v28208_v29  ;;  %v16541_v18 = vpop.xlane.xlu1 %16540  ;;  %v29808_v33 = vand.u32 4294901760, %v28206_v38  ;;  %v23763_v5 = vpop.eup %23762 }
0x34f1   :  { %v28227_v39 = vmul.f32 %v23988_v56, %v16652_v57  ;;  %22459 = vmatpush3.bf16.msra.mxu1 %v28214_v62  ;;  %v23765_v17 = vpop.eup %23764  ;;  %v28244_v56 = vsub.f32 %v27840_v16, %v28217_v35  ;;  %v16624_v42 = vmul.f32 %v23763_v5, %v16544_v10  ;;  %v30404_v16 = vand.u32 4294901760, %v28013_v28 }
0x34f2   :  { %v28233_v9 = vmul.f32 %v23989_v41, %v16650_v24  ;;  %v28239_v2 = vpack.c.bf16 %v29809_v12, %v29808_v33  ;;  %v16622_v43 = vmul.f32 %v23765_v17, %v16541_v18  ;;  %v30406_v10 = vand.u32 4294901760, %v28052_v48  ;;  %v23990_v17 = vld [vmem:[%s29550_s15 + $0x78] sm:$0xff] }
0x34f3   :  { %v29813_v37 = vand.u32 4294901760, %v28227_v39  ;;  %v16592_v57 = vpop.xlane.xlu0 %16591  ;;  %30401 = vst [vmem:[#allocation50_spill] sm:$0xff] %v28244_v56  ;;  %v28257_v62 = vpack.c.bf16 %v30404_v16, %v30403_v52  ;;  %v28263_v5 = vand.u32 4294901760, %v28244_v56 }
0x34f4   :  { %30400 = vst [vmem:[#allocation49_spill] sm:$0xff] %v28239_v2  ;;  %v29812_v53 = vand.u32 4294901760, %v28233_v9  ;;  %v16589_v24 = vpop.xlane.xlu1 %16588  ;;  %v16927_v18 = vsub.f32 %v28052_v48, %v30406_v10  ;;  %v28273_v28 = vmul.f32 %v23991_v26, %v16622_v43  ;;  %v23992_v10 = vld [vmem:[%s29550_s15 + $0xf8] sm:$0xff]  ;;  %v23993_v43 = vld [vmem:[%s29550_s15 + $0xf0] sm:$0xff]  ;;  %v30410_v26 = vand.u32 4294901760, %v27681_v3 }
0x34f5   :  { %30405 = vst [vmem:[#allocation54_spill] sm:$0xff] %v28257_v62  ;;  %30407 = vst [vmem:[#allocation56_spill] sm:$0xff] %v28263_v5 }
0x34f6   :  { %v23767_v41 = vpop.eup %23766  ;;  %v28251_v33 = vpack.c.bf16 %v29813_v37, %v29812_v53  ;;  %v28268_v53 = vmul.f32 %v23990_v17, %v16624_v42  ;;  %v30412_v37 = vand.u32 4294901760, %v28082_v46  ;;  %v30420_v22 = vand.u32 4294901760, %v28273_v28 }
0x34f7   :  { %v23769_v12 = vpop.eup %23768  ;;  %v16656_v2 = vmul.f32 %v23767_v41, %v16592_v57  ;;  %v17583_v19 = vpop.xlane.xlu0 %17582  ;;  %v30408_v41 = vand.u32 4294901760, %v28054_v58 }
0x34f8   :  { %30402 = vst [vmem:[#allocation53_spill] sm:$0xff] %v28251_v33  ;;  %v16654_v52 = vmul.f32 %v23769_v12, %v16589_v24  ;;  %22461 = vmatprep.subr.bf16.mxu1 %v28251_v33  ;;  %v17578_v57 = vpop.xlane.xlu1 %17577  ;;  %v30409_v24 = vand.u32 4294901760, %v27691_v51 }
0x34f9   :  { %v16920_v16 = vsub.f32 %v28054_v58, %v30408_v41  ;;  %v28282_v42 = vmul.f32 %v23992_v10, %v16656_v2  ;;  %22463 = vmatpush3.bf16.msra.mxu1 %v28257_v62  ;;  %v16815_v41 = vsub.f32 %v27681_v3, %v30410_v26  ;;  %v16928_v10 = vand.u32 4294901760, %v16927_v18 }
0x34fa   :  { %v28288_v12 = vmul.f32 %v23993_v43, %v16654_v52  ;;  %v16808_v17 = vsub.f32 %v27691_v51, %v30409_v24  ;;  %v16797_v62 = vsub.f32 %v28244_v56, %v28263_v5  ;;  %v16934_v26 = vsub.f32 %v28084_v44, %v30411_v36 }
0x34fb   :  { %v28297_v2 = vpop.xlane.xlu0 %15414  ;;  %v16921_v24 = vand.u32 4294901760, %v16920_v16  ;;  %v16941_v18 = vsub.f32 %v28082_v46, %v30412_v37  ;;  %v16816_v32 = vand.u32 4294901760, %v16815_v41  ;;  %v30413_v5 = vand.u32 4294901760, %v27753_v54 }
0x34fc   :  { %v28304_v29 = vpop.xlane.xlu1 %15411  ;;  %v16809_v27 = vand.u32 4294901760, %v16808_v17  ;;  %v30414_v52 = vand.u32 4294901760, %v27743_v4  ;;  %v28319_v16 = vrot.slane %v17583_v19, %v30415_v0  ;;  %v28322_v21 = vrot.slane %v17578_v57, %v30415_v0 }
0x34fd   :  { %v16822_v33 = vsub.f32 %v27753_v54, %v30413_v5  ;;  %v30416_v49 = vand.u32 4294901760, %v28288_v12  ;;  %v30417_v37 = vand.u32 4294901760, %v28282_v42  ;;  %v28330_v41 = vand.u32 4294901760, %v16797_v62 }
0x34fe   :  { %v16829_v43 = vsub.f32 %v27743_v4, %v30414_v52  ;;  %v30421_v52 = vand.u32 4294901760, %v28268_v53  ;;  %v22468_v19 = vpack.c.bf16 %v16928_v10, %v16921_v24  ;;  %v30423_v57 = vand.u32 4294901760, %v28114_v47 }
0x34ff   :  { %v15367_v36 = vpop.xlane.xlu0 %15366  ;;  %v28328_v17 = vpack.c.bf16 %v30417_v37, %v30416_v49  ;;  %30419 = vst [vmem:[#allocation61_spill] sm:$0xff] %v28330_v41  ;;  %v16955_v56 = vsub.f32 %v28112_v30, %v30424_v59  ;;  %v16935_v37 = vand.u32 4294901760, %v16934_v26  ;;  %v16942_v25 = vand.u32 4294901760, %v16941_v18 }
0x3500   :  { %v15364_v5 = vpop.xlane.xlu1 %15363  ;;  %v28336_v55 = vpack.c.bf16 %v30421_v52, %v30420_v22  ;;  %v16948_v23 = vsub.f32 %v28114_v47, %v30423_v57  ;;  %v17589_v49 = vmul.f32 %v28322_v21, %v15367_v36  ;;  %v17625_v62 = vmul.f32 %v28319_v16, %v15367_v36 }
0x3501   :  { %30418 = vst [vmem:[#allocation57_spill] sm:$0xff] %v28328_v17  ;;  %22465 = vmatprep.subr.bf16.mxu1 %v28328_v17  ;;  %v16823_v22 = vand.u32 4294901760, %v16822_v33  ;;  %v16830_v10 = vand.u32 4294901760, %v16829_v43  ;;  %v30425_v24 = vand.u32 4294901760, %v27803_v60  ;;  %v17588_v57 = vmul.f32 %v28322_v21, %v15364_v5  ;;  %v30428_v33 = vld [vmem:[#allocation8_spill] sm:$0xff] }
0x3502   :  { %30422 = vst [vmem:[#allocation64_spill] sm:$0xff] %v28336_v55  ;;  %22467 = vmatpush3.bf16.msra.mxu1 %v28336_v55  ;;  %v17624_v59 = vmul.f32 %v28319_v16, %v15364_v5  ;;  %v30426_v47 = vand.u32 4294901760, %v27813_v63  ;;  %v30427_v26 = vand.u32 4294901760, %v27877_v34  ;;  %v28361_v43 = vrot.slane %v30428_v33, %v30415_v0 }
0x3503   :  { %v16843_v52 = vsub.f32 %v27803_v60, %v30425_v24  ;;  %22469 = vmatprep.subr.bf16.mxu1 %v22468_v19  ;;  %v22470_v55 = vpack.c.bf16 %v16816_v32, %v16809_v27  ;;  %v16949_v17 = vand.u32 4294901760, %v16948_v23  ;;  %v16956_v24 = vand.u32 4294901760, %v16955_v56  ;;  %v28374_v33 = vpop.xlane.xlu0 %15420 }
0x3504   :  { %v16836_v30 = vsub.f32 %v27813_v63, %v30426_v47  ;;  %v16857_v18 = vsub.f32 %v27877_v34, %v30427_v26  ;;  %v17657_v60 = vmax.f32 %v17589_v49, %v17625_v62  ;;  %v22472_v54 = vpack.c.bf16 %v16942_v25, %v16935_v37  ;;  %v30431_v26 = vld [vmem:[#allocation13_spill] sm:$0xff] }
0x3505   :  { %16799 = vmatmul.mubr.f32.vlgmr.msra.gmra.mrb[132].mxu1 %v28330_v41  ;;  %v30429_v19 = vand.u32 4294901760, %v28144_v50  ;;  %v30430_v47 = vand.u32 4294901760, %v28142_v8  ;;  %v28372_v34 = vrot.slane %v30431_v26, %v30415_v0  ;;  %v22474_v23 = vpack.c.bf16 %v16830_v10, %v16823_v22 }
0x3506   :  { %22471 = vmatpush3.bf16.msra.mxu1 %v22470_v55  ;;  %v16844_v32 = vand.u32 4294901760, %v16843_v52  ;;  %v30432_v27 = vand.u32 4294901760, %v27896_v13  ;;  %17029 = vmatprep.mubr.f32.mxu1 %v27857_v11  ;;  %v17698_v56 = vmul.f32 %v28361_v43, %v15367_v36  ;;  %v17656_v49 = vmax.f32 %v17588_v57, %v17624_v59 }
0x3507   :  { %v16962_v4 = vsub.f32 %v28144_v50, %v30429_v19  ;;  %v16969_v63 = vsub.f32 %v28142_v8, %v30430_v47  ;;  %22473 = vmatprep.subr.bf16.mxu1 %v22472_v54  ;;  %v16837_v62 = vand.u32 4294901760, %v16836_v30  ;;  %v16858_v37 = vand.u32 4294901760, %v16857_v18  ;;  %v28382_v47 = vpop.xlane.xlu1 %15417 }
0x3508   :  { %v16850_v25 = vsub.f32 %v27896_v13, %v30432_v27  ;;  %v17699_v19 = vmul.f32 %v28372_v34, %v15367_v36  ;;  %30433 = vst [vmem:[#allocation65_spill] sm:$0xff] %v28382_v47  ;;  %v22476_v26 = vpack.c.bf16 %v16956_v24, %v16949_v17  ;;  %v30434_v55 = vand.u32 4294901760, %v28174_v61  ;;  %v15373_v47 = vpop.xlane.xlu0 %15372 }
0x3509   :  { %v30435_v10 = vand.u32 4294901760, %v28172_v31  ;;  %v17762_v27 = vsub.f32 %v17698_v56, %v17657_v60  ;;  %v17696_v41 = vmul.f32 %v28361_v43, %v15364_v5  ;;  %v16963_v57 = vand.u32 4294901760, %v16962_v4 }
0x350a   :  { %v16976_v22 = vsub.f32 %v28174_v61, %v30434_v55  ;;  %v16970_v54 = vand.u32 4294901760, %v16969_v63  ;;  %v17763_v30 = vsub.f32 %v17699_v19, %v17657_v60  ;;  %v17697_v59 = vmul.f32 %v28372_v34, %v15364_v5  ;;  %22475 = vmatpush3.bf16.msra.mxu1 %v22474_v23 }
0x350b   :  { %v16983_v52 = vsub.f32 %v28172_v31, %v30435_v10  ;;  %v16851_v36 = vand.u32 4294901760, %v16850_v25  ;;  %v30436_v17 = vand.u32 4294901760, %v27952_v15  ;;  %v17760_v24 = vsub.f32 %v17696_v41, %v17656_v49  ;;  %22477 = vmatprep.subr.bf16.mxu1 %v22476_v26 }
0x350c   :  { %v22478_v55 = vpack.c.bf16 %v16844_v32, %v16837_v62  ;;  %v30437_v11 = vand.u32 4294901760, %v27963_v1  ;;  %v17761_v10 = vsub.f32 %v17697_v59, %v17656_v49  ;;  %v16977_v4 = vand.u32 4294901760, %v16976_v22  ;;  %v15370_v32 = vpop.xlane.xlu1 %15369 }
0x350d   :  { %v16871_v18 = vsub.f32 %v27952_v15, %v30436_v17  ;;  %v16984_v63 = vand.u32 4294901760, %v16983_v52  ;;  %v30438_v60 = vand.u32 4294901760, %v28204_v40  ;;  %v17828_v23 = vmul.f32 1.442695, %v17762_v27 }
0x350e   :  { %v16864_v56 = vsub.f32 %v27963_v1, %v30437_v11  ;;  %v22480_v25 = vpack.c.bf16 %v16970_v54, %v16963_v57  ;;  %v30439_v19 = vand.u32 4294901760, %v28206_v38  ;;  %v17830_v26 = vmul.f32 1.442695, %v17763_v30  ;;  %22479 = vmatpush3.bf16.msra.mxu1 %v22478_v55 }
0x350f   :  { %v16997_v5 = vsub.f32 %v28204_v40, %v30438_v60  ;;  %v22482_v62 = vpack.c.bf16 %v16858_v37, %v16851_v36  ;;  %v16872_v17 = vand.u32 4294901760, %v16871_v18  ;;  %v30440_v11 = vand.u32 4294901760, %v27994_v45 }
0x3510   :  { %v16990_v41 = vsub.f32 %v28206_v38, %v30439_v19  ;;  %v17824_v22 = vmul.f32 1.442695, %v17760_v24  ;;  %v17591_v52 = vmul.f32 %v28322_v21, %v15373_v47  ;;  %v17627_v59 = vmul.f32 %v28319_v16, %v15373_v47  ;;  %22481 = vmatprep.subr.bf16.mxu1 %v22480_v25 }
0x3511   :  { %v16885_v49 = vsub.f32 %v27994_v45, %v30440_v11  ;;  %v30441_v27 = vand.u32 4294901760, %v28004_v7  ;;  %v17826_v54 = vmul.f32 1.442695, %v17761_v10  ;;  %v22484_v30 = vpack.c.bf16 %v16984_v63, %v16977_v4  ;;  %v28414_v24 = vpop.xlane.xlu0 %15426  ;;  %v28417_v63 = vpop.xlane.xlu1 %15423 }
0x3512   :  { %v16865_v60 = vand.u32 4294901760, %v16864_v56  ;;  %v16998_v55 = vand.u32 4294901760, %v16997_v5  ;;  %23770 = vpow2.f32 %v17828_v23  ;;  %v17590_v37 = vmul.f32 %v28322_v21, %v15370_v32  ;;  %30442 = vst [vmem:[#allocation68_spill] sm:$0xff] %v28414_v24  ;;  %22483 = vmatpush3.bf16.msra.mxu1 %v22482_v62  ;;  %30443 = vst [vmem:[#allocation69_spill] sm:$0xff] %v28417_v63 }
0x3513   :  { %v16878_v57 = vsub.f32 %v28004_v7, %v30441_v27  ;;  %v17626_v36 = vmul.f32 %v28319_v16, %v15370_v32  ;;  %v16991_v18 = vand.u32 4294901760, %v16990_v41  ;;  %23772 = vpow2.f32 %v17830_v26  ;;  %22485 = vmatprep.subr.bf16.mxu1 %v22484_v30 }
0x3514   :  { %23774 = vpow2.f32 %v17824_v22  ;;  %v17659_v25 = vmax.f32 %v17591_v52, %v17627_v59  ;;  %v16886_v11 = vand.u32 4294901760, %v16885_v49  ;;  %v22486_v10 = vpack.c.bf16 %v16872_v17, %v16865_v60 }
0x3515   :  { %v16879_v19 = vand.u32 4294901760, %v16878_v57  ;;  %23776 = vpow2.f32 %v17826_v54  ;;  %v17702_v56 = vmul.f32 %v28361_v43, %v15373_v47  ;;  %v17658_v4 = vmax.f32 %v17590_v37, %v17626_v36 }
0x3516   :  { %v22488_v5 = vpack.c.bf16 %v16998_v55, %v16991_v18  ;;  %v17703_v23 = vmul.f32 %v28372_v34, %v15373_v47  ;;  %22487 = vmatpush3.bf16.msra.mxu1 %v22486_v10  ;;  %v17700_v26 = vmul.f32 %v28361_v43, %v15370_v32  ;;  %v30444_v22 = vand.u32 4294901760, %v28227_v39  ;;  %v15379_v47 = vpop.xlane.xlu0 %15378 }
0x3517   :  { %v17766_v41 = vsub.f32 %v17702_v56, %v17659_v25  ;;  %v22490_v62 = vpack.c.bf16 %v16886_v11, %v16879_v19  ;;  %v30445_v17 = vand.u32 4294901760, %v28233_v9  ;;  %v17701_v27 = vmul.f32 %v28372_v34, %v15370_v32 }
0x3518   :  { %22489 = vmatprep.subr.bf16.mxu1 %v22488_v5  ;;  %v28424_v49 = vsub.f32 %v28227_v39, %v30444_v22  ;;  %v17767_v59 = vsub.f32 %v17703_v23, %v17659_v25  ;;  %v17764_v57 = vsub.f32 %v17700_v26, %v17658_v4  ;;  %v17593_v55 = vmul.f32 %v28322_v21, %v15379_v47  ;;  %v15376_v39 = vpop.xlane.xlu1 %15375 }
0x3519   :  { %v28429_v52 = vsub.f32 %v28233_v9, %v30445_v17  ;;  %v17765_v54 = vsub.f32 %v17701_v27, %v17658_v4  ;;  %v17836_v60 = vmul.f32 1.442695, %v17766_v41  ;;  %v17629_v37 = vmul.f32 %v28319_v16, %v15379_v47 }
0x351a   :  { %22491 = vmatpush3.bf16.msra.mxu1 %v22490_v62  ;;  %v17838_v18 = vmul.f32 1.442695, %v17767_v59  ;;  %v29863_v9 = vand.u32 4294901760, %v28424_v49  ;;  %v17832_v11 = vmul.f32 1.442695, %v17764_v57  ;;  %v30446_v32 = vand.u32 4294901760, %v28031_v6  ;;  %v28444_v22 = vpop.xlane.xlu0 %15432 }
0x351b   :  { %v29861_v19 = vand.u32 4294901760, %v28429_v52  ;;  %v17834_v4 = vmul.f32 1.442695, %v17765_v54  ;;  %v17592_v5 = vmul.f32 %v28322_v21, %v15376_v39  ;;  %v17628_v23 = vmul.f32 %v28319_v16, %v15376_v39  ;;  %30448 = vst [vmem:[#allocation70_spill] sm:$0xff] %v28444_v22 }
0x351c   :  { %v23771_v30 = vpop.eup %23770  ;;  %v16899_v10 = vsub.f32 %v28031_v6, %v30446_v32  ;;  %v30447_v41 = vand.u32 4294901760, %v28036_v14  ;;  %23778 = vpow2.f32 %v17836_v60  ;;  %v17661_v62 = vmax.f32 %v17593_v55, %v17629_v37  ;;  %v28453_v57 = vpop.xlane.xlu1 %15429 }
0x351d   :  { %v23773_v36 = vpop.eup %23772  ;;  %23780 = vpow2.f32 %v17838_v18  ;;  %v17004_v17 = vsub.f32 %v28429_v52, %v29861_v19  ;;  %v17011_v59 = vsub.f32 %v28424_v49, %v29863_v9  ;;  %v17706_v27 = vmul.f32 %v28361_v43, %v15379_v47  ;;  %30449 = vst [vmem:[#allocation73_spill] sm:$0xff] %v28453_v57  ;;  %v30450_v19 = vld [vmem:[#allocation11_spill] sm:$0xff] }
0x351e   :  { %v23775_v25 = vpop.eup %23774  ;;  %v16892_v26 = vsub.f32 %v28036_v14, %v30447_v41  ;;  %23782 = vpow2.f32 %v17832_v11  ;;  %v17955_v54 = vadd.f32 %v23773_v36, %v23771_v30  ;;  %v17660_v60 = vmax.f32 %v17592_v5, %v17628_v23  ;;  %v30451_v5 = vld [vmem:[#allocation16_spill] sm:$0xff] }
0x351f   :  { %v23777_v56 = vpop.eup %23776  ;;  %23784 = vpow2.f32 %v17834_v4  ;;  %v16900_v37 = vand.u32 4294901760, %v16899_v10  ;;  %v17707_v18 = vmul.f32 %v28372_v34, %v15379_v47  ;;  %v17770_v41 = vsub.f32 %v17706_v27, %v17661_v62  ;;  %v15385_v4 = vpop.xlane.xlu0 %15384 }
0x3520   :  { %v17952_v32 = vadd.f32 %v23777_v56, %v23775_v25  ;;  %v16893_v55 = vand.u32 4294901760, %v16892_v26  ;;  %17956 = vadd.xlane.f32.xlu0 %v17955_v54  ;;  %v28458_v22 = vrot.slane %v30450_v19, %v30415_v0  ;;  %v17704_v11 = vmul.f32 %v28361_v43, %v15376_v39  ;;  %v15382_v54 = vpop.xlane.xlu1 %15381 }
0x3521   :  { %v17005_v9 = vand.u32 4294901760, %v17004_v17  ;;  %v17012_v63 = vand.u32 4294901760, %v17011_v59  ;;  %v17771_v57 = vsub.f32 %v17707_v18, %v17661_v62  ;;  %v17705_v24 = vmul.f32 %v28372_v34, %v15376_v39 }
0x3522   :  { %17953 = vadd.xlane.f32.xlu1 %v17952_v32  ;;  %v28464_v10 = vrot.slane %v30451_v5, %v30415_v0  ;;  %v17768_v47 = vsub.f32 %v17704_v11, %v17660_v60  ;;  %v18058_v23 = vmul.f32 %v23771_v30, %v28458_v22  ;;  %v22494_v26 = vpack.c.bf16 %v16900_v37, %v16893_v55 }
0x3523   :  { %v30452_v27 = vand.u32 4294901760, %v28282_v42  ;;  %v30454_v17 = vand.u32 4294901760, %v28288_v12  ;;  %v17844_v39 = vmul.f32 1.442695, %v17770_v41  ;;  %v17769_v59 = vsub.f32 %v17705_v24, %v17660_v60  ;;  %v28492_v5 = vpop.xlane.xlu0 %15438 }
0x3524   :  { %v18059_v0 = vmul.f32 %v23773_v36, %v28464_v10  ;;  %v22492_v32 = vpack.c.bf16 %v17012_v63, %v17005_v9  ;;  %v18056_v18 = vmul.f32 %v23775_v25, %v28458_v22  ;;  %v18057_v30 = vmul.f32 %v23777_v56, %v28464_v10  ;;  %30457 = vst [vmem:[#allocation77_spill] sm:$0xff] %v28492_v5 }
0x3525   :  { %v28470_v19 = vsub.f32 %v28282_v42, %v30452_v27  ;;  %v28475_v62 = vsub.f32 %v28288_v12, %v30454_v17  ;;  %v30455_v37 = vand.u32 4294901760, %v28273_v28  ;;  %v17846_v11 = vmul.f32 1.442695, %v17771_v57 }
0x3526   :  { %v23779_v55 = vpop.eup %23778  ;;  %v17595_v12 = vmul.f32 %v28322_v21, %v15385_v4  ;;  %v17631_v41 = vmul.f32 %v28319_v16, %v15385_v4  ;;  %v30456_v60 = vand.u32 4294901760, %v28268_v53  ;;  %v17840_v36 = vmul.f32 1.442695, %v17768_v47  ;;  %22493 = vmatprep.subr.bf16.mxu1 %v22492_v32 }
0x3527   :  { %30453 = vst [vmem:[#allocation74_spill] sm:$0xff] %v28470_v19  ;;  %v28483_v42 = vsub.f32 %v28273_v28, %v30455_v37  ;;  %v23781_v24 = vpop.eup %23780  ;;  %v18123_v9 = vadd.f32 %v18059_v0, %v18058_v23  ;;  %v18120_v25 = vadd.f32 %v18057_v30, %v18056_v18  ;;  %22495 = vmatpush3.bf16.msra.mxu1 %v22494_v26  ;;  %v29867_v28 = vand.u32 4294901760, %v28475_v62  ;;  %v28499_v0 = vpop.xlane.xlu1 %15435 }
0x3528   :  { %v28490_v63 = vsub.f32 %v28268_v53, %v30456_v60  ;;  %v23783_v56 = vpop.eup %23782  ;;  %v29869_v57 = vand.u32 4294901760, %v28470_v19  ;;  %23786 = vpow2.f32 %v17844_v39  ;;  %v17842_v17 = vmul.f32 1.442695, %v17769_v59  ;;  %30458 = vst [vmem:[#allocation78_spill] sm:$0xff] %v28499_v0 }
0x3529   :  { %v23785_v27 = vpop.eup %23784  ;;  %v17594_v37 = vmul.f32 %v28322_v21, %v15382_v54  ;;  %v17630_v53 = vmul.f32 %v28319_v16, %v15382_v54  ;;  %18124 = vadd.xlane.f32.xlu0 %v18123_v9  ;;  %18121 = vadd.xlane.f32.xlu1 %v18120_v25  ;;  %v29870_v47 = vand.u32 4294901760, %v28483_v42  ;;  %23788 = vpow2.f32 %v17846_v11  ;;  %v15391_v9 = vpop.xlane.xlu0 %15390 }
0x352a   :  { %v17663_v23 = vmax.f32 %v17595_v12, %v17631_v41  ;;  %23790 = vpow2.f32 %v17840_v36  ;;  %v17961_v32 = vadd.f32 %v23781_v24, %v23779_v55  ;;  %v17710_v18 = vmul.f32 %v28361_v43, %v15385_v4 }
0x352b   :  { %v17018_v39 = vsub.f32 %v28475_v62, %v29867_v28  ;;  %v17025_v59 = vsub.f32 %v28470_v19, %v29869_v57  ;;  %v17958_v30 = vadd.f32 %v23785_v27, %v23783_v56  ;;  %23792 = vpow2.f32 %v17842_v17  ;;  %v15388_v57 = vpop.xlane.xlu1 %15387 }
0x352c   :  { %v17711_v11 = vmul.f32 %v28372_v34, %v15385_v4  ;;  %v17662_v12 = vmax.f32 %v17594_v37, %v17630_v53  ;;  %v17774_v41 = vsub.f32 %v17710_v18, %v17663_v23  ;;  %v16906_v25 = vsub.f32 %v28483_v42, %v29870_v47 }
0x352d   :  { %17962 = vadd.xlane.f32.xlu0 %v17961_v32  ;;  %v17019_v60 = vand.u32 4294901760, %v17018_v39  ;;  %v17026_v36 = vand.u32 4294901760, %v17025_v59  ;;  %17959 = vadd.xlane.f32.xlu1 %v17958_v30  ;;  %v17708_v26 = vmul.f32 %v28361_v43, %v15382_v54  ;;  %v30459_v17 = vand.u32 4294901760, %v28490_v63 }
0x352e   :  { %v17775_v28 = vsub.f32 %v17711_v11, %v17663_v23  ;;  %v17709_v37 = vmul.f32 %v28372_v34, %v15382_v54  ;;  %v17852_v32 = vmul.f32 1.442695, %v17774_v41  ;;  %v16907_v18 = vand.u32 4294901760, %v16906_v25 }
0x352f   :  { %v22496_v0 = vpack.c.bf16 %v17026_v36, %v17019_v60  ;;  %v16913_v4 = vsub.f32 %v28490_v63, %v30459_v17  ;;  %v17772_v53 = vsub.f32 %v17708_v26, %v17662_v12  ;;  %v17597_v23 = vmul.f32 %v28322_v21, %v15391_v9  ;;  %v28525_v26 = vpop.xlane.xlu0 %15444  ;;  %v28530_v19 = vpop.xlane.xlu1 %15441 }
0x3530   :  { %v17854_v59 = vmul.f32 1.442695, %v17775_v28  ;;  %v17773_v30 = vsub.f32 %v17709_v37, %v17662_v12  ;;  %v17633_v11 = vmul.f32 %v28319_v16, %v15391_v9  ;;  %v18062_v47 = vmul.f32 %v23779_v55, %v28458_v22 }
0x3531   :  { %22497 = vmatprep.subr.bf16.mxu1 %v22496_v0  ;;  %v16914_v36 = vand.u32 4294901760, %v16913_v4  ;;  %v18063_v17 = vmul.f32 %v23781_v24, %v28464_v10  ;;  %v18060_v54 = vmul.f32 %v23783_v56, %v28458_v22  ;;  %v17848_v41 = vmul.f32 1.442695, %v17772_v53 }
0x3532   :  { %v28518_v39 = vpop.eup %23786  ;;  %v18061_v25 = vmul.f32 %v23785_v27, %v28464_v10  ;;  %v17596_v28 = vmul.f32 %v28322_v21, %v15388_v57  ;;  %v17632_v12 = vmul.f32 %v28319_v16, %v15388_v57  ;;  %23794 = vpow2.f32 %v17852_v32 }
0x3533   :  { %v23789_v60 = vpop.eup %23788  ;;  %v22498_v37 = vpack.c.bf16 %v16914_v36, %v16907_v18  ;;  %v18129_v5 = vadd.f32 %v18063_v17, %v18062_v47  ;;  %v17850_v55 = vmul.f32 1.442695, %v17773_v30  ;;  %23796 = vpow2.f32 %v17854_v59 }
0x3534   :  { %v23791_v0 = vpop.eup %23790  ;;  %v18126_v24 = vadd.f32 %v18061_v25, %v18060_v54  ;;  %v17665_v56 = vmax.f32 %v17597_v23, %v17633_v11  ;;  %v17605_v53 = vmul.f32 %v28322_v21, %v28297_v2  ;;  %v17641_v27 = vmul.f32 %v28319_v16, %v28297_v2  ;;  %v15397_v23 = vpop.xlane.xlu0 %15396 }
0x3535   :  { %v23793_v4 = vpop.eup %23792  ;;  %22499 = vmatpush3.bf16.msra.mxu1 %v22498_v37  ;;  %18130 = vadd.xlane.f32.xlu0 %v18129_v5  ;;  %23798 = vpow2.f32 %v17848_v41  ;;  %v17714_v18 = vmul.f32 %v28361_v43, %v15391_v9  ;;  %v30460_v47 = vpack.c.bf16 %v28052_v48, %v28054_v58  ;;  %v17715_v32 = vmul.f32 %v28372_v34, %v15391_v9  ;;  %v28547_v48 = vpop.xlane.xlu1 %15393 }
0x3536   :  { %18127 = vadd.xlane.f32.xlu1 %v18126_v24  ;;  %v17664_v59 = vmax.f32 %v17596_v28, %v17632_v12  ;;  %v17967_v30 = vadd.f32 %v23789_v60, %v28518_v39  ;;  %v17964_v5 = vadd.f32 %v23793_v4, %v23791_v0  ;;  %23800 = vpow2.f32 %v17850_v55 }
0x3537   :  { %22501 = vmatprep.subr.bf16.mxu1 %v30460_v47  ;;  %v17778_v11 = vsub.f32 %v17714_v18, %v17665_v56  ;;  %v17779_v36 = vsub.f32 %v17715_v32, %v17665_v56  ;;  %v17712_v17 = vmul.f32 %v28361_v43, %v15388_v57  ;;  %v30461_v54 = vpack.c.bf16 %v27681_v3, %v27691_v51  ;;  %v30463_v56 = vld [vmem:[#allocation92_spill] sm:$0xff] }
0x3538   :  { %17031 = vmatmul.mubr.f32.vlgmr.msra.gmra.mrb[134].mxu1 %v28217_v35  ;;  %v17604_v58 = vmul.f32 %v28322_v21, %v28304_v29  ;;  %v30462_v9 = vpack.c.bf16 %v28082_v46, %v28084_v44  ;;  %v17673_v41 = vmax.f32 %v17605_v53, %v17641_v27  ;;  %v17640_v25 = vmul.f32 %v28319_v16, %v28304_v29  ;;  %v30464_v53 = vld [vmem:[#allocation93_spill] sm:$0xff]  ;;  %v28570_v18 = vpop.xlane.xlu0 %15450 }
0x3539   :  { %22503 = vmatpush3.bf16.msra.mxu1 %v30461_v54  ;;  %17968 = vadd.xlane.f32.xlu0 %v17967_v30  ;;  %v17713_v28 = vmul.f32 %v28372_v34, %v15388_v57  ;;  %v17776_v12 = vsub.f32 %v17712_v17, %v17664_v59  ;;  %v17730_v3 = vmul.f32 %v28361_v43, %v28297_v2  ;;  %v17860_v37 = vmul.f32 1.442695, %v17778_v11  ;;  %v30467_v11 = vld [vmem:[#allocation34_spill] sm:$0xff] }
0x353a   :  { %22505 = vmatprep.subr.bf16.mxu1 %v30462_v9  ;;  %17965 = vadd.xlane.f32.xlu1 %v17964_v5  ;;  %v17731_v51 = vmul.f32 %v28372_v34, %v28297_v2  ;;  %v17862_v55 = vmul.f32 1.442695, %v17779_v36  ;;  %v17599_v57 = vmul.f32 %v28322_v21, %v15397_v23  ;;  %v30465_v27 = vpack.c.bf16 %v30463_v56, %v30464_v53  ;;  %v30466_v5 = vld [vmem:[#allocation33_spill] sm:$0xff]  ;;  %v28588_v53 = vpop.xlane.xlu1 %15447 }
0x353b   :  { %17166 = vmatprep.mubr.f32.mxu1 %v27871_v20  ;;  %v17777_v24 = vsub.f32 %v17713_v28, %v17664_v59  ;;  %v17635_v2 = vmul.f32 %v28319_v16, %v15397_v23  ;;  %v18066_v32 = vmul.f32 %v28518_v39, %v28458_v22  ;;  %v18067_v30 = vmul.f32 %v23789_v60, %v28464_v10 }
0x353c   :  { %v28572_v47 = vpop.eup %23794  ;;  %v30468_v59 = vpack.c.bf16 %v30466_v5, %v30467_v11  ;;  %v18064_v36 = vmul.f32 %v23791_v0, %v28458_v22  ;;  %v17794_v54 = vsub.f32 %v17730_v3, %v17673_v41  ;;  %v28584_v9 = vmax.f32 %v17604_v58, %v17640_v25  ;;  %v30470_v11 = vld [vmem:[#allocation99_spill] sm:$0xff] }
0x353d   :  { %22507 = vmatpush3.bf16.msra.mxu1 %v30465_v27  ;;  %v28582_v17 = vpop.eup %23796  ;;  %v17728_v28 = vmul.f32 %v28361_v43, %v28304_v29  ;;  %v17856_v56 = vmul.f32 1.442695, %v17776_v12  ;;  %v17598_v60 = vmul.f32 %v28322_v21, %v28547_v48  ;;  %v17634_v27 = vmul.f32 %v28319_v16, %v28547_v48  ;;  %v30469_v12 = vld [vmem:[#allocation47_spill] sm:$0xff] }
0x353e   :  { %22509 = vmatprep.subr.bf16.mxu1 %v30468_v59  ;;  %v18135_v0 = vadd.f32 %v18067_v30, %v18066_v32  ;;  %v18065_v5 = vmul.f32 %v23793_v4, %v28464_v10  ;;  %v17795_v3 = vsub.f32 %v17731_v51, %v17673_v41  ;;  %v28599_v58 = vmul.f32 %v28372_v34, %v28304_v29 }
0x353f   :  { %v28590_v39 = vpop.eup %23798  ;;  %23802 = vpow2.f32 %v17860_v37  ;;  %v17858_v25 = vmul.f32 1.442695, %v17777_v24  ;;  %v30471_v59 = vpack.c.bf16 %v30469_v12, %v30470_v11  ;;  %v17667_v46 = vmax.f32 %v17599_v57, %v17635_v2  ;;  %v15403_v24 = vpop.xlane.xlu0 %15402 }
0x3540   :  { %v28604_v44 = vpop.eup %23800  ;;  %23804 = vpow2.f32 %v17862_v55  ;;  %18136 = vadd.xlane.f32.xlu0 %v18135_v0  ;;  %v18132_v20 = vadd.f32 %v18065_v5, %v18064_v36  ;;  %v30472_v4 = vpack.c.bf16 %v28142_v8, %v28144_v50  ;;  %v22530_v29 = vpack.c.bf16 %v28490_v63, %v28483_v42  ;;  %v15400_v36 = vpop.xlane.xlu1 %15399 }
0x3541   :  { %22511 = vmatpush3.bf16.msra.mxu1 %v30471_v59  ;;  %v17892_v41 = vmul.f32 1.442695, %v17794_v54  ;;  %v17792_v51 = vsub.f32 %v17728_v28, %v28584_v9  ;;  %v17793_v37 = vsub.f32 %v28599_v58, %v28584_v9  ;;  %23806 = vpow2.f32 %v17856_v56  ;;  %v30473_v54 = vld [vmem:[#allocation59_spill] sm:$0xff] }
0x3542   :  { %22513 = vmatprep.subr.bf16.mxu1 %v30472_v4  ;;  %v17718_v55 = vmul.f32 %v28361_v43, %v15397_v23  ;;  %v17719_v57 = vmul.f32 %v28372_v34, %v15397_v23  ;;  %v17666_v2 = vmax.f32 %v17598_v60, %v17634_v27  ;;  %18133 = vadd.xlane.f32.xlu1 %v18132_v20  ;;  %v17894_v50 = vmul.f32 1.442695, %v17795_v3 }
0x3543   :  { %v17973_v8 = vadd.f32 %v28582_v17, %v28572_v47  ;;  %23808 = vpow2.f32 %v17858_v25  ;;  %v17716_v32 = vmul.f32 %v28361_v43, %v28547_v48  ;;  %v17970_v30 = vadd.f32 %v28604_v44, %v28590_v39 }
0x3544   :  { %v30474_v28 = vpack.c.bf16 %v30473_v54, %v27896_v13  ;;  %v17782_v56 = vsub.f32 %v17718_v55, %v17667_v46  ;;  %v17783_v23 = vsub.f32 %v17719_v57, %v17667_v46  ;;  %v17601_v20 = vmul.f32 %v28322_v21, %v15403_v24  ;;  %v28645_v57 = vpop.xlane.xlu0 %15456 }
0x3545   :  { %17974 = vadd.xlane.f32.xlu0 %v17973_v8  ;;  %v17637_v60 = vmul.f32 %v28319_v16, %v15403_v24  ;;  %23810 = vpow2.f32 %v17892_v41  ;;  %v17607_v27 = vmul.f32 %v28322_v21, %v28374_v33  ;;  %v17643_v0 = vmul.f32 %v28319_v16, %v28374_v33 }
0x3546   :  { %22515 = vmatpush3.bf16.msra.mxu1 %v30474_v28  ;;  %v17717_v5 = vmul.f32 %v28372_v34, %v28547_v48  ;;  %v30475_v13 = vpack.c.bf16 %v28172_v31, %v28174_v61  ;;  %v17780_v46 = vsub.f32 %v17716_v32, %v17666_v2  ;;  %17971 = vadd.xlane.f32.xlu1 %v17970_v30  ;;  %23812 = vpow2.f32 %v17894_v50 }
0x3547   :  { %v17669_v3 = vmax.f32 %v17601_v20, %v17637_v60  ;;  %v17600_v25 = vmul.f32 %v28322_v21, %v15400_v36  ;;  %v17636_v12 = vmul.f32 %v28319_v16, %v15400_v36  ;;  %v28638_v11 = vmul.f32 1.442695, %v17792_v51 }
0x3548   :  { %22517 = vmatprep.subr.bf16.mxu1 %v30475_v13  ;;  %v17781_v59 = vsub.f32 %v17717_v5, %v17666_v2  ;;  %v17722_v4 = vmul.f32 %v28361_v43, %v15403_v24  ;;  %v30476_v48 = vpack.c.bf16 %v27952_v15, %v27963_v1  ;;  %v17868_v41 = vmul.f32 1.442695, %v17782_v56  ;;  %v30478_v56 = vld [vmem:[#allocation65_spill] sm:$0xff] }
0x3549   :  { %v17870_v31 = vmul.f32 1.442695, %v17783_v23  ;;  %v17723_v61 = vmul.f32 %v28372_v34, %v15403_v24  ;;  %v17668_v55 = vmax.f32 %v17600_v25, %v17636_v12  ;;  %v30477_v8 = vpack.c.bf16 %v28204_v40, %v28206_v38  ;;  %v28650_v51 = vpop.eup %23802  ;;  %v28663_v38 = vpop.xlane.xlu1 %15453 }
0x354a   :  { %22519 = vmatpush3.bf16.msra.mxu1 %v30476_v48  ;;  %v17786_v2 = vsub.f32 %v17722_v4, %v17669_v3  ;;  %v18070_v50 = vmul.f32 %v28572_v47, %v28458_v22  ;;  %v18071_v15 = vmul.f32 %v28582_v17, %v28464_v10  ;;  %v18068_v1 = vmul.f32 %v28590_v39, %v28458_v22  ;;  %v28658_v24 = vpop.eup %23804  ;;  %v15409_v25 = vpop.xlane.xlu0 %15408 }
0x354b   :  { %22521 = vmatprep.subr.bf16.mxu1 %v30477_v8  ;;  %v28660_v32 = vmax.f32 %v17607_v27, %v17643_v0  ;;  %v17864_v30 = vmul.f32 1.442695, %v17780_v46  ;;  %v17787_v54 = vsub.f32 %v17723_v61, %v17669_v3  ;;  %v17720_v40 = vmul.f32 %v28361_v43, %v15400_v36  ;;  %v23807_v28 = vpop.eup %23806 }
0x354c   :  { %v17606_v47 = vmul.f32 %v28322_v21, %v30478_v56  ;;  %v17866_v23 = vmul.f32 1.442695, %v17781_v59  ;;  %v18141_v20 = vadd.f32 %v18071_v15, %v18070_v50  ;;  %v18069_v17 = vmul.f32 %v28604_v44, %v28464_v10 }
0x354d   :  { %v30479_v39 = vpack.c.bf16 %v27994_v45, %v28004_v7  ;;  %v17642_v60 = vmul.f32 %v28319_v16, %v30478_v56  ;;  %23814 = vpow2.f32 %v17868_v41  ;;  %v17721_v27 = vmul.f32 %v28372_v34, %v15400_v36  ;;  %v23809_v13 = vpop.eup %23808  ;;  %v15406_v58 = vpop.xlane.xlu1 %15405 }
0x354e   :  { %v17784_v0 = vsub.f32 %v17720_v40, %v17668_v55  ;;  %v30480_v5 = vpack.c.bf16 %v28424_v49, %v28429_v52  ;;  %v17734_v46 = vmul.f32 %v28361_v43, %v28374_v33  ;;  %23816 = vpow2.f32 %v17870_v31  ;;  %18142 = vadd.xlane.f32.xlu0 %v18141_v20 }
0x354f   :  { %22523 = vmatpush3.bf16.msra.mxu1 %v30479_v39  ;;  %v17876_v44 = vmul.f32 1.442695, %v17786_v2  ;;  %v18138_v45 = vadd.f32 %v18069_v17, %v18068_v1  ;;  %v28682_v7 = vmul.f32 %v28372_v34, %v28374_v33  ;;  %23818 = vpow2.f32 %v17864_v30  ;;  %v28684_v12 = vpop.eup %23810 }
0x3550   :  { %22525 = vmatprep.subr.bf16.mxu1 %v30480_v5  ;;  %v17878_v3 = vmul.f32 1.442695, %v17787_v54  ;;  %v17785_v36 = vsub.f32 %v17721_v27, %v17668_v55  ;;  %v28689_v59 = vmul.f32 1.442695, %v17793_v37  ;;  %v17798_v4 = vsub.f32 %v17734_v46, %v28660_v32  ;;  %v28701_v37 = vpop.eup %23812 }
0x3551   :  { %23820 = vpow2.f32 %v17866_v23  ;;  %18139 = vadd.xlane.f32.xlu1 %v18138_v45  ;;  %v17979_v48 = vadd.f32 %v28658_v24, %v28650_v51  ;;  %v30481_v33 = vpack.c.bf16 %v28031_v6, %v28036_v14  ;;  %v17799_v41 = vsub.f32 %v28682_v7, %v28660_v32  ;;  %v30490_v32 = vld [vmem:[#allocation44_spill] sm:$0xff] }
0x3552   :  { %v28699_v31 = vmax.f32 %v17606_v47, %v17642_v60  ;;  %v17872_v61 = vmul.f32 1.442695, %v17784_v0  ;;  %v17976_v9 = vadd.f32 %v23809_v13, %v23807_v28  ;;  %v28705_v55 = vmul.f32 %v28361_v43, %v30478_v56  ;;  %v30482_v47 = vld [vmem:[#allocation68_spill] sm:$0xff] }
0x3553   :  { %22527 = vmatpush3.bf16.msra.mxu1 %v30481_v33  ;;  %23822 = vpow2.f32 %v17876_v44  ;;  %17980 = vadd.xlane.f32.xlu0 %v17979_v48  ;;  %v17603_v8 = vmul.f32 %v28322_v21, %v15409_v25  ;;  %v17639_v6 = vmul.f32 %v28319_v16, %v15409_v25  ;;  %v28711_v14 = vmul.f32 %v28372_v34, %v30478_v56  ;;  %v30483_v48 = vld [vmem:[#allocation69_spill] sm:$0xff] }
0x3554   :  { %23824 = vpow2.f32 %v17878_v3  ;;  %v17874_v2 = vmul.f32 1.442695, %v17785_v36  ;;  %v17726_v50 = vmul.f32 %v28361_v43, %v15409_v25  ;;  %v17727_v1 = vmul.f32 %v28372_v34, %v15409_v25 }
0x3555   :  { %17977 = vadd.xlane.f32.xlu1 %v17976_v9  ;;  %v17671_v15 = vmax.f32 %v17603_v8, %v17639_v6  ;;  %v17602_v30 = vmul.f32 %v28322_v21, %v15406_v58  ;;  %v17638_v54 = vmul.f32 %v28319_v16, %v15406_v58  ;;  %v28717_v40 = vmul.f32 1.442695, %v17798_v4 }
0x3556   :  { %v17609_v23 = vmul.f32 %v28322_v21, %v30482_v47  ;;  %v17645_v56 = vmul.f32 %v28319_v16, %v30482_v47  ;;  %23826 = vpow2.f32 %v17872_v61  ;;  %v17724_v60 = vmul.f32 %v28361_v43, %v15406_v58 }
0x3557   :  { %v17790_v20 = vsub.f32 %v17726_v50, %v17671_v15  ;;  %v17791_v17 = vsub.f32 %v17727_v1, %v17671_v15  ;;  %v17670_v39 = vmax.f32 %v17602_v30, %v17638_v54  ;;  %v23815_v27 = vpop.eup %23814  ;;  %v17725_v0 = vmul.f32 %v28372_v34, %v15406_v58  ;;  %v30485_v54 = vld [vmem:[#allocation70_spill] sm:$0xff] }
0x3558   :  { %v18074_v5 = vmul.f32 %v28650_v51, %v28458_v22  ;;  %v18075_v46 = vmul.f32 %v28658_v24, %v28464_v10  ;;  %v18072_v44 = vmul.f32 %v23807_v28, %v28458_v22  ;;  %v23817_v45 = vpop.eup %23816  ;;  %23828 = vpow2.f32 %v17874_v2  ;;  %v30484_v28 = vld [vmem:[#allocation74_spill] sm:$0xff] }
0x3559   :  { %v17884_v3 = vmul.f32 1.442695, %v17790_v20  ;;  %v17886_v36 = vmul.f32 1.442695, %v17791_v17  ;;  %v17788_v25 = vsub.f32 %v17724_v60, %v17670_v39  ;;  %v23819_v4 = vpop.eup %23818  ;;  %v17608_v33 = vmul.f32 %v28322_v21, %v30483_v48 }
0x355a   :  { %v17789_v61 = vsub.f32 %v17725_v0, %v17670_v39  ;;  %v18147_v9 = vadd.f32 %v18075_v46, %v18074_v5  ;;  %v18073_v58 = vmul.f32 %v23809_v13, %v28464_v10  ;;  %v17644_v51 = vmul.f32 %v28319_v16, %v30483_v48 }
0x355b   :  { %v23821_v8 = vpop.eup %23820  ;;  %23830 = vpow2.f32 %v17884_v3  ;;  %v17880_v24 = vmul.f32 1.442695, %v17788_v25  ;;  %v22528_v6 = vpack.c.bf16 %v30484_v28, %v28475_v62  ;;  %v17985_v15 = vadd.f32 %v23817_v45, %v23815_v27 }
0x355c   :  { %23832 = vpow2.f32 %v17886_v36  ;;  %v17882_v2 = vmul.f32 1.442695, %v17789_v61  ;;  %18148 = vadd.xlane.f32.xlu0 %v18147_v9  ;;  %v18144_v50 = vadd.f32 %v18073_v58, %v18072_v44  ;;  %v17677_v30 = vmax.f32 %v17609_v23, %v17645_v56  ;;  %v30486_v44 = vld [vmem:[#allocation27_spill] sm:$0xff]  ;;  %v30489_v58 = vld [vmem:[#allocation30_spill] sm:$0xff] }
0x355d   :  { %v28737_v1 = vpop.eup %23822  ;;  %v17611_v13 = vmul.f32 %v28322_v21, %v30485_v54  ;;  %v17647_v20 = vmul.f32 %v28319_v16, %v30485_v54  ;;  %23834 = vpow2.f32 %v17880_v24  ;;  %22529 = vmatprep.subr.bf16.mxu1 %v22528_v6  ;;  %v17982_v39 = vadd.f32 %v23821_v8, %v23819_v4 }
0x355e   :  { %v28743_v17 = vpop.eup %23824  ;;  %23836 = vpow2.f32 %v17882_v2  ;;  %18145 = vadd.xlane.f32.xlu1 %v18144_v50  ;;  %22531 = vmatpush3.bf16.msra.mxu1 %v22530_v29  ;;  %v18078_v60 = vmul.f32 %v23815_v27, %v28458_v22  ;;  %v18079_v23 = vmul.f32 %v23817_v45, %v28464_v10  ;;  %v17796_v56 = vsub.f32 %v28705_v55, %v28699_v31  ;;  %v30487_v45 = vld [vmem:[#allocation50_spill] sm:$0xff]  ;;  %v30491_v2 = vld [vmem:[#allocation73_spill] sm:$0xff] }
0x355f   :  { %v17797_v0 = vsub.f32 %v28711_v14, %v28699_v31  ;;  %v17738_v5 = vmul.f32 %v28361_v43, %v30482_v47  ;;  %v17739_v46 = vmul.f32 %v28372_v34, %v30482_v47  ;;  %22533 = vmatprep.subr.bf16.mxu1 %v30486_v44  ;;  %23838 = vpow2.f32 %v28638_v11 }
0x3560   :  { %v28759_v3 = vpop.eup %23826  ;;  %v17676_v29 = vmax.f32 %v17608_v33, %v17644_v51  ;;  %17986 = vadd.xlane.f32.xlu0 %v17985_v15  ;;  %v18076_v27 = vmul.f32 %v23819_v4, %v28458_v22  ;;  %v18077_v55 = vmul.f32 %v23821_v8, %v28464_v10  ;;  %23840 = vpow2.f32 %v28689_v59  ;;  %v30488_v33 = vld [vmem:[#allocation28_spill] sm:$0xff] }
0x3561   :  { %v17802_v31 = vsub.f32 %v17738_v5, %v17677_v30  ;;  %v17803_v14 = vsub.f32 %v17739_v46, %v17677_v30  ;;  %17169 = vmatmul.mubr.f32.vlgmr.msra.gmra.mrb[136].mxu1 %v30487_v45  ;;  %v17902_v47 = vmul.f32 1.442695, %v17799_v41  ;;  %v17736_v36 = vmul.f32 %v28361_v43, %v30483_v48 }
0x3562   :  { %v17679_v11 = vmax.f32 %v17611_v13, %v17647_v20  ;;  %17983 = vadd.xlane.f32.xlu1 %v17982_v39  ;;  %v18153_v25 = vadd.f32 %v18079_v23, %v18078_v60  ;;  %22535 = vmatpush3.bf16.msra.mxu1 %v30488_v33  ;;  %v28772_v4 = vpop.eup %23828  ;;  %23842 = vpow2.f32 %v28717_v40  ;;  %v17896_v59 = vmul.f32 1.442695, %v17796_v56  ;;  %v30492_v39 = vld [vmem:[#allocation31_spill] sm:$0xff] }
0x3563   :  { %v17898_v61 = vmul.f32 1.442695, %v17797_v0  ;;  %v17737_v9 = vmul.f32 %v28372_v34, %v30483_v48  ;;  %22537 = vmatprep.subr.bf16.mxu1 %v30489_v58  ;;  %17273 = vmatprep.mubr.f32.mxu1 %v30490_v32  ;;  %v17800_v7 = vsub.f32 %v17736_v36, %v17676_v29  ;;  %v17742_v41 = vmul.f32 %v28361_v43, %v30485_v54  ;;  %v30493_v56 = vld [vmem:[#allocation35_spill] sm:$0xff]  ;;  %v30501_v32 = vld [vmem:[#allocation45_spill] sm:$0xff] }
0x3564   :  { %18154 = vadd.xlane.f32.xlu0 %v18153_v25  ;;  %v18150_v8 = vadd.f32 %v18077_v55, %v18076_v27  ;;  %v17991_v51 = vadd.f32 %v28743_v17, %v28737_v1  ;;  %v17908_v40 = vmul.f32 1.442695, %v17802_v31  ;;  %v17610_v48 = vmul.f32 %v28322_v21, %v30491_v2 }
0x3565   :  { %v28783_v24 = vpop.eup %23830  ;;  %v17801_v6 = vsub.f32 %v17737_v9, %v17676_v29  ;;  %v17646_v50 = vmul.f32 %v28319_v16, %v30491_v2  ;;  %23844 = vpow2.f32 %v17902_v47  ;;  %v17910_v30 = vmul.f32 1.442695, %v17803_v14 }
0x3566   :  { %v28789_v15 = vpop.eup %23832  ;;  %v17806_v13 = vsub.f32 %v17742_v41, %v17679_v11  ;;  %18151 = vadd.xlane.f32.xlu1 %v18150_v8  ;;  %v17988_v20 = vadd.f32 %v28772_v4, %v28759_v3  ;;  %22539 = vmatpush3.bf16.msra.mxu1 %v30492_v39  ;;  %23846 = vpow2.f32 %v17896_v59  ;;  %v17743_v23 = vmul.f32 %v28372_v34, %v30485_v54  ;;  %v30494_v54 = vld [vmem:[#allocation36_spill] sm:$0xff] }
0x3567   :  { %v28794_v60 = vpop.eup %23834  ;;  %22541 = vmatprep.subr.bf16.mxu1 %v30493_v56  ;;  %23848 = vpow2.f32 %v17898_v61  ;;  %v17904_v5 = vmul.f32 1.442695, %v17800_v7  ;;  %v17997_v46 = vadd.f32 %v28789_v15, %v28783_v24  ;;  %v17906_v29 = vmul.f32 1.442695, %v17801_v6  ;;  %v30496_v7 = vld [vmem:[#allocation38_spill] sm:$0xff]  ;;  %v30497_v6 = vld [vmem:[#allocation39_spill] sm:$0xff] }
0x3568   :  { %v28799_v0 = vpop.eup %23836  ;;  %17992 = vadd.xlane.f32.xlu0 %v17991_v51  ;;  %23850 = vpow2.f32 %v17908_v40  ;;  %v17807_v27 = vsub.f32 %v17743_v23, %v17679_v11  ;;  %v28803_v55 = vmax.f32 %v17610_v48, %v17646_v50  ;;  %v17916_v14 = vmul.f32 1.442695, %v17806_v13  ;;  %v30495_v11 = vld [vmem:[#allocation77_spill] sm:$0xff] }
0x3569   :  { %v23839_v31 = vpop.eup %23838  ;;  %23852 = vpow2.f32 %v17910_v30  ;;  %v17994_v47 = vadd.f32 %v28799_v0, %v28794_v60  ;;  %v17740_v25 = vmul.f32 %v28361_v43, %v30491_v2  ;;  %v28812_v59 = vmul.f32 %v28372_v34, %v30491_v2  ;;  %v30498_v13 = vld [vmem:[#allocation41_spill] sm:$0xff] }
0x356a   :  { %17989 = vadd.xlane.f32.xlu1 %v17988_v20  ;;  %22543 = vmatpush3.bf16.msra.mxu1 %v30494_v54  ;;  %v23841_v36 = vpop.eup %23840  ;;  %v17613_v61 = vmul.f32 %v28322_v21, %v30495_v11  ;;  %v17649_v9 = vmul.f32 %v28319_v16, %v30495_v11  ;;  %23854 = vpow2.f32 %v17904_v5  ;;  %v17918_v8 = vmul.f32 1.442695, %v17807_v27 }
0x356b   :  { %22545 = vmatprep.subr.bf16.mxu1 %v30496_v7  ;;  %23856 = vpow2.f32 %v17906_v29  ;;  %v17804_v51 = vsub.f32 %v17740_v25, %v28803_v55  ;;  %v17805_v40 = vsub.f32 %v28812_v59, %v28803_v55  ;;  %v18003_v2 = vadd.f32 %v28701_v37, %v28684_v12 }
0x356c   :  { %17998 = vadd.xlane.f32.xlu0 %v17997_v46  ;;  %v23843_v41 = vpop.eup %23842  ;;  %23858 = vpow2.f32 %v17916_v14  ;;  %v18090_v48 = vmul.f32 %v28684_v12, %v28458_v22  ;;  %v18091_v50 = vmul.f32 %v28701_v37, %v28464_v10  ;;  %v17681_v30 = vmax.f32 %v17613_v61, %v17649_v9  ;;  %v30499_v14 = vld [vmem:[#allocation78_spill] sm:$0xff] }
0x356d   :  { %v18000_v20 = vadd.f32 %v23841_v36, %v23839_v31  ;;  %v18088_v23 = vmul.f32 %v23839_v31, %v28458_v22  ;;  %v18082_v5 = vmul.f32 %v28737_v1, %v28458_v22  ;;  %v18089_v29 = vmul.f32 %v23841_v36, %v28464_v10 }
0x356e   :  { %17995 = vadd.xlane.f32.xlu1 %v17994_v47  ;;  %22547 = vmatpush3.bf16.msra.mxu1 %v30497_v6  ;;  %v18083_v27 = vmul.f32 %v28743_v17, %v28464_v10  ;;  %v18080_v12 = vmul.f32 %v28759_v3, %v28458_v22  ;;  %v18081_v37 = vmul.f32 %v28772_v4, %v28464_v10  ;;  %v17912_v25 = vmul.f32 1.442695, %v17804_v51  ;;  %v30500_v3 = vld [vmem:[#allocation42_spill] sm:$0xff] }
0x356f   :  { %22549 = vmatprep.subr.bf16.mxu1 %v30498_v13  ;;  %v23845_v46 = vpop.eup %23844  ;;  %v17746_v31 = vmul.f32 %v28361_v43, %v30495_v11  ;;  %v17747_v1 = vmul.f32 %v28372_v34, %v30495_v11  ;;  %v17612_v47 = vmul.f32 %v28322_v21, %v30499_v14  ;;  %v17648_v36 = vmul.f32 %v28319_v16, %v30499_v14 }
0x3570   :  { %18004 = vadd.xlane.f32.xlu0 %v18003_v2  ;;  %v23847_v55 = vpop.eup %23846  ;;  %v18171_v59 = vadd.f32 %v18091_v50, %v18090_v48  ;;  %v28849_v4 = vadd.f32 %v18083_v27, %v18082_v5  ;;  %v28851_v61 = vadd.f32 %v18081_v37, %v18080_v12  ;;  %v18086_v11 = vmul.f32 %v28783_v24, %v28458_v22 }
0x3571   :  { %v23849_v17 = vpop.eup %23848  ;;  %v17810_v2 = vsub.f32 %v17746_v31, %v17681_v30  ;;  %v18087_v45 = vmul.f32 %v28789_v15, %v28464_v10  ;;  %v18084_v51 = vmul.f32 %v28794_v60, %v28458_v22  ;;  %v17615_v48 = vmul.f32 %v28322_v21, %v28525_v26  ;;  %v30502_v60 = vld [vmem:[#allocation46_spill] sm:$0xff] }
0x3572   :  { %18001 = vadd.xlane.f32.xlu1 %v18000_v20  ;;  %22551 = vmatpush3.bf16.msra.mxu1 %v30500_v3  ;;  %v23851_v9 = vpop.eup %23850  ;;  %v17651_v50 = vmul.f32 %v28319_v16, %v28525_v26  ;;  %v18168_v5 = vadd.f32 %v18089_v29, %v18088_v23  ;;  %v18085_v27 = vmul.f32 %v28799_v0, %v28464_v10  ;;  %23860 = vpow2.f32 %v17918_v8 }
0x3573   :  { %22553 = vmatprep.subr.bf16.mxu1 %v30501_v32  ;;  %v23853_v20 = vpop.eup %23852  ;;  %v17811_v12 = vsub.f32 %v17747_v1, %v17681_v30  ;;  %v17680_v24 = vmax.f32 %v17612_v47, %v17648_v36  ;;  %v18009_v37 = vadd.f32 %v23845_v46, %v23843_v41  ;;  %v28866_v31 = vadd.f32 %v18087_v45, %v18086_v11  ;;  %v30503_v30 = vld [vmem:[#allocation53_spill] sm:$0xff] }
0x3574   :  { %18172 = vadd.xlane.f32.xlu0 %v18171_v59  ;;  %v23855_v15 = vpop.eup %23854  ;;  %v18094_v32 = vmul.f32 %v23843_v41, %v28458_v22  ;;  %v18095_v3 = vmul.f32 %v23845_v46, %v28464_v10  ;;  %v28871_v13 = vadd.f32 %v18085_v27, %v18084_v51  ;;  %v17914_v29 = vmul.f32 1.442695, %v17805_v40 }
0x3575   :  { %v23857_v23 = vpop.eup %23856  ;;  %v17924_v59 = vmul.f32 1.442695, %v17810_v2  ;;  %v17744_v0 = vmul.f32 %v28361_v43, %v30499_v14  ;;  %v17745_v45 = vmul.f32 %v28372_v34, %v30499_v14  ;;  %v17683_v1 = vmax.f32 %v17615_v48, %v17651_v50  ;;  %v30504_v48 = vld [vmem:[#allocation54_spill] sm:$0xff] }
0x3576   :  { %18169 = vadd.xlane.f32.xlu1 %v18168_v5  ;;  %22555 = vmatpush3.bf16.msra.mxu1 %v30502_v60  ;;  %v28878_v8 = vpop.eup %23858  ;;  %v18006_v41 = vadd.f32 %v23849_v17, %v23847_v55  ;;  %v18092_v46 = vmul.f32 %v23847_v55, %v28458_v22  ;;  %v18093_v47 = vmul.f32 %v23849_v17, %v28464_v10  ;;  %v17926_v36 = vmul.f32 1.442695, %v17811_v12  ;;  %v30505_v17 = vld [vmem:[#allocation57_spill] sm:$0xff] }
0x3577   :  { %22557 = vmatprep.subr.bf16.mxu1 %v30503_v30  ;;  %v17808_v40 = vsub.f32 %v17744_v0, %v17680_v24  ;;  %v17614_v2 = vmul.f32 %v28322_v21, %v28530_v19  ;;  %v17650_v11 = vmul.f32 %v28319_v16, %v28530_v19  ;;  %23862 = vpow2.f32 %v17912_v25  ;;  %v30506_v0 = vld [vmem:[#allocation64_spill] sm:$0xff] }
0x3578   :  { %18010 = vadd.xlane.f32.xlu0 %v18009_v37  ;;  %v17809_v14 = vsub.f32 %v17745_v45, %v17680_v24  ;;  %v17750_v51 = vmul.f32 %v28361_v43, %v28525_v26  ;;  %v18177_v50 = vadd.f32 %v18095_v3, %v18094_v32  ;;  %23864 = vpow2.f32 %v17914_v29 }
0x3579   :  { %v17751_v55 = vmul.f32 %v28372_v34, %v28525_v26  ;;  %23866 = vpow2.f32 %v17924_v59  ;;  %v18174_v27 = vadd.f32 %v18093_v47, %v18092_v46  ;;  %v17920_v25 = vmul.f32 1.442695, %v17808_v40 }
0x357a   :  { %18007 = vadd.xlane.f32.xlu1 %v18006_v41  ;;  %22559 = vmatpush3.bf16.msra.mxu1 %v30504_v48  ;;  %v17814_v5 = vsub.f32 %v17750_v51, %v17683_v1  ;;  %23868 = vpow2.f32 %v17926_v36  ;;  %v17682_v24 = vmax.f32 %v17614_v2, %v17650_v11  ;;  %v17922_v37 = vmul.f32 1.442695, %v17809_v14  ;;  %v30507_v41 = vld [vmem:[#allocation29_spill] sm:$0xff]  ;;  %v30508_v14 = vld [vmem:[#allocation56_spill] sm:$0xff] }
0x357b   :  { %22561 = vmatprep.subr.bf16.mxu1 %v30505_v17  ;;  %v17815_v12 = vsub.f32 %v17751_v55, %v17683_v1  ;;  %v18015_v45 = vadd.f32 %v23853_v20, %v23851_v9  ;;  %v18098_v32 = vmul.f32 %v23851_v9, %v28458_v22  ;;  %v18099_v3 = vmul.f32 %v23853_v20, %v28464_v10 }
0x357c   :  { %18178 = vadd.xlane.f32.xlu0 %v18177_v50  ;;  %v17748_v26 = vmul.f32 %v28361_v43, %v28530_v19  ;;  %v17749_v29 = vmul.f32 %v28372_v34, %v28530_v19  ;;  %v17617_v59 = vmul.f32 %v28322_v21, %v28570_v18  ;;  %v17653_v1 = vmul.f32 %v28319_v16, %v28570_v18  ;;  %v23861_v46 = vpop.eup %23860  ;;  %v30509_v50 = vld [vmem:[#allocation89_spill] sm:$0xff] }
0x357d   :  { %v17932_v47 = vmul.f32 1.442695, %v17814_v5  ;;  %v18012_v9 = vadd.f32 %v23857_v23, %v23855_v15  ;;  %v18096_v20 = vmul.f32 %v23855_v15, %v28458_v22  ;;  %v18097_v36 = vmul.f32 %v23857_v23, %v28464_v10  ;;  %v30510_v5 = vld [vmem:[#allocation32_spill] sm:$0xff]  ;;  %v30511_v23 = vld [vmem:[#allocation102_spill] sm:$0xff] }
0x357e   :  { %18175 = vadd.xlane.f32.xlu1 %v18174_v27  ;;  %22563 = vmatpush3.bf16.msra.mxu1 %v30506_v0  ;;  %v17812_v40 = vsub.f32 %v17748_v26, %v17682_v24  ;;  %v17813_v2 = vsub.f32 %v17749_v29, %v17682_v24  ;;  %v17616_v19 = vmul.f32 %v28322_v21, %v28588_v53  ;;  %23870 = vpow2.f32 %v17920_v25 }
0x357f   :  { %22565 = vmatprep.subr.bf16.mxu1 %v30507_v41  ;;  %v17652_v11 = vmul.f32 %v28319_v16, %v28588_v53  ;;  %v17934_v51 = vmul.f32 1.442695, %v17815_v12  ;;  %v18183_v55 = vadd.f32 %v18099_v3, %v18098_v32  ;;  %23872 = vpow2.f32 %v17922_v37  ;;  %v30512_v37 = vld [vmem:[#allocation96_spill] sm:$0xff] }
0x3580   :  { %18016 = vadd.xlane.f32.xlu0 %v18015_v45  ;;  %v17685_v15 = vmax.f32 %v17617_v59, %v17653_v1  ;;  %23874 = vpow2.f32 %v17932_v47  ;;  %v18180_v24 = vadd.f32 %v18097_v36, %v18096_v20  ;;  %v17928_v26 = vmul.f32 1.442695, %v17812_v40  ;;  %v30513_v40 = vld [vmem:[#allocation37_spill] sm:$0xff] }
0x3581   :  { %17277 = vmatmul.mubr.f32.vlgmr.msra.gmra.mrb[138].mxu1 %v30508_v14  ;;  %v23863_v27 = vpop.eup %23862  ;;  %v17930_v29 = vmul.f32 1.442695, %v17813_v2  ;;  %v17754_v25 = vmul.f32 %v28361_v43, %v28570_v18  ;;  %v17684_v12 = vmax.f32 %v17616_v19, %v17652_v11  ;;  %23876 = vpow2.f32 %v17934_v51 }
0x3582   :  { %18013 = vadd.xlane.f32.xlu1 %v18012_v9  ;;  %22567 = vmatpush3.bf16.msra.mxu1 %v30509_v50  ;;  %v23865_v45 = vpop.eup %23864  ;;  %v18021_v32 = vadd.f32 %v23861_v46, %v28878_v8  ;;  %v18102_v3 = vmul.f32 %v28878_v8, %v28458_v22  ;;  %v18103_v59 = vmul.f32 %v23861_v46, %v28464_v10  ;;  %23878 = vpow2.f32 %v17928_v26 }
0x3583   :  { %22569 = vmatprep.subr.bf16.mxu1 %v30510_v5  ;;  %17443 = vmatprep.mubr.f32.mxu1 %v30511_v23  ;;  %v23867_v41 = vpop.eup %23866  ;;  %v17755_v47 = vmul.f32 %v28372_v34, %v28570_v18  ;;  %v17818_v9 = vsub.f32 %v17754_v25, %v17685_v15  ;;  %v17752_v20 = vmul.f32 %v28361_v43, %v28588_v53  ;;  %v30514_v5 = vld [vmem:[#allocation100_spill] sm:$0xff]  ;;  %23880 = vpow2.f32 %v17930_v29 }
0x3584   :  { %18184 = vadd.xlane.f32.xlu0 %v18183_v55  ;;  %v23869_v1 = vpop.eup %23868  ;;  %v17619_v36 = vmul.f32 %v28322_v21, %v28645_v57  ;;  %v17655_v2 = vmul.f32 %v28319_v16, %v28645_v57  ;;  %v18018_v8 = vadd.f32 %v23865_v45, %v23863_v27  ;;  %v18100_v46 = vmul.f32 %v23863_v27, %v28458_v22 }
0x3585   :  { %v18101_v19 = vmul.f32 %v23865_v45, %v28464_v10  ;;  %v17819_v11 = vsub.f32 %v17755_v47, %v17685_v15  ;;  %v17753_v18 = vmul.f32 %v28372_v34, %v28588_v53  ;;  %v17618_v51 = vmul.f32 %v28322_v21, %v28663_v38  ;;  %v30515_v45 = vld [vmem:[#allocation40_spill] sm:$0xff] }
0x3586   :  { %18181 = vadd.xlane.f32.xlu1 %v18180_v24  ;;  %22571 = vmatpush3.bf16.msra.mxu1 %v30512_v37  ;;  %v17654_v50 = vmul.f32 %v28319_v16, %v28663_v38  ;;  %v17816_v55 = vsub.f32 %v17752_v20, %v17684_v12  ;;  %v18189_v24 = vadd.f32 %v18103_v59, %v18102_v3  ;;  %v17940_v27 = vmul.f32 1.442695, %v17818_v9 }
0x3587   :  { %22573 = vmatprep.subr.bf16.mxu1 %v30513_v40  ;;  %v17817_v25 = vsub.f32 %v17753_v18, %v17684_v12  ;;  %v17687_v37 = vmax.f32 %v17619_v36, %v17655_v2  ;;  %v18186_v53 = vadd.f32 %v18101_v19, %v18100_v46  ;;  %v17942_v21 = vmul.f32 1.442695, %v17819_v11  ;;  %v30516_v40 = vld [vmem:[#allocation24_spill] sm:$0xff]  ;;  %v30517_v2 = vld [vmem:[#allocation43_spill] sm:$0xff] }
0x3588   :  { %18022 = vadd.xlane.f32.xlu0 %v18021_v32  ;;  %v23871_v15 = vpop.eup %23870  ;;  %v17758_v16 = vmul.f32 %v28361_v43, %v28645_v57  ;;  %v17686_v26 = vmax.f32 %v17618_v51, %v17654_v50  ;;  %v17936_v20 = vmul.f32 1.442695, %v17816_v55  ;;  %v18027_v29 = vadd.f32 %v23869_v1, %v23867_v41  ;;  %v30518_v51 = vld [vmem:[#allocation25_spill] sm:$0xff] }
0x3589   :  { %v23873_v32 = vpop.eup %23872  ;;  %v18106_v12 = vmul.f32 %v23867_v41, %v28458_v22  ;;  %v18107_v3 = vmul.f32 %v23869_v1, %v28464_v10  ;;  %23882 = vpow2.f32 %v17940_v27  ;;  %v17938_v59 = vmul.f32 1.442695, %v17817_v25  ;;  %v30519_v55 = vld [vmem:[#allocation49_spill] sm:$0xff] }
0x358a   :  { %18019 = vadd.xlane.f32.xlu1 %v18018_v8  ;;  %22575 = vmatpush3.bf16.msra.mxu1 %v30514_v5  ;;  %v23875_v47 = vpop.eup %23874  ;;  %v17759_v9 = vmul.f32 %v28372_v34, %v28645_v57  ;;  %v17756_v36 = vmul.f32 %v28361_v43, %v28663_v38  ;;  %v17822_v46 = vsub.f32 %v17758_v16, %v17687_v37  ;;  %23884 = vpow2.f32 %v17942_v21 }
0x358b   :  { %22577 = vmatprep.subr.bf16.mxu1 %v30515_v45  ;;  %v23877_v8 = vpop.eup %23876  ;;  %v18024_v19 = vadd.f32 %v23873_v32, %v23871_v15  ;;  %v18104_v11 = vmul.f32 %v23871_v15, %v28458_v22  ;;  %v18105_v41 = vmul.f32 %v23873_v32, %v28464_v10  ;;  %v17757_v18 = vmul.f32 %v28372_v34, %v28663_v38 }
0x358c   :  { %18190 = vadd.xlane.f32.xlu0 %v18189_v24  ;;  %v17823_v1 = vsub.f32 %v17759_v9, %v17687_v37  ;;  %23886 = vpow2.f32 %v17936_v20  ;;  %v17820_v57 = vsub.f32 %v17756_v36, %v17686_v26  ;;  %v18195_v43 = vadd.f32 %v18107_v3, %v18106_v12  ;;  %v23879_v5 = vpop.eup %23878 }
0x358d   :  { %23888 = vpow2.f32 %v17938_v59  ;;  %v17821_v50 = vsub.f32 %v17757_v18, %v17686_v26  ;;  %v17948_v24 = vmul.f32 1.442695, %v17822_v46  ;;  %v18192_v27 = vadd.f32 %v18105_v41, %v18104_v11  ;;  %v23881_v25 = vpop.eup %23880 }
0x358e   :  { %18187 = vadd.xlane.f32.xlu1 %v18186_v53  ;;  %22579 = vmatpush3.bf16.msra.mxu1 %v30516_v40  ;;  %v17950_v45 = vmul.f32 1.442695, %v17823_v1  ;;  %v30520_v15 = vand.u32 4294901760, %v28429_v52  ;;  %v30521_v34 = vand.u32 4294901760, %v28424_v49  ;;  %v17944_v37 = vmul.f32 1.442695, %v17820_v57 }
0x358f   :  { %22581 = vmatprep.subr.bf16.mxu1 %v30517_v2  ;;  %v30522_v53 = vld [vmem:[#allocation18_spill] sm:$0xff]  ;;  %v18033_v32 = vadd.f32 %v23877_v8, %v23875_v47  ;;  %v18110_v21 = vmul.f32 %v23875_v47, %v28458_v22  ;;  %v18111_v16 = vmul.f32 %v23877_v8, %v28464_v10  ;;  %v17946_v26 = vmul.f32 1.442695, %v17821_v50 }
0x3590   :  { %18028 = vadd.xlane.f32.xlu0 %v18027_v29  ;;  %v22588_v38 = vpack.c.bf16 %v30521_v34, %v30520_v15  ;;  %23890 = vpow2.f32 %v17948_v24  ;;  %v18030_v20 = vadd.f32 %v23881_v25, %v23879_v5  ;;  %v18108_v40 = vmul.f32 %v23879_v5, %v28458_v22  ;;  %v30525_v47 = vld [vmem:[#allocation26_spill] sm:$0xff]  ;;  %v28985_v24 = vpop.f32.mrb[130].mxu1  ;;  %v30529_v34 = vld [vmem:[#allocation41_spill] sm:$0xff] }
0x3591   :  { %v18109_v52 = vmul.f32 %v23881_v25, %v28464_v10  ;;  %23892 = vpow2.f32 %v17950_v45  ;;  %v30523_v29 = vand.u32 4294901760, %v28475_v62  ;;  %v30524_v12 = vand.u32 4294901760, %v30484_v28  ;;  %30528 = vst [vmem:[#allocation82_spill] sm:$0xff] %v28985_v24  ;;  %v21895_v45 = vpop.f32.mrb[131].mxu1 }
0x3592   :  { %18025 = vadd.xlane.f32.xlu1 %v18024_v19  ;;  %22583 = vmatpush3.bf16.msra.mxu1 %v30518_v51  ;;  %23894 = vpow2.f32 %v17944_v37  ;;  %v18201_v59 = vadd.f32 %v18111_v16, %v18110_v21  ;;  %v30526_v8 = vand.u32 4294901760, %v28483_v42  ;;  %v30527_v46 = vand.u32 4294901760, %v28490_v63  ;;  %v30531_v37 = vld [vmem:[#allocation45_spill] sm:$0xff]  ;;  %v23994_v21 = vld [vmem:[%s29550_s15 + $0x8] sm:$0xff] }
0x3593   :  { %22585 = vmatprep.subr.bf16.mxu1 %v30519_v55  ;;  %v23883_v49 = vpop.eup %23882  ;;  %v22592_v3 = vpack.c.bf16 %v30524_v12, %v30523_v29  ;;  %23896 = vpow2.f32 %v17946_v26  ;;  %v18198_v2 = vadd.f32 %v18109_v52, %v18108_v40 }
0x3594   :  { %18196 = vadd.xlane.f32.xlu0 %v18195_v43  ;;  %v23885_v9 = vpop.eup %23884  ;;  %v22594_v19 = vpack.c.bf16 %v30527_v46, %v30526_v8  ;;  %v18114_v11 = vmul.f32 %v23883_v49, %v28458_v22 }
0x3595   :  { %v18039_v28 = vadd.f32 %v23885_v9, %v23883_v49  ;;  %v18115_v41 = vmul.f32 %v23885_v9, %v28464_v10  ;;  %v30534_v9 = vld [vmem:[#allocation23_spill] sm:$0xff] }
0x3596   :  { %18193 = vadd.xlane.f32.xlu1 %v18192_v27  ;;  %22587 = vmatpush3.bf16.msra.mxu1 %v30522_v53  ;;  %v23887_v36 = vpop.eup %23886 }
0x3597   :  { %22589 = vmatprep.subr.bf16.mxu1 %v22588_v38  ;;  %v23889_v62 = vpop.eup %23888  ;;  %v18112_v18 = vmul.f32 %v23887_v36, %v28458_v22  ;;  %v18207_v63 = vadd.f32 %v18115_v41, %v18114_v11  ;;  %v30530_v38 = vld [vmem:[#allocation42_spill] sm:$0xff] }
0x3598   :  { %18034 = vadd.xlane.f32.xlu0 %v18033_v32  ;;  %v18036_v1 = vadd.f32 %v23889_v62, %v23887_v36  ;;  %v18113_v57 = vmul.f32 %v23889_v62, %v28464_v10  ;;  %v19213_v62 = vld [vmem:[#allocation3] ss:$0 sm:$0xff] }
0x359a   :  { %18031 = vadd.xlane.f32.xlu1 %v18030_v20  ;;  %22591 = vmatpush3.bf16.msra.mxu1 %v30525_v47  ;;  %v23891_v42 = vpop.eup %23890 }
0x359b   :  { %22593 = vmatprep.subr.bf16.mxu1 %v22592_v3  ;;  %v23893_v51 = vpop.eup %23892 }
0x359c   :  { %18202 = vadd.xlane.f32.xlu0 %v18201_v59  ;;  %v23895_v43 = vpop.eup %23894  ;;  %v18045_v55 = vadd.f32 %v23893_v51, %v23891_v42 }
0x359d   :  { %v23897_v50 = vpop.eup %23896 }
0x359e   :  { %18199 = vadd.xlane.f32.xlu1 %v18198_v2  ;;  %22595 = vmatpush3.bf16.msra.mxu1 %v22594_v19  ;;  %v18042_v5 = vadd.f32 %v23897_v50, %v23895_v43  ;;  %v18117_v15 = vmul.f32 %v23897_v50, %v28464_v10 }
0x359f   :  { %22597 = vmatprep.subr.bf16.mxu1 %v30486_v44  ;;  %v18204_v44 = vadd.f32 %v18113_v57, %v18112_v18 }
0x35a0   :  { %18040 = vadd.xlane.f32.xlu0 %v18039_v28  ;;  %v23996_v28 = vld [vmem:[%s29550_s15 + $0x18] sm:$0xff] }
0x35a1   :  { %17445 = vmatmul.mubr.f32.vlgmr.msra.gmra.mrb[140].mxu1 %v28217_v35 }
0x35a2   :  { %18037 = vadd.xlane.f32.xlu1 %v18036_v1  ;;  %22599 = vmatpush3.bf16.msra.mxu1 %v30488_v33  ;;  %v18118_v33 = vmul.f32 %v23891_v42, %v28458_v22  ;;  %v23997_v1 = vld [vmem:[%s29550_s15 + $0x10] sm:$0xff] }
0x35a3   :  { %22601 = vmatprep.subr.bf16.mxu1 %v30489_v58  ;;  %17547 = vmatprep.mubr.f32.mxu1 %v30511_v23  ;;  %v18119_v58 = vmul.f32 %v23893_v51, %v28464_v10  ;;  %v15949_v51 = vld [vmem:[%s29554_s19] sm:$0xf] }
0x35a4   :  { %18208 = vadd.xlane.f32.xlu0 %v18207_v63 }
0x35a6   :  { %18205 = vadd.xlane.f32.xlu1 %v18204_v44  ;;  %22603 = vmatpush3.bf16.msra.mxu1 %v30492_v39  ;;  %v24057_v39 = vmov 0  }
0x35a7   :  { %22605 = vmatprep.subr.bf16.mxu1 %v30493_v56  ;;  %23447 = vset.pattern.permute.xlu1 %v24057_v39  ;;  %v18116_v56 = vmul.f32 %v23895_v43, %v28458_v22 }
0x35a8   :  { %18046 = vadd.xlane.f32.xlu0 %v18045_v55 }
0x35a9   :  { %23448 = vset.pattern.permute.xlu0 %v24057_v39 }
0x35aa   :  { %18043 = vadd.xlane.f32.xlu1 %v18042_v5  ;;  %22607 = vmatpush3.bf16.msra.mxu1 %v30494_v54  ;;  %v18213_v54 = vadd.f32 %v18119_v58, %v18118_v33 }
0x35ab   :  { %22609 = vmatprep.subr.bf16.mxu1 %v30496_v7  ;;  %v18210_v7 = vadd.f32 %v18117_v15, %v18116_v56 }
0x35ac   :  { %18160 = vadd.xlane.f32.xlu0 %v28849_v4 }
0x35ad   :  { %v17957_v27 = vpop.xlane.xlu0 %17956 }
0x35ae   :  { %23898 = vrcp.f32 %v17957_v27  ;;  %18157 = vadd.xlane.f32.xlu1 %v28851_v61  ;;  %22611 = vmatpush3.bf16.msra.mxu1 %v30497_v6 }
0x35af   :  { %v17954_v25 = vpop.xlane.xlu1 %17953  ;;  %22613 = vmatprep.subr.bf16.mxu1 %v30529_v34 }
0x35b0   :  { %23900 = vrcp.f32 %v17954_v25  ;;  %18214 = vadd.xlane.f32.xlu0 %v18213_v54 }
0x35b2   :  { %18211 = vadd.xlane.f32.xlu1 %v18210_v7  ;;  %22615 = vmatpush3.bf16.msra.mxu1 %v30530_v38 }
0x35b3   :  { %22617 = vmatprep.subr.bf16.mxu1 %v30531_v37 }
0x35b4   :  { %18166 = vadd.xlane.f32.xlu0 %v28866_v31  ;;  %v23995_v31 = vld [vmem:[%s29550_s15] sm:$0xff] }
0x35b6   :  { %v18125_v4 = vpop.xlane.xlu0 %18124  ;;  %v18122_v22 = vpop.xlane.xlu1 %18121  ;;  %18163 = vadd.xlane.f32.xlu1 %v28871_v13  ;;  %22619 = vmatpush3.bf16.msra.mxu1 %v30502_v60 }
0x35b7   :  { %22621 = vmatprep.subr.bf16.mxu1 %v30503_v30 }
0x35b8   :  { %v23899_v10 = vpop.eup %23898 }
0x35b9   :  { %v18219_v6 = vmul.f32 %v23899_v10, %v18125_v4  ;;  %v23998_v10 = vld [vmem:[%s29550_s15 + $0x28] sm:$0xff] }
0x35ba   :  { %v23901_v53 = vpop.eup %23900  ;;  %v17963_v32 = vpop.xlane.xlu0 %17962  ;;  %22623 = vmatpush3.bf16.msra.mxu1 %v30504_v48 }
0x35bb   :  { %v18217_v61 = vmul.f32 %v23901_v53, %v18122_v22  ;;  %v18281_v16 = vmul.f32 %v23994_v21, %v18219_v6  ;;  %23902 = vrcp.f32 %v17963_v32  ;;  %v17960_v26 = vpop.xlane.xlu1 %17959  ;;  %22625 = vmatprep.subr.bf16.mxu1 %v30505_v17  ;;  %v23999_v6 = vld [vmem:[%s29550_s15 + $0x20] sm:$0xff] }
0x35bc   :  { %23904 = vrcp.f32 %v17960_v26 }
0x35bd   :  { %v18280_v20 = vmul.f32 %v23995_v31, %v18217_v61  ;;  %v18316_v13 = vand.u32 4294901760, %v18281_v16 }
0x35be   :  { %22627 = vmatpush3.bf16.msra.mxu1 %v30506_v0 }
0x35bf   :  { %v18313_v60 = vand.u32 4294901760, %v18280_v20  ;;  %v29011_v30 = vsub.f32 %v18281_v16, %v18316_v13 }
0x35c1   :  { %v29013_v40 = vpack.c.bf16 %v18316_v13, %v18313_v60  ;;  %v29015_v52 = vsub.f32 %v18280_v20, %v18313_v60  ;;  %v18434_v49 = vand.u32 4294901760, %v29011_v30  ;;  %17549 = vmatmul.mubr.f32.vlgmr.msra.gmra.mrb[142].mxu1 %v28217_v35 }
0x35c2   :  { %v18131_v59 = vpop.xlane.xlu0 %18130  ;;  %18413 = vmatprep.mubr.f32.mxu1 %v30534_v9 }
0x35c3   :  { %30532 = vst [vmem:[#allocation83_spill] sm:$0xff] %v29013_v40  ;;  %v18427_v29 = vand.u32 4294901760, %v29015_v52  ;;  %v18435_v48 = vsub.f32 %v29011_v30, %v18434_v49  ;;  %v18128_v8 = vpop.xlane.xlu1 %18127 }
0x35c5   :  { %v18428_v17 = vsub.f32 %v29015_v52, %v18427_v29  ;;  %v29025_v3 = vpack.c.bf16 %v18434_v49, %v18427_v29  ;;  %v23903_v47 = vpop.eup %23902  ;;  %v18436_v0 = vand.u32 4294901760, %v18435_v48 }
0x35c6   :  { %v23905_v36 = vpop.eup %23904  ;;  %v18223_v2 = vmul.f32 %v23903_v47, %v18131_v59  ;;  %v17969_v57 = vpop.xlane.xlu0 %17968 }
0x35c7   :  { %30533 = vst [vmem:[#allocation86_spill] sm:$0xff] %v29025_v3  ;;  %v18429_v46 = vand.u32 4294901760, %v18428_v17  ;;  %v18221_v19 = vmul.f32 %v23905_v36, %v18128_v8  ;;  %23906 = vrcp.f32 %v17969_v57  ;;  %v17966_v63 = vpop.xlane.xlu1 %17965  ;;  %17560 = vperm.xlu1 %23447, %v19213_v62  }
0x35c8   :  { %v18283_v11 = vmul.f32 %v23996_v28, %v18223_v2  ;;  %23908 = vrcp.f32 %v17966_v63 }
0x35c9   :  { %v29031_v41 = vpack.c.bf16 %v18436_v0, %v18429_v46  ;;  %v18282_v18 = vmul.f32 %v23997_v1, %v18221_v19  ;;  %v24000_v19 = vld [vmem:[%s29550_s15 + $0x38] sm:$0xff] }
0x35ca   :  { %v18322_v42 = vand.u32 4294901760, %v18283_v11  ;;  %17567 = vperm.xlu0 %23448, %v15949_v51  }
0x35cb   :  { %v18319_v43 = vand.u32 4294901760, %v18282_v18 }
0x35cc   :  { %v29039_v44 = vsub.f32 %v18283_v11, %v18322_v42 }
0x35cd   :  { %v29041_v50 = vpack.c.bf16 %v18322_v42, %v18319_v43  ;;  %v29043_v55 = vsub.f32 %v18282_v18, %v18319_v43  ;;  %v18137_v45 = vpop.xlane.xlu0 %18136  ;;  %v24001_v42 = vld [vmem:[%s29550_s15 + $0x30] sm:$0xff] }
0x35ce   :  { %v18448_v5 = vand.u32 4294901760, %v29039_v44 }
0x35cf   :  { %30535 = vst [vmem:[#allocation87_spill] sm:$0xff] %v29041_v50  ;;  %v18441_v33 = vand.u32 4294901760, %v29043_v55  ;;  %v18134_v34 = vpop.xlane.xlu1 %18133 }
0x35d0   :  { %v18449_v27 = vsub.f32 %v29039_v44, %v18448_v5 }
0x35d1   :  { %v18442_v25 = vsub.f32 %v29043_v55, %v18441_v33  ;;  %v29051_v39 = vpack.c.bf16 %v18448_v5, %v18441_v33  ;;  %v23907_v54 = vpop.eup %23906 }
0x35d2   :  { %v18450_v56 = vand.u32 4294901760, %v18449_v27  ;;  %v23909_v7 = vpop.eup %23908  ;;  %v18227_v38 = vmul.f32 %v23907_v54, %v18137_v45  ;;  %v17975_v22 = vpop.xlane.xlu0 %17974 }
0x35d3   :  { %30536 = vst [vmem:[#allocation90_spill] sm:$0xff] %v29051_v39  ;;  %v18443_v15 = vand.u32 4294901760, %v18442_v25  ;;  %v18225_v4 = vmul.f32 %v23909_v7, %v18134_v34  ;;  %23910 = vrcp.f32 %v17975_v22  ;;  %v17972_v32 = vpop.xlane.xlu1 %17971 }
0x35d4   :  { %v18285_v53 = vmul.f32 %v23998_v10, %v18227_v38  ;;  %23912 = vrcp.f32 %v17972_v32 }
0x35d5   :  { %v29053_v37 = vpack.c.bf16 %v18450_v56, %v18443_v15  ;;  %v18284_v61 = vmul.f32 %v23999_v6, %v18225_v4 }
0x35d6   :  { %v18328_v21 = vand.u32 4294901760, %v18285_v53 }
0x35d7   :  { %v18325_v16 = vand.u32 4294901760, %v18284_v61 }
0x35d8   :  { %v29061_v26 = vsub.f32 %v18285_v53, %v18328_v21  ;;  %v20038_v1 = vpop.f32.mrb[132].mxu1 }
0x35d9   :  { %v29063_v31 = vpack.c.bf16 %v18328_v21, %v18325_v16  ;;  %v29065_v20 = vsub.f32 %v18284_v61, %v18325_v16  ;;  %v20039_v51 = vpop.f32.mrb[133].mxu1  ;;  %v24002_v21 = vld [vmem:[%s29550_s15 + $0x48] sm:$0xff] }
0x35da   :  { %v18462_v13 = vand.u32 4294901760, %v29061_v26  ;;  %v29085_v33 = vadd.f32 %v20039_v51, %v20038_v1 }
0x35db   :  { %30537 = vst [vmem:[#allocation91_spill] sm:$0xff] %v29063_v31  ;;  %v18455_v60 = vand.u32 4294901760, %v29065_v20  ;;  %v18143_v48 = vpop.xlane.xlu0 %18142 }
0x35dc   :  { %v18463_v29 = vsub.f32 %v29061_v26, %v18462_v13 }
0x35dd   :  { %v18456_v17 = vsub.f32 %v29065_v20, %v18455_v60  ;;  %v29073_v47 = vpack.c.bf16 %v18462_v13, %v18455_v60  ;;  %v23911_v59 = vpop.eup %23910 }
0x35de   :  { %v18140_v9 = vpop.xlane.xlu1 %18139  ;;  %v18464_v0 = vand.u32 4294901760, %v18463_v29  ;;  %v18231_v36 = vmul.f32 %v23911_v59, %v18143_v48  ;;  %v23913_v8 = vpop.eup %23912 }
0x35df   :  { %30538 = vst [vmem:[#allocation94_spill] sm:$0xff] %v29073_v47  ;;  %v18457_v2 = vand.u32 4294901760, %v18456_v17  ;;  %v18229_v28 = vmul.f32 %v23913_v8, %v18140_v9  ;;  %v24003_v17 = vld [vmem:[%s29550_s15 + $0x40] sm:$0xff] }
0x35e0   :  { %v17981_v46 = vpop.xlane.xlu0 %17980  ;;  %v18287_v62 = vmul.f32 %v24000_v19, %v18231_v36 }
0x35e1   :  { %23914 = vrcp.f32 %v17981_v46  ;;  %v29078_v11 = vpack.c.bf16 %v18464_v0, %v18457_v2  ;;  %v18286_v63 = vmul.f32 %v24001_v42, %v18229_v28 }
0x35e2   :  { %v17978_v18 = vpop.xlane.xlu1 %17977  ;;  %v18334_v57 = vand.u32 4294901760, %v18287_v62 }
0x35e3   :  { %23916 = vrcp.f32 %v17978_v18  ;;  %v18331_v5 = vand.u32 4294901760, %v18286_v63 }
0x35e4   :  { %v29083_v43 = vsub.f32 %v18287_v62, %v18334_v57 }
0x35e5   :  { %v29088_v25 = vpack.c.bf16 %v18334_v57, %v18331_v5  ;;  %v29090_v45 = vsub.f32 %v18286_v63, %v18331_v5 }
0x35e6   :  { %v18476_v27 = vand.u32 4294901760, %v29083_v43 }
0x35e7   :  { %30539 = vst [vmem:[#allocation95_spill] sm:$0xff] %v29088_v25  ;;  %v18469_v15 = vand.u32 4294901760, %v29090_v45 }
0x35e8   :  { %v18477_v56 = vsub.f32 %v29083_v43, %v18476_v27 }
0x35e9   :  { %v18149_v54 = vpop.xlane.xlu0 %18148  ;;  %v18470_v38 = vsub.f32 %v29090_v45, %v18469_v15  ;;  %v29097_v10 = vpack.c.bf16 %v18476_v27, %v18469_v15 }
0x35ea   :  { %v18478_v22 = vand.u32 4294901760, %v18477_v56 }
0x35eb   :  { %v23915_v7 = vpop.eup %23914  ;;  %v18146_v4 = vpop.xlane.xlu1 %18145  ;;  %30540 = vst [vmem:[#allocation97_spill] sm:$0xff] %v29097_v10  ;;  %v18471_v32 = vand.u32 4294901760, %v18470_v38 }
0x35ec   :  { %v18235_v53 = vmul.f32 %v23915_v7, %v18149_v54  ;;  %v24004_v7 = vld [vmem:[%s29550_s15 + $0x58] sm:$0xff] }
0x35ed   :  { %v23917_v6 = vpop.eup %23916  ;;  %v17987_v61 = vpop.xlane.xlu0 %17986  ;;  %v29102_v29 = vpack.c.bf16 %v18478_v22, %v18471_v32 }
0x35ee   :  { %v18289_v16 = vmul.f32 %v24002_v21, %v18235_v53  ;;  %v18233_v13 = vmul.f32 %v23917_v6, %v18146_v4  ;;  %23918 = vrcp.f32 %v17987_v61  ;;  %v24005_v61 = vld [vmem:[%s29550_s15 + $0x50] sm:$0xff] }
0x35ef   :  { %v17984_v60 = vpop.xlane.xlu1 %17983 }
0x35f0   :  { %v18340_v48 = vand.u32 4294901760, %v18289_v16  ;;  %v18288_v59 = vmul.f32 %v24003_v17, %v18233_v13  ;;  %23920 = vrcp.f32 %v17984_v60 }
0x35f1   :  { %v18155_v9 = vpop.xlane.xlu0 %18154 }
0x35f2   :  { %v29107_v0 = vsub.f32 %v18289_v16, %v18340_v48  ;;  %v18337_v36 = vand.u32 4294901760, %v18288_v59 }
0x35f3   :  { %v18152_v2 = vpop.xlane.xlu1 %18151 }
0x35f4   :  { %v18490_v8 = vand.u32 4294901760, %v29107_v0  ;;  %v29110_v46 = vpack.c.bf16 %v18340_v48, %v18337_v36  ;;  %v29112_v19 = vsub.f32 %v18288_v59, %v18337_v36 }
0x35f5   :  { %v29114_v62 = vpop.xlane.xlu0 %17992 }
0x35f6   :  { %30541 = vst [vmem:[#allocation98_spill] sm:$0xff] %v29110_v46  ;;  %v18491_v28 = vsub.f32 %v29107_v0, %v18490_v8  ;;  %v18483_v1 = vand.u32 4294901760, %v29112_v19 }
0x35f7   :  { %v29120_v57 = vpop.xlane.xlu1 %17989 }
0x35f8   :  { %v23919_v42 = vpop.eup %23918  ;;  %v18484_v63 = vsub.f32 %v29112_v19, %v18483_v1  ;;  %v18492_v51 = vand.u32 4294901760, %v18491_v28  ;;  %v29123_v5 = vpack.c.bf16 %v18490_v8, %v18483_v1 }
0x35f9   :  { %v18239_v27 = vmul.f32 %v23919_v42, %v18155_v9  ;;  %v29125_v56 = vpop.xlane.xlu0 %17998 }
0x35fa   :  { %30542 = vst [vmem:[#allocation101_spill] sm:$0xff] %v29123_v5  ;;  %v23921_v15 = vpop.eup %23920  ;;  %v18485_v54 = vand.u32 4294901760, %v18484_v63 }
0x35fb   :  { %v18291_v38 = vmul.f32 %v24004_v7, %v18239_v27  ;;  %v18237_v4 = vmul.f32 %v23921_v15, %v18152_v2  ;;  %v29130_v22 = vpop.xlane.xlu1 %17995 }
0x35fc   :  { %v29132_v53 = vpack.c.bf16 %v18492_v51, %v18485_v54 }
0x35fd   :  { %v18346_v6 = vand.u32 4294901760, %v18291_v38  ;;  %v18290_v32 = vmul.f32 %v24005_v61, %v18237_v4  ;;  %v18005_v21 = vpop.xlane.xlu0 %18004  ;;  %v24006_v61 = vld [vmem:[%s29550_s15 + $0x88] sm:$0xff] }
0x35fe   :  { %23922 = vrcp.f32 %v18005_v21 }
0x35ff   :  { %v29137_v16 = vsub.f32 %v18291_v38, %v18346_v6  ;;  %v18343_v13 = vand.u32 4294901760, %v18290_v32  ;;  %v18002_v60 = vpop.xlane.xlu1 %18001 }
0x3600   :  { %23924 = vrcp.f32 %v18002_v60 }
0x3601   :  { %30543 = vst [vmem:[#allocation19_spill] sm:$0xff] %v29137_v16  ;;  %v18504_v48 = vand.u32 4294901760, %v29137_v16  ;;  %v29140_v17 = vpack.c.bf16 %v18346_v6, %v18343_v13  ;;  %v29142_v59 = vsub.f32 %v18290_v32, %v18343_v13  ;;  %v18173_v9 = vpop.xlane.xlu0 %18172 }
0x3603   :  { %30544 = vst [vmem:[#allocation79_spill] sm:$0xff] %v29140_v17  ;;  %30545 = vst [vmem:[#allocation104_spill] sm:$0xff] %v29142_v59  ;;  %v18505_v36 = vsub.f32 %v29137_v16, %v18504_v48  ;;  %v18497_v2 = vand.u32 4294901760, %v29142_v59  ;;  %v18170_v8 = vpop.xlane.xlu1 %18169 }
0x3605   :  { %v18498_v1 = vsub.f32 %v29142_v59, %v18497_v2  ;;  %v18011_v42 = vpop.xlane.xlu0 %18010  ;;  %v18506_v63 = vand.u32 4294901760, %v18505_v36  ;;  %v29149_v51 = vpack.c.bf16 %v18504_v48, %v18497_v2  ;;  %v24007_v2 = vld [vmem:[%s29550_s15 + $0x80] sm:$0xff] }
0x3606   :  { %23926 = vrcp.f32 %v18011_v42 }
0x3607   :  { %30546 = vst [vmem:[#allocation105_spill] sm:$0xff] %v29149_v51  ;;  %v18008_v27 = vpop.xlane.xlu1 %18007  ;;  %v18499_v15 = vand.u32 4294901760, %v18498_v1 }
0x3608   :  { %v23923_v54 = vpop.eup %23922  ;;  %23928 = vrcp.f32 %v18008_v27 }
0x3609   :  { %v18251_v7 = vmul.f32 %v23923_v54, %v18173_v9  ;;  %v18179_v38 = vpop.xlane.xlu0 %18178  ;;  %v29151_v4 = vpack.c.bf16 %v18506_v63, %v18499_v15 }
0x360a   :  { %v23925_v6 = vpop.eup %23924 }
0x360b   :  { %v18297_v32 = vmul.f32 %v24006_v61, %v18251_v7  ;;  %v18249_v21 = vmul.f32 %v23925_v6, %v18170_v8  ;;  %v18176_v13 = vpop.xlane.xlu1 %18175  ;;  %v20073_v60 = vpop.f32.mrb[134].mxu1 }
0x360c   :  { %v20074_v48 = vpop.f32.mrb[135].mxu1 }
0x360d   :  { %v18364_v36 = vand.u32 4294901760, %v18297_v32  ;;  %v18296_v1 = vmul.f32 %v24007_v2, %v18249_v21  ;;  %v18017_v9 = vpop.xlane.xlu0 %18016  ;;  %v20075_v42 = vadd.f32 %v20074_v48, %v20073_v60 }
0x360e   :  { %23930 = vrcp.f32 %v18017_v9 }
0x360f   :  { %v29159_v63 = vsub.f32 %v18297_v32, %v18364_v36  ;;  %v18361_v27 = vand.u32 4294901760, %v18296_v1  ;;  %v18014_v15 = vpop.xlane.xlu1 %18013  ;;  %v29162_v54 = vadd.f32 %v20075_v42, %v29085_v33  ;;  %v24008_v32 = vld [vmem:[%s29550_s15 + $0x98] sm:$0xff] }
0x3610   :  { %v23927_v8 = vpop.eup %23926  ;;  %23932 = vrcp.f32 %v18014_v15 }
0x3611   :  { %v29164_v7 = vsub.f32 %v18296_v1, %v18361_v27  ;;  %v18255_v6 = vmul.f32 %v23927_v8, %v18179_v38  ;;  %v18185_v61 = vpop.xlane.xlu0 %18184  ;;  %v29166_v28 = vpack.c.bf16 %v18364_v36, %v18361_v27  ;;  %v29876_v21 = vand.u32 4294901760, %v29159_v63  ;;  %v24009_v36 = vld [vmem:[%s29550_s15 + $0x90] sm:$0xff] }
0x3612   :  { %v23929_v18 = vpop.eup %23928 }
0x3613   :  { %30547 = vst [vmem:[#allocation106_spill] sm:$0xff] %v29166_v28  ;;  %v18299_v60 = vmul.f32 %v24008_v32, %v18255_v6  ;;  %v18253_v48 = vmul.f32 %v23929_v18, %v18176_v13  ;;  %22629 = vmatprep.subr.bf16.mxu1 %v29166_v28  ;;  %v18182_v33 = vpop.xlane.xlu1 %18181  ;;  %v29875_v2 = vand.u32 4294901760, %v29164_v7 }
0x3614   :  { %22631 = vmatpush3.bf16.msra.mxu1 %v29013_v40 }
0x3615   :  { %v18370_v38 = vand.u32 4294901760, %v18299_v60  ;;  %v18298_v1 = vmul.f32 %v24009_v36, %v18253_v48  ;;  %v18023_v9 = vpop.xlane.xlu0 %18022  ;;  %v29182_v18 = vpack.c.bf16 %v29876_v21, %v29875_v2 }
0x3616   :  { %23934 = vrcp.f32 %v18023_v9  ;;  %v24010_v9 = vld [vmem:[%s29550_s15 + $0xa8] sm:$0xff] }
0x3617   :  { %30548 = vst [vmem:[#allocation107_spill] sm:$0xff] %v29182_v18  ;;  %v29184_v13 = vsub.f32 %v18299_v60, %v18370_v38  ;;  %v18367_v42 = vand.u32 4294901760, %v18298_v1  ;;  %v18020_v27 = vpop.xlane.xlu1 %18019 }
0x3618   :  { %v23931_v15 = vpop.eup %23930  ;;  %23936 = vrcp.f32 %v18020_v27 }
0x3619   :  { %v29186_v8 = vsub.f32 %v18298_v1, %v18367_v42  ;;  %v18259_v6 = vmul.f32 %v23931_v15, %v18185_v61  ;;  %v18191_v32 = vpop.xlane.xlu0 %18190  ;;  %v29188_v34 = vpack.c.bf16 %v18370_v38, %v18367_v42  ;;  %v29877_v36 = vand.u32 4294901760, %v29184_v13  ;;  %v24011_v38 = vld [vmem:[%s29550_s15 + $0xa0] sm:$0xff] }
0x361a   :  { %v23933_v48 = vpop.eup %23932 }
0x361b   :  { %30549 = vst [vmem:[#allocation48_spill] sm:$0xff] %v29188_v34  ;;  %v18301_v49 = vmul.f32 %v24010_v9, %v18259_v6  ;;  %v18257_v60 = vmul.f32 %v23933_v48, %v18182_v33  ;;  %22633 = vmatprep.subr.bf16.mxu1 %v29188_v34  ;;  %v18188_v58 = vpop.xlane.xlu1 %18187  ;;  %v29878_v27 = vand.u32 4294901760, %v29186_v8 }
0x361c   :  { %22635 = vmatpush3.bf16.msra.mxu1 %v29041_v50 }
0x361d   :  { %v18376_v61 = vand.u32 4294901760, %v18301_v49  ;;  %v18300_v1 = vmul.f32 %v24011_v38, %v18257_v60  ;;  %v18029_v42 = vpop.xlane.xlu0 %18028  ;;  %v29204_v33 = vpack.c.bf16 %v29877_v36, %v29878_v27 }
0x361e   :  { %23938 = vrcp.f32 %v18029_v42  ;;  %v24012_v42 = vld [vmem:[%s29550_s15 + $0xb8] sm:$0xff] }
0x361f   :  { %30550 = vst [vmem:[#allocation51_spill] sm:$0xff] %v29204_v33  ;;  %v29206_v15 = vsub.f32 %v18301_v49, %v18376_v61  ;;  %v18373_v6 = vand.u32 4294901760, %v18300_v1  ;;  %v18026_v48 = vpop.xlane.xlu1 %18025 }
0x3620   :  { %v23935_v9 = vpop.eup %23934  ;;  %23940 = vrcp.f32 %v18026_v48 }
0x3621   :  { %v29208_v12 = vsub.f32 %v18300_v1, %v18373_v6  ;;  %v18263_v2 = vmul.f32 %v23935_v9, %v18191_v32  ;;  %v18197_v21 = vpop.xlane.xlu0 %18196  ;;  %v29210_v51 = vpack.c.bf16 %v18376_v61, %v18373_v6  ;;  %v29880_v38 = vand.u32 4294901760, %v29206_v15  ;;  %v24013_v61 = vld [vmem:[%s29550_s15 + $0xb0] sm:$0xff] }
0x3622   :  { %v23937_v60 = vpop.eup %23936 }
0x3623   :  { %30551 = vst [vmem:[#allocation52_spill] sm:$0xff] %v29210_v51  ;;  %v18303_v36 = vmul.f32 %v24012_v42, %v18263_v2  ;;  %v18261_v49 = vmul.f32 %v23937_v60, %v18188_v58  ;;  %22637 = vmatprep.subr.bf16.mxu1 %v29210_v51  ;;  %v18194_v27 = vpop.xlane.xlu1 %18193  ;;  %v29879_v48 = vand.u32 4294901760, %v29208_v12 }
0x3624   :  { %22639 = vmatpush3.bf16.msra.mxu1 %v29063_v31 }
0x3625   :  { %v18382_v32 = vand.u32 4294901760, %v18303_v36  ;;  %v18302_v1 = vmul.f32 %v24013_v61, %v18261_v49  ;;  %v18035_v6 = vpop.xlane.xlu0 %18034  ;;  %v29226_v2 = vpack.c.bf16 %v29880_v38, %v29879_v48  ;;  %v24014_v48 = vld [vmem:[%s29550_s15 + $0xc8] sm:$0xff] }
0x3626   :  { %23942 = vrcp.f32 %v18035_v6 }
0x3627   :  { %30552 = vst [vmem:[#allocation9_spill] sm:$0xff] %v29226_v2  ;;  %v29228_v58 = vsub.f32 %v18303_v36, %v18382_v32  ;;  %v18379_v9 = vand.u32 4294901760, %v18302_v1  ;;  %v18032_v60 = vpop.xlane.xlu1 %18031 }
0x3628   :  { %v23939_v42 = vpop.eup %23938  ;;  %23944 = vrcp.f32 %v18032_v60 }
0x3629   :  { %v29230_v5 = vsub.f32 %v18302_v1, %v18379_v9  ;;  %v18267_v10 = vmul.f32 %v23939_v42, %v18197_v21  ;;  %v18203_v47 = vpop.xlane.xlu0 %18202  ;;  %v29232_v39 = vpack.c.bf16 %v18382_v32, %v18379_v9  ;;  %v29881_v61 = vand.u32 4294901760, %v29228_v58  ;;  %v24015_v32 = vld [vmem:[%s29550_s15 + $0xc0] sm:$0xff] }
0x362a   :  { %v23941_v49 = vpop.eup %23940 }
0x362b   :  { %30553 = vst [vmem:[#allocation7_spill] sm:$0xff] %v29232_v39  ;;  %v18305_v6 = vmul.f32 %v24014_v48, %v18267_v10  ;;  %v18265_v36 = vmul.f32 %v23941_v49, %v18194_v27  ;;  %22641 = vmatprep.subr.bf16.mxu1 %v29232_v39  ;;  %v18200_v38 = vpop.xlane.xlu1 %18199  ;;  %v29882_v60 = vand.u32 4294901760, %v29230_v5 }
0x362c   :  { %22643 = vmatpush3.bf16.msra.mxu1 %v29088_v25 }
0x362d   :  { %v18388_v21 = vand.u32 4294901760, %v18305_v6  ;;  %v18304_v1 = vmul.f32 %v24015_v32, %v18265_v36  ;;  %v18041_v9 = vpop.xlane.xlu0 %18040  ;;  %v29248_v10 = vpack.c.bf16 %v29881_v61, %v29882_v60 }
0x362e   :  { %23946 = vrcp.f32 %v18041_v9 }
0x362f   :  { %30554 = vst [vmem:[#allocation14_spill] sm:$0xff] %v29248_v10  ;;  %23948 = vrcp.f32 %v29114_v62  ;;  %v29251_v27 = vsub.f32 %v18305_v6, %v18388_v21  ;;  %v18385_v48 = vand.u32 4294901760, %v18304_v1  ;;  %v18038_v42 = vpop.xlane.xlu1 %18037  ;;  %v24016_v62 = vld [vmem:[%s29550_s15 + $0xd8] sm:$0xff] }
0x3630   :  { %v23943_v49 = vpop.eup %23942  ;;  %23950 = vrcp.f32 %v18038_v42 }
0x3631   :  { %23952 = vrcp.f32 %v29120_v57  ;;  %v29254_v2 = vsub.f32 %v18304_v1, %v18385_v48  ;;  %v18271_v36 = vmul.f32 %v23943_v49, %v18203_v47  ;;  %v18209_v32 = vpop.xlane.xlu0 %18208  ;;  %v29256_v33 = vpack.c.bf16 %v18388_v21, %v18385_v48  ;;  %v24017_v21 = vld [vmem:[%s29550_s15 + $0xd0] sm:$0xff] }
0x3632   :  { %v23945_v3 = vpop.eup %23944  ;;  %v29883_v61 = vand.u32 4294901760, %v29251_v27 }
0x3633   :  { %30555 = vst [vmem:[#allocation12_spill] sm:$0xff] %v29256_v33  ;;  %v18307_v6 = vmul.f32 %v24016_v62, %v18271_v36  ;;  %v18269_v9 = vmul.f32 %v23945_v3, %v18200_v38  ;;  %22645 = vmatprep.subr.bf16.mxu1 %v29256_v33  ;;  %v18206_v42 = vpop.xlane.xlu1 %18205  ;;  %v29884_v57 = vand.u32 4294901760, %v29254_v2 }
0x3634   :  { %22647 = vmatpush3.bf16.msra.mxu1 %v29110_v46  ;;  %v20108_v47 = vpop.f32.mrb[136].mxu1 }
0x3635   :  { %v18394_v1 = vand.u32 4294901760, %v18307_v6  ;;  %v18306_v48 = vmul.f32 %v24017_v21, %v18269_v9  ;;  %v18047_v49 = vpop.xlane.xlu0 %18046  ;;  %v20109_v60 = vpop.f32.mrb[137].mxu1  ;;  %v29272_v3 = vpack.c.bf16 %v29883_v61, %v29884_v57 }
0x3636   :  { %23954 = vrcp.f32 %v18047_v49  ;;  %v20110_v38 = vadd.f32 %v20109_v60, %v20108_v47 }
0x3637   :  { %30556 = vst [vmem:[#allocation20_spill] sm:$0xff] %v29272_v3  ;;  %23956 = vrcp.f32 %v29125_v56  ;;  %v29275_v36 = vsub.f32 %v18307_v6, %v18394_v1  ;;  %v18391_v62 = vand.u32 4294901760, %v18306_v48  ;;  %v18044_v10 = vpop.xlane.xlu1 %18043 }
0x3638   :  { %v23947_v14 = vpop.eup %23946  ;;  %23958 = vrcp.f32 %v18044_v10  ;;  %v29278_v9 = vadd.f32 %v20110_v38, %v29162_v54  ;;  %v24018_v10 = vld [vmem:[%s29550_s15 + $0xe8] sm:$0xff] }
0x3639   :  { %v23949_v21 = vpop.eup %23948  ;;  %23960 = vrcp.f32 %v29130_v22  ;;  %v29281_v18 = vsub.f32 %v18306_v48, %v18391_v62  ;;  %v18275_v61 = vmul.f32 %v23947_v14, %v18209_v32  ;;  %v18161_v57 = vpop.xlane.xlu0 %18160  ;;  %v29283_v49 = vpack.c.bf16 %v18394_v1, %v18391_v62  ;;  %v24019_v14 = vld [vmem:[%s29550_s15 + $0x68] sm:$0xff]  ;;  %v24020_v62 = vld [vmem:[%s29550_s15 + $0xe0] sm:$0xff] }
0x363a   :  { %v23951_v60 = vpop.eup %23950  ;;  %v18243_v56 = vmul.f32 %v23949_v21, %v18161_v57  ;;  %v29893_v6 = vand.u32 4294901760, %v29275_v36 }
0x363b   :  { %30557 = vst [vmem:[#allocation17_spill] sm:$0xff] %v29283_v49  ;;  %v23953_v47 = vpop.eup %23952  ;;  %v18309_v54 = vmul.f32 %v24018_v10, %v18275_v61  ;;  %v18273_v38 = vmul.f32 %v23951_v60, %v18206_v42  ;;  %22649 = vmatprep.subr.bf16.mxu1 %v29283_v49  ;;  %v18158_v22 = vpop.xlane.xlu1 %18157  ;;  %v29894_v48 = vand.u32 4294901760, %v29281_v18 }
0x363c   :  { %v18293_v32 = vmul.f32 %v24019_v14, %v18243_v56  ;;  %v18241_v57 = vmul.f32 %v23953_v47, %v18158_v22  ;;  %22651 = vmatpush3.bf16.msra.mxu1 %v29140_v17  ;;  %v24021_v56 = vld [vmem:[%s29550_s15 + $0x60] sm:$0xff]  ;;  %v30559_v14 = vand.u32 4294901760, %v29159_v63 }
0x363d   :  { %v18400_v1 = vand.u32 4294901760, %v18309_v54  ;;  %v18308_v61 = vmul.f32 %v24020_v62, %v18273_v38  ;;  %v18215_v42 = vpop.xlane.xlu0 %18214  ;;  %v29302_v21 = vpack.c.bf16 %v29893_v6, %v29894_v48  ;;  %v30561_v6 = vand.u32 4294901760, %v29164_v7 }
0x363e   :  { %v18352_v60 = vand.u32 4294901760, %v18293_v32  ;;  %v18292_v47 = vmul.f32 %v24021_v56, %v18241_v57  ;;  %v18547_v3 = vsub.f32 %v29159_v63, %v30559_v14  ;;  %v24022_v14 = vld [vmem:[%s29550_s15 + $0xf8] sm:$0xff] }
0x363f   :  { %30558 = vst [vmem:[#allocation55_spill] sm:$0xff] %v29302_v21  ;;  %v18397_v10 = vand.u32 4294901760, %v18308_v61  ;;  %v18212_v22 = vpop.xlane.xlu1 %18211  ;;  %v18540_v48 = vsub.f32 %v29164_v7, %v30561_v6  ;;  %v29323_v51 = vsub.f32 %v18309_v54, %v18400_v1 }
0x3640   :  { %v23955_v38 = vpop.eup %23954  ;;  %v18349_v62 = vand.u32 4294901760, %v18292_v47  ;;  %v29317_v25 = vsub.f32 %v18293_v32, %v18352_v60  ;;  %v18548_v31 = vand.u32 4294901760, %v18547_v3 }
0x3641   :  { %v23957_v17 = vpop.eup %23956  ;;  %v18279_v49 = vmul.f32 %v23955_v38, %v18215_v42  ;;  %v18167_v46 = vpop.xlane.xlu0 %18166  ;;  %v29310_v33 = vpack.c.bf16 %v18400_v1, %v18397_v10  ;;  %v29325_v6 = vsub.f32 %v18308_v61, %v18397_v10  ;;  %v18541_v54 = vand.u32 4294901760, %v18540_v48  ;;  %v24025_v61 = vld [vmem:[%s29550_s15 + $0x70] sm:$0xff] }
0x3642   :  { %v23959_v21 = vpop.eup %23958  ;;  %v29315_v24 = vpack.c.bf16 %v18352_v60, %v18349_v62  ;;  %v18247_v57 = vmul.f32 %v23957_v17, %v18167_v46  ;;  %v24023_v46 = vld [vmem:[%s29550_s15 + $0x78] sm:$0xff]  ;;  %v29331_v60 = vsub.f32 %v18292_v47, %v18349_v62  ;;  %v30564_v47 = vand.u32 4294901760, %v29184_v13 }
0x3643   :  { %30560 = vst [vmem:[#allocation58_spill] sm:$0xff] %v29310_v33  ;;  %v23961_v56 = vpop.eup %23960  ;;  %v18311_v39 = vmul.f32 %v24022_v14, %v18279_v49  ;;  %v18277_v42 = vmul.f32 %v23959_v21, %v18212_v22  ;;  %22653 = vmatprep.subr.bf16.mxu1 %v29310_v33  ;;  %v18164_v38 = vpop.xlane.xlu1 %18163  ;;  %v24024_v21 = vld [vmem:[%s29550_s15 + $0xf0] sm:$0xff]  ;;  %v30563_v22 = vand.u32 4294901760, %v29186_v8  ;;  %v30565_v48 = vand.u32 4294901760, %v29206_v15  ;;  %s24058_s15 = smov [#allocation4]  }
0x3644   :  { %30562 = vst [vmem:[#allocation10_spill] sm:$0xff] %v29315_v24  ;;  %v18295_v17 = vmul.f32 %v24023_v46, %v18247_v57  ;;  %v18245_v32 = vmul.f32 %v23961_v56, %v18164_v38  ;;  %22655 = vmatpush3.bf16.msra.mxu1 %v29315_v24  ;;  %v18561_v62 = vsub.f32 %v29184_v13, %v30564_v47  ;;  %v18518_v56 = vand.u32 4294901760, %v29317_v25  ;;  %s19187_s3 = sshll.u32 %s24058_s15, 4  ;;  %s19188_s3 = int_to_ptr.vmem [resolvable:$true] %s19187_s3 }
0x3645   :  { %v18406_v49 = vand.u32 4294901760, %v18311_v39  ;;  %v18310_v3 = vmul.f32 %v24024_v21, %v18277_v42  ;;  %v18554_v57 = vsub.f32 %v29186_v8, %v30563_v22  ;;  %v18575_v38 = vsub.f32 %v29206_v15, %v30565_v48  ;;  %s24026_s26 = scalar_lea.vmem %s19188_s3, 128  ;;  %p24031_p1 = scmp.lt.s32.totalorder %s19188_s3, %s19188_s3 }
0x3646   :  { %v18358_v1 = vand.u32 4294901760, %v18295_v17  ;;  %v18294_v10 = vmul.f32 %v24025_v61, %v18245_v32  ;;  %v18623_v21 = vand.u32 4294901760, %v29325_v6  ;;  %v18630_v61 = vand.u32 4294901760, %v29323_v51  ;;  %p24027_p0 = scmp.ne.s32.totalorder %s19188_s3, %s24026_s26  ;;  %p24032_p2 = scmp.lt.s32.totalorder %s24026_s26, %s24026_s26 }
0x3647   :  { %v29346_v14 = vsub.f32 %v18311_v39, %v18406_v49  ;;  %v18403_v42 = vand.u32 4294901760, %v18310_v3  ;;  %v18511_v22 = vand.u32 4294901760, %v29331_v60  ;;  %v22660_v40 = vpack.c.bf16 %v18548_v31, %v18541_v54  ;;  %v30572_v31 = vld [vmem:[#allocation61_spill] sm:$0xff] }
0x3648   :  { %v29351_v46 = vsub.f32 %v18295_v17, %v18358_v1  ;;  %v18355_v32 = vand.u32 4294901760, %v18294_v10  ;;  %v30567_v17 = vand.u32 4294901760, %v29208_v12  ;;  %v18555_v28 = vand.u32 4294901760, %v18554_v57  ;;  %p24033_p3 = por %p24032_p2, %p24031_p1 }
0x3649   :  { %v29356_v24 = vsub.f32 %v18310_v3, %v18403_v42  ;;  %v29358_v47 = vpack.c.bf16 %v18406_v49, %v18403_v42  ;;  %v18644_v39 = vand.u32 4294901760, %v29346_v14  ;;  %v18562_v3 = vand.u32 4294901760, %v18561_v62 }
0x364a   :  { %v18532_v33 = vand.u32 4294901760, %v29351_v46  ;;  %v29362_v50 = vpack.c.bf16 %v18358_v1, %v18355_v32  ;;  %v29364_v48 = vsub.f32 %v18294_v10, %v18355_v32  ;;  %v18568_v34 = vsub.f32 %v29208_v12, %v30567_v17  ;;  %p24034_p4 = pnand %p24033_p3, %p24027_p0 }
0x364b   :  { %22657 = vmatprep.subr.bf16.mxu1 %v29358_v47  ;;  %v18637_v49 = vand.u32 4294901760, %v29356_v24  ;;  %v29373_v59 = vpack.c.bf16 %v18630_v61, %v18623_v21  ;;  %v29375_v1 = vpack.c.bf16 %v18518_v56, %v18511_v22  ;;  %v18576_v17 = vand.u32 4294901760, %v18575_v38 }
0x364c   :  { %30566 = vst [vmem:[#allocation60_spill] sm:$0xff] %v29362_v50  ;;  %v18525_v42 = vand.u32 4294901760, %v29364_v48  ;;  %22659 = vmatpush3.bf16.msra.mxu1 %v29362_v50  ;;  %v18569_v32 = vand.u32 4294901760, %v18568_v34  ;;  %v22664_v54 = vpack.c.bf16 %v18562_v3, %v18555_v28  ;;  %v30573_v57 = vand.u32 4294901760, %v29230_v5 }
0x364d   :  { %30568 = vst [vmem:[#allocation62_spill] sm:$0xff] %v29373_v59  ;;  %22661 = vmatprep.subr.bf16.mxu1 %v22660_v40  ;;  %30569 = vst [vmem:[#allocation15_spill] sm:$0xff] %v29375_v1  ;;  %v29377_v10 = vpack.c.bf16 %v18644_v39, %v18637_v49  ;;  %v30574_v50 = vand.u32 4294901760, %v29228_v58  ;;  %v30576_v3 = vand.u32 4294901760, %v29251_v27 }
0x364e   :  { %v29379_v16 = vpack.c.bf16 %v18532_v33, %v18525_v42  ;;  %v18582_v62 = vsub.f32 %v29230_v5, %v30573_v57  ;;  %v22668_v40 = vpack.c.bf16 %v18576_v17, %v18569_v32  ;;  %v30578_v32 = vand.u32 4294901760, %v29275_v36 }
0x364f   :  { %30570 = vst [vmem:[#allocation63_spill] sm:$0xff] %v29377_v10  ;;  %18419 = vmatmul.mubr.f32.vlgmr.msra.gmra.mrb[144].mxu1 %v30572_v31  ;;  %v18589_v59 = vsub.f32 %v29228_v58, %v30574_v50  ;;  %v18603_v31 = vsub.f32 %v29251_v27, %v30576_v3 }
0x3650   :  { %30571 = vst [vmem:[#allocation21_spill] sm:$0xff] %v29379_v16  ;;  %22663 = vmatpush3.bf16.msra.mxu1 %v29031_v41  ;;  %18649 = vmatprep.mubr.f32.mxu1 %v30511_v23  ;;  %v18583_v34 = vand.u32 4294901760, %v18582_v62  ;;  %v30575_v16 = vand.u32 4294901760, %v29254_v2  ;;  %v30577_v41 = vand.u32 4294901760, %v29281_v18  ;;  %v18624_v23 = vsub.f32 %v29325_v6, %v18623_v21 }
0x3651   :  { %22665 = vmatprep.subr.bf16.mxu1 %v22664_v54  ;;  %v18590_v38 = vand.u32 4294901760, %v18589_v59  ;;  %v18617_v59 = vsub.f32 %v29275_v36, %v30578_v32  ;;  %v18604_v10 = vand.u32 4294901760, %v18603_v31  ;;  %v18645_v31 = vsub.f32 %v29346_v14, %v18644_v39 }
0x3652   :  { %v18596_v28 = vsub.f32 %v29254_v2, %v30575_v16  ;;  %v18610_v54 = vsub.f32 %v29281_v18, %v30577_v41  ;;  %v18631_v41 = vsub.f32 %v29323_v51, %v18630_v61  ;;  %v18533_v21 = vsub.f32 %v29351_v46, %v18532_v33 }
0x3653   :  { %v22672_v62 = vpack.c.bf16 %v18590_v38, %v18583_v34  ;;  %v18512_v34 = vsub.f32 %v29331_v60, %v18511_v22  ;;  %v18526_v61 = vsub.f32 %v29364_v48, %v18525_v42  ;;  %v22692_v33 = vpack.c.bf16 %v29159_v63, %v29164_v7  ;;  %v30580_v42 = vld [vmem:[#allocation103_spill] sm:$0xff] }
0x3654   :  { %22667 = vmatpush3.bf16.msra.mxu1 %v29053_v37  ;;  %v20143_v57 = vpop.f32.mrb[138].mxu1  ;;  %v18597_v16 = vand.u32 4294901760, %v18596_v28  ;;  %v18611_v37 = vand.u32 4294901760, %v18610_v54  ;;  %v18625_v28 = vand.u32 4294901760, %v18624_v23  ;;  %v22696_v39 = vpack.c.bf16 %v29184_v13, %v29186_v8 }
0x3655   :  { %22669 = vmatprep.subr.bf16.mxu1 %v22668_v40  ;;  %v20144_v50 = vpop.f32.mrb[139].mxu1  ;;  %v18618_v40 = vand.u32 4294901760, %v18617_v59  ;;  %v18527_v22 = vand.u32 4294901760, %v18526_v61  ;;  %v22700_v32 = vpack.c.bf16 %v29206_v15, %v29208_v12  ;;  %v30581_v63 = vpack.c.bf16 %v29039_v44, %v29043_v55  ;;  %v30607_v61 = vld [vmem:[#allocation56_spill] sm:$0xff] }
0x3656   :  { %v20145_v17 = vadd.f32 %v20144_v50, %v20143_v57  ;;  %v22676_v1 = vpack.c.bf16 %v18604_v10, %v18597_v16  ;;  %v18519_v57 = vsub.f32 %v29317_v25, %v18518_v56  ;;  %v18646_v50 = vand.u32 4294901760, %v18645_v31  ;;  %v29468_v16 = vpop.permute.xlu0 %17567  ;;  %v30605_v31 = vld [vmem:[#allocation60_spill] sm:$0xff] }
0x3657   :  { %v22680_v38 = vpack.c.bf16 %v18618_v40, %v18611_v37  ;;  %v22704_v13 = vpack.c.bf16 %v29228_v58, %v29230_v5  ;;  %v30583_v12 = vpack.c.bf16 %v29083_v43, %v29090_v45  ;;  %v22712_v44 = vpack.c.bf16 %v29275_v36, %v29281_v18  ;;  %v30586_v5 = vld [vmem:[#allocation104_spill] sm:$0xff]  ;;  %v30590_v18 = vld [vmem:[#allocation83_spill] sm:$0xff]  ;;  %v30598_v37 = vld [vmem:[#allocation82_spill] sm:$0xff] }
0x3658   :  { %22671 = vmatpush3.bf16.msra.mxu1 %v29078_v11  ;;  %v17279_v3 = vadd.f32 %v20145_v17, %v29278_v9  ;;  %v18632_v11 = vand.u32 4294901760, %v18631_v41  ;;  %v18638_v9 = vsub.f32 %v29356_v24, %v18637_v49  ;;  %v18534_v49 = vand.u32 4294901760, %v18533_v21  ;;  %v30592_v58 = vld [vmem:[#allocation48_spill] sm:$0xff]  ;;  %v30606_v21 = vld [vmem:[#allocation107_spill] sm:$0xff] }
0x3659   :  { %22673 = vmatprep.subr.bf16.mxu1 %v22672_v62  ;;  %v30584_v55 = vpack.c.bf16 %v29107_v0, %v29112_v19  ;;  %v22718_v43 = vpack.c.bf16 %v29317_v25, %v29331_v60  ;;  %v22720_v45 = vpack.c.bf16 %v29346_v14, %v29356_v24  ;;  %v22722_v0 = vpack.c.bf16 %v29351_v46, %v29364_v48  ;;  %v30588_v19 = vld [vmem:[#allocation106_spill] sm:$0xff]  ;;  %v30593_v25 = vld [vmem:[#allocation87_spill] sm:$0xff]  ;;  %v30594_v24 = vld [vmem:[#allocation52_spill] sm:$0xff]  ;;  %v29463_v60 = vpop.permute.xlu1 %17560 }
0x365a   :  { %v22684_v10 = vpack.c.bf16 %v18632_v11, %v18625_v28  ;;  %v18639_v56 = vand.u32 4294901760, %v18638_v9  ;;  %v30595_v14 = vld [vmem:[#allocation91_spill] sm:$0xff]  ;;  %v30599_v41 = vld [vmem:[#allocation12_spill] sm:$0xff]  ;;  %v30603_v11 = vld [vmem:[#allocation58_spill] sm:$0xff] }
0x365b   :  { %v30596_v48 = vld [vmem:[#allocation7_spill] sm:$0xff]  ;;  %v30604_v9 = vld [vmem:[#allocation10_spill] sm:$0xff] }
0x365c   :  { %22675 = vmatpush3.bf16.msra.mxu1 %v29102_v29  ;;  %v18513_v29 = vand.u32 4294901760, %v18512_v34  ;;  %v22688_v54 = vpack.c.bf16 %v18646_v50, %v18639_v56  ;;  %v30600_v34 = vld [vmem:[#allocation98_spill] sm:$0xff]  ;;  %v30602_v28 = vld [vmem:[#allocation79_spill] sm:$0xff]  ;;  %v30612_v50 = vld [vmem:[#allocation9_spill] sm:$0xff] }
0x365d   :  { %22677 = vmatprep.subr.bf16.mxu1 %v22676_v1  ;;  %v18520_v1 = vand.u32 4294901760, %v18519_v57  ;;  %v30611_v56 = vld [vmem:[#allocation90_spill] sm:$0xff] }
0x365f   :  { %v22686_v23 = vpack.c.bf16 %v18520_v1, %v18513_v29  ;;  %v30608_v29 = vld [vmem:[#allocation86_spill] sm:$0xff] }
0x3660   :  { %22679 = vmatpush3.bf16.msra.mxu1 %v29132_v53  ;;  %v22690_v53 = vpack.c.bf16 %v18534_v49, %v18527_v22  ;;  %v30609_v1 = vld [vmem:[#allocation102_spill] sm:$0xff]  ;;  %v30615_v49 = vld [vmem:[#allocation97_spill] sm:$0xff] }
0x3661   :  { %22681 = vmatprep.subr.bf16.mxu1 %v22680_v38  ;;  %v30601_v38 = vld [vmem:[#allocation17_spill] sm:$0xff]  ;;  %v30614_v22 = vld [vmem:[#allocation14_spill] sm:$0xff] }
0x3664   :  { %22683 = vmatpush3.bf16.msra.mxu1 %v29151_v4  ;;  %v30579_v4 = vpack.c.bf16 %v29011_v30, %v29015_v52  ;;  %v30582_v30 = vpack.c.bf16 %v29061_v26, %v29065_v20  ;;  %v22708_v52 = vpack.c.bf16 %v29251_v27, %v29254_v2  ;;  %v22716_v26 = vpack.c.bf16 %v29323_v51, %v29325_v6  ;;  %v30585_v20 = vld [vmem:[#allocation19_spill] sm:$0xff]  ;;  %v30589_v51 = vld [vmem:[#allocation50_spill] sm:$0xff]  ;;  %v30591_v2 = vld [vmem:[#allocation44_spill] sm:$0xff] }
0x3665   :  { %22685 = vmatprep.subr.bf16.mxu1 %v22684_v10  ;;  %v30587_v15 = vpack.c.bf16 %v30585_v20, %v30586_v5  ;;  %v30610_v10 = vld [vmem:[#allocation51_spill] sm:$0xff] }
0x3668   :  { %22687 = vmatpush3.bf16.msra.mxu1 %v22686_v23  ;;  %v30613_v23 = vld [vmem:[#allocation94_spill] sm:$0xff] }
0x3669   :  { %22689 = vmatprep.subr.bf16.mxu1 %v22688_v54  ;;  %v30616_v54 = vld [vmem:[#allocation20_spill] sm:$0xff] }
0x366c   :  { %22691 = vmatpush3.bf16.msra.mxu1 %v22690_v53  ;;  %v30617_v53 = vld [vmem:[#allocation101_spill] sm:$0xff] }
0x366d   :  { %22693 = vmatprep.subr.bf16.mxu1 %v22692_v33  ;;  %v30618_v33 = vld [vmem:[#allocation55_spill] sm:$0xff] }
0x366f   :  { %18651 = vmatmul.mubr.f32.vlgmr.msra.gmra.mrb[146].mxu1 %v28217_v35 }
0x3670   :  { %22695 = vmatpush3.bf16.msra.mxu1 %v30579_v4  ;;  %18786 = vmatprep.mubr.f32.mxu1 %v30580_v42  ;;  %v30620_v4 = vld [vmem:[#allocation62_spill] sm:$0xff]  ;;  %v30621_v42 = vld [vmem:[#allocation15_spill] sm:$0xff] }
0x3671   :  { %22697 = vmatprep.subr.bf16.mxu1 %v22696_v39  ;;  %v30619_v39 = vld [vmem:[#allocation105_spill] sm:$0xff] }
0x3674   :  { %22699 = vmatpush3.bf16.msra.mxu1 %v30581_v63  ;;  %v20178_v7 = vpop.f32.mrb[140].mxu1  ;;  %v30623_v63 = vld [vmem:[#allocation21_spill] sm:$0xff] }
0x3675   :  { %22701 = vmatprep.subr.bf16.mxu1 %v22700_v32  ;;  %v20179_v59 = vpop.f32.mrb[141].mxu1  ;;  %v30622_v32 = vld [vmem:[#allocation63_spill] sm:$0xff] }
0x3676   :  { %v20180_v17 = vadd.f32 %v20179_v59, %v20178_v7 }
0x3678   :  { %v17447_v8 = vadd.f32 %v20180_v17, %v17279_v3  ;;  %22703 = vmatpush3.bf16.msra.mxu1 %v30582_v30  ;;  %v30597_v3 = vld [vmem:[#allocation95_spill] sm:$0xff] }
0x3679   :  { %22705 = vmatprep.subr.bf16.mxu1 %v22704_v13 }
0x367c   :  { %22707 = vmatpush3.bf16.msra.mxu1 %v30583_v12 }
0x367d   :  { %22709 = vmatprep.subr.bf16.mxu1 %v22708_v52 }
0x3680   :  { %22711 = vmatpush3.bf16.msra.mxu1 %v30584_v55 }
0x3681   :  { %22713 = vmatprep.subr.bf16.mxu1 %v22712_v44 }
0x3684   :  { %22715 = vmatpush3.bf16.msra.mxu1 %v30587_v15 }
0x3685   :  { %22717 = vmatprep.subr.bf16.mxu1 %v22716_v26 }
0x3688   :  { %22719 = vmatpush3.bf16.msra.mxu1 %v22718_v43 }
0x3689   :  { %22721 = vmatprep.subr.bf16.mxu1 %v22720_v45 }
0x368c   :  { %22723 = vmatpush3.bf16.msra.mxu1 %v22722_v0 }
0x368d   :  { %22725 = vmatprep.subr.bf16.mxu1 %v30588_v19 }
0x368f   :  { %18789 = vmatmul.mubr.f32.vlgmr.msra.gmra.mrb[148].mxu1 %v30589_v51 }
0x3690   :  { %22727 = vmatpush3.bf16.msra.mxu1 %v30590_v18  ;;  %18893 = vmatprep.mubr.f32.mxu1 %v30591_v2 }
0x3691   :  { %22729 = vmatprep.subr.bf16.mxu1 %v30592_v58 }
0x3694   :  { %22731 = vmatpush3.bf16.msra.mxu1 %v30593_v25  ;;  %v20213_v27 = vpop.f32.mrb[142].mxu1 }
0x3695   :  { %22733 = vmatprep.subr.bf16.mxu1 %v30594_v24  ;;  %v20214_v36 = vpop.f32.mrb[143].mxu1 }
0x3696   :  { %v20215_v6 = vadd.f32 %v20214_v36, %v20213_v27 }
0x3698   :  { %22735 = vmatpush3.bf16.msra.mxu1 %v30595_v14  ;;  %v17551_v46 = vadd.f32 %v20215_v6, %v17447_v8 }
0x3699   :  { %22737 = vmatprep.subr.bf16.mxu1 %v30596_v48 }
0x369a   :  { %v17563_v62 = vmul.f32 %v29463_v60, %v17551_v46 }
0x369c   :  { %22739 = vmatpush3.bf16.msra.mxu1 %v30597_v3  ;;  %v17564_v40 = vadd.f32 %v17563_v62, %v30598_v37 }
0x369d   :  { %22741 = vmatprep.subr.bf16.mxu1 %v30599_v41 }
0x369e   :  { %v17570_v57 = vadd.f32 %v29468_v16, %v17564_v40 }
0x36a0   :  { %17572 = vst.msk [vmem:[#allocation4] sm:$0xf] %vm17571_vm10, %v17570_v57  ;;  %22743 = vmatpush3.bf16.msra.mxu1 %v30600_v34 }
0x36a1   :  { %22745 = vmatprep.subr.bf16.mxu1 %v30601_v38 }
0x36a4   :  { %22747 = vmatpush3.bf16.msra.mxu1 %v30602_v28 }
0x36a5   :  { %22749 = vmatprep.subr.bf16.mxu1 %v30603_v11 }
0x36a8   :  { %22751 = vmatpush3.bf16.msra.mxu1 %v30604_v9 }
0x36a9   :  { %22753 = vmatprep.subr.bf16.mxu1 %v29358_v47 }
0x36ac   :  { %22755 = vmatpush3.bf16.msra.mxu1 %v30605_v31 }
0x36ad   :  { %22757 = vmatprep.subr.bf16.mxu1 %v30606_v21 }
0x36af   :  { %18897 = vmatmul.mubr.f32.vlgmr.msra.gmra.mrb[150].mxu1 %v30607_v61 }
0x36b0   :  { %22759 = vmatpush3.bf16.msra.mxu1 %v30608_v29  ;;  %19063 = vmatprep.mubr.f32.mxu1 %v30609_v1 }
0x36b1   :  { %22761 = vmatprep.subr.bf16.mxu1 %v30610_v10 }
0x36b4   :  { %22763 = vmatpush3.bf16.msra.mxu1 %v30611_v56 }
0x36b5   :  { %22765 = vmatprep.subr.bf16.mxu1 %v30612_v50 }
0x36b8   :  { %22767 = vmatpush3.bf16.msra.mxu1 %v30613_v23 }
0x36b9   :  { %22769 = vmatprep.subr.bf16.mxu1 %v30614_v22 }
0x36bc   :  { %22771 = vmatpush3.bf16.msra.mxu1 %v30615_v49 }
0x36bd   :  { %22773 = vmatprep.subr.bf16.mxu1 %v30616_v54 }
0x36c0   :  { %22775 = vmatpush3.bf16.msra.mxu1 %v30617_v53 }
0x36c1   :  { %22777 = vmatprep.subr.bf16.mxu1 %v30618_v33 }
0x36c4   :  { %22779 = vmatpush3.bf16.msra.mxu1 %v30619_v39 }
0x36c5   :  { %22781 = vmatprep.subr.bf16.mxu1 %v30620_v4 }
0x36c8   :  { %22783 = vmatpush3.bf16.msra.mxu1 %v30621_v42 }
0x36c9   :  { %22785 = vmatprep.subr.bf16.mxu1 %v30622_v32 }
0x36cc   :  { %22787 = vmatpush3.bf16.msra.mxu1 %v30623_v63 }
0x36cd   :  { %22789 = vmatprep.subr.bf16.mxu1 %v30588_v19 }
0x36cf   :  { %19065 = vmatmul.mubr.f32.vlgmr.msra.gmra.mrb[152].mxu1 %v28217_v35 }
0x36d0   :  { %22791 = vmatpush3.bf16.msra.mxu1 %v30590_v18  ;;  %19167 = vmatprep.mubr.f32.mxu1 %v30609_v1 }
0x36d1   :  { %22793 = vmatprep.subr.bf16.mxu1 %v30592_v58  ;;  %v19176_v58 = vrot.slane %v30598_v37, 4 }
0x36d4   :  { %22795 = vmatpush3.bf16.msra.mxu1 %v30593_v25 }
0x36d5   :  { %22797 = vmatprep.subr.bf16.mxu1 %v30594_v24 }
0x36d8   :  { %22799 = vmatpush3.bf16.msra.mxu1 %v30595_v14 }
0x36d9   :  { %22801 = vmatprep.subr.bf16.mxu1 %v30596_v48 }
0x36dc   :  { %22803 = vmatpush3.bf16.msra.mxu1 %v30597_v3 }
0x36dd   :  { %22805 = vmatprep.subr.bf16.mxu1 %v30599_v41 }
0x36e0   :  { %22807 = vmatpush3.bf16.msra.mxu1 %v30600_v34 }
0x36e1   :  { %22809 = vmatprep.subr.bf16.mxu1 %v30601_v38 }
0x36e4   :  { %22811 = vmatpush3.bf16.msra.mxu1 %v30602_v28 }
0x36e5   :  { %22813 = vmatprep.subr.bf16.mxu1 %v30603_v11 }
0x36e8   :  { %22815 = vmatpush3.bf16.msra.mxu1 %v30604_v9 }
0x36e9   :  { %22817 = vmatprep.subr.bf16.mxu1 %v29358_v47 }
0x36ec   :  { %22819 = vmatpush3.bf16.msra.mxu1 %v30605_v31 }
0x36ef   :  { %19169 = vmatmul.mubr.f32.vlgmr.msra.gmra.mrb[154].mxu1 %v28217_v35 }
0x3722   :  { %v20248_v7 = vpop.f32.mrb[144].mxu1 }
0x3723   :  { %v20249_v59 = vpop.f32.mrb[145].mxu1 }
0x3724   :  { %v20250_v17 = vadd.f32 %v20249_v59, %v20248_v7 }
0x3742   :  { %v20283_v13 = vpop.f32.mrb[146].mxu1 }
0x3743   :  { %v20284_v8 = vpop.f32.mrb[147].mxu1 }
0x3744   :  { %v20285_v30 = vadd.f32 %v20284_v8, %v20283_v13 }
0x3746   :  { %v18653_v52 = vadd.f32 %v20285_v30, %v20250_v17 }
0x3762   :  { %v20318_v12 = vpop.f32.mrb[148].mxu1 }
0x3763   :  { %v20319_v44 = vpop.f32.mrb[149].mxu1 }
0x3764   :  { %v20320_v55 = vadd.f32 %v20319_v44, %v20318_v12 }
0x3766   :  { %v18791_v26 = vadd.f32 %v20320_v55, %v18653_v52 }
0x3782   :  { %v20353_v20 = vpop.f32.mrb[150].mxu1 }
0x3783   :  { %v20354_v5 = vpop.f32.mrb[151].mxu1 }
0x3784   :  { %v20355_v15 = vadd.f32 %v20354_v5, %v20353_v20 }
0x3786   :  { %v18899_v43 = vadd.f32 %v20355_v15, %v18791_v26 }
0x37a2   :  { %v20388_v47 = vpop.f32.mrb[152].mxu1 }
0x37a3   :  { %v20389_v45 = vpop.f32.mrb[153].mxu1 }
0x37a4   :  { %v20390_v0 = vadd.f32 %v20389_v45, %v20388_v47 }
0x37a6   :  { %v19067_v19 = vadd.f32 %v20390_v0, %v18899_v43 }
0x37c2   :  { %v20423_v35 = vpop.f32.mrb[154].mxu1 }
0x37c3   :  { %v20424_v51 = vpop.f32.mrb[155].mxu1 }
0x37c4   :  { %v20425_v18 = vadd.f32 %v20424_v51, %v20423_v35 }
0x37c6   :  { %v19171_v2 = vadd.f32 %v20425_v18, %v19067_v19 }
0x37c8   :  { %v19174_v25 = vmul.f32 %v19171_v2, %v29463_v60 }
0x37ca   :  { %v19178_v27 = vadd.f32 %v19176_v58, %v19174_v25 }
0x37cc   :  { %v19179_v24 = vadd.f32 %v19178_v27, %v29468_v16 }
0x37ce   :  { %19180 = vst.msk [vmem:[#allocation4 + $0x4] sm:$0xf] %vm17571_vm10, %v19179_v24 }
0x37cf   :  { %24037 = shalt.err (!%p24034_p4)
}
0x37d0   :  { %s24038_s6 = scalar_lea.hbm %s29555_s20, 128 }
0x37d1   :  { %p24039_p5 = scmp.ne.s32.totalorder %s29555_s20, %s24038_s6  ;;  %p24042_p6 = scmp.lt.u32.totalorder %s24038_s6, %s29555_s20 }
0x37d3   :  { %p24044_p7 = pnand %p24042_p6, %p24039_p5 }
0x37d5   :  { %24047 = shalt.err (!%p24044_p7)
}
0x37d6   :  { %19190 = dma.vmem_to_hbm [thread:$0]  %s19188_s3, 128, %s29555_s20, [#allocation5]  }
0x37d7   :  { %24048 = dma.done.wait [#allocation5], 128  }
0x37d8   :  { %24049 = vsyncadd [#allocation5], 4294967168 }
0x37d9   :  { %19194 = vsyncpa [#allocation5], 1 }

</bundles_post_ra>
